<compile_context>
chip_gen: v7x
topology: tpu7x:2x2x1
jax: 0.10.0
libtpu: 0.0.40
codegen_flags: <defaults>
</compile_context>

<pallas_src>
import math
import functools
import numpy as np

import jax
import jax.numpy as jnp
from jax import lax
from jax.experimental import pallas as pl
from jax.experimental.pallas import tpu as pltpu

EPS = 1e-6  # bn_eps from the module (LayerNorm eps)


# ---------------------------------------------------------------------------
# Fused Pallas kernel
# ---------------------------------------------------------------------------
def _layernorm(x, gamma, beta):
    mu = jnp.mean(x, axis=-1, keepdims=True)
    var = jnp.mean(jnp.square(x - mu), axis=-1, keepdims=True)
    return (x - mu) * lax.rsqrt(var + EPS) * gamma + beta


def _swin_block_kernel(mask_ref, x_ref, g1_ref, b1_ref, wqkv_ref, bqkv_ref,
                       rpb_ref, wproj_ref, bproj_ref, g2_ref, b2_ref,
                       w1_ref, bias1_ref, w2_ref, bias2_ref, o_ref,
                       *, num_heads, scale):
    WT, N, C = x_ref.shape          # WT windows of N tokens, C channels
    hd = C // num_heads
    R = WT * N
    bf16 = jnp.bfloat16

    # windowed shortcut (pre-norm), f32
    x = x_ref[...].astype(jnp.float32).reshape(R, C)

    # ---- norm1 (f32) ----
    xn = _layernorm(x, g1_ref[...], b1_ref[...])

    # ---- fused qkv projection: one bf16 matmul, f32 accumulate ----
    qkv = jnp.dot(xn.astype(bf16), wqkv_ref[...],
                  preferred_element_type=jnp.float32) + bqkv_ref[...]   # (R, 3C)

    # ---- split heads into a (num_heads*WT) batch dim ----
    def split(base):
        parts = [qkv[:, base + h * hd: base + (h + 1) * hd].reshape(WT, N, hd)
                 for h in range(num_heads)]
        return jnp.stack(parts, axis=0).reshape(num_heads * WT, N, hd)

    q = split(0)          # (H*WT, N, hd)
    k = split(C)
    v = split(2 * C)

    # fold qk scale into q (smaller tensor than the score matrix)
    q = q * scale

    # ---- attention scores, batched over (head, window) ----
    s = jnp.einsum('bnd,bmd->bnm', q.astype(bf16), k.astype(bf16),
                   preferred_element_type=jnp.float32)                  # (H*WT, N, N)
    s = s.reshape(num_heads, WT, N, N)
    s = s + rpb_ref[...][:, None, :, :] + mask_ref[...][None, :, :, :]

    # ---- softmax (f32; exp on EUP, approx reciprocal on EUP) ----
    s = s - jnp.max(s, axis=-1, keepdims=True)
    e = jnp.exp(s)
    p = e * pl.reciprocal(jnp.sum(e, axis=-1, keepdims=True), approx=True)

    av = jnp.einsum('bnm,bmd->bnd',
                    p.reshape(num_heads * WT, N, N).astype(bf16),
                    v.astype(bf16),
                    preferred_element_type=jnp.float32)                 # (H*WT, N, hd)
    av = av.reshape(num_heads, WT, N, hd)
    av = jnp.concatenate([av[h].reshape(R, hd) for h in range(num_heads)],
                         axis=-1)                                        # (R, C)

    y = jnp.dot(av.astype(bf16), wproj_ref[...],
                preferred_element_type=jnp.float32) + bproj_ref[...]

    # ---- residual 1 ----
    x2 = x + y

    # ---- norm2 + MLP (exact GELU, matches nn.GELU) + residual 2 ----
    x2n = _layernorm(x2, g2_ref[...], b2_ref[...])
    h1 = jnp.dot(x2n.astype(bf16), w1_ref[...],
                 preferred_element_type=jnp.float32) + bias1_ref[...]
    h1 = 0.5 * h1 * (1.0 + lax.erf(h1 * (1.0 / math.sqrt(2.0))))
    h2 = jnp.dot(h1.astype(bf16), w2_ref[...],
                 preferred_element_type=jnp.float32) + bias2_ref[...]

    o_ref[...] = (x2 + h2).reshape(WT, N, C).astype(o_ref.dtype)


# ---------------------------------------------------------------------------
# Pallas wrapper
# ---------------------------------------------------------------------------
def swin_block_pallas(x_windows, attn_mask, params, *, num_heads):
    """x_windows: (B*nW, N, C) in (shifted) window order.  attn_mask: (nW, N, N)."""
    Bw, N, C = x_windows.shape
    nW = attn_mask.shape[0]
    WT = nW                          # windows per grid step (one image per step)
    assert Bw % WT == 0 and nW % WT == 0
    hidden = params["w1"].shape[1]
    scale = (C // num_heads) ** (-0.5)
    n_mask_blocks = nW // WT

    if n_mask_blocks == 1:
        mask_map = lambda i: (0, 0, 0)      # constant -> fetched once, stays resident
    else:
        mask_map = lambda i: (i % n_mask_blocks, 0, 0)

    kernel = functools.partial(_swin_block_kernel, num_heads=num_heads, scale=scale)
    const2 = lambda i: (0, 0)

    return pl.pallas_call(
        kernel,
        out_shape=jax.ShapeDtypeStruct((Bw, N, C), x_windows.dtype),
        grid=(Bw // WT,),
        in_specs=[
            pl.BlockSpec((WT, N, N), mask_map),                     # attn mask
            pl.BlockSpec((WT, N, C), lambda i: (i, 0, 0)),          # x windows
            pl.BlockSpec((1, C), const2),                           # norm1 gamma
            pl.BlockSpec((1, C), const2),                           # norm1 beta
            pl.BlockSpec((C, 3 * C), const2),                       # qkv weight^T (bf16)
            pl.BlockSpec((1, 3 * C), const2),                       # qkv bias
            pl.BlockSpec((num_heads, N, N), lambda i: (0, 0, 0)),   # rel pos bias
            pl.BlockSpec((C, C), const2),                           # proj weight^T (bf16)
            pl.BlockSpec((1, C), const2),                           # proj bias
            pl.BlockSpec((1, C), const2),                           # norm2 gamma
            pl.BlockSpec((1, C), const2),                           # norm2 beta
            pl.BlockSpec((C, hidden), const2),                      # fc1 weight^T (bf16)
            pl.BlockSpec((1, hidden), const2),                      # fc1 bias
            pl.BlockSpec((hidden, C), const2),                      # fc2 weight^T (bf16)
            pl.BlockSpec((1, C), const2),                           # fc2 bias
        ],
        out_specs=pl.BlockSpec((WT, N, C), lambda i: (i, 0, 0)),
        compiler_params=pltpu.CompilerParams(dimension_semantics=("parallel",)),
    )(attn_mask, x_windows, params["g1"], params["b1"], params["wqkv"],
      params["bqkv"], params["rpb"], params["wproj"], params["bproj"],
      params["g2"], params["b2"], params["w1"], params["bias1"],
      params["w2"], params["bias2"])


# ---------------------------------------------------------------------------
# Glue: shift + window partition/reverse (per-token permutations only)
# ---------------------------------------------------------------------------
def swin_block_forward(x, params, attn_mask, *, H, W, window_size, shift_size,
                       num_heads):
    B, L, C = x.shape
    assert L == H * W
    ws = window_size
    nH, nWw = H // ws, W // ws
    nW = nH * nWw
    N = ws * ws

    xr = x.reshape(B, H, W, C)
    if shift_size > 0:
        xr = jnp.roll(xr, shift=(-shift_size, -shift_size), axis=(1, 2))
    # window_partition -> (B*nW, N, C)
    xw = xr.reshape(B, nH, ws, nWw, ws, C).transpose(0, 1, 3, 2, 4, 5)
    xw = xw.reshape(B * nW, N, C)

    out_w = swin_block_pallas(xw, attn_mask, params, num_heads=num_heads)

    # window_reverse + unshift
    out = out_w.reshape(B, nH, nWw, ws, ws, C).transpose(0, 1, 3, 2, 4, 5)
    out = out.reshape(B, H, W, C)
    if shift_size > 0:
        out = jnp.roll(out, shift=(shift_size, shift_size), axis=(1, 2))
    return out.reshape(B, L, C)


# ---------------------------------------------------------------------------
# Pure-JAX reference (f32) mirroring the PyTorch module, for validation
# ---------------------------------------------------------------------------
def swin_block_reference(x, params, attn_mask, *, H, W, window_size, shift_size,
                         num_heads):
    B, L, C = x.shape
    ws = window_size
    N = ws * ws
    nH, nWw = H // ws, W // ws
    nW = nH * nWw
    hd = C // num_heads
    scale = hd ** (-0.5)

    def ln(t, g, b):
        mu = t.mean(-1, keepdims=True)
        var = ((t - mu) ** 2).mean(-1, keepdims=True)
        return (t - mu) / jnp.sqrt(var + EPS) * g + b

    shortcut = x
    xn = ln(x, params["g1"], params["b1"])
    xr = xn.reshape(B, H, W, C)
    if shift_size > 0:
        xr = jnp.roll(xr, (-shift_size, -shift_size), axis=(1, 2))
    xw = xr.reshape(B, nH, ws, nWw, ws, C).transpose(0, 1, 3, 2, 4, 5)
    xw = xw.reshape(B * nW, N, C)

    qkv = xw @ params["wqkv"].astype(jnp.float32) + params["bqkv"]
    qkv = qkv.reshape(B * nW, N, 3, num_heads, hd).transpose(2, 0, 3, 1, 4)
    q, k, v = qkv[0], qkv[1], qkv[2]                       # (B*nW, H, N, hd)
    attn = (q * scale) @ jnp.swapaxes(k, -2, -1)           # (B*nW, H, N, N)
    attn = attn + params["rpb"][None]
    attn = attn.reshape(B, nW, num_heads, N, N) + attn_mask[None, :, None]
    attn = attn.reshape(B * nW, num_heads, N, N)
    attn = jax.nn.softmax(attn, axis=-1)
    out = attn @ v
    out = out.transpose(0, 2, 1, 3).reshape(B * nW, N, C)
    out = out @ params["wproj"].astype(jnp.float32) + params["bproj"]

    xr = out.reshape(B, nH, nWw, ws, ws, C).transpose(0, 1, 3, 2, 4, 5)
    xr = xr.reshape(B, H, W, C)
    if shift_size > 0:
        xr = jnp.roll(xr, (shift_size, shift_size), axis=(1, 2))
    x1 = shortcut + xr.reshape(B, L, C)

    x2n = ln(x1, params["g2"], params["b2"])
    h = x2n @ params["w1"].astype(jnp.float32) + params["bias1"]
    h = 0.5 * h * (1.0 + lax.erf(h / math.sqrt(2.0)))
    m = h @ params["w2"].astype(jnp.float32) + params["bias2"]
    return x1 + m


# ---------------------------------------------------------------------------
# Mask / relative-position-bias tables, param init
# ---------------------------------------------------------------------------
def compute_relative_position_index(window_size):
    coords = np.stack(np.meshgrid(np.arange(window_size), np.arange(window_size),
                                  indexing="ij"))
    coords_flat = coords.reshape(2, -1)
    rel = coords_flat[:, :, None] - coords_flat[:, None, :]
    rel = rel.transpose(1, 2, 0).astype(np.int64)
    rel[..., 0] += window_size - 1
    rel[..., 1] += window_size - 1
    rel[..., 0] *= 2 * window_size - 1
    return rel.sum(-1)                                      # (N, N)


def build_attn_mask(H, W, window_size, shift_size):
    nW = (H // window_size) * (W // window_size)
    N = window_size * window_size
    if shift_size == 0:
        return np.zeros((nW, N, N), np.float32)
    img_mask = np.zeros((1, H, W, 1), np.float32)
    slices = (slice(0, -window_size),
              slice(-window_size, -shift_size),
              slice(-shift_size, None))
    cnt = 0
    for hs in slices:
        for ws_ in slices:
            img_mask[:, hs, ws_, :] = cnt
            cnt += 1
    mw = img_mask.reshape(1, H // window_size, window_size,
                          W // window_size, window_size, 1)
    mw = mw.transpose(0, 1, 3, 2, 4, 5).reshape(-1, N)
    m = mw[:, None, :] - mw[:, :, None]
    return np.where(m != 0, -100.0, 0.0).astype(np.float32)


def init_params(key, C, num_heads, window_size, hidden):
    ks = jax.random.split(key, 7)
    N = window_size * window_size
    bf16 = jnp.bfloat16
    p = {
        "g1": jnp.ones((1, C), jnp.float32),
        "b1": jnp.zeros((1, C), jnp.float32),
        "wqkv": (0.02 * jax.random.normal(ks[0], (C, 3 * C), jnp.float32)).astype(bf16),
        "bqkv": 0.02 * jax.random.normal(ks[1], (1, 3 * C), jnp.float32),
        "wproj": (0.02 * jax.random.normal(ks[2], (C, C), jnp.float32)).astype(bf16),
        "bproj": 0.02 * jax.random.normal(ks[3], (1, C), jnp.float32),
        "g2": jnp.ones((1, C), jnp.float32),
        "b2": jnp.zeros((1, C), jnp.float32),
        "w1": (0.02 * jax.random.normal(ks[4], (C, hidden), jnp.float32)).astype(bf16),
        "bias1": jnp.zeros((1, hidden), jnp.float32),
        "w2": (0.02 * jax.random.normal(ks[5], (hidden, C), jnp.float32)).astype(bf16),
        "bias2": jnp.zeros((1, C), jnp.float32),
    }
    # relative position bias table, pre-gathered to (num_heads, N, N), f32
    table = 0.02 * jax.random.normal(
        ks[6], ((2 * window_size - 1) ** 2, num_heads), jnp.float32)
    idx = compute_relative_position_index(window_size)
    rpb = table[idx.reshape(-1)].reshape(N, N, num_heads).transpose(2, 0, 1)
    p["rpb"] = rpb
    return p


# ---------------------------------------------------------------------------
# Main
# ---------------------------------------------------------------------------
if __name__ == "__main__":
    # dim=32, 16x16 resolution, 4 heads, window 8, shift 4 (shifted-window
    # mask path exercised), mlp_ratio=4 -> hidden 128.  Eval mode: dropout /
    # drop_path are identity.
    B, H, W, C = 2, 16, 16, 32
    num_heads, window_size, shift_size, mlp_ratio = 4, 8, 4, 4.0

    # same adjustment as SwinTransformerBlock.__init__
    if min(H, W) <= window_size:
        shift_size = 0
        window_size = min(H, W)
    hidden = int(C * mlp_ratio)

    key = jax.random.PRNGKey(0)
    kx, kp = jax.random.split(key)
    x = jax.random.normal(kx, (B, H * W, C), jnp.float32)

    params = init_params(kp, C, num_heads, window_size, hidden)
    attn_mask = jnp.asarray(build_attn_mask(H, W, window_size, shift_size))

    fwd = jax.jit(functools.partial(
        swin_block_forward, H=H, W=W, window_size=window_size,
        shift_size=shift_size, num_heads=num_heads))

    out = fwd(x, params, attn_mask)
    out = jax.block_until_ready(out)
    assert out.shape == (B, H * W, C)
    assert bool(jnp.all(jnp.isfinite(out)))

    # validate against a pure-JAX f32 reference (bf16 matmuls + approx
    # reciprocal in the kernel -> loose tolerance)
    ref = swin_block_reference(
        x, params, attn_mask, H=H, W=W, window_size=window_size,
        shift_size=shift_size, num_heads=num_heads)
    np.testing.assert_allclose(np.asarray(out), np.asarray(ref),
                               atol=2e-2, rtol=2e-2)

    print("KERNEL_OK")
</pallas_src>

<mosaic_0001>
module attributes {stable_mosaic.version = 11 : i64} {
  func.func @_swin_block_kernel(%arg0: i32, %arg1: memref<4x64x64xf32, #tpu.memory_space<vmem>>, %arg2: memref<4x64x32xf32, #tpu.memory_space<vmem>>, %arg3: memref<1x32xf32, #tpu.memory_space<vmem>>, %arg4: memref<1x32xf32, #tpu.memory_space<vmem>>, %arg5: memref<32x96xbf16, #tpu.memory_space<vmem>>, %arg6: memref<1x96xf32, #tpu.memory_space<vmem>>, %arg7: memref<4x64x64xf32, #tpu.memory_space<vmem>>, %arg8: memref<32x32xbf16, #tpu.memory_space<vmem>>, %arg9: memref<1x32xf32, #tpu.memory_space<vmem>>, %arg10: memref<1x32xf32, #tpu.memory_space<vmem>>, %arg11: memref<1x32xf32, #tpu.memory_space<vmem>>, %arg12: memref<32x128xbf16, #tpu.memory_space<vmem>>, %arg13: memref<1x128xf32, #tpu.memory_space<vmem>>, %arg14: memref<128x32xbf16, #tpu.memory_space<vmem>>, %arg15: memref<1x32xf32, #tpu.memory_space<vmem>>, %arg16: memref<4x64x32xf32, #tpu.memory_space<vmem>>) attributes {dimension_semantics = [#tpu.dimension_semantics<parallel>], iteration_bounds = array<i64: 2>, scalar_prefetch = 0 : i64, scratch_operands = 0 : i64, tpu.core_type = #tpu.core_type<tc>, window_params = [{pipeline_mode = #tpu.pipeline_mode<synchronous>, transform_indices = @transform_0, window_bounds = array<i64: 4, 64, 64>}, {transform_indices = @transform_1, window_bounds = array<i64: 4, 64, 32>}, {pipeline_mode = #tpu.pipeline_mode<synchronous>, transform_indices = @transform_2, window_bounds = array<i64: 1, 32>}, {pipeline_mode = #tpu.pipeline_mode<synchronous>, transform_indices = @transform_3, window_bounds = array<i64: 1, 32>}, {pipeline_mode = #tpu.pipeline_mode<synchronous>, transform_indices = @transform_4, window_bounds = array<i64: 32, 96>}, {pipeline_mode = #tpu.pipeline_mode<synchronous>, transform_indices = @transform_5, window_bounds = array<i64: 1, 96>}, {pipeline_mode = #tpu.pipeline_mode<synchronous>, transform_indices = @transform_6, window_bounds = array<i64: 4, 64, 64>}, {pipeline_mode = #tpu.pipeline_mode<synchronous>, transform_indices = @transform_7, window_bounds = array<i64: 32, 32>}, {pipeline_mode = #tpu.pipeline_mode<synchronous>, transform_indices = @transform_8, window_bounds = array<i64: 1, 32>}, {pipeline_mode = #tpu.pipeline_mode<synchronous>, transform_indices = @transform_9, window_bounds = array<i64: 1, 32>}, {pipeline_mode = #tpu.pipeline_mode<synchronous>, transform_indices = @transform_10, window_bounds = array<i64: 1, 32>}, {pipeline_mode = #tpu.pipeline_mode<synchronous>, transform_indices = @transform_11, window_bounds = array<i64: 32, 128>}, {pipeline_mode = #tpu.pipeline_mode<synchronous>, transform_indices = @transform_12, window_bounds = array<i64: 1, 128>}, {pipeline_mode = #tpu.pipeline_mode<synchronous>, transform_indices = @transform_13, window_bounds = array<i64: 128, 32>}, {pipeline_mode = #tpu.pipeline_mode<synchronous>, transform_indices = @transform_14, window_bounds = array<i64: 1, 32>}, {transform_indices = @transform_15, window_bounds = array<i64: 4, 64, 32>}]} {
    %c0 = arith.constant 0 : index
    %c0_0 = arith.constant 0 : index
    %c0_1 = arith.constant 0 : index
    %0 = vector.load %arg2[%c0, %c0_0, %c0_1] : memref<4x64x32xf32, #tpu.memory_space<vmem>>, vector<4x64x32xf32>
    %1 = vector.shape_cast %0 : vector<4x64x32xf32> to vector<256x32xf32>
    %c0_2 = arith.constant 0 : index
    %c0_3 = arith.constant 0 : index
    %2 = vector.load %arg3[%c0_2, %c0_3] : memref<1x32xf32, #tpu.memory_space<vmem>>, vector<1x32xf32>
    %c0_4 = arith.constant 0 : index
    %c0_5 = arith.constant 0 : index
    %3 = vector.load %arg4[%c0_4, %c0_5] : memref<1x32xf32, #tpu.memory_space<vmem>>, vector<1x32xf32>
    %cst = arith.constant dense<0.000000e+00> : vector<256xf32>
    %4 = vector.multi_reduction <add>, %1, %cst [1] : vector<256x32xf32> to vector<256xf32>
    %5 = vector.shape_cast %4 : vector<256xf32> to vector<256x1xf32>
    %cst_6 = arith.constant 3.200000e+01 : f32
    %6 = vector.broadcast %cst_6 : f32 to vector<256x1xf32>
    %7 = arith.divf %5, %6 : vector<256x1xf32>
    %8 = vector.broadcast %7 : vector<256x1xf32> to vector<256x32xf32>
    %9 = arith.subf %1, %8 : vector<256x32xf32>
    %10 = arith.mulf %9, %9 : vector<256x32xf32>
    %cst_7 = arith.constant dense<0.000000e+00> : vector<256xf32>
    %11 = vector.multi_reduction <add>, %10, %cst_7 [1] : vector<256x32xf32> to vector<256xf32>
    %12 = vector.shape_cast %11 : vector<256xf32> to vector<256x1xf32>
    %cst_8 = arith.constant 3.200000e+01 : f32
    %13 = vector.broadcast %cst_8 : f32 to vector<256x1xf32>
    %14 = arith.divf %12, %13 : vector<256x1xf32>
    %15 = vector.broadcast %7 : vector<256x1xf32> to vector<256x32xf32>
    %16 = arith.subf %1, %15 : vector<256x32xf32>
    %cst_9 = arith.constant 9.99999997E-7 : f32
    %17 = vector.broadcast %cst_9 : f32 to vector<256x1xf32>
    %18 = arith.addf %14, %17 : vector<256x1xf32>
    %19 = math.rsqrt %18 : vector<256x1xf32>
    %20 = vector.broadcast %19 : vector<256x1xf32> to vector<256x32xf32>
    %21 = arith.mulf %16, %20 : vector<256x32xf32>
    %22 = vector.broadcast %2 : vector<1x32xf32> to vector<256x32xf32>
    %23 = arith.mulf %21, %22 : vector<256x32xf32>
    %24 = vector.broadcast %3 : vector<1x32xf32> to vector<256x32xf32>
    %25 = arith.addf %23, %24 : vector<256x32xf32>
    %26 = arith.truncf %25 : vector<256x32xf32> to vector<256x32xbf16>
    %c0_10 = arith.constant 0 : index
    %c0_11 = arith.constant 0 : index
    %27 = vector.load %arg5[%c0_10, %c0_11] : memref<32x96xbf16, #tpu.memory_space<vmem>>, vector<32x96xbf16>
    %cst_12 = arith.constant dense<0.000000e+00> : vector<256x96xf32>
    %28 = tpu.matmul %26, %27, %cst_12 {dimension_numbers = #tpu.dot_dimension_numbers<[1], [0], [0], [1], [0, 0, 1, 1], [], []>} : vector<256x32xbf16>, vector<32x96xbf16>, vector<256x96xf32> -> vector<256x96xf32>
    %c0_13 = arith.constant 0 : index
    %c0_14 = arith.constant 0 : index
    %29 = vector.load %arg6[%c0_13, %c0_14] : memref<1x96xf32, #tpu.memory_space<vmem>>, vector<1x96xf32>
    %30 = vector.broadcast %29 : vector<1x96xf32> to vector<256x96xf32>
    %31 = arith.addf %28, %30 : vector<256x96xf32>
    %32 = vector.extract_strided_slice %31 {offsets = [0, 0], sizes = [256, 8], strides = [1, 1]} : vector<256x96xf32> to vector<256x8xf32>
    %33 = vector.shape_cast %32 : vector<256x8xf32> to vector<4x64x8xf32>
    %34 = vector.extract_strided_slice %31 {offsets = [0, 8], sizes = [256, 8], strides = [1, 1]} : vector<256x96xf32> to vector<256x8xf32>
    %35 = vector.shape_cast %34 : vector<256x8xf32> to vector<4x64x8xf32>
    %36 = vector.extract_strided_slice %31 {offsets = [0, 16], sizes = [256, 8], strides = [1, 1]} : vector<256x96xf32> to vector<256x8xf32>
    %37 = vector.shape_cast %36 : vector<256x8xf32> to vector<4x64x8xf32>
    %38 = vector.extract_strided_slice %31 {offsets = [0, 24], sizes = [256, 8], strides = [1, 1]} : vector<256x96xf32> to vector<256x8xf32>
    %39 = vector.shape_cast %38 : vector<256x8xf32> to vector<4x64x8xf32>
    %40 = vector.shape_cast %33 : vector<4x64x8xf32> to vector<1x4x64x8xf32>
    %41 = vector.shape_cast %35 : vector<4x64x8xf32> to vector<1x4x64x8xf32>
    %42 = vector.shape_cast %37 : vector<4x64x8xf32> to vector<1x4x64x8xf32>
    %43 = vector.shape_cast %39 : vector<4x64x8xf32> to vector<1x4x64x8xf32>
    %44 = tpu.concatenate %40, %41, %42, %43 in 0 : vector<1x4x64x8xf32>, vector<1x4x64x8xf32>, vector<1x4x64x8xf32>, vector<1x4x64x8xf32> -> vector<4x4x64x8xf32>
    %45 = vector.shape_cast %44 : vector<4x4x64x8xf32> to vector<16x64x8xf32>
    %46 = vector.extract_strided_slice %31 {offsets = [0, 32], sizes = [256, 8], strides = [1, 1]} : vector<256x96xf32> to vector<256x8xf32>
    %47 = vector.shape_cast %46 : vector<256x8xf32> to vector<4x64x8xf32>
    %48 = vector.extract_strided_slice %31 {offsets = [0, 40], sizes = [256, 8], strides = [1, 1]} : vector<256x96xf32> to vector<256x8xf32>
    %49 = vector.shape_cast %48 : vector<256x8xf32> to vector<4x64x8xf32>
    %50 = vector.extract_strided_slice %31 {offsets = [0, 48], sizes = [256, 8], strides = [1, 1]} : vector<256x96xf32> to vector<256x8xf32>
    %51 = vector.shape_cast %50 : vector<256x8xf32> to vector<4x64x8xf32>
    %52 = vector.extract_strided_slice %31 {offsets = [0, 56], sizes = [256, 8], strides = [1, 1]} : vector<256x96xf32> to vector<256x8xf32>
    %53 = vector.shape_cast %52 : vector<256x8xf32> to vector<4x64x8xf32>
    %54 = vector.shape_cast %47 : vector<4x64x8xf32> to vector<1x4x64x8xf32>
    %55 = vector.shape_cast %49 : vector<4x64x8xf32> to vector<1x4x64x8xf32>
    %56 = vector.shape_cast %51 : vector<4x64x8xf32> to vector<1x4x64x8xf32>
    %57 = vector.shape_cast %53 : vector<4x64x8xf32> to vector<1x4x64x8xf32>
    %58 = tpu.concatenate %54, %55, %56, %57 in 0 : vector<1x4x64x8xf32>, vector<1x4x64x8xf32>, vector<1x4x64x8xf32>, vector<1x4x64x8xf32> -> vector<4x4x64x8xf32>
    %59 = vector.shape_cast %58 : vector<4x4x64x8xf32> to vector<16x64x8xf32>
    %60 = vector.extract_strided_slice %31 {offsets = [0, 64], sizes = [256, 8], strides = [1, 1]} : vector<256x96xf32> to vector<256x8xf32>
    %61 = vector.shape_cast %60 : vector<256x8xf32> to vector<4x64x8xf32>
    %62 = vector.extract_strided_slice %31 {offsets = [0, 72], sizes = [256, 8], strides = [1, 1]} : vector<256x96xf32> to vector<256x8xf32>
    %63 = vector.shape_cast %62 : vector<256x8xf32> to vector<4x64x8xf32>
    %64 = vector.extract_strided_slice %31 {offsets = [0, 80], sizes = [256, 8], strides = [1, 1]} : vector<256x96xf32> to vector<256x8xf32>
    %65 = vector.shape_cast %64 : vector<256x8xf32> to vector<4x64x8xf32>
    %66 = vector.extract_strided_slice %31 {offsets = [0, 88], sizes = [256, 8], strides = [1, 1]} : vector<256x96xf32> to vector<256x8xf32>
    %67 = vector.shape_cast %66 : vector<256x8xf32> to vector<4x64x8xf32>
    %68 = vector.shape_cast %61 : vector<4x64x8xf32> to vector<1x4x64x8xf32>
    %69 = vector.shape_cast %63 : vector<4x64x8xf32> to vector<1x4x64x8xf32>
    %70 = vector.shape_cast %65 : vector<4x64x8xf32> to vector<1x4x64x8xf32>
    %71 = vector.shape_cast %67 : vector<4x64x8xf32> to vector<1x4x64x8xf32>
    %72 = tpu.concatenate %68, %69, %70, %71 in 0 : vector<1x4x64x8xf32>, vector<1x4x64x8xf32>, vector<1x4x64x8xf32>, vector<1x4x64x8xf32> -> vector<4x4x64x8xf32>
    %73 = vector.shape_cast %72 : vector<4x4x64x8xf32> to vector<16x64x8xf32>
    %cst_15 = arith.constant 0.353553385 : f32
    %74 = vector.broadcast %cst_15 : f32 to vector<16x64x8xf32>
    %75 = arith.mulf %45, %74 : vector<16x64x8xf32>
    %76 = arith.truncf %75 : vector<16x64x8xf32> to vector<16x64x8xbf16>
    %77 = arith.truncf %59 : vector<16x64x8xf32> to vector<16x64x8xbf16>
    "tpu.trace_start"() <{level = 10 : i32, message = "bnd,bmd->bnm"}> : () -> ()
    %cst_16 = arith.constant dense<0.000000e+00> : vector<16x64x64xf32>
    %78 = tpu.matmul %76, %77, %cst_16 {dimension_numbers = #tpu.dot_dimension_numbers<[2], [2], [1], [1], [0, 0, 0, 1, 1, 1], [0], [0]>} : vector<16x64x8xbf16>, vector<16x64x8xbf16>, vector<16x64x64xf32> -> vector<16x64x64xf32>
    "tpu.trace_stop"() : () -> ()
    %79 = vector.shape_cast %78 : vector<16x64x64xf32> to vector<4x4x64x64xf32>
    %c0_17 = arith.constant 0 : index
    %c0_18 = arith.constant 0 : index
    %c0_19 = arith.constant 0 : index
    %80 = vector.load %arg7[%c0_17, %c0_18, %c0_19] : memref<4x64x64xf32, #tpu.memory_space<vmem>>, vector<4x64x64xf32>
    %81 = vector.shape_cast %80 : vector<4x64x64xf32> to vector<4x1x64x64xf32>
    %82 = vector.broadcast %81 : vector<4x1x64x64xf32> to vector<4x4x64x64xf32>
    %83 = arith.addf %79, %82 : vector<4x4x64x64xf32>
    %c0_20 = arith.constant 0 : index
    %c0_21 = arith.constant 0 : index
    %c0_22 = arith.constant 0 : index
    %84 = vector.load %arg1[%c0_20, %c0_21, %c0_22] : memref<4x64x64xf32, #tpu.memory_space<vmem>>, vector<4x64x64xf32>
    %85 = vector.shape_cast %84 : vector<4x64x64xf32> to vector<1x4x64x64xf32>
    %86 = vector.broadcast %85 : vector<1x4x64x64xf32> to vector<4x4x64x64xf32>
    %87 = arith.addf %83, %86 : vector<4x4x64x64xf32>
    %cst_23 = arith.constant dense<0xFF800000> : vector<4x4x64xf32>
    %88 = vector.multi_reduction <maximumf>, %87, %cst_23 [3] : vector<4x4x64x64xf32> to vector<4x4x64xf32>
    %89 = vector.shape_cast %88 : vector<4x4x64xf32> to vector<4x4x64x1xf32>
    %90 = vector.broadcast %89 : vector<4x4x64x1xf32> to vector<4x4x64x64xf32>
    %91 = arith.subf %87, %90 : vector<4x4x64x64xf32>
    %92 = math.exp %91 : vector<4x4x64x64xf32>
    %cst_24 = arith.constant dense<0.000000e+00> : vector<4x4x64xf32>
    %93 = vector.multi_reduction <add>, %92, %cst_24 [3] : vector<4x4x64x64xf32> to vector<4x4x64xf32>
    %94 = vector.shape_cast %93 : vector<4x4x64xf32> to vector<4x4x64x1xf32>
    %95 = tpu.reciprocal %94 {approx = true} : vector<4x4x64x1xf32> -> vector<4x4x64x1xf32>
    %96 = vector.broadcast %95 : vector<4x4x64x1xf32> to vector<4x4x64x64xf32>
    %97 = arith.mulf %92, %96 : vector<4x4x64x64xf32>
    %98 = vector.shape_cast %97 : vector<4x4x64x64xf32> to vector<16x64x64xf32>
    %99 = arith.truncf %98 : vector<16x64x64xf32> to vector<16x64x64xbf16>
    %100 = arith.truncf %73 : vector<16x64x8xf32> to vector<16x64x8xbf16>
    "tpu.trace_start"() <{level = 10 : i32, message = "bnm,bmd->bnd"}> : () -> ()
    %cst_25 = arith.constant dense<0.000000e+00> : vector<16x64x8xf32>
    %101 = tpu.matmul %99, %100, %cst_25 {dimension_numbers = #tpu.dot_dimension_numbers<[2], [1], [1], [2], [0, 0, 0, 1, 1, 2], [0], [0]>} : vector<16x64x64xbf16>, vector<16x64x8xbf16>, vector<16x64x8xf32> -> vector<16x64x8xf32>
    "tpu.trace_stop"() : () -> ()
    %102 = vector.shape_cast %101 : vector<16x64x8xf32> to vector<4x4x64x8xf32>
    %103 = vector.extract_strided_slice %102 {offsets = [0, 0, 0, 0], sizes = [1, 4, 64, 8], strides = [1, 1, 1, 1]} : vector<4x4x64x8xf32> to vector<1x4x64x8xf32>
    %104 = vector.shape_cast %103 : vector<1x4x64x8xf32> to vector<4x64x8xf32>
    %105 = vector.shape_cast %104 : vector<4x64x8xf32> to vector<256x8xf32>
    %106 = vector.extract_strided_slice %102 {offsets = [1, 0, 0, 0], sizes = [1, 4, 64, 8], strides = [1, 1, 1, 1]} : vector<4x4x64x8xf32> to vector<1x4x64x8xf32>
    %107 = vector.shape_cast %106 : vector<1x4x64x8xf32> to vector<4x64x8xf32>
    %108 = vector.shape_cast %107 : vector<4x64x8xf32> to vector<256x8xf32>
    %109 = vector.extract_strided_slice %102 {offsets = [2, 0, 0, 0], sizes = [1, 4, 64, 8], strides = [1, 1, 1, 1]} : vector<4x4x64x8xf32> to vector<1x4x64x8xf32>
    %110 = vector.shape_cast %109 : vector<1x4x64x8xf32> to vector<4x64x8xf32>
    %111 = vector.shape_cast %110 : vector<4x64x8xf32> to vector<256x8xf32>
    %112 = vector.extract_strided_slice %102 {offsets = [3, 0, 0, 0], sizes = [1, 4, 64, 8], strides = [1, 1, 1, 1]} : vector<4x4x64x8xf32> to vector<1x4x64x8xf32>
    %113 = vector.shape_cast %112 : vector<1x4x64x8xf32> to vector<4x64x8xf32>
    %114 = vector.shape_cast %113 : vector<4x64x8xf32> to vector<256x8xf32>
    %115 = tpu.concatenate %105, %108, %111, %114 in 1 : vector<256x8xf32>, vector<256x8xf32>, vector<256x8xf32>, vector<256x8xf32> -> vector<256x32xf32>
    %116 = arith.truncf %115 : vector<256x32xf32> to vector<256x32xbf16>
    %c0_26 = arith.constant 0 : index
    %c0_27 = arith.constant 0 : index
    %117 = vector.load %arg8[%c0_26, %c0_27] : memref<32x32xbf16, #tpu.memory_space<vmem>>, vector<32x32xbf16>
    %cst_28 = arith.constant dense<0.000000e+00> : vector<256x32xf32>
    %118 = tpu.matmul %116, %117, %cst_28 {dimension_numbers = #tpu.dot_dimension_numbers<[1], [0], [0], [1], [0, 0, 1, 1], [], []>} : vector<256x32xbf16>, vector<32x32xbf16>, vector<256x32xf32> -> vector<256x32xf32>
    %c0_29 = arith.constant 0 : index
    %c0_30 = arith.constant 0 : index
    %119 = vector.load %arg9[%c0_29, %c0_30] : memref<1x32xf32, #tpu.memory_space<vmem>>, vector<1x32xf32>
    %120 = vector.broadcast %119 : vector<1x32xf32> to vector<256x32xf32>
    %121 = arith.addf %118, %120 : vector<256x32xf32>
    %122 = arith.addf %1, %121 : vector<256x32xf32>
    %c0_31 = arith.constant 0 : index
    %c0_32 = arith.constant 0 : index
    %123 = vector.load %arg10[%c0_31, %c0_32] : memref<1x32xf32, #tpu.memory_space<vmem>>, vector<1x32xf32>
    %c0_33 = arith.constant 0 : index
    %c0_34 = arith.constant 0 : index
    %124 = vector.load %arg11[%c0_33, %c0_34] : memref<1x32xf32, #tpu.memory_space<vmem>>, vector<1x32xf32>
    %cst_35 = arith.constant dense<0.000000e+00> : vector<256xf32>
    %125 = vector.multi_reduction <add>, %122, %cst_35 [1] : vector<256x32xf32> to vector<256xf32>
    %126 = vector.shape_cast %125 : vector<256xf32> to vector<256x1xf32>
    %cst_36 = arith.constant 3.200000e+01 : f32
    %127 = vector.broadcast %cst_36 : f32 to vector<256x1xf32>
    %128 = arith.divf %126, %127 : vector<256x1xf32>
    %129 = vector.broadcast %128 : vector<256x1xf32> to vector<256x32xf32>
    %130 = arith.subf %122, %129 : vector<256x32xf32>
    %131 = arith.mulf %130, %130 : vector<256x32xf32>
    %cst_37 = arith.constant dense<0.000000e+00> : vector<256xf32>
    %132 = vector.multi_reduction <add>, %131, %cst_37 [1] : vector<256x32xf32> to vector<256xf32>
    %133 = vector.shape_cast %132 : vector<256xf32> to vector<256x1xf32>
    %cst_38 = arith.constant 3.200000e+01 : f32
    %134 = vector.broadcast %cst_38 : f32 to vector<256x1xf32>
    %135 = arith.divf %133, %134 : vector<256x1xf32>
    %136 = vector.broadcast %128 : vector<256x1xf32> to vector<256x32xf32>
    %137 = arith.subf %122, %136 : vector<256x32xf32>
    %cst_39 = arith.constant 9.99999997E-7 : f32
    %138 = vector.broadcast %cst_39 : f32 to vector<256x1xf32>
    %139 = arith.addf %135, %138 : vector<256x1xf32>
    %140 = math.rsqrt %139 : vector<256x1xf32>
    %141 = vector.broadcast %140 : vector<256x1xf32> to vector<256x32xf32>
    %142 = arith.mulf %137, %141 : vector<256x32xf32>
    %143 = vector.broadcast %123 : vector<1x32xf32> to vector<256x32xf32>
    %144 = arith.mulf %142, %143 : vector<256x32xf32>
    %145 = vector.broadcast %124 : vector<1x32xf32> to vector<256x32xf32>
    %146 = arith.addf %144, %145 : vector<256x32xf32>
    %147 = arith.truncf %146 : vector<256x32xf32> to vector<256x32xbf16>
    %c0_40 = arith.constant 0 : index
    %c0_41 = arith.constant 0 : index
    %148 = vector.load %arg12[%c0_40, %c0_41] : memref<32x128xbf16, #tpu.memory_space<vmem>>, vector<32x128xbf16>
    %cst_42 = arith.constant dense<0.000000e+00> : vector<256x128xf32>
    %149 = tpu.matmul %147, %148, %cst_42 {dimension_numbers = #tpu.dot_dimension_numbers<[1], [0], [0], [1], [0, 0, 1, 1], [], []>} : vector<256x32xbf16>, vector<32x128xbf16>, vector<256x128xf32> -> vector<256x128xf32>
    %c0_43 = arith.constant 0 : index
    %c0_44 = arith.constant 0 : index
    %150 = vector.load %arg13[%c0_43, %c0_44] : memref<1x128xf32, #tpu.memory_space<vmem>>, vector<1x128xf32>
    %151 = vector.broadcast %150 : vector<1x128xf32> to vector<256x128xf32>
    %152 = arith.addf %149, %151 : vector<256x128xf32>
    %cst_45 = arith.constant 5.000000e-01 : f32
    %153 = vector.broadcast %cst_45 : f32 to vector<256x128xf32>
    %154 = arith.mulf %153, %152 : vector<256x128xf32>
    %cst_46 = arith.constant 0.707106769 : f32
    %155 = vector.broadcast %cst_46 : f32 to vector<256x128xf32>
    %156 = arith.mulf %152, %155 : vector<256x128xf32>
    %157 = math.erf %156 : vector<256x128xf32>
    %cst_47 = arith.constant 1.000000e+00 : f32
    %158 = vector.broadcast %cst_47 : f32 to vector<256x128xf32>
    %159 = arith.addf %158, %157 : vector<256x128xf32>
    %160 = arith.mulf %154, %159 : vector<256x128xf32>
    %161 = arith.truncf %160 : vector<256x128xf32> to vector<256x128xbf16>
    %c0_48 = arith.constant 0 : index
    %c0_49 = arith.constant 0 : index
    %162 = vector.load %arg14[%c0_48, %c0_49] : memref<128x32xbf16, #tpu.memory_space<vmem>>, vector<128x32xbf16>
    %cst_50 = arith.constant dense<0.000000e+00> : vector<256x32xf32>
    %163 = tpu.matmul %161, %162, %cst_50 {dimension_numbers = #tpu.dot_dimension_numbers<[1], [0], [0], [1], [0, 0, 1, 1], [], []>} : vector<256x128xbf16>, vector<128x32xbf16>, vector<256x32xf32> -> vector<256x32xf32>
    %c0_51 = arith.constant 0 : index
    %c0_52 = arith.constant 0 : index
    %164 = vector.load %arg15[%c0_51, %c0_52] : memref<1x32xf32, #tpu.memory_space<vmem>>, vector<1x32xf32>
    %165 = vector.broadcast %164 : vector<1x32xf32> to vector<256x32xf32>
    %166 = arith.addf %163, %165 : vector<256x32xf32>
    %167 = arith.addf %122, %166 : vector<256x32xf32>
    %168 = vector.shape_cast %167 : vector<256x32xf32> to vector<4x64x32xf32>
    %c0_53 = arith.constant 0 : index
    %c0_54 = arith.constant 0 : index
    %c0_55 = arith.constant 0 : index
    %169 = vector.load %arg16[%c0_53, %c0_54, %c0_55] : memref<4x64x32xf32, #tpu.memory_space<vmem>>, vector<4x64x32xf32>
    tpu.vector_store %arg16[%c0_53, %c0_54, %c0_55], %168 {strides = array<i32>} : memref<4x64x32xf32, #tpu.memory_space<vmem>>, vector<4x64x32xf32>,
    return
  }
  func.func @transform_0(%arg0: i32) -> (i32, i32, i32) {
    %c0_i32 = arith.constant 0 : i32
    %c0_i32_0 = arith.constant 0 : i32
    %c0_i32_1 = arith.constant 0 : i32
    %c0_i32_2 = arith.constant 0 : i32
    return %c0_i32, %c0_i32_0, %c0_i32_1 : i32, i32, i32
  }
  func.func @transform_1(%arg0: i32) -> (i32, i32, i32) {
    %c0_i32 = arith.constant 0 : i32
    %c0_i32_0 = arith.constant 0 : i32
    %c0_i32_1 = arith.constant 0 : i32
    return %arg0, %c0_i32, %c0_i32_0 : i32, i32, i32
  }
  func.func @transform_2(%arg0: i32) -> (i32, i32) {
    %c0_i32 = arith.constant 0 : i32
    %c0_i32_0 = arith.constant 0 : i32
    %c0_i32_1 = arith.constant 0 : i32
    return %c0_i32, %c0_i32_0 : i32, i32
  }
  func.func @transform_3(%arg0: i32) -> (i32, i32) {
    %c0_i32 = arith.constant 0 : i32
    %c0_i32_0 = arith.constant 0 : i32
    %c0_i32_1 = arith.constant 0 : i32
    return %c0_i32, %c0_i32_0 : i32, i32
  }
  func.func @transform_4(%arg0: i32) -> (i32, i32) {
    %c0_i32 = arith.constant 0 : i32
    %c0_i32_0 = arith.constant 0 : i32
    %c0_i32_1 = arith.constant 0 : i32
    return %c0_i32, %c0_i32_0 : i32, i32
  }
  func.func @transform_5(%arg0: i32) -> (i32, i32) {
    %c0_i32 = arith.constant 0 : i32
    %c0_i32_0 = arith.constant 0 : i32
    %c0_i32_1 = arith.constant 0 : i32
    return %c0_i32, %c0_i32_0 : i32, i32
  }
  func.func @transform_6(%arg0: i32) -> (i32, i32, i32) {
    %c0_i32 = arith.constant 0 : i32
    %c0_i32_0 = arith.constant 0 : i32
    %c0_i32_1 = arith.constant 0 : i32
    %c0_i32_2 = arith.constant 0 : i32
    return %c0_i32, %c0_i32_0, %c0_i32_1 : i32, i32, i32
  }
  func.func @transform_7(%arg0: i32) -> (i32, i32) {
    %c0_i32 = arith.constant 0 : i32
    %c0_i32_0 = arith.constant 0 : i32
    %c0_i32_1 = arith.constant 0 : i32
    return %c0_i32, %c0_i32_0 : i32, i32
  }
  func.func @transform_8(%arg0: i32) -> (i32, i32) {
    %c0_i32 = arith.constant 0 : i32
    %c0_i32_0 = arith.constant 0 : i32
    %c0_i32_1 = arith.constant 0 : i32
    return %c0_i32, %c0_i32_0 : i32, i32
  }
  func.func @transform_9(%arg0: i32) -> (i32, i32) {
    %c0_i32 = arith.constant 0 : i32
    %c0_i32_0 = arith.constant 0 : i32
    %c0_i32_1 = arith.constant 0 : i32
    return %c0_i32, %c0_i32_0 : i32, i32
  }
  func.func @transform_10(%arg0: i32) -> (i32, i32) {
    %c0_i32 = arith.constant 0 : i32
    %c0_i32_0 = arith.constant 0 : i32
    %c0_i32_1 = arith.constant 0 : i32
    return %c0_i32, %c0_i32_0 : i32, i32
  }
  func.func @transform_11(%arg0: i32) -> (i32, i32) {
    %c0_i32 = arith.constant 0 : i32
    %c0_i32_0 = arith.constant 0 : i32
    %c0_i32_1 = arith.constant 0 : i32
    return %c0_i32, %c0_i32_0 : i32, i32
  }
  func.func @transform_12(%arg0: i32) -> (i32, i32) {
    %c0_i32 = arith.constant 0 : i32
    %c0_i32_0 = arith.constant 0 : i32
    %c0_i32_1 = arith.constant 0 : i32
    return %c0_i32, %c0_i32_0 : i32, i32
  }
  func.func @transform_13(%arg0: i32) -> (i32, i32) {
    %c0_i32 = arith.constant 0 : i32
    %c0_i32_0 = arith.constant 0 : i32
    %c0_i32_1 = arith.constant 0 : i32
    return %c0_i32, %c0_i32_0 : i32, i32
  }
  func.func @transform_14(%arg0: i32) -> (i32, i32) {
    %c0_i32 = arith.constant 0 : i32
    %c0_i32_0 = arith.constant 0 : i32
    %c0_i32_1 = arith.constant 0 : i32
    return %c0_i32, %c0_i32_0 : i32, i32
  }
  func.func @transform_15(%arg0: i32) -> (i32, i32, i32) {
    %c0_i32 = arith.constant 0 : i32
    %c0_i32_0 = arith.constant 0 : i32
    %c0_i32_1 = arith.constant 0 : i32
    return %arg0, %c0_i32, %c0_i32_0 : i32, i32, i32
  }
}

</mosaic_0001>

<bundles_post_ra>
// kernel: swin_block_forward.1
= control target key start
LH: loop header
LB: loop body
LE: loop exit
PB: predicated region body
PF: predicated region fallthrough
CT: control target
= control target key end

     0   :  { %s11145_s18 = smov 0   ;;  %s17256_s0 = inlined_call_operand.vmem [shape: f32[4,64,64], index: 0, kind: input, shape index: {}]   ;;  %s17257_s1 = inlined_call_operand.vmem [shape: f32[8,64,32], index: 1, kind: input, shape index: {}]   ;;  %s17258_s2 = inlined_call_operand.vmem [shape: f32[1,32], index: 2, kind: input, shape index: {}]   ;;  %s17259_s3 = inlined_call_operand.vmem [shape: f32[1,32], index: 3, kind: input, shape index: {}]   ;;  %s17260_s4 = inlined_call_operand.vmem [shape: bf16[32,96], index: 4, kind: input, shape index: {}]   ;;  %s17261_s5 = inlined_call_operand.vmem [shape: f32[1,96], index: 5, kind: input, shape index: {}]   ;;  %s17262_s6 = inlined_call_operand.vmem [shape: f32[4,64,64], index: 6, kind: input, shape index: {}]   ;;  %s17263_s7 = inlined_call_operand.vmem [shape: bf16[32,32], index: 7, kind: input, shape index: {}]   ;;  %s17264_s8 = inlined_call_operand.vmem [shape: f32[1,32], index: 8, kind: input, shape index: {}]   ;;  %s17265_s9 = inlined_call_operand.vmem [shape: f32[1,32], index: 9, kind: input, shape index: {}]   ;;  %s17266_s10 = inlined_call_operand.vmem [shape: f32[1,32], index: 10, kind: input, shape index: {}]   ;;  %s17267_s11 = inlined_call_operand.vmem [shape: bf16[32,128], index: 11, kind: input, shape index: {}]   ;;  %s17268_s12 = inlined_call_operand.vmem [shape: f32[1,128], index: 12, kind: input, shape index: {}]   ;;  %s17269_s13 = inlined_call_operand.vmem [shape: bf16[128,32], index: 13, kind: input, shape index: {}]   ;;  %s17270_s14 = inlined_call_operand.vmem [shape: f32[1,32], index: 14, kind: input, shape index: {}]   ;;  %s17271_s15 = inlined_call_operand.vmem [shape: f32[8,64,32], index: 15, kind: output, shape index: {}]  }
   0x1 LB: > { %s8724_s19 = sadd.s32 4294967295, %s11055_s18   ;;  %p8728_p0 = scmp.ge.s32.totalorder %s11055_s18, 1  ;;  %s11055_s18 = sphi %s11145_s18, %s25_s18  }
   0x2   : > { %p439_p1 = scmp.lt.s32.totalorder %s11055_s18, 3 }
   0x4   : > { %p440_p2 = pnand %p8728_p0, %p439_p1 }
   0x6   : > { %443 = sbr.rel (%p440_p2) target bundleno = 3729 (0xe91), region = 80 }
   0xd   : > { %s8729_s20 = sshll.u32 %s8724_s19, 2  ;;  %vm538_vm0 = vcmask 261120   ;;  %s11057_s23 = smov 120   ;;  %vm1868_vm1 = vcmask 64512   ;;  %vm3793_vm2 = vcmask 523264   ;;  %vm7106_vm3 = vcmask 130048  }
   0xe   : > { %p490_p3 = scmp.lt.s32.totalorder %s8729_s20, 7  ;;  %s11058_s25 = smov 112   ;;  %vm7139_vm4 = vcmask 195584  }
   0xf   : > { %s11059_s26 = smov 104   ;;  %s11060_s27 = smov 96  }
  0x10   : > { %s18619_s20 = smov (!%p490_p3, %s8729_s20), 7  ;;  %s11061_s28 = smov 64  }
  0x11   : > { %s8935_s21 = sshll.u32 %s18619_s20, 6 }
  0x12   : > { %s11161_s24 = scalar_lea.vmem %s17257_s1, %s8935_s21  ;;  %s17124_s29 = scalar_lea.vmem %s17271_s15, %s8935_s21 }
  0x13   : > { %v11164_v0 = vld [vmem:[%s11161_s24] sm:$0xff]  ;;  %v11167_v1 = vld [vmem:[%s11161_s24 + $0x10] sm:$0xff]  ;;  %v11170_v2 = vld [vmem:[%s11161_s24 + $0x8] sm:$0xff] }
  0x14   : > { %v539_v3 = vsel %vm538_vm0, %v11164_v0, 0.0  ;;  %v545_v4 = vsel %vm538_vm0, %v11167_v1, 0.0  ;;  %v11177_v5 = vld [vmem:[%s11161_s24 + $0x18] sm:$0xff]  ;;  %v542_v6 = vsel %vm538_vm0, %v11170_v2, 0.0  ;;  %v11184_v8 = vld [vmem:[%s11161_s24 + $0x20] sm:$0xff]  ;;  %v11187_v9 = vld [vmem:[%s11161_s24 + $0x28] sm:$0xff] }
  0x15   : > { %540 = vadd.xlane.f32.xlu0 %v539_v3  ;;  %546 = vadd.xlane.f32.xlu1 %v545_v4  ;;  %v548_v7 = vsel %vm538_vm0, %v11177_v5, 0.0  ;;  %v551_v10 = vsel %vm538_vm0, %v11184_v8, 0.0  ;;  %v554_v11 = vsel %vm538_vm0, %v11187_v9, 0.0  ;;  %v11194_v12 = vld [vmem:[%s11161_s24 + $0x30] sm:$0xff]  ;;  %v11197_v13 = vld [vmem:[%s11161_s24 + $0x38] sm:$0xff]  ;;  %v11202_v15 = vld [vmem:[%s11161_s24 + $0x40] sm:$0xff] }
  0x16   : > { %v557_v14 = vsel %vm538_vm0, %v11194_v12, 0.0  ;;  %v560_v16 = vsel %vm538_vm0, %v11197_v13, 0.0  ;;  %v11207_v17 = vld [vmem:[%s11161_s24 + $0x48] sm:$0xff]  ;;  %v563_v18 = vsel %vm538_vm0, %v11202_v15, 0.0  ;;  %v11214_v20 = vld [vmem:[%s11161_s24 + $0x50] sm:$0xff]  ;;  %v11217_v21 = vld [vmem:[%s11161_s24 + $0x58] sm:$0xff] }
  0x17   : > { %v566_v19 = vsel %vm538_vm0, %v11207_v17, 0.0  ;;  %v569_v22 = vsel %vm538_vm0, %v11214_v20, 0.0  ;;  %v572_v23 = vsel %vm538_vm0, %v11217_v21, 0.0  ;;  %v11224_v24 = vld [vmem:[%s11161_s24 + $0x60] sm:$0xff]  ;;  %v11227_v25 = vld [vmem:[%s11161_s24 + $0x68] sm:$0xff]  ;;  %v11234_v28 = vld [vmem:[%s11161_s24 + $0x70] sm:$0xff] }
  0x18   : > { %v575_v26 = vsel %vm538_vm0, %v11224_v24, 0.0  ;;  %v578_v27 = vsel %vm538_vm0, %v11227_v25, 0.0  ;;  %v11237_v29 = vld [vmem:[%s11161_s24 + $0x78] sm:$0xff]  ;;  %v581_v30 = vsel %vm538_vm0, %v11234_v28, 0.0  ;;  %v11244_v32 = vld [vmem:[%s11161_s24 + $0x80] sm:$0xff]  ;;  %v11247_v33 = vld [vmem:[%s11161_s24 + $0x88] sm:$0xff] }
  0x19   : > { %543 = vadd.xlane.f32.xlu0 %v542_v6  ;;  %549 = vadd.xlane.f32.xlu1 %v548_v7  ;;  %v584_v31 = vsel %vm538_vm0, %v11237_v29, 0.0  ;;  %v587_v34 = vsel %vm538_vm0, %v11244_v32, 0.0  ;;  %v590_v35 = vsel %vm538_vm0, %v11247_v33, 0.0  ;;  %v11254_v36 = vld [vmem:[%s11161_s24 + $0x90] sm:$0xff]  ;;  %v11257_v37 = vld [vmem:[%s11161_s24 + $0x98] sm:$0xff]  ;;  %v11264_v40 = vld [vmem:[%s11161_s24 + $0xa0] sm:$0xff] }
  0x1a   : > { %v593_v38 = vsel %vm538_vm0, %v11254_v36, 0.0  ;;  %v596_v39 = vsel %vm538_vm0, %v11257_v37, 0.0  ;;  %v11267_v41 = vld [vmem:[%s11161_s24 + $0xa8] sm:$0xff]  ;;  %v599_v42 = vsel %vm538_vm0, %v11264_v40, 0.0  ;;  %v11274_v44 = vld [vmem:[%s11161_s24 + $0xb0] sm:$0xff]  ;;  %v11277_v45 = vld [vmem:[%s11161_s24 + $0xb8] sm:$0xff] }
  0x1b   : > { %v602_v43 = vsel %vm538_vm0, %v11267_v41, 0.0  ;;  %v605_v46 = vsel %vm538_vm0, %v11274_v44, 0.0  ;;  %v608_v47 = vsel %vm538_vm0, %v11277_v45, 0.0  ;;  %v11284_v48 = vld [vmem:[%s11161_s24 + $0xc0] sm:$0xff]  ;;  %v11287_v49 = vld [vmem:[%s11161_s24 + $0xc8] sm:$0xff]  ;;  %v11294_v52 = vld [vmem:[%s11161_s24 + $0xd0] sm:$0xff] }
  0x1c   : > { %v611_v50 = vsel %vm538_vm0, %v11284_v48, 0.0  ;;  %v614_v51 = vsel %vm538_vm0, %v11287_v49, 0.0  ;;  %v11297_v53 = vld [vmem:[%s11161_s24 + $0xd8] sm:$0xff]  ;;  %v617_v54 = vsel %vm538_vm0, %v11294_v52, 0.0  ;;  %v11304_v56 = vld [vmem:[%s11161_s24 + $0xe0] sm:$0xff]  ;;  %v11307_v57 = vld [vmem:[%s11161_s24 + $0xe8] sm:$0xff] }
  0x1d   : > { %552 = vadd.xlane.f32.xlu0 %v551_v10  ;;  %555 = vadd.xlane.f32.xlu1 %v554_v11  ;;  %v620_v55 = vsel %vm538_vm0, %v11297_v53, 0.0  ;;  %v623_v58 = vsel %vm538_vm0, %v11304_v56, 0.0  ;;  %v626_v59 = vsel %vm538_vm0, %v11307_v57, 0.0  ;;  %v11314_v60 = vld [vmem:[%s11161_s24 + $0xf0] sm:$0xff]  ;;  %v11317_v61 = vld [vmem:[%s11161_s24 + $0xf8] sm:$0xff] }
  0x1e   : > { %v629_v62 = vsel %vm538_vm0, %v11314_v60, 0.0  ;;  %v632_v63 = vsel %vm538_vm0, %v11317_v61, 0.0 }
  0x21   : > { %558 = vadd.xlane.f32.xlu0 %v557_v14  ;;  %561 = vadd.xlane.f32.xlu1 %v560_v16 }
  0x25   : > { %564 = vadd.xlane.f32.xlu0 %v563_v18  ;;  %567 = vadd.xlane.f32.xlu1 %v566_v19 }
  0x29   : > { %570 = vadd.xlane.f32.xlu0 %v569_v22  ;;  %573 = vadd.xlane.f32.xlu1 %v572_v23 }
  0x2d   : > { %576 = vadd.xlane.f32.xlu0 %v575_v26  ;;  %579 = vadd.xlane.f32.xlu1 %v578_v27 }
  0x31   : > { %582 = vadd.xlane.f32.xlu0 %v581_v30  ;;  %585 = vadd.xlane.f32.xlu1 %v584_v31 }
  0x35   : > { %588 = vadd.xlane.f32.xlu0 %v587_v34  ;;  %591 = vadd.xlane.f32.xlu1 %v590_v35 }
  0x39   : > { %594 = vadd.xlane.f32.xlu0 %v593_v38  ;;  %597 = vadd.xlane.f32.xlu1 %v596_v39 }
  0x3d   : > { %600 = vadd.xlane.f32.xlu0 %v599_v42  ;;  %603 = vadd.xlane.f32.xlu1 %v602_v43 }
  0x41   : > { %606 = vadd.xlane.f32.xlu0 %v605_v46  ;;  %609 = vadd.xlane.f32.xlu1 %v608_v47 }
  0x45   : > { %612 = vadd.xlane.f32.xlu0 %v611_v50  ;;  %615 = vadd.xlane.f32.xlu1 %v614_v51 }
  0x49   : > { %618 = vadd.xlane.f32.xlu0 %v617_v54  ;;  %621 = vadd.xlane.f32.xlu1 %v620_v55 }
  0x4d   : > { %624 = vadd.xlane.f32.xlu0 %v623_v58  ;;  %627 = vadd.xlane.f32.xlu1 %v626_v59 }
  0x51   : > { %630 = vadd.xlane.f32.xlu0 %v629_v62  ;;  %633 = vadd.xlane.f32.xlu1 %v632_v63 }
  0xa2   : > { %v541_v3 = vpop.xlane.xlu0 %540  ;;  %v547_v4 = vpop.xlane.xlu1 %546 }
  0xa3   : > { %v636_v6 = vmul.f32 0.03125, %v541_v3  ;;  %v638_v7 = vmul.f32 0.03125, %v547_v4 }
  0xa5   : > { %v11324_v10 = vsub.f32 %v11164_v0, %v636_v6  ;;  %v11327_v11 = vsub.f32 %v11167_v1, %v638_v7 }
  0xa6   : > { %v544_v14 = vpop.xlane.xlu0 %543  ;;  %v550_v16 = vpop.xlane.xlu1 %549 }
  0xa7   : > { %v637_v18 = vmul.f32 0.03125, %v544_v14  ;;  %v639_v19 = vmul.f32 0.03125, %v550_v16  ;;  %v700_v22 = vmul.f32 %v11324_v10, %v11324_v10  ;;  %v702_v23 = vmul.f32 %v11327_v11, %v11327_v11 }
  0xa9   : > { %v11334_v26 = vsub.f32 %v11170_v2, %v637_v18  ;;  %v11337_v27 = vsub.f32 %v11177_v5, %v639_v19  ;;  %v732_v0 = vsel %vm538_vm0, %v700_v22, 0.0  ;;  %v738_v31 = vsel %vm538_vm0, %v702_v23, 0.0 }
  0xaa   : > { %733 = vadd.xlane.f32.xlu0 %v732_v0  ;;  %v553_v1 = vpop.xlane.xlu0 %552  ;;  %v556_v30 = vpop.xlane.xlu1 %555 }
  0xab   : > { %v640_v34 = vmul.f32 0.03125, %v553_v1  ;;  %v641_v35 = vmul.f32 0.03125, %v556_v30  ;;  %v701_v38 = vmul.f32 %v11334_v26, %v11334_v26  ;;  %v703_v39 = vmul.f32 %v11337_v27, %v11337_v27 }
  0xad   : > { %v11346_v2 = vsub.f32 %v11184_v8, %v640_v34  ;;  %v11349_v5 = vsub.f32 %v11187_v9, %v641_v35  ;;  %v735_v42 = vsel %vm538_vm0, %v701_v38, 0.0  ;;  %v741_v47 = vsel %vm538_vm0, %v703_v39, 0.0 }
  0xae   : > { %739 = vadd.xlane.f32.xlu0 %v738_v31  ;;  %736 = vadd.xlane.f32.xlu1 %v735_v42  ;;  %v559_v43 = vpop.xlane.xlu0 %558  ;;  %v562_v46 = vpop.xlane.xlu1 %561 }
  0xaf   : > { %v642_v50 = vmul.f32 0.03125, %v559_v43  ;;  %v643_v51 = vmul.f32 0.03125, %v562_v46  ;;  %v704_v54 = vmul.f32 %v11346_v2, %v11346_v2  ;;  %v705_v8 = vmul.f32 %v11349_v5, %v11349_v5 }
  0xb1   : > { %v11358_v55 = vsub.f32 %v11194_v12, %v642_v50  ;;  %v11361_v9 = vsub.f32 %v11197_v13, %v643_v51  ;;  %v744_v58 = vsel %vm538_vm0, %v704_v54, 0.0  ;;  %v747_v63 = vsel %vm538_vm0, %v705_v8, 0.0 }
  0xb2   : > { %742 = vadd.xlane.f32.xlu1 %v741_v47  ;;  %745 = vadd.xlane.f32.xlu0 %v744_v58  ;;  %v565_v59 = vpop.xlane.xlu0 %564  ;;  %v568_v62 = vpop.xlane.xlu1 %567 }
  0xb3   : > { %v644_v3 = vmul.f32 0.03125, %v565_v59  ;;  %v645_v4 = vmul.f32 0.03125, %v568_v62  ;;  %v706_v6 = vmul.f32 %v11358_v55, %v11358_v55  ;;  %v707_v12 = vmul.f32 %v11361_v9, %v11361_v9 }
  0xb5   : > { %v11370_v7 = vsub.f32 %v11202_v15, %v644_v3  ;;  %v11373_v13 = vsub.f32 %v11207_v17, %v645_v4  ;;  %v750_v14 = vsel %vm538_vm0, %v706_v6, 0.0  ;;  %v753_v19 = vsel %vm538_vm0, %v707_v12, 0.0 }
  0xb6   : > { %748 = vadd.xlane.f32.xlu1 %v747_v63  ;;  %751 = vadd.xlane.f32.xlu0 %v750_v14  ;;  %v571_v16 = vpop.xlane.xlu0 %570  ;;  %v574_v18 = vpop.xlane.xlu1 %573 }
  0xb7   : > { %v646_v22 = vmul.f32 0.03125, %v571_v16  ;;  %v647_v23 = vmul.f32 0.03125, %v574_v18  ;;  %v708_v0 = vmul.f32 %v11370_v7, %v11370_v7  ;;  %v709_v15 = vmul.f32 %v11373_v13, %v11373_v13 }
  0xb9   : > { %v11382_v1 = vsub.f32 %v11214_v20, %v646_v22  ;;  %v11385_v17 = vsub.f32 %v11217_v21, %v647_v23  ;;  %v756_v30 = vsel %vm538_vm0, %v708_v0, 0.0  ;;  %v759_v35 = vsel %vm538_vm0, %v709_v15, 0.0 }
  0xba   : > { %754 = vadd.xlane.f32.xlu1 %v753_v19  ;;  %757 = vadd.xlane.f32.xlu0 %v756_v30  ;;  %v577_v31 = vpop.xlane.xlu0 %576  ;;  %v580_v34 = vpop.xlane.xlu1 %579 }
  0xbb   : > { %v648_v38 = vmul.f32 0.03125, %v577_v31  ;;  %v649_v39 = vmul.f32 0.03125, %v580_v34  ;;  %v710_v42 = vmul.f32 %v11382_v1, %v11382_v1  ;;  %v711_v20 = vmul.f32 %v11385_v17, %v11385_v17 }
  0xbd   : > { %v11394_v43 = vsub.f32 %v11224_v24, %v648_v38  ;;  %v11397_v21 = vsub.f32 %v11227_v25, %v649_v39  ;;  %v762_v46 = vsel %vm538_vm0, %v710_v42, 0.0  ;;  %v765_v51 = vsel %vm538_vm0, %v711_v20, 0.0 }
  0xbe   : > { %760 = vadd.xlane.f32.xlu1 %v759_v35  ;;  %763 = vadd.xlane.f32.xlu0 %v762_v46  ;;  %v583_v47 = vpop.xlane.xlu0 %582  ;;  %v586_v50 = vpop.xlane.xlu1 %585 }
  0xbf   : > { %v650_v54 = vmul.f32 0.03125, %v583_v47  ;;  %v651_v8 = vmul.f32 0.03125, %v586_v50  ;;  %v712_v58 = vmul.f32 %v11394_v43, %v11394_v43  ;;  %v713_v24 = vmul.f32 %v11397_v21, %v11397_v21 }
  0xc1   : > { %v11406_v59 = vsub.f32 %v11234_v28, %v650_v54  ;;  %v11409_v25 = vsub.f32 %v11237_v29, %v651_v8  ;;  %v768_v62 = vsel %vm538_vm0, %v712_v58, 0.0  ;;  %v771_v4 = vsel %vm538_vm0, %v713_v24, 0.0  ;;  %v10259_v58 = vld [vmem:[%s17260_s4] sm:$0xff]  }
  0xc2   : > { %766 = vadd.xlane.f32.xlu1 %v765_v51  ;;  %769 = vadd.xlane.f32.xlu0 %v768_v62  ;;  %v589_v63 = vpop.xlane.xlu0 %588  ;;  %v592_v3 = vpop.xlane.xlu1 %591 }
  0xc3   : > { %v652_v6 = vmul.f32 0.03125, %v589_v63  ;;  %v653_v12 = vmul.f32 0.03125, %v592_v3  ;;  %v714_v14 = vmul.f32 %v11406_v59, %v11406_v59  ;;  %v715_v28 = vmul.f32 %v11409_v25, %v11409_v25  ;;  %9271 = vmatprep.subr.bf16.mxu0 %v10259_v58 }
  0xc4   : > { %9272 = vmatpush3.bf16.msra.mxu0 %v10259_v58 }
  0xc5   : > { %v11418_v16 = vsub.f32 %v11244_v32, %v652_v6  ;;  %v11421_v29 = vsub.f32 %v11247_v33, %v653_v12  ;;  %v774_v18 = vsel %vm538_vm0, %v714_v14, 0.0  ;;  %v777_v23 = vsel %vm538_vm0, %v715_v28, 0.0  ;;  %v10260_v28 = vld [vmem:[%s17260_s4 + $0x8] sm:$0xff]  }
  0xc6   : > { %772 = vadd.xlane.f32.xlu1 %v771_v4  ;;  %775 = vadd.xlane.f32.xlu0 %v774_v18  ;;  %v595_v19 = vpop.xlane.xlu0 %594  ;;  %v598_v22 = vpop.xlane.xlu1 %597 }
  0xc7   : > { %v654_v0 = vmul.f32 0.03125, %v595_v19  ;;  %v655_v15 = vmul.f32 0.03125, %v598_v22  ;;  %v716_v30 = vmul.f32 %v11418_v16, %v11418_v16  ;;  %v717_v32 = vmul.f32 %v11421_v29, %v11421_v29  ;;  %9273 = vmatprep.subr.bf16.mxu0 %v10260_v28 }
  0xc8   : > { %9274 = vmatpush3.bf16.msra.mxu0 %v10260_v28 }
  0xc9   : > { %v11430_v31 = vsub.f32 %v11254_v36, %v654_v0  ;;  %v11433_v33 = vsub.f32 %v11257_v37, %v655_v15  ;;  %v780_v34 = vsel %vm538_vm0, %v716_v30, 0.0  ;;  %v783_v39 = vsel %vm538_vm0, %v717_v32, 0.0 }
  0xca   : > { %778 = vadd.xlane.f32.xlu1 %v777_v23  ;;  %781 = vadd.xlane.f32.xlu0 %v780_v34  ;;  %v601_v35 = vpop.xlane.xlu0 %600  ;;  %v604_v38 = vpop.xlane.xlu1 %603 }
  0xcb   : > { %v656_v42 = vmul.f32 0.03125, %v601_v35  ;;  %v657_v20 = vmul.f32 0.03125, %v604_v38  ;;  %v718_v46 = vmul.f32 %v11430_v31, %v11430_v31  ;;  %v719_v36 = vmul.f32 %v11433_v33, %v11433_v33 }
  0xcd   : > { %v11442_v47 = vsub.f32 %v11264_v40, %v656_v42  ;;  %v11445_v37 = vsub.f32 %v11267_v41, %v657_v20  ;;  %v786_v50 = vsel %vm538_vm0, %v718_v46, 0.0  ;;  %v789_v8 = vsel %vm538_vm0, %v719_v36, 0.0 }
  0xce   : > { %784 = vadd.xlane.f32.xlu1 %v783_v39  ;;  %787 = vadd.xlane.f32.xlu0 %v786_v50  ;;  %v607_v51 = vpop.xlane.xlu0 %606  ;;  %v610_v54 = vpop.xlane.xlu1 %609 }
  0xcf   : > { %v658_v24 = vmul.f32 0.03125, %v607_v51  ;;  %v659_v62 = vmul.f32 0.03125, %v610_v54  ;;  %v720_v40 = vmul.f32 %v11442_v47, %v11442_v47  ;;  %v721_v41 = vmul.f32 %v11445_v37, %v11445_v37 }
  0xd1   : > { %v11457_v63 = vsub.f32 %v11274_v44, %v658_v24  ;;  %v11460_v3 = vsub.f32 %v11277_v45, %v659_v62  ;;  %v792_v4 = vsel %vm538_vm0, %v720_v40, 0.0  ;;  %v795_v14 = vsel %vm538_vm0, %v721_v41, 0.0 }
  0xd2   : > { %790 = vadd.xlane.f32.xlu1 %v789_v8  ;;  %793 = vadd.xlane.f32.xlu0 %v792_v4  ;;  %v613_v6 = vpop.xlane.xlu0 %612  ;;  %v616_v12 = vpop.xlane.xlu1 %615 }
  0xd3   : > { %v660_v18 = vmul.f32 0.03125, %v613_v6  ;;  %v661_v19 = vmul.f32 0.03125, %v616_v12  ;;  %v722_v44 = vmul.f32 %v11457_v63, %v11457_v63  ;;  %v723_v45 = vmul.f32 %v11460_v3, %v11460_v3 }
  0xd5   : > { %v11472_v22 = vsub.f32 %v11284_v48, %v660_v18  ;;  %v11475_v23 = vsub.f32 %v11287_v49, %v661_v19  ;;  %v798_v0 = vsel %vm538_vm0, %v722_v44, 0.0  ;;  %v801_v32 = vsel %vm538_vm0, %v723_v45, 0.0 }
  0xd6   : > { %796 = vadd.xlane.f32.xlu1 %v795_v14  ;;  %799 = vadd.xlane.f32.xlu0 %v798_v0  ;;  %v619_v15 = vpop.xlane.xlu0 %618  ;;  %v622_v30 = vpop.xlane.xlu1 %621 }
  0xd7   : > { %v662_v34 = vmul.f32 0.03125, %v619_v15  ;;  %v663_v35 = vmul.f32 0.03125, %v622_v30  ;;  %v724_v38 = vmul.f32 %v11472_v22, %v11472_v22  ;;  %v725_v48 = vmul.f32 %v11475_v23, %v11475_v23 }
  0xd9   : > { %v11484_v49 = vsub.f32 %v11294_v52, %v662_v34  ;;  %v11487_v39 = vsub.f32 %v11297_v53, %v663_v35  ;;  %v804_v42 = vsel %vm538_vm0, %v724_v38, 0.0  ;;  %v807_v36 = vsel %vm538_vm0, %v725_v48, 0.0 }
  0xda   : > { %802 = vadd.xlane.f32.xlu1 %v801_v32  ;;  %805 = vadd.xlane.f32.xlu0 %v804_v42  ;;  %v625_v20 = vpop.xlane.xlu0 %624  ;;  %v628_v46 = vpop.xlane.xlu1 %627 }
  0xdb   : > { %v664_v50 = vmul.f32 0.03125, %v625_v20  ;;  %v665_v51 = vmul.f32 0.03125, %v628_v46  ;;  %v726_v54 = vmul.f32 %v11484_v49, %v11484_v49  ;;  %v727_v52 = vmul.f32 %v11487_v39, %v11487_v39 }
  0xdd   : > { %v11496_v8 = vsub.f32 %v11304_v56, %v664_v50  ;;  %v11499_v53 = vsub.f32 %v11307_v57, %v665_v51  ;;  %v810_v58 = vsel %vm538_vm0, %v726_v54, 0.0  ;;  %v813_v40 = vsel %vm538_vm0, %v727_v52, 0.0 }
  0xde   : > { %808 = vadd.xlane.f32.xlu1 %v807_v36  ;;  %811 = vadd.xlane.f32.xlu0 %v810_v58  ;;  %v631_v24 = vpop.xlane.xlu0 %630  ;;  %v634_v62 = vpop.xlane.xlu1 %633 }
  0xdf   : > { %v666_v41 = vmul.f32 0.03125, %v631_v24  ;;  %v667_v4 = vmul.f32 0.03125, %v634_v62  ;;  %v728_v6 = vmul.f32 %v11496_v8, %v11496_v8  ;;  %v729_v56 = vmul.f32 %v11499_v53, %v11499_v53 }
  0xe1   : > { %v11508_v12 = vsub.f32 %v11314_v60, %v666_v41  ;;  %v11511_v57 = vsub.f32 %v11317_v61, %v667_v4  ;;  %v816_v14 = vsel %vm538_vm0, %v728_v6, 0.0  ;;  %v819_v28 = vsel %vm538_vm0, %v729_v56, 0.0 }
  0xe2   : > { %814 = vadd.xlane.f32.xlu1 %v813_v40  ;;  %817 = vadd.xlane.f32.xlu0 %v816_v14 }
  0xe3   : > { %v730_v18 = vmul.f32 %v11508_v12, %v11508_v12  ;;  %v731_v19 = vmul.f32 %v11511_v57, %v11511_v57 }
  0xe5   : > { %v822_v44 = vsel %vm538_vm0, %v730_v18, 0.0  ;;  %v825_v60 = vsel %vm538_vm0, %v731_v19, 0.0 }
  0xe6   : > { %820 = vadd.xlane.f32.xlu1 %v819_v28  ;;  %823 = vadd.xlane.f32.xlu0 %v822_v44  ;;  %v11525_v28 = vld [vmem:[%s17258_s2] ss:$0 sm:$0xff] }
  0xea   : > { %826 = vadd.xlane.f32.xlu1 %v825_v60 }
 0x137   : > { %v734_v61 = vpop.xlane.xlu0 %733 }
 0x138   : > { %v828_v45 = vmul.f32 0.03125, %v734_v61 }
 0x13a   : > { %v860_v0 = vadd.f32 1e-06, %v828_v45 }
 0x13b   : > { %v737_v15 = vpop.xlane.xlu1 %736  ;;  %v740_v30 = vpop.xlane.xlu0 %739 }
 0x13c   : > { %10273 = vrsqrt.f32 %v860_v0  ;;  %v829_v32 = vmul.f32 0.03125, %v737_v15  ;;  %v830_v34 = vmul.f32 0.03125, %v740_v30 }
 0x13e   : > { %v861_v35 = vadd.f32 1e-06, %v829_v32  ;;  %v862_v38 = vadd.f32 1e-06, %v830_v34  ;;  %v11532_v32 = vld [vmem:[%s17259_s3] ss:$0 sm:$0xff] }
 0x13f   : > { %v743_v48 = vpop.xlane.xlu1 %742  ;;  %v746_v42 = vpop.xlane.xlu0 %745 }
 0x140   : > { %10275 = vrsqrt.f32 %v861_v35  ;;  %v831_v20 = vmul.f32 0.03125, %v743_v48  ;;  %v832_v46 = vmul.f32 0.03125, %v746_v42 }
 0x141   : > { %10277 = vrsqrt.f32 %v862_v38 }
 0x142   : > { %v863_v36 = vadd.f32 1e-06, %v831_v20  ;;  %v864_v50 = vadd.f32 1e-06, %v832_v46 }
 0x143   : > { %v749_v51 = vpop.xlane.xlu1 %748  ;;  %v752_v54 = vpop.xlane.xlu0 %751 }
 0x144   : > { %10279 = vrsqrt.f32 %v863_v36  ;;  %v833_v52 = vmul.f32 0.03125, %v749_v51  ;;  %v834_v58 = vmul.f32 0.03125, %v752_v54 }
 0x145   : > { %10281 = vrsqrt.f32 %v864_v50 }
 0x146   : > { %v10274_v24 = vpop.eup %10273  ;;  %v865_v62 = vadd.f32 1e-06, %v833_v52  ;;  %v866_v40 = vadd.f32 1e-06, %v834_v58 }
 0x147   : > { %v755_v41 = vpop.xlane.xlu1 %754  ;;  %v758_v4 = vpop.xlane.xlu0 %757  ;;  %v924_v6 = vmul.f32 %v10274_v24, %v11324_v10 }
 0x148   : > { %10283 = vrsqrt.f32 %v865_v62  ;;  %v835_v56 = vmul.f32 0.03125, %v755_v41  ;;  %v836_v14 = vmul.f32 0.03125, %v758_v4 }
 0x149   : > { %10285 = vrsqrt.f32 %v866_v40  ;;  %v962_v15 = vmul.f32 %v11525_v28, %v924_v6 }
 0x14a   : > { %v10276_v18 = vpop.eup %10275  ;;  %v867_v19 = vadd.f32 1e-06, %v835_v56  ;;  %v868_v44 = vadd.f32 1e-06, %v836_v14 }
 0x14b   : > { %v10278_v60 = vpop.eup %10277  ;;  %v761_v61 = vpop.xlane.xlu1 %760  ;;  %v925_v0 = vmul.f32 %v10276_v18, %v11334_v26  ;;  %v1000_v36 = vadd.f32 %v11532_v32, %v962_v15 }
 0x14c   : > { %v764_v45 = vpop.xlane.xlu0 %763  ;;  %10287 = vrsqrt.f32 %v867_v19  ;;  %v837_v10 = vmul.f32 0.03125, %v761_v61  ;;  %v926_v34 = vmul.f32 %v10278_v60, %v11327_v11 }
 0x14d   : > { %v838_v30 = vmul.f32 0.03125, %v764_v45  ;;  %10289 = vrsqrt.f32 %v868_v44  ;;  %v963_v35 = vmul.f32 %v11525_v28, %v925_v0 }
 0x14e   : > { %v10280_v38 = vpop.eup %10279  ;;  %v869_v48 = vadd.f32 1e-06, %v837_v10  ;;  %v964_v54 = vmul.f32 %v11525_v28, %v926_v34 }
 0x14f   : > { %v870_v42 = vadd.f32 1e-06, %v838_v30  ;;  %v10282_v20 = vpop.eup %10281  ;;  %v767_v26 = vpop.xlane.xlu1 %766  ;;  %v1001_v50 = vadd.f32 %v11532_v32, %v963_v35  ;;  %v927_v51 = vmul.f32 %v10280_v38, %v11337_v27 }
 0x150   : > { %v770_v46 = vpop.xlane.xlu0 %769  ;;  %10291 = vrsqrt.f32 %v869_v48  ;;  %v839_v52 = vmul.f32 0.03125, %v767_v26  ;;  %v928_v62 = vmul.f32 %v10282_v20, %v11346_v2  ;;  %v1002_v27 = vadd.f32 %v11532_v32, %v964_v54 }
 0x151   : > { %v840_v11 = vmul.f32 0.03125, %v770_v46  ;;  %10293 = vrsqrt.f32 %v870_v42  ;;  %v1032_v58 = vpack.c.bf16 %v1001_v50, %v1000_v36  ;;  %v965_v24 = vmul.f32 %v11525_v28, %v927_v51 }
 0x152   : > { %v10284_v40 = vpop.eup %10283  ;;  %v871_v41 = vadd.f32 1e-06, %v839_v52  ;;  %v966_v44 = vmul.f32 %v11525_v28, %v928_v62 }
 0x153   : > { %v872_v4 = vadd.f32 1e-06, %v840_v11  ;;  %v10286_v6 = vpop.eup %10285  ;;  %v773_v56 = vpop.xlane.xlu1 %772  ;;  %9275 = vmatprep.mubr.msk.bf16.mxu0 %vm538_vm0, %v1032_v58  ;;  %v1003_v18 = vadd.f32 %v11532_v32, %v965_v24  ;;  %v929_v19 = vmul.f32 %v10284_v40, %v11349_v5 }
 0x154   : > { %v776_v14 = vpop.xlane.xlu0 %775  ;;  %10295 = vrsqrt.f32 %v871_v41  ;;  %v841_v60 = vmul.f32 0.03125, %v773_v56  ;;  %v930_v2 = vmul.f32 %v10286_v6, %v11358_v55  ;;  %v1004_v5 = vadd.f32 %v11532_v32, %v966_v44 }
 0x155   : > { %v842_v61 = vmul.f32 0.03125, %v776_v14  ;;  %10297 = vrsqrt.f32 %v872_v4  ;;  %v1033_v45 = vpack.c.bf16 %v1003_v18, %v1002_v27  ;;  %v967_v0 = vmul.f32 %v11525_v28, %v929_v19 }
 0x156   : > { %v10288_v15 = vpop.eup %10287  ;;  %v873_v10 = vadd.f32 1e-06, %v841_v60  ;;  %v968_v55 = vmul.f32 %v11525_v28, %v930_v2 }
 0x157   : > { %v874_v30 = vadd.f32 1e-06, %v842_v61  ;;  %v10290_v34 = vpop.eup %10289  ;;  %v779_v35 = vpop.xlane.xlu1 %778  ;;  %9276 = vmatmul.mubr.msk.bf16.vlgmr.msra.gmra.mrb[0].mxu0 %vm538_vm0, %v1033_v45  ;;  %v1005_v48 = vadd.f32 %v11532_v32, %v967_v0  ;;  %v931_v42 = vmul.f32 %v10288_v15, %v11361_v9 }
 0x158   : > { %v782_v38 = vpop.xlane.xlu0 %781  ;;  %10299 = vrsqrt.f32 %v873_v10  ;;  %v843_v20 = vmul.f32 0.03125, %v779_v35  ;;  %v932_v50 = vmul.f32 %v10290_v34, %v11370_v7  ;;  %v1006_v9 = vadd.f32 %v11532_v32, %v968_v55 }
 0x159   : > { %v844_v26 = vmul.f32 0.03125, %v782_v38  ;;  %10301 = vrsqrt.f32 %v874_v30  ;;  %v1034_v46 = vpack.c.bf16 %v1005_v48, %v1004_v5  ;;  %v969_v36 = vmul.f32 %v11525_v28, %v931_v42 }
 0x15a   : > { %v10292_v51 = vpop.eup %10291  ;;  %v875_v54 = vadd.f32 1e-06, %v843_v20  ;;  %v970_v41 = vmul.f32 %v11525_v28, %v932_v50 }
 0x15b   : > { %v876_v52 = vadd.f32 1e-06, %v844_v26  ;;  %v10294_v11 = vpop.eup %10293  ;;  %v785_v58 = vpop.xlane.xlu1 %784  ;;  %9279 = vmatprep.mubr.msk.bf16.mxu0 %vm538_vm0, %v1034_v46  ;;  %v1007_v62 = vadd.f32 %v11532_v32, %v969_v36  ;;  %v933_v40 = vmul.f32 %v10292_v51, %v11373_v13 }
 0x15c   : > { %v788_v24 = vpop.xlane.xlu0 %787  ;;  %10303 = vrsqrt.f32 %v875_v54  ;;  %v845_v4 = vmul.f32 0.03125, %v785_v58  ;;  %v934_v7 = vmul.f32 %v10294_v11, %v11382_v1  ;;  %v1008_v13 = vadd.f32 %v11532_v32, %v970_v41 }
 0x15d   : > { %v846_v6 = vmul.f32 0.03125, %v788_v24  ;;  %10305 = vrsqrt.f32 %v876_v52  ;;  %v1035_v56 = vpack.c.bf16 %v1007_v62, %v1006_v9  ;;  %v971_v14 = vmul.f32 %v11525_v28, %v933_v40 }
 0x15e   : > { %v10296_v27 = vpop.eup %10295  ;;  %v877_v18 = vadd.f32 1e-06, %v845_v4  ;;  %v972_v1 = vmul.f32 %v11525_v28, %v934_v7 }
 0x15f   : > { %v878_v19 = vadd.f32 1e-06, %v846_v6  ;;  %v10298_v44 = vpop.eup %10297  ;;  %v791_v60 = vpop.xlane.xlu1 %790  ;;  %9280 = vmatmul.mubr.msk.bf16.gmra.mrb[4].mxu0 %vm538_vm0, %v1035_v56  ;;  %v1009_v2 = vadd.f32 %v11532_v32, %v971_v14  ;;  %v935_v45 = vmul.f32 %v10296_v27, %v11385_v17 }
 0x160   : > { %v794_v61 = vpop.xlane.xlu0 %793  ;;  %10307 = vrsqrt.f32 %v877_v18  ;;  %v847_v0 = vmul.f32 0.03125, %v791_v60  ;;  %v936_v34 = vmul.f32 %v10298_v44, %v11394_v43  ;;  %v1010_v17 = vadd.f32 %v11532_v32, %v972_v1 }
 0x161   : > { %v848_v15 = vmul.f32 0.03125, %v794_v61  ;;  %10309 = vrsqrt.f32 %v878_v19  ;;  %v1036_v10 = vpack.c.bf16 %v1009_v2, %v1008_v13  ;;  %v973_v30 = vmul.f32 %v11525_v28, %v935_v45 }
 0x162   : > { %v10300_v35 = vpop.eup %10299  ;;  %v879_v38 = vadd.f32 1e-06, %v847_v0  ;;  %v974_v46 = vmul.f32 %v11525_v28, %v936_v34 }
 0x163   : > { %v880_v5 = vadd.f32 1e-06, %v848_v15  ;;  %v10302_v48 = vpop.eup %10301  ;;  %v797_v42 = vpop.xlane.xlu1 %796  ;;  %9283 = vmatprep.mubr.msk.bf16.mxu0 %vm538_vm0, %v1036_v10  ;;  %v1011_v20 = vadd.f32 %v11532_v32, %v973_v30  ;;  %v937_v26 = vmul.f32 %v10300_v35, %v11397_v21 }
 0x164   : > { %v800_v55 = vpop.xlane.xlu0 %799  ;;  %10311 = vrsqrt.f32 %v879_v38  ;;  %v849_v36 = vmul.f32 0.03125, %v797_v42  ;;  %v938_v43 = vmul.f32 %v10302_v48, %v11406_v59  ;;  %v1012_v21 = vadd.f32 %v11532_v32, %v974_v46 }
 0x165   : > { %v850_v50 = vmul.f32 0.03125, %v800_v55  ;;  %10313 = vrsqrt.f32 %v880_v5  ;;  %v1037_v51 = vpack.c.bf16 %v1011_v20, %v1010_v17  ;;  %v975_v54 = vmul.f32 %v11525_v28, %v937_v26 }
 0x166   : > { %v10304_v52 = vpop.eup %10303  ;;  %v881_v11 = vadd.f32 1e-06, %v849_v36  ;;  %v976_v59 = vmul.f32 %v11525_v28, %v938_v43 }
 0x167   : > { %v882_v58 = vadd.f32 1e-06, %v850_v50  ;;  %v10306_v24 = vpop.eup %10305  ;;  %v803_v9 = vpop.xlane.xlu1 %802  ;;  %9284 = vmatmul.mubr.msk.bf16.gmra.mrb[8].mxu0 %vm538_vm0, %v1037_v51  ;;  %v1013_v40 = vadd.f32 %v11532_v32, %v975_v54  ;;  %v939_v41 = vmul.f32 %v10304_v52, %v11409_v25 }
 0x168   : > { %v806_v62 = vpop.xlane.xlu0 %805  ;;  %10315 = vrsqrt.f32 %v881_v11  ;;  %v851_v4 = vmul.f32 0.03125, %v803_v9  ;;  %v940_v14 = vmul.f32 %v10306_v24, %v11418_v16  ;;  %v1014_v25 = vadd.f32 %v11532_v32, %v976_v59 }
 0x169   : > { %v852_v6 = vmul.f32 0.03125, %v806_v62  ;;  %10317 = vrsqrt.f32 %v882_v58  ;;  %v1038_v7 = vpack.c.bf16 %v1013_v40, %v1012_v21  ;;  %v977_v56 = vmul.f32 %v11525_v28, %v939_v41 }
 0x16a   : > { %v10308_v27 = vpop.eup %10307  ;;  %v883_v18 = vadd.f32 1e-06, %v851_v4  ;;  %v978_v45 = vmul.f32 %v11525_v28, %v940_v14 }
 0x16b   : > { %v884_v19 = vadd.f32 1e-06, %v852_v6  ;;  %v10310_v44 = vpop.eup %10309  ;;  %v809_v60 = vpop.xlane.xlu1 %808  ;;  %9287 = vmatprep.mubr.msk.bf16.mxu0 %vm538_vm0, %v1038_v7  ;;  %v1015_v13 = vadd.f32 %v11532_v32, %v977_v56  ;;  %v941_v2 = vmul.f32 %v10308_v27, %v11421_v29 }
 0x16c   : > { %v812_v61 = vpop.xlane.xlu0 %811  ;;  %10319 = vrsqrt.f32 %v883_v18  ;;  %v853_v1 = vmul.f32 0.03125, %v809_v60  ;;  %v942_v16 = vmul.f32 %v10310_v44, %v11430_v31  ;;  %v1016_v29 = vadd.f32 %v11532_v32, %v978_v45 }
 0x16d   : > { %v854_v0 = vmul.f32 0.03125, %v812_v61  ;;  %10321 = vrsqrt.f32 %v884_v19  ;;  %v1039_v15 = vpack.c.bf16 %v1015_v13, %v1014_v25  ;;  %v979_v10 = vmul.f32 %v11525_v28, %v941_v2 }
 0x16e   : > { %v10312_v30 = vpop.eup %10311  ;;  %v885_v34 = vadd.f32 1e-06, %v853_v1  ;;  %v980_v31 = vmul.f32 %v11525_v28, %v942_v16 }
 0x16f   : > { %v886_v35 = vadd.f32 1e-06, %v854_v0  ;;  %v10314_v38 = vpop.eup %10313  ;;  %v815_v5 = vpop.xlane.xlu1 %814  ;;  %9288 = vmatmul.mubr.msk.bf16.gmra.mrb[12].mxu0 %vm538_vm0, %v1039_v15  ;;  %v1017_v42 = vadd.f32 %v11532_v32, %v979_v10  ;;  %v943_v55 = vmul.f32 %v10312_v30, %v11433_v33 }
 0x170   : > { %v818_v48 = vpop.xlane.xlu0 %817  ;;  %10323 = vrsqrt.f32 %v885_v34  ;;  %v855_v17 = vmul.f32 0.03125, %v815_v5  ;;  %v944_v36 = vmul.f32 %v10314_v38, %v11442_v47  ;;  %v1018_v33 = vadd.f32 %v11532_v32, %v980_v31 }
 0x171   : > { %v856_v20 = vmul.f32 0.03125, %v818_v48  ;;  %10325 = vrsqrt.f32 %v886_v35  ;;  %v1040_v26 = vpack.c.bf16 %v1017_v42, %v1016_v29  ;;  %v981_v46 = vmul.f32 %v11525_v28, %v943_v55 }
 0x172   : > { %v10316_v50 = vpop.eup %10315  ;;  %v887_v43 = vadd.f32 1e-06, %v855_v17  ;;  %v982_v9 = vmul.f32 %v11525_v28, %v944_v36 }
 0x173   : > { %v888_v51 = vadd.f32 1e-06, %v856_v20  ;;  %v10318_v54 = vpop.eup %10317  ;;  %v821_v52 = vpop.xlane.xlu1 %820  ;;  %9291 = vmatprep.mubr.msk.bf16.mxu0 %vm538_vm0, %v1040_v26  ;;  %v1019_v58 = vadd.f32 %v11532_v32, %v981_v46  ;;  %v945_v24 = vmul.f32 %v10316_v50, %v11445_v37 }
 0x174   : > { %v824_v11 = vpop.xlane.xlu0 %823  ;;  %10327 = vrsqrt.f32 %v887_v43  ;;  %v857_v62 = vmul.f32 0.03125, %v821_v52  ;;  %v946_v47 = vmul.f32 %v10318_v54, %v11457_v63  ;;  %v1020_v37 = vadd.f32 %v11532_v32, %v982_v9 }
 0x175   : > { %v858_v21 = vmul.f32 0.03125, %v824_v11  ;;  %10329 = vrsqrt.f32 %v888_v51  ;;  %v1041_v40 = vpack.c.bf16 %v1019_v58, %v1018_v33  ;;  %v983_v41 = vmul.f32 %v11525_v28, %v945_v24  ;;  %v11646_v11 = vld [vmem:[%s17261_s5] ss:$0 sm:$0xff] }
 0x176   : > { %v10320_v59 = vpop.eup %10319  ;;  %v889_v4 = vadd.f32 1e-06, %v857_v62  ;;  %v984_v18 = vmul.f32 %v11525_v28, %v946_v47 }
 0x177   : > { %v890_v6 = vadd.f32 1e-06, %v858_v21  ;;  %v10322_v7 = vpop.eup %10321  ;;  %v827_v56 = vpop.xlane.xlu1 %826  ;;  %9292 = vmatmul.mubr.msk.bf16.gmra.mrb[16].mxu0 %vm538_vm0, %v1041_v40  ;;  %v1021_v14 = vadd.f32 %v11532_v32, %v983_v41  ;;  %v947_v27 = vmul.f32 %v10320_v59, %v11460_v3 }
 0x178   : > { %10331 = vrsqrt.f32 %v889_v4  ;;  %v859_v63 = vmul.f32 0.03125, %v827_v56  ;;  %v948_v19 = vmul.f32 %v10322_v7, %v11472_v22  ;;  %v1022_v2 = vadd.f32 %v11532_v32, %v984_v18 }
 0x179   : > { %10333 = vrsqrt.f32 %v890_v6  ;;  %v1042_v44 = vpack.c.bf16 %v1021_v14, %v1020_v37  ;;  %v985_v60 = vmul.f32 %v11525_v28, %v947_v27 }
 0x17a   : > { %v10324_v61 = vpop.eup %10323  ;;  %v891_v25 = vadd.f32 1e-06, %v859_v63  ;;  %v986_v1 = vmul.f32 %v11525_v28, %v948_v19 }
 0x17b   : > { %v10326_v13 = vpop.eup %10325  ;;  %9295 = vmatprep.mubr.msk.bf16.mxu0 %vm538_vm0, %v1042_v44  ;;  %v1023_v45 = vadd.f32 %v11532_v32, %v985_v60  ;;  %v949_v3 = vmul.f32 %v10324_v61, %v11475_v23 }
 0x17c   : > { %10335 = vrsqrt.f32 %v891_v25  ;;  %v950_v22 = vmul.f32 %v10326_v13, %v11484_v49  ;;  %v1024_v30 = vadd.f32 %v11532_v32, %v986_v1 }
 0x17d   : > { %v1043_v0 = vpack.c.bf16 %v1023_v45, %v1022_v2  ;;  %v987_v16 = vmul.f32 %v11525_v28, %v949_v3 }
 0x17e   : > { %v10328_v15 = vpop.eup %10327  ;;  %v988_v23 = vmul.f32 %v11525_v28, %v950_v22 }
 0x17f   : > { %v10330_v10 = vpop.eup %10329  ;;  %9296 = vmatmul.mubr.msk.bf16.gmra.mrb[20].mxu0 %vm538_vm0, %v1043_v0  ;;  %v1025_v34 = vadd.f32 %v11532_v32, %v987_v16  ;;  %v951_v35 = vmul.f32 %v10328_v15, %v11487_v39 }
 0x180   : > { %v952_v38 = vmul.f32 %v10330_v10, %v11496_v8  ;;  %v1026_v42 = vadd.f32 %v11532_v32, %v988_v23 }
 0x181   : > { %v1044_v5 = vpack.c.bf16 %v1025_v34, %v1024_v30  ;;  %v989_v49 = vmul.f32 %v11525_v28, %v951_v35 }
 0x182   : > { %v10332_v48 = vpop.eup %10331  ;;  %v990_v17 = vmul.f32 %v11525_v28, %v952_v38 }
 0x183   : > { %v10334_v29 = vpop.eup %10333  ;;  %9299 = vmatprep.mubr.msk.bf16.mxu0 %vm538_vm0, %v1044_v5  ;;  %v1027_v55 = vadd.f32 %v11532_v32, %v989_v49  ;;  %v953_v31 = vmul.f32 %v10332_v48, %v11499_v53 }
 0x184   : > { %v954_v39 = vmul.f32 %v10334_v29, %v11508_v12  ;;  %v1028_v46 = vadd.f32 %v11532_v32, %v990_v17 }
 0x185   : > { %v1045_v20 = vpack.c.bf16 %v1027_v55, %v1026_v42  ;;  %v991_v8 = vmul.f32 %v11525_v28, %v953_v31 }
 0x186   : > { %v10336_v26 = vpop.eup %10335  ;;  %v992_v43 = vmul.f32 %v11525_v28, %v954_v39 }
 0x187   : > { %9300 = vmatmul.mubr.msk.bf16.gmra.mrb[24].mxu0 %vm538_vm0, %v1045_v20  ;;  %v1029_v36 = vadd.f32 %v11532_v32, %v991_v8  ;;  %v955_v50 = vmul.f32 %v10336_v26, %v11511_v57 }
 0x188   : > { %v1030_v12 = vadd.f32 %v11532_v32, %v992_v43 }
 0x189   : > { %v1046_v51 = vpack.c.bf16 %v1029_v36, %v1028_v46  ;;  %v993_v53 = vmul.f32 %v11525_v28, %v955_v50 }
 0x18b   : > { %9303 = vmatprep.mubr.msk.bf16.mxu0 %vm538_vm0, %v1046_v51  ;;  %v1031_v54 = vadd.f32 %v11532_v32, %v993_v53 }
 0x18d   : > { %v1047_v52 = vpack.c.bf16 %v1031_v54, %v1030_v12 }
 0x18f   : > { %9304 = vmatmul.mubr.msk.bf16.gmra.mrb[28].mxu0 %vm538_vm0, %v1047_v52 }
 0x22a   : > { %v9277_v57 = vpop.f32.mrb[0].mxu0 }
 0x22b   : > { %v1162_v33 = vadd.f32 %v9277_v57, %v11646_v11  ;;  %v1153_v58 = vpop.f32.mrb[1].mxu0 }
 0x22c   : > { %v1154_v28 = vadd.f32 %v11646_v11, %v1153_v58  ;;  %v9278_v24 = vpop.f32.mrb[2].mxu0 }
 0x22d   : > { %v1165_v9 = vadd.f32 %v9278_v24, %v11646_v11  ;;  %1316 = vrot.lane.b32.xlu0 %v1162_v33, %s11057_s23  ;;  %v1156_v32 = vpop.f32.mrb[3].mxu0  ;;  %v11656_v21 = vmul.f32 0.35355338, %v1162_v33 }
 0x22e   : > { %v11653_v62 = vadd.f32 %v11646_v11, %v1156_v32  ;;  %1312 = vrot.lane.b32.xlu1 %v1154_v28, %s11057_s23  ;;  %v1600_v41 = vmul.f32 0.35355338, %v1154_v28 }
 0x22f   : > { %v11658_v47 = vmul.f32 0.35355338, %v1165_v9  ;;  %v11660_v40 = vpack.c.bf16 %v1165_v9, %v1162_v33 }
 0x230   : > { %v1601_v59 = vmul.f32 0.35355338, %v11653_v62  ;;  %v1792_v4 = vpack.c.bf16 %v11653_v62, %v1154_v28 }
 0x231   : > { %1412 = vrot.lane.b32.xlu0 %v1162_v33, %s11058_s25 }
 0x232   : > { %1318 = vrot.lane.b32.xlu1 %v1165_v9, %s11057_s23  ;;  %v9281_v7 = vpop.f32.mrb[4].mxu0  ;;  %v1728_v56 = vpack.c.bf16 %v1601_v59, %v1600_v41 }
 0x233   : > { %v11669_v37 = vadd.f32 %v9281_v7, %v11646_v11  ;;  %v1169_v14 = vpop.f32.mrb[5].mxu0 }
 0x234   : > { %v11672_v27 = vadd.f32 %v11646_v11, %v1169_v14  ;;  %v9282_v18 = vpop.f32.mrb[6].mxu0  ;;  %9315 = vmatprep.mubr.msk.bf16.mxu0 %vm1868_vm1, %v1728_v56 }
 0x235   : > { %v11676_v63 = vadd.f32 %v9282_v18, %v11646_v11  ;;  %1508 = vrot.lane.b32.xlu0 %v1162_v33, %s11059_s26  ;;  %v1172_v19 = vpop.f32.mrb[7].mxu0  ;;  %v11688_v61 = vmul.f32 0.35355338, %v11669_v37 }
 0x236   : > { %v11680_v44 = vadd.f32 %v11646_v11, %v1172_v19  ;;  %1414 = vrot.lane.b32.xlu1 %v1165_v9, %s11058_s25  ;;  %v11698_v2 = vmul.f32 0.35355338, %v11672_v27 }
 0x237   : > { %v11685_v60 = vpack.c.bf16 %v11676_v63, %v11669_v37  ;;  %v11691_v25 = vmul.f32 0.35355338, %v11676_v63 }
 0x238   : > { %v11695_v13 = vpack.c.bf16 %v11680_v44, %v11672_v27  ;;  %v11701_v45 = vmul.f32 0.35355338, %v11680_v44 }
 0x239   : > { %1408 = vrot.lane.b32.xlu0 %v1154_v28, %s11058_s25 }
 0x23a   : > { %1510 = vrot.lane.b32.xlu1 %v1165_v9, %s11059_s26  ;;  %v9285_v1 = vpop.f32.mrb[8].mxu0 }
 0x23b   : > { %v11710_v0 = vadd.f32 %v9285_v1, %v11646_v11  ;;  %v1185_v16 = vpop.f32.mrb[9].mxu0 }
 0x23c   : > { %v11713_v15 = vadd.f32 %v11646_v11, %v1185_v16  ;;  %v9286_v10 = vpop.f32.mrb[10].mxu0 }
 0x23d   : > { %v11716_v30 = vadd.f32 %v9286_v10, %v11646_v11  ;;  %1504 = vrot.lane.b32.xlu0 %v1154_v28, %s11059_s26  ;;  %v1188_v34 = vpop.f32.mrb[11].mxu0  ;;  %v11729_v38 = vmul.f32 0.35355338, %v11710_v0 }
 0x23e   : > { %v11720_v35 = vadd.f32 %v11646_v11, %v1188_v34  ;;  %1314 = vrot.lane.b32.xlu1 %v11653_v62, %s11057_s23  ;;  %v1608_v49 = vmul.f32 0.35355338, %v11713_v15 }
 0x23f   : > { %v11726_v23 = vpack.c.bf16 %v11716_v30, %v11710_v0  ;;  %v11732_v5 = vmul.f32 0.35355338, %v11716_v30 }
 0x240   : > { %v1609_v48 = vmul.f32 0.35355338, %v11720_v35 }
 0x241   : > { %1860 = vrot.lane.b32.xlu0 %v1792_v4, %s11060_s27 }
 0x242   : > { %1410 = vrot.lane.b32.xlu1 %v11653_v62, %s11058_s25  ;;  %v9289_v42 = vpop.f32.mrb[12].mxu0  ;;  %v1732_v55 = vpack.c.bf16 %v1609_v48, %v1608_v49 }
 0x243   : > { %v11742_v31 = vadd.f32 %v9289_v42, %v11646_v11  ;;  %v1201_v17 = vpop.f32.mrb[13].mxu0 }
 0x244   : > { %v11745_v39 = vadd.f32 %v11646_v11, %v1201_v17  ;;  %v9290_v20 = vpop.f32.mrb[14].mxu0  ;;  %9331 = vmatprep.mubr.msk.bf16.mxu1 %vm1868_vm1, %v1732_v55 }
 0x245   : > { %v11749_v8 = vadd.f32 %v9290_v20, %v11646_v11  ;;  %5266 = vrot.lane.b32.xlu0 %v1792_v4, %s11061_s28  ;;  %v1204_v26 = vpop.f32.mrb[15].mxu0 }
 0x246   : > { %v11753_v46 = vadd.f32 %v11646_v11, %v1204_v26  ;;  %1506 = vrot.lane.b32.xlu1 %v11653_v62, %s11059_s26 }
 0x249   : > { %1324 = vrot.lane.b32.xlu0 %v11669_v37, %s11057_s23 }
 0x24a   : > { %1862 = vrot.lane.b32.xlu1 %v11660_v40, %s11060_s27  ;;  %v9293_v36 = vpop.f32.mrb[16].mxu0 }
 0x24b   : > { %v11762_v50 = vadd.f32 %v9293_v36, %v11646_v11  ;;  %v1217_v43 = vpop.f32.mrb[17].mxu0 }
 0x24c   : > { %v11765_v51 = vadd.f32 %v11646_v11, %v1217_v43  ;;  %v9294_v53 = vpop.f32.mrb[18].mxu0 }
 0x24d   : > { %17649 = vst [vmem:[#allocation2_spill] sm:$0xff] %v11762_v50  ;;  %v11768_v12 = vadd.f32 %v9294_v53, %v11646_v11  ;;  %1420 = vrot.lane.b32.xlu0 %v11669_v37, %s11058_s25  ;;  %v1220_v54 = vpop.f32.mrb[19].mxu0 }
 0x24e   : > { %v11773_v52 = vadd.f32 %v11646_v11, %v1220_v54  ;;  %5268 = vrot.lane.b32.xlu1 %v11660_v40, %s11061_s28  ;;  %v11782_v33 = vmul.f32 0.35355338, %v11765_v51 }
 0x24f   : > { %17650 = vst [vmem:[#allocation3_spill] sm:$0xff] %v11768_v12 }
 0x250   : > { %v11779_v57 = vpack.c.bf16 %v11773_v52, %v11765_v51  ;;  %v11785_v58 = vmul.f32 0.35355338, %v11773_v52 }
 0x251   : > { %1516 = vrot.lane.b32.xlu0 %v11669_v37, %s11059_s26 }
 0x252   : > { %1326 = vrot.lane.b32.xlu1 %v11676_v63, %s11057_s23  ;;  %v9297_v28 = vpop.f32.mrb[20].mxu0 }
 0x253   : > { %v11794_v9 = vadd.f32 %v9297_v28, %v11646_v11  ;;  %v1233_v32 = vpop.f32.mrb[21].mxu0 }
 0x254   : > { %v11797_v62 = vadd.f32 %v11646_v11, %v1233_v32  ;;  %v9298_v40 = vpop.f32.mrb[22].mxu0 }
 0x255   : > { %17651 = vst [vmem:[#allocation4_spill] sm:$0xff] %v11794_v9  ;;  %v11800_v41 = vadd.f32 %v9298_v40, %v11646_v11  ;;  %1320 = vrot.lane.b32.xlu0 %v11672_v27, %s11057_s23  ;;  %v1236_v59 = vpop.f32.mrb[23].mxu0 }
 0x256   : > { %17652 = vst [vmem:[#allocation5_spill] sm:$0xff] %v11797_v62  ;;  %v11805_v4 = vadd.f32 %v11646_v11, %v1236_v59  ;;  %1422 = vrot.lane.b32.xlu1 %v11676_v63, %s11058_s25 }
 0x257   : > { %17653 = vst [vmem:[#allocation6_spill] sm:$0xff] %v11800_v41 }
 0x258   : > { %17654 = vst [vmem:[#allocation7_spill] sm:$0xff] %v11805_v4 }
 0x259   : > { %1416 = vrot.lane.b32.xlu0 %v11672_v27, %s11058_s25 }
 0x25a   : > { %1518 = vrot.lane.b32.xlu1 %v11676_v63, %s11059_s26  ;;  %v9301_v7 = vpop.f32.mrb[24].mxu0 }
 0x25b   : > { %v11814_v56 = vadd.f32 %v9301_v7, %v11646_v11  ;;  %v1249_v37 = vpop.f32.mrb[25].mxu0 }
 0x25c   : > { %v11817_v14 = vadd.f32 %v11646_v11, %v1249_v37  ;;  %v9302_v18 = vpop.f32.mrb[26].mxu0 }
 0x25d   : > { %17655 = vst [vmem:[#allocation8_spill] sm:$0xff] %v11814_v56  ;;  %v11820_v19 = vadd.f32 %v9302_v18, %v11646_v11  ;;  %1512 = vrot.lane.b32.xlu0 %v11672_v27, %s11059_s26  ;;  %v1252_v1 = vpop.f32.mrb[27].mxu0 }
 0x25e   : > { %v11825_v16 = vadd.f32 %v11646_v11, %v1252_v1  ;;  %1322 = vrot.lane.b32.xlu1 %v11680_v44, %s11057_s23  ;;  %v11834_v10 = vmul.f32 0.35355338, %v11817_v14 }
 0x25f   : > { %17656 = vst [vmem:[#allocation9_spill] sm:$0xff] %v11820_v19 }
 0x260   : > { %v11831_v63 = vpack.c.bf16 %v11825_v16, %v11817_v14  ;;  %v11837_v34 = vmul.f32 0.35355338, %v11825_v16 }
 0x261   : > { %1866 = vrot.lane.b32.xlu0 %v11685_v60, %s11060_s27 }
 0x262   : > { %1418 = vrot.lane.b32.xlu1 %v11680_v44, %s11058_s25  ;;  %v9305_v27 = vpop.f32.mrb[28].mxu0 }
 0x263   : > { %v11846_v48 = vadd.f32 %v9305_v27, %v11646_v11  ;;  %v1265_v42 = vpop.f32.mrb[29].mxu0 }
 0x264   : > { %v11849_v55 = vadd.f32 %v11646_v11, %v1265_v42  ;;  %v9306_v17 = vpop.f32.mrb[30].mxu0 }
 0x265   : > { %17657 = vst [vmem:[#allocation10_spill] sm:$0xff] %v11846_v48  ;;  %v11852_v20 = vadd.f32 %v9306_v17, %v11646_v11  ;;  %1864 = vrot.lane.b32.xlu0 %v11695_v13, %s11060_s27  ;;  %v1268_v26 = vpop.f32.mrb[31].mxu0 }
 0x266   : > { %17658 = vst [vmem:[#allocation11_spill] sm:$0xff] %v11849_v55  ;;  %v11857_v36 = vadd.f32 %v11646_v11, %v1268_v26  ;;  %1514 = vrot.lane.b32.xlu1 %v11680_v44, %s11059_s26  ;;  %v1796_v11 = vpack.c.bf16 %v11720_v35, %v11713_v15  ;;  %v1801_v26 = vpack.c.bf16 %v11768_v12, %v11762_v50 }
 0x267   : > { %17659 = vst [vmem:[#allocation12_spill] sm:$0xff] %v11852_v20 }
 0x268   : > { %17660 = vst [vmem:[#allocation13_spill] sm:$0xff] %v11857_v36 }
 0x269   : > { %5270 = vrot.lane.b32.xlu0 %v11695_v13, %s11061_s28 }
 0x26a   : > { %5272 = vrot.lane.b32.xlu1 %v11685_v60, %s11061_s28 }
 0x26d   : > { %1332 = vrot.lane.b32.xlu0 %v11710_v0, %s11057_s23 }
 0x26e   : > { %1334 = vrot.lane.b32.xlu1 %v11716_v30, %s11057_s23 }
 0x271   : > { %1428 = vrot.lane.b32.xlu0 %v11710_v0, %s11058_s25 }
 0x272   : > { %1430 = vrot.lane.b32.xlu1 %v11716_v30, %s11058_s25 }
 0x275   : > { %1524 = vrot.lane.b32.xlu0 %v11710_v0, %s11059_s26  ;;  %v1799_v0 = vpack.c.bf16 %v11749_v8, %v11742_v31 }
 0x276   : > { %1526 = vrot.lane.b32.xlu1 %v11716_v30, %s11059_s26  ;;  %v1798_v30 = vpack.c.bf16 %v11753_v46, %v11745_v39 }
 0x279   : > { %1328 = vrot.lane.b32.xlu0 %v11713_v15, %s11057_s23 }
 0x27a   : > { %1330 = vrot.lane.b32.xlu1 %v11720_v35, %s11057_s23 }
 0x27d   : > { %1424 = vrot.lane.b32.xlu0 %v11713_v15, %s11058_s25 }
 0x27e   : > { %1426 = vrot.lane.b32.xlu1 %v11720_v35, %s11058_s25 }
 0x281   : > { %1520 = vrot.lane.b32.xlu0 %v11713_v15, %s11059_s26 }
 0x282   : > { %1522 = vrot.lane.b32.xlu1 %v11720_v35, %s11059_s26 }
 0x285   : > { %5357 = vrot.lane.b32.xlu0 %v11726_v23, %s11061_s28 }
 0x286   : > { %1964 = vrot.lane.b32.xlu1 %v11726_v23, %s11060_s27 }
 0x289   : > { %5355 = vrot.lane.b32.xlu0 %v1796_v11, %s11061_s28 }
 0x28a   : > { %1962 = vrot.lane.b32.xlu1 %v1796_v11, %s11060_s27 }
 0x28d   : > { %1340 = vrot.lane.b32.xlu0 %v11742_v31, %s11057_s23 }
 0x28e   : > { %1342 = vrot.lane.b32.xlu1 %v11749_v8, %s11057_s23 }
 0x291   : > { %1436 = vrot.lane.b32.xlu0 %v11742_v31, %s11058_s25 }
 0x292   : > { %1438 = vrot.lane.b32.xlu1 %v11749_v8, %s11058_s25 }
 0x295   : > { %1532 = vrot.lane.b32.xlu0 %v11742_v31, %s11059_s26 }
 0x296   : > { %1534 = vrot.lane.b32.xlu1 %v11749_v8, %s11059_s26 }
 0x299   : > { %1336 = vrot.lane.b32.xlu0 %v11745_v39, %s11057_s23 }
 0x29a   : > { %1338 = vrot.lane.b32.xlu1 %v11753_v46, %s11057_s23 }
 0x29d   : > { %1432 = vrot.lane.b32.xlu0 %v11745_v39, %s11058_s25 }
 0x29e   : > { %1434 = vrot.lane.b32.xlu1 %v11753_v46, %s11058_s25 }
 0x29f   : > { %v11917_v44 = vpop.permute.xlu0 %1316 }
 0x2a0   : > { %17661 = vst [vmem:[#allocation14_spill] sm:$0xff] %v11917_v44  ;;  %v11919_v60 = vpop.permute.xlu1 %1312 }
 0x2a1   : > { %1528 = vrot.lane.b32.xlu0 %v11745_v39, %s11059_s26 }
 0x2a2   : > { %1530 = vrot.lane.b32.xlu1 %v11753_v46, %s11059_s26 }
 0x2a3   : > { %v11925_v13 = vpop.permute.xlu0 %1412 }
 0x2a4   : > { %17662 = vst [vmem:[#allocation15_spill] sm:$0xff] %v11925_v13  ;;  %v11929_v15 = vpop.permute.xlu1 %1318 }
 0x2a5   : > { %1968 = vrot.lane.b32.xlu0 %v1799_v0, %s11060_s27 }
 0x2a6   : > { %5359 = vrot.lane.b32.xlu1 %v1798_v30, %s11061_s28 }
 0x2a7   : > { %v11935_v35 = vpop.permute.xlu0 %1508 }
 0x2a8   : > { %17663 = vst [vmem:[#allocation16_spill] sm:$0xff] %v11935_v35  ;;  %v11937_v23 = vpop.permute.xlu1 %1414 }
 0x2a9   : > { %5361 = vrot.lane.b32.xlu0 %v1799_v0, %s11061_s28 }
 0x2aa   : > { %1350 = vrot.lane.b32.xlu1 %v11768_v12, %s11057_s23 }
 0x2ab   : > { %v11942_v43 = vpop.permute.xlu0 %1408 }
 0x2ac   : > { %v11944_v53 = vpop.permute.xlu1 %1510 }
 0x2ad   : > { %17664 = vst [vmem:[#allocation17_spill] sm:$0xff] %v11944_v53  ;;  %1966 = vrot.lane.b32.xlu0 %v1798_v30, %s11060_s27 }
 0x2ae   : > { %1446 = vrot.lane.b32.xlu1 %v11768_v12, %s11058_s25 }
 0x2af   : > { %v11949_v54 = vpop.permute.xlu0 %1504 }
 0x2b0   : > { %17665 = vst [vmem:[#allocation18_spill] sm:$0xff] %v11949_v54  ;;  %v11951_v28 = vpop.permute.xlu1 %1314 }
 0x2b1   : > { %1348 = vrot.lane.b32.xlu0 %v11762_v50, %s11057_s23 }
 0x2b2   : > { %1542 = vrot.lane.b32.xlu1 %v11768_v12, %s11059_s26 }
 0x2b3   : > { %v1861_v32 = vpop.permute.xlu0 %1860 }
 0x2b4   : > { %v11957_v40 = vpop.permute.xlu1 %1410  ;;  %9939 = vmatprep.subr.msk.bf16.mxu0 %vm1868_vm1, %v1861_v32  ;;  %v1882_v59 = vsel %vm1868_vm1, %v1861_v32, 0 }
 0x2b5   : > { %1444 = vrot.lane.b32.xlu0 %v11762_v50, %s11058_s25  ;;  %9308 = vmatpush3.bf16.xpose.msra.mxu0 %v1882_v59 }
 0x2b6   : > { %1346 = vrot.lane.b32.xlu1 %v11773_v52, %s11057_s23 }
 0x2b7   : > { %v11965_v7 = vpop.permute.xlu0 %5266 }
 0x2b8   : > { %17666 = vst [vmem:[#allocation19_spill] sm:$0xff] %v11965_v7  ;;  %v11967_v37 = vpop.permute.xlu1 %1506 }
 0x2b9   : > { %17667 = vst [vmem:[#allocation20_spill] sm:$0xff] %v11967_v37  ;;  %1540 = vrot.lane.b32.xlu0 %v11762_v50, %s11059_s26 }
 0x2ba   : > { %1442 = vrot.lane.b32.xlu1 %v11773_v52, %s11058_s25 }
 0x2bb   : > { %v11973_v18 = vpop.permute.xlu0 %1324 }
 0x2bc   : > { %v1863_v1 = vpop.permute.xlu1 %1862 }
 0x2bd   : > { %1344 = vrot.lane.b32.xlu0 %v11765_v51, %s11057_s23  ;;  %9940 = vmatprep.subr.msk.bf16.mxu0 %vm1868_vm1, %v1863_v1  ;;  %v1885_v27 = vsel %vm1868_vm1, %v1863_v1, 0 }
 0x2be   : > { %1538 = vrot.lane.b32.xlu1 %v11773_v52, %s11059_s26  ;;  %9310 = vmatpush3.bf16.xpose.msra.mxu0 %v1885_v27 }
 0x2bf   : > { %v11981_v42 = vpop.permute.xlu0 %1420 }
 0x2c0   : > { %17668 = vst [vmem:[#allocation21_spill] sm:$0xff] %v11981_v42  ;;  %v11983_v17 = vpop.permute.xlu1 %5268 }
 0x2c1   : > { %17669 = vst [vmem:[#allocation22_spill] sm:$0xff] %v11983_v17  ;;  %1440 = vrot.lane.b32.xlu0 %v11765_v51, %s11058_s25 }
 0x2c2   : > { %2065 = vrot.lane.b32.xlu1 %v1801_v26, %s11060_s27 }
 0x2c3   : > { %v11990_v11 = vpop.permute.xlu0 %1516 }
 0x2c4   : > { %17670 = vst [vmem:[#allocation23_spill] sm:$0xff] %v11990_v11  ;;  %v11992_v0 = vpop.permute.xlu1 %1326 }
 0x2c5   : > { %1536 = vrot.lane.b32.xlu0 %v11765_v51, %s11059_s26 }
 0x2c6   : > { %5446 = vrot.lane.b32.xlu1 %v1801_v26, %s11061_s28 }
 0x2c7   : > { %v11997_v52 = vpop.permute.xlu0 %1320 }
 0x2c8   : > { %v11999_v30 = vpop.permute.xlu1 %1422 }
 0x2c9   : > { %17671 = vst [vmem:[#allocation24_spill] sm:$0xff] %v11999_v30  ;;  %1356 = vrot.lane.b32.xlu0 %v11794_v9, %s11057_s23 }
 0x2ca   : > { %2063 = vrot.lane.b32.xlu1 %v11779_v57, %s11060_s27 }
 0x2cb   : > { %v12005_v32 = vpop.permute.xlu0 %1416 }
 0x2cc   : > { %17672 = vst [vmem:[#allocation25_spill] sm:$0xff] %v12005_v32  ;;  %v12007_v59 = vpop.permute.xlu1 %1518 }
 0x2cd   : > { %17673 = vst [vmem:[#allocation26_spill] sm:$0xff] %v12007_v59  ;;  %1452 = vrot.lane.b32.xlu0 %v11794_v9, %s11058_s25 }
 0x2ce   : > { %5444 = vrot.lane.b32.xlu1 %v11779_v57, %s11061_s28 }
 0x2cf   : > { %v12013_v51 = vpop.permute.xlu0 %1512 }
 0x2d0   : > { %17674 = vst [vmem:[#allocation27_spill] sm:$0xff] %v12013_v51  ;;  %v12015_v1 = vpop.permute.xlu1 %1322 }
 0x2d1   : > { %1548 = vrot.lane.b32.xlu0 %v11794_v9, %s11059_s26 }
 0x2d2   : > { %1358 = vrot.lane.b32.xlu1 %v11800_v41, %s11057_s23 }
 0x2d3   : > { %v1867_v27 = vpop.permute.xlu0 %1866 }
 0x2d4   : > { %v12021_v26 = vpop.permute.xlu1 %1418  ;;  %v1891_v6 = vsel %vm1868_vm1, %v1867_v27, 0 }
 0x2d5   : > { %1352 = vrot.lane.b32.xlu0 %v11797_v62, %s11057_s23 }
 0x2d6   : > { %1454 = vrot.lane.b32.xlu1 %v11800_v41, %s11058_s25 }
 0x2d7   : > { %v1865_v57 = vpop.permute.xlu0 %1864 }
 0x2d8   : > { %v12027_v49 = vpop.permute.xlu1 %1514  ;;  %9941 = vmatprep.subr.msk.bf16.mxu0 %vm1868_vm1, %v1865_v57  ;;  %v1888_v29 = vsel %vm1868_vm1, %v1865_v57, 0 }
 0x2d9   : > { %17675 = vst [vmem:[#allocation28_spill] sm:$0xff] %v12027_v49  ;;  %1448 = vrot.lane.b32.xlu0 %v11797_v62, %s11058_s25  ;;  %9312 = vmatpush3.bf16.xpose.msra.mxu0 %v1888_v29  ;;  %v1803_v29 = vpack.c.bf16 %v11800_v41, %v11794_v9  ;;  %v17683_v9 = vpack.c.bf16 %v11701_v45, %v11698_v2 }
 0x2da   : > { %1550 = vrot.lane.b32.xlu1 %v11800_v41, %s11059_s26  ;;  %9942 = vmatprep.subr.msk.bf16.mxu0 %vm1868_vm1, %v1867_v27  ;;  %v17685_v2 = vpack.c.bf16 %v11691_v25, %v11688_v61  ;;  %v17686_v45 = vpack.c.bf16 %v11785_v58, %v11782_v33 }
 0x2db   : > { %v12036_v24 = vpop.permute.xlu0 %5270 }
 0x2dc   : > { %17676 = vst [vmem:[#allocation29_spill] sm:$0xff] %v12036_v24  ;;  %v12038_v3 = vpop.permute.xlu1 %5272  ;;  %v1802_v24 = vpack.c.bf16 %v11805_v4, %v11797_v62 }
 0x2dd   : > { %17677 = vst [vmem:[#allocation30_spill] sm:$0xff] %v12038_v3  ;;  %1544 = vrot.lane.b32.xlu0 %v11797_v62, %s11059_s26 }
 0x2de   : > { %1354 = vrot.lane.b32.xlu1 %v11805_v4, %s11057_s23 }
 0x2df   : > { %v12044_v57 = vpop.permute.xlu0 %1332 }
 0x2e0   : > { %v12048_v22 = vpop.permute.xlu1 %1334 }
 0x2e1   : > { %2069 = vrot.lane.b32.xlu0 %v1803_v29, %s11060_s27  ;;  %9314 = vmatpush3.bf16.xpose.msra.mxu0 %v1891_v6  ;;  %v17682_v6 = vpack.c.bf16 %v11658_v47, %v11656_v21 }
 0x2e2   : > { %1450 = vrot.lane.b32.xlu1 %v11805_v4, %s11058_s25 }
 0x2e3   : > { %v12054_v3 = vpop.permute.xlu0 %1428 }
 0x2e4   : > { %17678 = vst [vmem:[#allocation31_spill] sm:$0xff] %v12054_v3  ;;  %v12058_v17 = vpop.permute.xlu1 %1430 }
 0x2e5   : > { %17679 = vst [vmem:[#allocation32_spill] sm:$0xff] %v12058_v17  ;;  %2067 = vrot.lane.b32.xlu0 %v1802_v24, %s11060_s27 }
 0x2e6   : > { %1546 = vrot.lane.b32.xlu1 %v11805_v4, %s11059_s26 }
 0x2e7   : > { %v12063_v7 = vpop.permute.xlu0 %1524 }
 0x2e8   : > { %17680 = vst [vmem:[#allocation33_spill] sm:$0xff] %v12063_v7  ;;  %v12065_v27 = vpop.permute.xlu1 %1526  ;;  %9316 = vmatmul.mubr.msk.bf16.vlgmr.msra.gmra.mrb[32].mxu0 %vm1868_vm1, %v17682_v6 }
 0x2e9   : > { %17681 = vst [vmem:[#allocation34_spill] sm:$0xff] %v12065_v27  ;;  %5448 = vrot.lane.b32.xlu0 %v1802_v24, %s11061_s28  ;;  %9319 = vmatprep.mubr.msk.bf16.mxu0 %vm1868_vm1, %v17683_v9 }
 0x2ea   : > { %5450 = vrot.lane.b32.xlu1 %v1803_v29, %s11061_s28 }
 0x2eb   : > { %v12077_v41 = vpop.permute.xlu0 %1328 }
 0x2ec   : > { %v12079_v62 = vpop.permute.xlu1 %1330 }
 0x2ed   : > { %1364 = vrot.lane.b32.xlu0 %v11814_v56, %s11057_s23 }
 0x2ee   : > { %1366 = vrot.lane.b32.xlu1 %v11820_v19, %s11057_s23 }
 0x2ef   : > { %v12085_v21 = vpop.permute.xlu0 %1424 }
 0x2f0   : > { %v12087_v47 = vpop.permute.xlu1 %1426  ;;  %9320 = vmatmul.mubr.msk.bf16.gmra.mrb[36].mxu0 %vm1868_vm1, %v17685_v2 }
 0x2f1   : > { %17684 = vst [vmem:[#allocation35_spill] sm:$0xff] %v12087_v47  ;;  %1460 = vrot.lane.b32.xlu0 %v11814_v56, %s11058_s25  ;;  %9347 = vmatprep.mubr.msk.bf16.mxu0 %vm1868_vm1, %v17686_v45 }
 0x2f2   : > { %1462 = vrot.lane.b32.xlu1 %v11820_v19, %s11058_s25 }
 0x2f3   : > { %v12101_v24 = vpop.permute.xlu0 %1520 }
 0x2f4   : > { %17687 = vst [vmem:[#allocation36_spill] sm:$0xff] %v12101_v24  ;;  %v12103_v9 = vpop.permute.xlu1 %1522 }
 0x2f5   : > { %17688 = vst [vmem:[#allocation37_spill] sm:$0xff] %v12103_v9  ;;  %1556 = vrot.lane.b32.xlu0 %v11814_v56, %s11059_s26 }
 0x2f6   : > { %1558 = vrot.lane.b32.xlu1 %v11820_v19, %s11059_s26 }
 0x2f7   : > { %v12109_v61 = vpop.permute.xlu0 %5357 }
 0x2f8   : > { %17689 = vst [vmem:[#allocation38_spill] sm:$0xff] %v12109_v61  ;;  %v1965_v25 = vpop.permute.xlu1 %1964 }
 0x2f9   : > { %1360 = vrot.lane.b32.xlu0 %v11817_v14, %s11057_s23  ;;  %v1986_v61 = vsel %vm1868_vm1, %v1965_v25, 0 }
 0x2fa   : > { %1362 = vrot.lane.b32.xlu1 %v11825_v16, %s11057_s23 }
 0x2fb   : > { %v12115_v33 = vpop.permute.xlu0 %5355 }
 0x2fc   : > { %17690 = vst [vmem:[#allocation39_spill] sm:$0xff] %v12115_v33  ;;  %v1963_v58 = vpop.permute.xlu1 %1962 }
 0x2fd   : > { %9943 = vmatprep.subr.msk.bf16.mxu1 %vm1868_vm1, %v1963_v58  ;;  %1456 = vrot.lane.b32.xlu0 %v11817_v14, %s11058_s25  ;;  %v1983_v29 = vsel %vm1868_vm1, %v1963_v58, 0  ;;  %v1805_v58 = vpack.c.bf16 %v11820_v19, %v11814_v56 }
 0x2fe   : > { %9324 = vmatpush3.bf16.xpose.msra.mxu1 %v1983_v29  ;;  %1458 = vrot.lane.b32.xlu1 %v11825_v16, %s11058_s25 }
 0x2ff   : > { %9944 = vmatprep.subr.msk.bf16.mxu1 %vm1868_vm1, %v1965_v25  ;;  %v12124_v6 = vpop.permute.xlu0 %1340 }
 0x300   : > { %v12126_v2 = vpop.permute.xlu1 %1342 }
 0x301   : > { %1552 = vrot.lane.b32.xlu0 %v11817_v14, %s11059_s26 }
 0x302   : > { %1554 = vrot.lane.b32.xlu1 %v11825_v16, %s11059_s26 }
 0x303   : > { %v12132_v45 = vpop.permute.xlu0 %1436 }
 0x304   : > { %17691 = vst [vmem:[#allocation40_spill] sm:$0xff] %v12132_v45  ;;  %v12136_v29 = vpop.permute.xlu1 %1438 }
 0x305   : > { %17692 = vst [vmem:[#allocation41_spill] sm:$0xff] %v12136_v29  ;;  %5535 = vrot.lane.b32.xlu0 %v1805_v58, %s11061_s28 }
 0x306   : > { %9326 = vmatpush3.bf16.xpose.msra.mxu1 %v1986_v61  ;;  %2166 = vrot.lane.b32.xlu1 %v1805_v58, %s11060_s27 }
 0x307   : > { %v12141_v33 = vpop.permute.xlu0 %1532 }
 0x308   : > { %17693 = vst [vmem:[#allocation42_spill] sm:$0xff] %v12141_v33  ;;  %v12143_v14 = vpop.permute.xlu1 %1534 }
 0x309   : > { %17694 = vst [vmem:[#allocation43_spill] sm:$0xff] %v12143_v14  ;;  %1372 = vrot.lane.b32.xlu0 %v11846_v48, %s11057_s23 }
 0x30a   : > { %2164 = vrot.lane.b32.xlu1 %v11831_v63, %s11060_s27 }
 0x30b   : > { %v12149_v16 = vpop.permute.xlu0 %1336 }
 0x30c   : > { %v12151_v56 = vpop.permute.xlu1 %1338 }
 0x30d   : > { %1468 = vrot.lane.b32.xlu0 %v11846_v48, %s11058_s25 }
 0x30e   : > { %5533 = vrot.lane.b32.xlu1 %v11831_v63, %s11061_s28 }
 0x30f   : > { %v12157_v61 = vpop.permute.xlu0 %1432 }
 0x310   : > { %17695 = vst [vmem:[#allocation44_spill] sm:$0xff] %v12157_v61  ;;  %v12159_v25 = vpop.permute.xlu1 %1434 }
 0x311   : > { %17696 = vst [vmem:[#allocation45_spill] sm:$0xff] %v12159_v25  ;;  %1564 = vrot.lane.b32.xlu0 %v11846_v48, %s11059_s26 }
 0x312   : > { %1374 = vrot.lane.b32.xlu1 %v11852_v20, %s11057_s23 }
 0x313   : > { %v12165_v58 = vpop.permute.xlu0 %1528 }
 0x314   : > { %17697 = vst [vmem:[#allocation46_spill] sm:$0xff] %v12165_v58  ;;  %v12167_v19 = vpop.permute.xlu1 %1530 }
 0x315   : > { %17698 = vst [vmem:[#allocation47_spill] sm:$0xff] %v12167_v19  ;;  %1368 = vrot.lane.b32.xlu0 %v11849_v55, %s11057_s23 }
 0x316   : > { %1470 = vrot.lane.b32.xlu1 %v11852_v20, %s11058_s25 }
 0x317   : > { %v1969_v63 = vpop.permute.xlu0 %1968 }
 0x318   : > { %v12173_v50 = vpop.permute.xlu1 %5359 }
 0x319   : > { %17699 = vst [vmem:[#allocation48_spill] sm:$0xff] %v12173_v50  ;;  %1464 = vrot.lane.b32.xlu0 %v11849_v55, %s11058_s25  ;;  %v1807_v50 = vpack.c.bf16 %v11852_v20, %v11846_v48 }
 0x31a   : > { %1566 = vrot.lane.b32.xlu1 %v11852_v20, %s11059_s26  ;;  %v1992_v20 = vsel %vm1868_vm1, %v1969_v63, 0 }
 0x31b   : > { %v12179_v4 = vpop.permute.xlu0 %5361 }
 0x31c   : > { %17700 = vst [vmem:[#allocation49_spill] sm:$0xff] %v12179_v4  ;;  %v12181_v58 = vpop.permute.xlu1 %1350 }
 0x31d   : > { %17701 = vst [vmem:[#allocation50_spill] sm:$0xff] %v12181_v58  ;;  %1560 = vrot.lane.b32.xlu0 %v11849_v55, %s11059_s26 }
 0x31e   : > { %1370 = vrot.lane.b32.xlu1 %v11857_v36, %s11057_s23 }
 0x31f   : > { %v1967_v19 = vpop.permute.xlu0 %1966 }
 0x320   : > { %v12189_v12 = vpop.permute.xlu1 %1446  ;;  %9945 = vmatprep.subr.msk.bf16.mxu1 %vm1868_vm1, %v1967_v19  ;;  %v1989_v9 = vsel %vm1868_vm1, %v1967_v19, 0  ;;  %v1806_v19 = vpack.c.bf16 %v11857_v36, %v11849_v55 }
 0x321   : > { %17702 = vst [vmem:[#allocation51_spill] sm:$0xff] %v12189_v12  ;;  %2170 = vrot.lane.b32.xlu0 %v1807_v50, %s11060_s27  ;;  %9328 = vmatpush3.bf16.xpose.msra.mxu1 %v1989_v9  ;;  %v1613_v12 = vmul.f32 0.35355338, %v11753_v46  ;;  %v12231_v46 = vpack.c.bf16 %v11937_v23, %v11925_v13 }
 0x322   : > { %1466 = vrot.lane.b32.xlu1 %v11857_v36, %s11058_s25  ;;  %9946 = vmatprep.subr.msk.bf16.mxu1 %vm1868_vm1, %v1969_v63  ;;  %v1612_v63 = vmul.f32 0.35355338, %v11745_v39  ;;  %v1615_v39 = vmul.f32 0.35355338, %v11749_v8 }
 0x323   : > { %v12197_v4 = vpop.permute.xlu0 %1348  ;;  %17707 = vst [vmem:[#allocation56_spill] sm:$0xff] %v12231_v46 }
 0x324   : > { %v12199_v58 = vpop.permute.xlu1 %1542 }
 0x325   : > { %17703 = vst [vmem:[#allocation52_spill] sm:$0xff] %v12199_v58  ;;  %5539 = vrot.lane.b32.xlu0 %v1807_v50, %s11061_s28  ;;  %v1808_v50 = vpack.c.bf16 %v11951_v28, %v11919_v60 }
 0x326   : > { %1562 = vrot.lane.b32.xlu1 %v11857_v36, %s11059_s26  ;;  %v1734_v36 = vpack.c.bf16 %v1613_v12, %v1612_v63  ;;  %v12246_v12 = vpack.c.bf16 %v11999_v30, %v11981_v42  ;;  %s11062_s26 = smov 8  }
 0x327   : > { %v12204_v48 = vpop.permute.xlu0 %1444 }
 0x328   : > { %17704 = vst [vmem:[#allocation53_spill] sm:$0xff] %v12204_v48  ;;  %v12208_v9 = vpop.permute.xlu1 %1346  ;;  %v1809_v48 = vpack.c.bf16 %v11929_v15, %v11917_v44  ;;  %v17709_v44 = vpack.c.bf16 %v11732_v5, %v11729_v38  ;;  %17710 = vst [vmem:[#allocation58_spill] sm:$0xff] %v12246_v12  ;;  %v12252_v38 = vpack.c.bf16 %v11944_v53, %v11935_v35  ;;  %v17742_v53 = vld [vmem:[#allocation46_spill] sm:$0xff]  ;;  %v17759_v30 = vld [vmem:[#allocation51_spill] sm:$0xff] }
 0x329   : > { %2168 = vrot.lane.b32.xlu0 %v1806_v19, %s11060_s27  ;;  %9330 = vmatpush3.bf16.xpose.msra.mxu1 %v1992_v20  ;;  %v1811_v20 = vpack.c.bf16 %v11992_v0, %v11973_v18 }
 0x32a   : > { %5537 = vrot.lane.b32.xlu1 %v1806_v19, %s11061_s28  ;;  %17712 = vst [vmem:[#allocation60_spill] sm:$0xff] %v12252_v38 }
 0x32b   : > { %v12215_v58 = vpop.permute.xlu0 %1540 }
 0x32c   : > { %17705 = vst [vmem:[#allocation54_spill] sm:$0xff] %v12215_v58  ;;  %v12220_v55 = vpop.permute.xlu1 %1442 }
 0x32d   : > { %17706 = vst [vmem:[#allocation55_spill] sm:$0xff] %v12220_v55  ;;  %5622 = vrot.lane.b32.xlu0 %v1808_v50, %s11061_s28 }
 0x32e   : > { %2267 = vrot.lane.b32.xlu1 %v1809_v48, %s11060_s27 }
 0x32f   : > { %v12227_v19 = vpop.permute.xlu0 %1344 }
 0x330   : > { %v12233_v58 = vpop.permute.xlu1 %1538  ;;  %9332 = vmatmul.mubr.msk.bf16.vlgmr.msra.gmra.mrb[0].mxu1 %vm1868_vm1, %v17709_v44  ;;  %v1614_v44 = vmul.f32 0.35355338, %v11742_v31  ;;  %v17716_v31 = vpack.c.bf16 %v11837_v34, %v11834_v10  ;;  %v12285_v10 = vpack.c.bf16 %v12021_v26, %v12005_v32 }
 0x331   : > { %17708 = vst [vmem:[#allocation57_spill] sm:$0xff] %v12233_v58  ;;  %2271 = vrot.lane.b32.xlu0 %v1811_v20, %s11060_s27  ;;  %9335 = vmatprep.mubr.msk.bf16.mxu1 %vm1868_vm1, %v1734_v36  ;;  %v12261_v36 = vpack.c.bf16 %v12007_v59, %v11990_v11  ;;  %v12353_v11 = vpack.c.bf16 %v12065_v27, %v12063_v7 }
 0x332   : > { %2671 = vrot.lane.b32.xlu1 %v12231_v46, %s11060_s27  ;;  %v1735_v8 = vpack.c.bf16 %v1615_v39, %v1614_v44  ;;  %v1810_v39 = vpack.c.bf16 %v12015_v1, %v11997_v52  ;;  %17717 = vst [vmem:[#allocation64_spill] sm:$0xff] %v12285_v10 }
 0x333   : > { %v12248_v63 = vpop.permute.xlu0 %1440  ;;  %17713 = vst [vmem:[#allocation61_spill] sm:$0xff] %v12261_v36  ;;  %17731 = vst [vmem:[#allocation78_spill] sm:$0xff] %v12353_v11 }
 0x334   : > { %17711 = vst [vmem:[#allocation59_spill] sm:$0xff] %v12248_v63  ;;  %v2066_v5 = vpop.permute.xlu1 %2065 }
 0x335   : > { %2675 = vrot.lane.b32.xlu0 %v12246_v12, %s11060_s27  ;;  %v2087_v12 = vsel %vm1868_vm1, %v2066_v5, 0 }
 0x336   : > { %3075 = vrot.lane.b32.xlu1 %v12252_v38, %s11060_s27 }
 0x337   : > { %v12263_v46 = vpop.permute.xlu0 %1536 }
 0x338   : > { %17714 = vst [vmem:[#allocation62_spill] sm:$0xff] %v12263_v46  ;;  %v12265_v42 = vpop.permute.xlu1 %5446  ;;  %9336 = vmatmul.mubr.msk.bf16.gmra.mrb[4].mxu1 %vm1868_vm1, %v1735_v8 }
 0x339   : > { %17715 = vst [vmem:[#allocation63_spill] sm:$0xff] %v12265_v42  ;;  %3079 = vrot.lane.b32.xlu0 %v12261_v36, %s11060_s27  ;;  %9363 = vmatprep.mubr.msk.bf16.mxu1 %vm1868_vm1, %v17716_v31  ;;  %v1813_v42 = vpack.c.bf16 %v12048_v22, %v12044_v57 }
 0x33a   : > { %5624 = vrot.lane.b32.xlu1 %v1809_v48, %s11061_s28  ;;  %v12292_v48 = vpack.c.bf16 %v11957_v40, %v11942_v43 }
 0x33b   : > { %v12277_v44 = vpop.permute.xlu0 %1356 }
 0x33c   : > { %v2064_v38 = vpop.permute.xlu1 %2063  ;;  %17719 = vst [vmem:[#allocation66_spill] sm:$0xff] %v12292_v48 }
 0x33d   : > { %9947 = vmatprep.subr.msk.bf16.mxu0 %vm1868_vm1, %v2064_v38  ;;  %2269 = vrot.lane.b32.xlu0 %v1810_v39, %s11060_s27  ;;  %v2084_v8 = vsel %vm1868_vm1, %v2064_v38, 0 }
 0x33e   : > { %2265 = vrot.lane.b32.xlu1 %v1808_v50, %s11060_s27  ;;  %9340 = vmatpush3.bf16.xpose.msra.mxu0 %v2084_v8  ;;  %v12302_v50 = vpack.c.bf16 %v12027_v49, %v12013_v51  ;;  %v12308_v8 = vpack.c.bf16 %v11967_v37, %v11949_v54  ;;  %v1812_v51 = vpack.c.bf16 %v12079_v62, %v12077_v41  ;;  %v17743_v54 = vld [vmem:[#allocation47_spill] sm:$0xff] }
 0x33f   : > { %9948 = vmatprep.subr.msk.bf16.mxu0 %vm1868_vm1, %v2066_v5  ;;  %v12288_v34 = vpop.permute.xlu0 %1452  ;;  %v12408_v37 = vpack.c.bf16 %v17743_v54, %v17742_v53 }
 0x340   : > { %17718 = vst [vmem:[#allocation65_spill] sm:$0xff] %v12288_v34  ;;  %v12294_v31 = vpop.permute.xlu1 %5444  ;;  %17721 = vst [vmem:[#allocation68_spill] sm:$0xff] %v12302_v50 }
 0x341   : > { %17720 = vst [vmem:[#allocation67_spill] sm:$0xff] %v12294_v31  ;;  %2673 = vrot.lane.b32.xlu0 %v12285_v10, %s11060_s27  ;;  %17723 = vst [vmem:[#allocation70_spill] sm:$0xff] %v12308_v8 }
 0x342   : > { %2669 = vrot.lane.b32.xlu1 %v12292_v48, %s11060_s27 }
 0x343   : > { %v12304_v38 = vpop.permute.xlu0 %1548 }
 0x344   : > { %17722 = vst [vmem:[#allocation69_spill] sm:$0xff] %v12304_v38  ;;  %v12310_v36 = vpop.permute.xlu1 %1358 }
 0x345   : > { %3077 = vrot.lane.b32.xlu0 %v12302_v50, %s11060_s27 }
 0x346   : > { %3073 = vrot.lane.b32.xlu1 %v12308_v8, %s11060_s27  ;;  %9342 = vmatpush3.bf16.xpose.msra.mxu0 %v2087_v12  ;;  %v12333_v12 = vpack.c.bf16 %v12126_v2, %v12124_v6 }
 0x347   : > { %v12317_v10 = vpop.permute.xlu0 %1352 }
 0x348   : > { %v12319_v48 = vpop.permute.xlu1 %1454  ;;  %17727 = vst [vmem:[#allocation74_spill] sm:$0xff] %v12333_v12 }
 0x349   : > { %17724 = vst [vmem:[#allocation71_spill] sm:$0xff] %v12319_v48  ;;  %5626 = vrot.lane.b32.xlu0 %v1810_v39, %s11061_s28 }
 0x34a   : > { %5628 = vrot.lane.b32.xlu1 %v1811_v20, %s11061_s28  ;;  %v12339_v20 = vpack.c.bf16 %v12058_v17, %v12054_v3  ;;  %v17758_v3 = vld [vmem:[#allocation53_spill] sm:$0xff] }
 0x34b   : > { %v12325_v31 = vpop.permute.xlu0 %1448  ;;  %v12455_v32 = vpack.c.bf16 %v17759_v30, %v17758_v3 }
 0x34c   : > { %17725 = vst [vmem:[#allocation72_spill] sm:$0xff] %v12325_v31  ;;  %v12327_v50 = vpop.permute.xlu1 %1550  ;;  %17729 = vst [vmem:[#allocation76_spill] sm:$0xff] %v12339_v20 }
 0x34d   : > { %17726 = vst [vmem:[#allocation73_spill] sm:$0xff] %v12327_v50  ;;  %5713 = vrot.lane.b32.xlu0 %v1813_v42, %s11061_s28  ;;  %17760 = vst [vmem:[#allocation88_spill] sm:$0xff] %v12455_v32 }
 0x34e   : > { %2368 = vrot.lane.b32.xlu1 %v1813_v42, %s11060_s27  ;;  %v12349_v42 = vpack.c.bf16 %v12136_v29, %v12132_v45  ;;  %v17747_v45 = vld [vmem:[#allocation2_spill] sm:$0xff] }
 0x34f   : > { %v12335_v5 = vpop.permute.xlu0 %1544 }
 0x350   : > { %17728 = vst [vmem:[#allocation75_spill] sm:$0xff] %v12335_v5  ;;  %v12341_v39 = vpop.permute.xlu1 %1354  ;;  %17730 = vst [vmem:[#allocation77_spill] sm:$0xff] %v12349_v42 }
 0x351   : > { %2372 = vrot.lane.b32.xlu0 %v12333_v12, %s11060_s27 }
 0x352   : > { %2772 = vrot.lane.b32.xlu1 %v12339_v20, %s11060_s27  ;;  %v12363_v20 = vpack.c.bf16 %v12143_v14, %v12141_v33  ;;  %v12381_v14 = vpack.c.bf16 %v12087_v47, %v12085_v21 }
 0x353   : > { %v2070_v8 = vpop.permute.xlu0 %2069 }
 0x354   : > { %v12355_v59 = vpop.permute.xlu1 %1450  ;;  %17733 = vst [vmem:[#allocation80_spill] sm:$0xff] %v12363_v20  ;;  %17736 = vst [vmem:[#allocation83_spill] sm:$0xff] %v12381_v14  ;;  %v2093_v49 = vsel %vm1868_vm1, %v2070_v8, 0 }
 0x355   : > { %17732 = vst [vmem:[#allocation79_spill] sm:$0xff] %v12355_v59  ;;  %2776 = vrot.lane.b32.xlu0 %v12349_v42, %s11060_s27 }
 0x356   : > { %3176 = vrot.lane.b32.xlu1 %v12353_v11, %s11060_s27  ;;  %v1814_v11 = vpack.c.bf16 %v12151_v56, %v12149_v16 }
 0x357   : > { %v2068_v12 = vpop.permute.xlu0 %2067 }
 0x358   : > { %v12367_v35 = vpop.permute.xlu1 %1546  ;;  %9949 = vmatprep.subr.msk.bf16.mxu0 %vm1868_vm1, %v2068_v12  ;;  %v2090_v27 = vsel %vm1868_vm1, %v2068_v12, 0 }
 0x359   : > { %17734 = vst [vmem:[#allocation81_spill] sm:$0xff] %v12367_v35  ;;  %3180 = vrot.lane.b32.xlu0 %v12363_v20, %s11060_s27  ;;  %9344 = vmatpush3.bf16.xpose.msra.mxu0 %v2090_v27  ;;  %v12390_v27 = vpack.c.bf16 %v12159_v25, %v12157_v61  ;;  %v17739_v20 = vld [vmem:[#allocation37_spill] sm:$0xff]  ;;  %v1618_v25 = vmul.f32 0.35355338, %v17747_v45  ;;  %v17752_v45 = vld [vmem:[#allocation6_spill] sm:$0xff] }
 0x35a   : > { %2366 = vrot.lane.b32.xlu1 %v1812_v51, %s11060_s27  ;;  %9950 = vmatprep.subr.msk.bf16.mxu0 %vm1868_vm1, %v2070_v8 }
 0x35b   : > { %v12377_v42 = vpop.permute.xlu0 %5448  ;;  %17738 = vst [vmem:[#allocation85_spill] sm:$0xff] %v12390_v27 }
 0x35c   : > { %17735 = vst [vmem:[#allocation82_spill] sm:$0xff] %v12377_v42  ;;  %v12383_v33 = vpop.permute.xlu1 %5450  ;;  %v12396_v42 = vpack.c.bf16 %v17739_v20, %v12101_v24  ;;  %v17746_v20 = vld [vmem:[#allocation7_spill] sm:$0xff] }
 0x35d   : > { %17737 = vst [vmem:[#allocation84_spill] sm:$0xff] %v12383_v33  ;;  %2370 = vrot.lane.b32.xlu0 %v1814_v11, %s11060_s27  ;;  %v17741_v33 = vld [vmem:[#allocation3_spill] sm:$0xff]  ;;  %v1621_v24 = vmul.f32 0.35355338, %v17746_v20 }
 0x35e   : > { %2770 = vrot.lane.b32.xlu1 %v12381_v14, %s11060_s27  ;;  %17740 = vst [vmem:[#allocation86_spill] sm:$0xff] %v12396_v42  ;;  %v1619_v14 = vmul.f32 0.35355338, %v17741_v33  ;;  %17744 = vst [vmem:[#allocation3_spill] sm:$0xff] %v12408_v37 }
 0x35f   : > { %v12392_v12 = vpop.permute.xlu0 %1364 }
 0x360   : > { %v12398_v7 = vpop.permute.xlu1 %1366 }
 0x361   : > { %2774 = vrot.lane.b32.xlu0 %v12390_v27, %s11060_s27  ;;  %9346 = vmatpush3.bf16.xpose.msra.mxu0 %v2093_v49  ;;  %v17749_v49 = vld [vmem:[#allocation5_spill] sm:$0xff]  ;;  %v1737_v27 = vpack.c.bf16 %v1619_v14, %v1618_v25  ;;  %v1623_v14 = vmul.f32 0.35355338, %v17752_v45  ;;  %v12434_v25 = vpack.c.bf16 %v12310_v36, %v12277_v44  ;;  %v12449_v45 = vpack.c.bf16 %v12319_v48, %v12288_v34  ;;  %v17806_v48 = vld [vmem:[#allocation10_spill] sm:$0xff] }
 0x362   : > { %3174 = vrot.lane.b32.xlu1 %v12396_v42, %s11060_s27  ;;  %v1620_v33 = vmul.f32 0.35355338, %v17749_v49  ;;  %v1816_v42 = vpack.c.bf16 %v12208_v9, %v12227_v19 }
 0x363   : > { %v12410_v29 = vpop.permute.xlu0 %1460  ;;  %17753 = vst [vmem:[#allocation6_spill] sm:$0xff] %v12434_v25 }
 0x364   : > { %17745 = vst [vmem:[#allocation87_spill] sm:$0xff] %v12410_v29  ;;  %v12414_v8 = vpop.permute.xlu1 %1462  ;;  %v1738_v53 = vpack.c.bf16 %v1621_v24, %v1620_v33  ;;  %v17754_v24 = vld [vmem:[#allocation50_spill] sm:$0xff]  ;;  %v17755_v33 = vld [vmem:[#allocation4_spill] sm:$0xff] }
 0x365   : > { %17748 = vst [vmem:[#allocation7_spill] sm:$0xff] %v12414_v8  ;;  %3178 = vrot.lane.b32.xlu0 %v12408_v37, %s11060_s27  ;;  %v1817_v49 = vpack.c.bf16 %v17754_v24, %v12197_v4  ;;  %v1622_v37 = vmul.f32 0.35355338, %v17755_v33  ;;  %17756 = vst [vmem:[#allocation50_spill] sm:$0xff] %v12449_v45 }
 0x366   : > { %5711 = vrot.lane.b32.xlu1 %v1812_v51, %s11061_s28  ;;  %v1633_v51 = vmul.f32 0.35355338, %v11951_v28 }
 0x367   : > { %v12422_v54 = vpop.permute.xlu0 %1556  ;;  %v1739_v28 = vpack.c.bf16 %v1623_v14, %v1622_v37  ;;  %v17764_v14 = vld [vmem:[#allocation54_spill] sm:$0xff] }
 0x368   : > { %17750 = vst [vmem:[#allocation2_spill] sm:$0xff] %v12422_v54  ;;  %v12424_v61 = vpop.permute.xlu1 %1558  ;;  %9348 = vmatmul.mubr.msk.bf16.vlgmr.msra.gmra.mrb[40].mxu0 %vm1868_vm1, %v1737_v27 }
 0x369   : > { %17751 = vst [vmem:[#allocation5_spill] sm:$0xff] %v12424_v61  ;;  %5800 = vrot.lane.b32.xlu0 %v1816_v42, %s11061_s28  ;;  %9351 = vmatprep.mubr.msk.bf16.mxu0 %vm1868_vm1, %v1738_v53  ;;  %v1632_v53 = vmul.f32 0.35355338, %v11919_v60  ;;  %v12467_v60 = vpack.c.bf16 %v12327_v50, %v12304_v38  ;;  %v12507_v50 = vpack.c.bf16 %v12220_v55, %v12248_v63  ;;  %v3638_v55 = vld [vmem:[%s17256_s0 + $0x28] sm:$0xff] }
 0x36a   : > { %5715 = vrot.lane.b32.xlu1 %v1814_v11, %s11061_s28 }
 0x36b   : > { %v12436_v20 = vpop.permute.xlu0 %1360  ;;  %v1744_v11 = vpack.c.bf16 %v1633_v51, %v1632_v53  ;;  %17762 = vst [vmem:[#allocation90_spill] sm:$0xff] %v12467_v60  ;;  %v17765_v51 = vld [vmem:[#allocation52_spill] sm:$0xff]  ;;  %17773 = vst [vmem:[#allocation99_spill] sm:$0xff] %v12507_v50 }
 0x36c   : > { %v12440_v27 = vpop.permute.xlu1 %1362  ;;  %v12473_v53 = vpack.c.bf16 %v17765_v51, %v17764_v14 }
 0x36d   : > { %2473 = vrot.lane.b32.xlu0 %v12434_v25, %s11060_s27 }
 0x36e   : > { %2469 = vrot.lane.b32.xlu1 %v1817_v49, %s11060_s27  ;;  %17766 = vst [vmem:[#allocation92_spill] sm:$0xff] %v12473_v53 }
 0x36f   : > { %v12451_v17 = vpop.permute.xlu0 %1456 }
 0x370   : > { %17757 = vst [vmem:[#allocation4_spill] sm:$0xff] %v12451_v17  ;;  %v12457_v33 = vpop.permute.xlu1 %1458  ;;  %9352 = vmatmul.mubr.msk.bf16.gmra.mrb[44].mxu0 %vm1868_vm1, %v1739_v28  ;;  %v1818_v28 = vpack.c.bf16 %v12341_v39, %v12317_v10 }
 0x371   : > { %17761 = vst [vmem:[#allocation89_spill] sm:$0xff] %v12457_v33  ;;  %2877 = vrot.lane.b32.xlu0 %v12449_v45, %s11060_s27  ;;  %9379 = vmatprep.mubr.msk.bf16.mxu0 %vm1868_vm1, %v1744_v11 }
 0x372   : > { %2873 = vrot.lane.b32.xlu1 %v12455_v32, %s11060_s27  ;;  %v12489_v32 = vpack.c.bf16 %v12355_v59, %v12325_v31 }
 0x373   : > { %v12469_v37 = vpop.permute.xlu0 %1552 }
 0x374   : > { %17763 = vst [vmem:[#allocation91_spill] sm:$0xff] %v12469_v37  ;;  %v12475_v25 = vpop.permute.xlu1 %1554  ;;  %17769 = vst [vmem:[#allocation95_spill] sm:$0xff] %v12489_v32 }
 0x375   : > { %17767 = vst [vmem:[#allocation93_spill] sm:$0xff] %v12475_v25  ;;  %3281 = vrot.lane.b32.xlu0 %v12467_v60, %s11060_s27 }
 0x376   : > { %3277 = vrot.lane.b32.xlu1 %v12473_v53, %s11060_s27 }
 0x377   : > { %v12483_v11 = vpop.permute.xlu0 %5535 }
 0x378   : > { %17768 = vst [vmem:[#allocation94_spill] sm:$0xff] %v12483_v11  ;;  %v2167_v45 = vpop.permute.xlu1 %2166 }
 0x379   : > { %2471 = vrot.lane.b32.xlu0 %v1818_v28, %s11060_s27 }
 0x37a   : > { %5802 = vrot.lane.b32.xlu1 %v1817_v49, %s11061_s28  ;;  %v12500_v49 = vpack.c.bf16 %v12367_v35, %v12335_v5 }
 0x37b   : > { %v12491_v38 = vpop.permute.xlu0 %1372 }
 0x37c   : > { %17770 = vst [vmem:[#allocation96_spill] sm:$0xff] %v12491_v38  ;;  %v2165_v60 = vpop.permute.xlu1 %2164  ;;  %17771 = vst [vmem:[#allocation97_spill] sm:$0xff] %v12500_v49 }
 0x37d   : > { %9951 = vmatprep.subr.msk.bf16.mxu1 %vm1868_vm1, %v2165_v60  ;;  %2875 = vrot.lane.b32.xlu0 %v12489_v32, %s11060_s27  ;;  %v2185_v53 = vsel %vm1868_vm1, %v2165_v60, 0  ;;  %v12519_v60 = vpack.c.bf16 %v12233_v58, %v12263_v46  ;;  %v2188_v32 = vsel %vm1868_vm1, %v2167_v45, 0 }
 0x37e   : > { %9356 = vmatpush3.bf16.xpose.msra.mxu1 %v2185_v53  ;;  %2467 = vrot.lane.b32.xlu1 %v1816_v42, %s11060_s27 }
 0x37f   : > { %9952 = vmatprep.subr.msk.bf16.mxu1 %vm1868_vm1, %v2167_v45  ;;  %v12503_v11 = vpop.permute.xlu0 %1468  ;;  %17776 = vst [vmem:[#allocation102_spill] sm:$0xff] %v12519_v60 }
 0x380   : > { %17772 = vst [vmem:[#allocation98_spill] sm:$0xff] %v12503_v11  ;;  %v12509_v51 = vpop.permute.xlu1 %5533 }
 0x381   : > { %17774 = vst [vmem:[#allocation100_spill] sm:$0xff] %v12509_v51  ;;  %3279 = vrot.lane.b32.xlu0 %v12500_v49, %s11060_s27  ;;  %v12535_v51 = vpack.c.bf16 %v12398_v7, %v12392_v12 }
 0x382   : > { %2871 = vrot.lane.b32.xlu1 %v12507_v50, %s11060_s27 }
 0x383   : > { %v12515_v42 = vpop.permute.xlu0 %1564  ;;  %17778 = vst [vmem:[#allocation104_spill] sm:$0xff] %v12535_v51 }
 0x384   : > { %17775 = vst [vmem:[#allocation101_spill] sm:$0xff] %v12515_v42  ;;  %v12521_v53 = vpop.permute.xlu1 %1374 }
 0x385   : > { %5804 = vrot.lane.b32.xlu0 %v1818_v28, %s11061_s28  ;;  %v12529_v49 = vpack.c.bf16 %v12521_v53, %v12491_v38  ;;  %v12551_v28 = vpack.c.bf16 %v12414_v8, %v12410_v29 }
 0x386   : > { %9358 = vmatpush3.bf16.xpose.msra.mxu1 %v2188_v32  ;;  %3275 = vrot.lane.b32.xlu1 %v12519_v60, %s11060_s27 }
 0x387   : > { %17777 = vst [vmem:[#allocation103_spill] sm:$0xff] %v12529_v49  ;;  %v12531_v50 = vpop.permute.xlu0 %1368  ;;  %17782 = vst [vmem:[#allocation108_spill] sm:$0xff] %v12551_v28 }
 0x388   : > { %v12537_v5 = vpop.permute.xlu1 %1470 }
 0x389   : > { %17779 = vst [vmem:[#allocation105_spill] sm:$0xff] %v12537_v5  ;;  %2574 = vrot.lane.b32.xlu0 %v12529_v49, %s11060_s27  ;;  %v12545_v32 = vpack.c.bf16 %v12537_v5, %v12503_v11  ;;  %v17800_v5 = vld [vmem:[#allocation8_spill] sm:$0xff] }
 0x38a   : > { %2570 = vrot.lane.b32.xlu1 %v12535_v51, %s11060_s27  ;;  %v12563_v51 = vpack.c.bf16 %v12424_v61, %v12422_v54 }
 0x38b   : > { %17780 = vst [vmem:[#allocation106_spill] sm:$0xff] %v12545_v32  ;;  %v12547_v45 = vpop.permute.xlu0 %1464 }
 0x38c   : > { %17781 = vst [vmem:[#allocation107_spill] sm:$0xff] %v12547_v45  ;;  %v12553_v60 = vpop.permute.xlu1 %1566  ;;  %17785 = vst [vmem:[#allocation111_spill] sm:$0xff] %v12563_v51 }
 0x38d   : > { %17783 = vst [vmem:[#allocation109_spill] sm:$0xff] %v12553_v60  ;;  %2978 = vrot.lane.b32.xlu0 %v12545_v32, %s11060_s27 }
 0x38e   : > { %2974 = vrot.lane.b32.xlu1 %v12551_v28, %s11060_s27  ;;  %v12577_v28 = vpack.c.bf16 %v12440_v27, %v12436_v20 }
 0x38f   : > { %v12559_v49 = vpop.permute.xlu0 %1560 }
 0x390   : > { %17784 = vst [vmem:[#allocation110_spill] sm:$0xff] %v12559_v49  ;;  %v12565_v35 = vpop.permute.xlu1 %1370  ;;  %17787 = vst [vmem:[#allocation113_spill] sm:$0xff] %v12577_v28 }
 0x391   : > { %v12569_v14 = vpack.c.bf16 %v12565_v35, %v12531_v50 }
 0x392   : > { %3378 = vrot.lane.b32.xlu1 %v12563_v51, %s11060_s27 }
 0x393   : > { %17786 = vst [vmem:[#allocation112_spill] sm:$0xff] %v12569_v14  ;;  %2572 = vrot.lane.b32.xlu0 %v12569_v14, %s11060_s27  ;;  %v2171_v32 = vpop.permute.xlu0 %2170  ;;  %v12593_v14 = vpack.c.bf16 %v12457_v33, %v12451_v17 }
 0x394   : > { %v12579_v58 = vpop.permute.xlu1 %1466 }
 0x395   : > { %17788 = vst [vmem:[#allocation114_spill] sm:$0xff] %v12579_v58  ;;  %v12583_v61 = vpack.c.bf16 %v12579_v58, %v12547_v45  ;;  %17791 = vst [vmem:[#allocation117_spill] sm:$0xff] %v12593_v14  ;;  %v17802_v45 = vld [vmem:[#allocation11_spill] sm:$0xff] }
 0x396   : > { %2568 = vrot.lane.b32.xlu1 %v12577_v28, %s11060_s27  ;;  %v1628_v58 = vmul.f32 0.35355338, %v17802_v45  ;;  %v1630_v45 = vmul.f32 0.35355338, %v17806_v48 }
 0x397   : > { %17789 = vst [vmem:[#allocation115_spill] sm:$0xff] %v12583_v61  ;;  %2976 = vrot.lane.b32.xlu0 %v12583_v61, %s11060_s27  ;;  %v12589_v51 = vpop.permute.xlu0 %5539  ;;  %v12607_v61 = vpack.c.bf16 %v12475_v25, %v12469_v37 }
 0x398   : > { %17790 = vst [vmem:[#allocation116_spill] sm:$0xff] %v12589_v51  ;;  %v12595_v54 = vpop.permute.xlu1 %1562 }
 0x399   : > { %17792 = vst [vmem:[#allocation118_spill] sm:$0xff] %v12595_v54  ;;  %v12599_v46 = vpack.c.bf16 %v12595_v54, %v12559_v49  ;;  %17794 = vst [vmem:[#allocation120_spill] sm:$0xff] %v12607_v61 }
 0x39a   : > { %2972 = vrot.lane.b32.xlu1 %v12593_v14, %s11060_s27 }
 0x39b   : > { %17793 = vst [vmem:[#allocation119_spill] sm:$0xff] %v12599_v46  ;;  %3380 = vrot.lane.b32.xlu0 %v12599_v46, %s11060_s27  ;;  %v2169_v28 = vpop.permute.xlu0 %2168  ;;  %v12620_v46 = vpack.c.bf16 %v12553_v60, %v12515_v42  ;;  %v1626_v42 = vmul.f32 0.35355338, %v17800_v5  ;;  %v1641_v5 = vmul.f32 0.35355338, %v12079_v62 }
 0x39c   : > { %v12609_v51 = vpop.permute.xlu1 %5537  ;;  %9953 = vmatprep.subr.msk.bf16.mxu1 %vm1868_vm1, %v2169_v28  ;;  %v2191_v11 = vsel %vm1868_vm1, %v2169_v28, 0  ;;  %v17798_v28 = vld [vmem:[#allocation9_spill] sm:$0xff] }
 0x39d   : > { %17795 = vst [vmem:[#allocation121_spill] sm:$0xff] %v12609_v51  ;;  %9360 = vmatpush3.bf16.xpose.msra.mxu1 %v2191_v11  ;;  %17797 = vst [vmem:[#allocation123_spill] sm:$0xff] %v12620_v46  ;;  %v2194_v11 = vsel %vm1868_vm1, %v2171_v32, 0 }
 0x39e   : > { %3376 = vrot.lane.b32.xlu1 %v12607_v61, %s11060_s27  ;;  %9954 = vmatprep.subr.msk.bf16.mxu1 %vm1868_vm1, %v2171_v32  ;;  %v1627_v61 = vmul.f32 0.35355338, %v17798_v28  ;;  %v17805_v32 = vld [vmem:[#allocation12_spill] sm:$0xff] }
 0x39f   : > { %v12616_v14 = vpop.permute.xlu0 %5622 }
 0x3a0   : > { %17796 = vst [vmem:[#allocation122_spill] sm:$0xff] %v12616_v14  ;;  %v2268_v49 = vpop.permute.xlu1 %2267  ;;  %v17799_v14 = vld [vmem:[#allocation13_spill] sm:$0xff] }
 0x3a1   : > { %v1629_v37 = vmul.f32 0.35355338, %v17799_v14  ;;  %v1640_v14 = vmul.f32 0.35355338, %v12077_v41  ;;  %v2289_v48 = vsel %vm1868_vm1, %v2268_v49, 0 }
 0x3a2   : > { %3382 = vrot.lane.b32.xlu1 %v12620_v46, %s11060_s27  ;;  %v1741_v46 = vpack.c.bf16 %v1627_v61, %v1626_v42  ;;  %v12664_v42 = vld [vmem:[%s17262_s6 + $0x10] sm:$0xff]  ;;  %s11063_s27 = smov 16  }
 0x3a3   : > { %v12624_v51 = vpop.permute.xlu0 %2271  ;;  %v1742_v29 = vpack.c.bf16 %v1629_v37, %v1628_v58  ;;  %v1748_v37 = vpack.c.bf16 %v1641_v5, %v1640_v14 }
 0x3a4   : > { %v12626_v54 = vpop.permute.xlu1 %2671 }
 0x3a5   : > { %9362 = vmatpush3.bf16.xpose.msra.mxu1 %v2194_v11  ;;  %v1631_v11 = vmul.f32 0.35355338, %v17805_v32 }
 0x3a7   : > { %v12630_v25 = vpop.permute.xlu0 %2675  ;;  %v1743_v58 = vpack.c.bf16 %v1631_v11, %v1630_v45  ;;  %v3635_v11 = vld [vmem:[%s17256_s0 + $0x10] sm:$0xff] }
 0x3a8   : > { %v12634_v60 = vpop.permute.xlu1 %3075 }
 0x3a9   : > { %17801 = vst [vmem:[#allocation9_spill] sm:$0xff] %v12634_v60 }
 0x3ab   : > { %v12637_v8 = vpop.permute.xlu0 %3079 }
 0x3ac   : > { %17803 = vst [vmem:[#allocation13_spill] sm:$0xff] %v12637_v8  ;;  %v12639_v34 = vpop.permute.xlu1 %5624  ;;  %9364 = vmatmul.mubr.msk.bf16.vlgmr.msra.gmra.mrb[8].mxu1 %vm1868_vm1, %v1741_v46 }
 0x3ad   : > { %17804 = vst [vmem:[#allocation8_spill] sm:$0xff] %v12639_v34  ;;  %9367 = vmatprep.mubr.msk.bf16.mxu1 %vm1868_vm1, %v1742_v29  ;;  %v3634_v34 = vld [vmem:[%s17256_s0 + $0x8] sm:$0xff] }
 0x3af   : > { %v2270_v28 = vpop.permute.xlu0 %2269 }
 0x3b0   : > { %v2266_v60 = vpop.permute.xlu1 %2265 }
 0x3b1   : > { %9955 = vmatprep.subr.msk.bf16.mxu0 %vm1868_vm1, %v2266_v60  ;;  %v2286_v61 = vsel %vm1868_vm1, %v2266_v60, 0  ;;  %v12669_v60 = vld [vmem:[%s17262_s6] sm:$0xff] }
 0x3b2   : > { %9372 = vmatpush3.bf16.xpose.msra.mxu0 %v2286_v61  ;;  %v12683_v61 = vld [vmem:[%s17262_s6 + $0x8] sm:$0xff] }
 0x3b3   : > { %9956 = vmatprep.subr.msk.bf16.mxu0 %vm1868_vm1, %v2268_v49  ;;  %v12650_v29 = vpop.permute.xlu0 %2673 }
 0x3b4   : > { %v12652_v46 = vpop.permute.xlu1 %2669  ;;  %9368 = vmatmul.mubr.msk.bf16.gmra.mrb[12].mxu1 %vm1868_vm1, %v1743_v58 }
 0x3b5   : > { %9395 = vmatprep.mubr.msk.bf16.mxu1 %vm1868_vm1, %v1748_v37  ;;  %v3633_v37 = vld [vmem:[%s17256_s0] sm:$0xff] }
 0x3b7   : > { %v12656_v62 = vpop.permute.xlu0 %3077 }
 0x3b8   : > { %17807 = vst [vmem:[#allocation11_spill] sm:$0xff] %v12656_v62  ;;  %v12658_v41 = vpop.permute.xlu1 %3073 }
 0x3b9   : > { %17808 = vst [vmem:[#allocation12_spill] sm:$0xff] %v12658_v41  ;;  %v3639_v41 = vld [vmem:[%s17256_s0 + $0x30] sm:$0xff] }
 0x3ba   : > { %9374 = vmatpush3.bf16.xpose.msra.mxu0 %v2289_v48 }
 0x3bb   : > { %v9317_v32 = vpop.f32.mrb[32].mxu0  ;;  %9957 = vmatprep.subr.msk.bf16.mxu0 %vm1868_vm1, %v2270_v28  ;;  %v12675_v14 = vpop.permute.xlu0 %5626 }
 0x3bc   : > { %17809 = vst [vmem:[#allocation10_spill] sm:$0xff] %v12675_v14  ;;  %v3507_v49 = vadd.f32 %v9317_v32, %v12664_v42  ;;  %v12678_v5 = vpop.permute.xlu1 %5628  ;;  %v1927_v45 = vpop.f32.mrb[33].mxu0  ;;  %v12692_v14 = vld [vmem:[%s17262_s6 + $0x18] sm:$0xff] }
 0x3bd   : > { %17810 = vst [vmem:[#allocation124_spill] sm:$0xff] %v12678_v5  ;;  %v3505_v58 = vadd.f32 %v12669_v60, %v1927_v45  ;;  %v9318_v48 = vpop.f32.mrb[34].mxu0 }
 0x3be   : > { %v12694_v32 = vadd.f32 %v3635_v11, %v3507_v49  ;;  %v1930_v5 = vpop.f32.mrb[35].mxu0  ;;  %v3508_v31 = vadd.f32 %v9318_v48, %v12692_v14  ;;  %v3636_v11 = vld [vmem:[%s17256_s0 + $0x18] sm:$0xff] }
 0x3bf   : > { %v3506_v45 = vadd.f32 %v12683_v61, %v1930_v5  ;;  %v12700_v8 = vpop.permute.xlu0 %5713  ;;  %v12702_v62 = vadd.f32 %v3633_v37, %v3505_v58  ;;  %v2292_v5 = vsel %vm1868_vm1, %v2270_v28, 0  ;;  %v12718_v58 = vld [vmem:[%s17262_s6 + $0x30] sm:$0xff] }
 0x3c0   : > { %17811 = vst [vmem:[#allocation125_spill] sm:$0xff] %v12694_v32  ;;  %17812 = vst [vmem:[#allocation126_spill] sm:$0xff] %v12700_v8  ;;  %v12705_v30 = vpop.permute.xlu1 %2368  ;;  %v3800_v59 = vsel %vm3793_vm2, %v12694_v32, -inf  ;;  %v12739_v32 = vld [vmem:[%s17262_s6 + $0x28] sm:$0xff] }
 0x3c1   : > { %17813 = vst [vmem:[#allocation127_spill] sm:$0xff] %v12702_v62  ;;  %v12712_v49 = vadd.f32 %v3634_v34, %v3506_v45  ;;  %3801 = vmax.xlane.f32.xlu0 %v3800_v59  ;;  %v12727_v34 = vld [vmem:[%s17262_s6 + $0x38] sm:$0xff]  ;;  %v12729_v59 = vadd.f32 %v3636_v11, %v3508_v31  ;;  %v12747_v31 = vld [vmem:[%s17262_s6 + $0x20] sm:$0xff] }
 0x3c2   : > { %9376 = vmatpush3.bf16.xpose.msra.mxu0 %v2292_v5  ;;  %v3794_v5 = vsel %vm3793_vm2, %v12702_v62, -inf }
 0x3c3   : > { %17814 = vst [vmem:[#allocation128_spill] sm:$0xff] %v12712_v49  ;;  %v9321_v37 = vpop.f32.mrb[36].mxu0  ;;  %9958 = vmatprep.subr.msk.bf16.mxu0 %vm1868_vm1, %v12624_v51  ;;  %v12722_v48 = vpop.permute.xlu0 %2372  ;;  %17815 = vst [vmem:[#allocation129_spill] sm:$0xff] %v12729_v59  ;;  %v3797_v62 = vsel %vm3793_vm2, %v12712_v49, -inf }
 0x3c4   : > { %v3511_v28 = vadd.f32 %v9321_v37, %v12718_v58  ;;  %v1943_v45 = vpop.f32.mrb[37].mxu0  ;;  %v12732_v8 = vpop.permute.xlu1 %2772  ;;  %v3640_v37 = vld [vmem:[%s17256_s0 + $0x38] sm:$0xff] }
 0x3c5   : > { %v9322_v11 = vpop.f32.mrb[38].mxu0  ;;  %3795 = vmax.xlane.f32.xlu0 %v3794_v5  ;;  %v3509_v38 = vadd.f32 %v12747_v31, %v1943_v45  ;;  %v1637_v45 = vmul.f32 0.35355338, %v12015_v1 }
 0x3c6   : > { %v3512_v3 = vadd.f32 %v9322_v11, %v12727_v34  ;;  %v1946_v33 = vpop.f32.mrb[39].mxu0  ;;  %3798 = vmax.xlane.f32.xlu1 %v3797_v62  ;;  %v12761_v13 = vadd.f32 %v3639_v41, %v3511_v28  ;;  %v3803_v11 = vsel %vm3793_vm2, %v12729_v59, -inf  ;;  %v2295_v62 = vsel %vm1868_vm1, %v12624_v51, 0  ;;  %v17820_v51 = vld [vmem:[#allocation14_spill] sm:$0xff] }
 0x3c7   : > { %v3510_v17 = vadd.f32 %v12739_v32, %v1946_v33  ;;  %v12759_v63 = vpop.permute.xlu0 %2776  ;;  %v3637_v33 = vld [vmem:[%s17256_s0 + $0x20] sm:$0xff]  ;;  %v1635_v41 = vmul.f32 0.35355338, %v11929_v15  ;;  %v1636_v15 = vmul.f32 0.35355338, %v11997_v52 }
 0x3c8   : > { %17816 = vst [vmem:[#allocation130_spill] sm:$0xff] %v12761_v13  ;;  %v12764_v5 = vadd.f32 %v3640_v37, %v3512_v3  ;;  %v12766_v47 = vpop.permute.xlu1 %3176  ;;  %v12783_v37 = vadd.f32 %v3637_v33, %v3509_v38  ;;  %v1639_v52 = vmul.f32 0.35355338, %v11992_v0 }
 0x3c9   : > { %3804 = vmax.xlane.f32.xlu0 %v3803_v11  ;;  %v12775_v49 = vadd.f32 %v3638_v55, %v3510_v17  ;;  %v3812_v11 = vsel %vm3793_vm2, %v12761_v13, -inf  ;;  %v1634_v55 = vmul.f32 0.35355338, %v17820_v51  ;;  %v1746_v33 = vpack.c.bf16 %v1637_v45, %v1636_v15 }
 0x3ca   : > { %17817 = vst [vmem:[#allocation131_spill] sm:$0xff] %v12764_v5  ;;  %9378 = vmatpush3.bf16.xpose.msra.mxu0 %v2295_v62  ;;  %v3815_v3 = vsel %vm3793_vm2, %v12764_v5, -inf  ;;  %17819 = vst [vmem:[#allocation133_spill] sm:$0xff] %v12783_v37  ;;  %v1638_v45 = vmul.f32 0.35355338, %v11973_v18 }
 0x3cb   : > { %17818 = vst [vmem:[#allocation132_spill] sm:$0xff] %v12775_v49  ;;  %3816 = vmax.xlane.f32.xlu1 %v3815_v3  ;;  %v12780_v28 = vpop.permute.xlu0 %3180  ;;  %v3809_v62 = vsel %vm3793_vm2, %v12775_v49, -inf  ;;  %v1745_v1 = vpack.c.bf16 %v1635_v41, %v1634_v55  ;;  %v1648_v41 = vmul.f32 0.35355338, %v12227_v19  ;;  %v2390_v55 = vsel %vm1868_vm1, %v12705_v30, 0 }
 0x3cc   : > { %v2367_v59 = vpop.permute.xlu1 %2366  ;;  %v1747_v15 = vpack.c.bf16 %v1639_v52, %v1638_v45  ;;  %v1642_v45 = vmul.f32 0.35355338, %v12044_v57  ;;  %v1646_v57 = vmul.f32 0.35355338, %v12124_v6 }
 0x3cd   : > { %3813 = vmax.xlane.f32.xlu0 %v3812_v11  ;;  %9959 = vmatprep.subr.msk.bf16.mxu1 %vm1868_vm1, %v2367_v59  ;;  %v2387_v17 = vsel %vm1868_vm1, %v2367_v59, 0  ;;  %v3806_v11 = vsel %vm3793_vm2, %v12783_v37, -inf }
 0x3ce   : > { %9388 = vmatpush3.bf16.xpose.msra.mxu1 %v2387_v17  ;;  %v1649_v17 = vmul.f32 0.35355338, %v12208_v9 }
 0x3cf   : > { %3810 = vmax.xlane.f32.xlu1 %v3809_v62  ;;  %9960 = vmatprep.subr.msk.bf16.mxu1 %vm1868_vm1, %v12705_v30  ;;  %v2371_v38 = vpop.permute.xlu0 %2370 }
 0x3d0   : > { %v12795_v3 = vpop.permute.xlu1 %2770  ;;  %v1752_v0 = vpack.c.bf16 %v1649_v17, %v1648_v41  ;;  %v2393_v30 = vsel %vm1868_vm1, %v2371_v38, 0  ;;  %v2396_v41 = vsel %vm1868_vm1, %v12722_v48, 0  ;;  %v1645_v17 = vmul.f32 0.35355338, %v12151_v56 }
 0x3d1   : > { %3807 = vmax.xlane.f32.xlu0 %v3806_v11  ;;  %9380 = vmatmul.mubr.msk.bf16.vlgmr.msra.gmra.mrb[48].mxu0 %vm1868_vm1, %v1745_v1  ;;  %v1657_v56 = vmul.f32 0.35355338, %v12440_v27 }
 0x3d2   : > { %9383 = vmatprep.mubr.msk.bf16.mxu0 %vm1868_vm1, %v1746_v33 }
 0x3d3   : > { %v12802_v59 = vpop.permute.xlu0 %2774 }
 0x3d4   : > { %v12805_v51 = vpop.permute.xlu1 %3174 }
 0x3d6   : > { %9390 = vmatpush3.bf16.xpose.msra.mxu1 %v2390_v55  ;;  %v1643_v55 = vmul.f32 0.35355338, %v12048_v22  ;;  %v1647_v22 = vmul.f32 0.35355338, %v12126_v2 }
 0x3d7   : > { %9961 = vmatprep.subr.msk.bf16.mxu1 %vm1868_vm1, %v2371_v38  ;;  %v12812_v62 = vpop.permute.xlu0 %3178  ;;  %v1644_v38 = vmul.f32 0.35355338, %v12149_v16  ;;  %v1656_v16 = vmul.f32 0.35355338, %v12436_v20 }
 0x3d8   : > { %v12814_v1 = vpop.permute.xlu1 %5711 }
 0x3d9   : > { %17821 = vst [vmem:[#allocation14_spill] sm:$0xff] %v12814_v1  ;;  %9384 = vmatmul.mubr.msk.bf16.gmra.mrb[52].mxu0 %vm1868_vm1, %v1747_v15 }
 0x3da   : > { %9411 = vmatprep.mubr.msk.bf16.mxu0 %vm1868_vm1, %v1752_v0  ;;  %v1749_v0 = vpack.c.bf16 %v1643_v55, %v1642_v45  ;;  %v1751_v55 = vpack.c.bf16 %v1647_v22, %v1646_v57 }
 0x3db   : > { %v12818_v19 = vpop.permute.xlu0 %5800 }
 0x3dc   : > { %17822 = vst [vmem:[#allocation134_spill] sm:$0xff] %v12818_v19  ;;  %v12820_v18 = vpop.permute.xlu1 %5715 }
 0x3dd   : > { %17823 = vst [vmem:[#allocation135_spill] sm:$0xff] %v12820_v18  ;;  %v1750_v18 = vpack.c.bf16 %v1645_v17, %v1644_v38  ;;  %v1756_v38 = vpack.c.bf16 %v1657_v56, %v1656_v16  ;;  %v12874_v56 = vld [vmem:[%s17256_s0 + $0x50] sm:$0xff] }
 0x3de   : > { %9392 = vmatpush3.bf16.xpose.msra.mxu1 %v2393_v30  ;;  %17826 = vst [vmem:[#allocation138_spill] sm:$0xff] %v12874_v56 }
 0x3df   : > { %9962 = vmatprep.subr.msk.bf16.mxu1 %vm1868_vm1, %v12722_v48  ;;  %v12825_v9 = vpop.permute.xlu0 %2473 }
 0x3e0   : > { %v2470_v33 = vpop.permute.xlu1 %2469 }
 0x3e1   : > { %v2491_v20 = vsel %vm1868_vm1, %v2470_v33, 0 }
 0x3e3   : > { %v12829_v52 = vpop.permute.xlu0 %2877 }
 0x3e4   : > { %v12827_v11 = vpop.permute.xlu1 %2873 }
 0x3e6   : > { %9394 = vmatpush3.bf16.xpose.msra.mxu1 %v2396_v41 }
 0x3e7   : > { %v12839_v30 = vpop.permute.xlu0 %3281 }
 0x3e8   : > { %v12837_v15 = vpop.permute.xlu1 %3277 }
 0x3eb   : > { %v2472_v41 = vpop.permute.xlu0 %2471 }
 0x3ec   : > { %v12841_v19 = vpop.permute.xlu1 %5802  ;;  %v2494_v57 = vsel %vm1868_vm1, %v2472_v41, 0 }
 0x3ed   : > { %17824 = vst [vmem:[#allocation136_spill] sm:$0xff] %v12841_v19  ;;  %9396 = vmatmul.mubr.msk.bf16.vlgmr.msra.gmra.mrb[16].mxu1 %vm1868_vm1, %v1749_v0 }
 0x3ee   : > { %9399 = vmatprep.mubr.msk.bf16.mxu1 %vm1868_vm1, %v1750_v18 }
 0x3ef   : > { %v12856_v6 = vpop.permute.xlu0 %2875 }
 0x3f0   : > { %v2468_v48 = vpop.permute.xlu1 %2467 }
 0x3f1   : > { %9963 = vmatprep.subr.msk.bf16.mxu0 %vm1868_vm1, %v2468_v48  ;;  %v2488_v45 = vsel %vm1868_vm1, %v2468_v48, 0 }
 0x3f2   : > { %9404 = vmatpush3.bf16.xpose.msra.mxu0 %v2488_v45 }
 0x3f3   : > { %9964 = vmatprep.subr.msk.bf16.mxu0 %vm1868_vm1, %v2470_v33  ;;  %v12864_v17 = vpop.permute.xlu0 %3279 }
 0x3f4   : > { %v12852_v18 = vpop.permute.xlu1 %2871 }
 0x3f5   : > { %9400 = vmatmul.mubr.msk.bf16.gmra.mrb[20].mxu1 %vm1868_vm1, %v1751_v55 }
 0x3f6   : > { %9427 = vmatprep.mubr.msk.bf16.mxu1 %vm1868_vm1, %v1756_v38 }
 0x3f7   : > { %v12869_v22 = vpop.permute.xlu0 %5804 }
 0x3f8   : > { %v12858_v2 = vpop.permute.xlu1 %3275  ;;  %17825 = vst [vmem:[#allocation137_spill] sm:$0xff] %v12869_v22 }
 0x3fa   : > { %9406 = vmatpush3.bf16.xpose.msra.mxu0 %v2491_v20  ;;  %v12890_v20 = vld [vmem:[%s17256_s0 + $0x58] sm:$0xff] }
 0x3fb   : > { %9965 = vmatprep.subr.msk.bf16.mxu0 %vm1868_vm1, %v2472_v41  ;;  %v12885_v41 = vld [vmem:[%s17256_s0 + $0x40] sm:$0xff]  ;;  %17828 = vst [vmem:[#allocation140_spill] sm:$0xff] %v12890_v20  ;;  %v12910_v5 = vpop.permute.xlu0 %2574 }
 0x3fc   : > { %v12862_v27 = vpop.permute.xlu1 %2570  ;;  %17827 = vst [vmem:[#allocation139_spill] sm:$0xff] %v12885_v41 }
 0x400   : > { %v12866_v0 = vpop.permute.xlu1 %2974 }
 0x402   : > { %9408 = vmatpush3.bf16.xpose.msra.mxu0 %v2494_v57 }
 0x403   : > { %v9333_v16 = vpop.f32.mrb[0].mxu1  ;;  %9966 = vmatprep.subr.msk.bf16.mxu0 %vm1868_vm1, %v12825_v9 }
 0x404   : > { %v3515_v33 = vadd.f32 %v9333_v16, %v12664_v42  ;;  %v2028_v48 = vpop.f32.mrb[1].mxu1  ;;  %v12879_v45 = vpop.permute.xlu1 %3378 }
 0x405   : > { %v3513_v55 = vadd.f32 %v12669_v60, %v2028_v48  ;;  %v9334_v38 = vpop.f32.mrb[2].mxu1  ;;  %v12900_v48 = vld [vmem:[%s17256_s0 + $0x48] sm:$0xff] }
 0x406   : > { %v12893_v57 = vadd.f32 %v12874_v56, %v3515_v33  ;;  %v3516_v16 = vadd.f32 %v9334_v38, %v12692_v14  ;;  %v2031_v22 = vpop.f32.mrb[3].mxu1  ;;  %17830 = vst [vmem:[#allocation142_spill] sm:$0xff] %v12900_v48 }
 0x407   : > { %v3514_v19 = vadd.f32 %v12683_v61, %v2031_v22  ;;  %v12903_v1 = vadd.f32 %v12885_v41, %v3513_v55  ;;  %v2497_v22 = vsel %vm1868_vm1, %v12825_v9, 0  ;;  %v12954_v41 = vpop.permute.xlu0 %2978 }
 0x408   : > { %17829 = vst [vmem:[#allocation141_spill] sm:$0xff] %v12893_v57  ;;  %v12906_v49 = vadd.f32 %v12890_v20, %v3516_v16  ;;  %v2569_v37 = vpop.permute.xlu1 %2568  ;;  %v3824_v33 = vsel %vm3793_vm2, %v12893_v57, -inf  ;;  %v1650_v57 = vmul.f32 0.35355338, %v12197_v4 }
 0x409   : > { %17831 = vst [vmem:[#allocation143_spill] sm:$0xff] %v12903_v1  ;;  %3825 = vmax.xlane.f32.xlu0 %v3824_v33  ;;  %9967 = vmatprep.subr.msk.bf16.mxu1 %vm1868_vm1, %v2569_v37  ;;  %v2589_v38 = vsel %vm1868_vm1, %v2569_v37, 0  ;;  %v12917_v55 = vadd.f32 %v12900_v48, %v3514_v19  ;;  %v12925_v33 = vld [vmem:[%s17256_s0 + $0x70] sm:$0xff]  ;;  %v1653_v37 = vmul.f32 0.35355338, %v12341_v39  ;;  %v3818_v4 = vsel %vm3793_vm2, %v12903_v1, -inf }
 0x40a   : > { %17832 = vst [vmem:[#allocation144_spill] sm:$0xff] %v12906_v49  ;;  %9410 = vmatpush3.bf16.xpose.msra.mxu0 %v2497_v22  ;;  %9420 = vmatpush3.bf16.xpose.msra.mxu1 %v2589_v38  ;;  %v3827_v16 = vsel %vm3793_vm2, %v12906_v49, -inf  ;;  %v1651_v22 = vmul.f32 0.35355338, %v17754_v24  ;;  %v1652_v39 = vmul.f32 0.35355338, %v12317_v10 }
 0x40b   : > { %v9337_v13 = vpop.f32.mrb[4].mxu1  ;;  %3828 = vmax.xlane.f32.xlu1 %v3827_v16  ;;  %9968 = vmatprep.subr.msk.bf16.mxu1 %vm1868_vm1, %v12862_v27  ;;  %v12940_v16 = vld [vmem:[%s17256_s0 + $0x60] sm:$0xff]  ;;  %v3821_v48 = vsel %vm3793_vm2, %v12917_v55, -inf }
 0x40c   : > { %v3519_v19 = vadd.f32 %v9337_v13, %v12718_v58  ;;  %9971 = vmatprep.subr.msk.bf16.mxu0 %vm1868_vm1, %v12652_v46  ;;  %v2044_v9 = vpop.f32.mrb[5].mxu1  ;;  %v12945_v13 = vld [vmem:[%s17256_s0 + $0x78] sm:$0xff]  ;;  %v1753_v20 = vpack.c.bf16 %v1651_v22, %v1650_v57  ;;  %v1754_v10 = vpack.c.bf16 %v1653_v37, %v1652_v39  ;;  %v2592_v22 = vsel %vm1868_vm1, %v12862_v27, 0  ;;  %v2573_v39 = vpop.permute.xlu0 %2572 }
 0x40d   : > { %v3517_v38 = vadd.f32 %v12747_v31, %v2044_v9  ;;  %v9338_v49 = vpop.f32.mrb[6].mxu1  ;;  %3819 = vmax.xlane.f32.xlu0 %v3818_v4  ;;  %v12960_v4 = vld [vmem:[%s17256_s0 + $0x68] sm:$0xff] }
 0x40e   : > { %v12949_v1 = vadd.f32 %v12925_v33, %v3519_v19  ;;  %v3520_v24 = vadd.f32 %v9338_v49, %v12727_v34  ;;  %v2047_v9 = vpop.f32.mrb[7].mxu1 }
 0x40f   : > { %v3518_v56 = vadd.f32 %v12739_v32, %v2047_v9  ;;  %3822 = vmax.xlane.f32.xlu1 %v3821_v48  ;;  %v12963_v19 = vadd.f32 %v12940_v16, %v3517_v38  ;;  %v2690_v48 = vsel %vm1868_vm1, %v12652_v46, 0  ;;  %v1655_v38 = vmul.f32 0.35355338, %v12310_v36 }
 0x410   : > { %v12966_v49 = vadd.f32 %v12945_v13, %v3520_v24  ;;  %v3836_v57 = vsel %vm3793_vm2, %v12949_v1, -inf  ;;  %v1654_v46 = vmul.f32 0.35355338, %v12277_v44  ;;  %v2696_v44 = vsel %vm1868_vm1, %v12650_v29, 0 }
 0x411   : > { %3837 = vmax.xlane.f32.xlu0 %v3836_v57  ;;  %9412 = vmatmul.mubr.msk.bf16.vlgmr.msra.gmra.mrb[56].mxu0 %vm1868_vm1, %v1753_v20  ;;  %v12974_v9 = vadd.f32 %v12960_v4, %v3518_v56  ;;  %v1665_v20 = vmul.f32 0.35355338, %v11957_v40  ;;  %v3830_v27 = vsel %vm3793_vm2, %v12963_v19, -inf  ;;  %v1664_v56 = vmul.f32 0.35355338, %v11942_v43 }
 0x412   : > { %9415 = vmatprep.mubr.msk.bf16.mxu0 %vm1868_vm1, %v1754_v10  ;;  %9422 = vmatpush3.bf16.xpose.msra.mxu1 %v2592_v22  ;;  %v3839_v37 = vsel %vm3793_vm2, %v12966_v49, -inf  ;;  %v1755_v24 = vpack.c.bf16 %v1655_v38, %v1654_v46  ;;  %v2595_v40 = vsel %vm1868_vm1, %v2573_v39, 0  ;;  %v2693_v57 = vsel %vm1868_vm1, %v12626_v54, 0  ;;  %v17835_v46 = vld [vmem:[#allocation15_spill] sm:$0xff] }
 0x413   : > { %9436 = vmatpush3.bf16.xpose.msra.mxu0 %v2690_v48  ;;  %3840 = vmax.xlane.f32.xlu1 %v3839_v37  ;;  %v3833_v36 = vsel %vm3793_vm2, %v12974_v9, -inf  ;;  %v1760_v10 = vpack.c.bf16 %v1665_v20, %v1664_v56  ;;  %v2598_v43 = vsel %vm1868_vm1, %v12910_v5, 0  ;;  %v1658_v22 = vmul.f32 0.35355338, %v12392_v12 }
 0x414   : > { %9969 = vmatprep.subr.msk.bf16.mxu1 %vm1868_vm1, %v2573_v39  ;;  %9972 = vmatprep.subr.msk.bf16.mxu0 %vm1868_vm1, %v12626_v54  ;;  %v1659_v54 = vmul.f32 0.35355338, %v12398_v7  ;;  %v1661_v48 = vmul.f32 0.35355338, %v12565_v35  ;;  %v1660_v37 = vmul.f32 0.35355338, %v12531_v50 }
 0x415   : > { %3831 = vmax.xlane.f32.xlu0 %v3830_v27  ;;  %v2791_v12 = vsel %vm1868_vm1, %v12795_v3, 0  ;;  %v2699_v7 = vsel %vm1868_vm1, %v12630_v25, 0  ;;  %v1663_v35 = vmul.f32 0.35355338, %v12521_v53  ;;  %v1667_v50 = vmul.f32 0.35355338, %v11937_v23 }
 0x416   : > { %v1758_v38 = vpack.c.bf16 %v1661_v48, %v1660_v37  ;;  %v17833_v39 = vld [vmem:[#allocation35_spill] sm:$0xff]  ;;  %v17834_v27 = vld [vmem:[#allocation96_spill] sm:$0xff]  ;;  %v1666_v56 = vmul.f32 0.35355338, %v17835_v46  ;;  %v17836_v53 = vld [vmem:[#allocation25_spill] sm:$0xff]  ;;  %v2794_v23 = vsel %vm1868_vm1, %v12732_v8, 0 }
 0x417   : > { %3834 = vmax.xlane.f32.xlu1 %v3833_v36  ;;  %v1673_v20 = vmul.f32 0.35355338, %v17833_v39  ;;  %v1668_v36 = vmul.f32 0.35355338, %v17836_v53  ;;  %v17840_v48 = vld [vmem:[#allocation55_spill] sm:$0xff]  ;;  %v13072_v39 = vld [vmem:[%s17256_s0 + $0x98] sm:$0xff] }
 0x418   : > { %v1681_v37 = vmul.f32 0.35355338, %v17840_v48 }
 0x419   : > { %9416 = vmatmul.mubr.msk.bf16.gmra.mrb[60].mxu0 %vm1868_vm1, %v1755_v24 }
 0x41a   : > { %9424 = vmatpush3.bf16.xpose.msra.mxu1 %v2595_v40  ;;  %9443 = vmatprep.mubr.msk.bf16.mxu0 %vm1868_vm1, %v1760_v10  ;;  %v1761_v10 = vpack.c.bf16 %v1667_v50, %v1666_v56  ;;  %v13082_v56 = vld [vmem:[%s17256_s0 + $0x88] sm:$0xff] }
 0x41b   : > { %9438 = vmatpush3.bf16.xpose.msra.mxu0 %v2693_v57  ;;  %9970 = vmatprep.subr.msk.bf16.mxu1 %vm1868_vm1, %v12910_v5  ;;  %v1757_v5 = vpack.c.bf16 %v1659_v54, %v1658_v22 }
 0x41c   : > { %9973 = vmatprep.subr.msk.bf16.mxu0 %vm1868_vm1, %v12650_v29  ;;  %v1669_v29 = vmul.f32 0.35355338, %v12021_v26  ;;  %v2892_v26 = vsel %vm1868_vm1, %v12852_v18, 0 }
 0x41e   : > { %v1762_v40 = vpack.c.bf16 %v1669_v29, %v1668_v36  ;;  %v13067_v29 = vld [vmem:[%s17256_s0 + $0x80] sm:$0xff] }
 0x422   : > { %9426 = vmatpush3.bf16.xpose.msra.mxu1 %v2598_v43 }
 0x423   : > { %9440 = vmatpush3.bf16.xpose.msra.mxu0 %v2696_v44  ;;  %9975 = vmatprep.subr.msk.bf16.mxu1 %vm1868_vm1, %v12795_v3  ;;  %v1672_v3 = vmul.f32 0.35355338, %v12085_v21  ;;  %v17837_v21 = vld [vmem:[#allocation24_spill] sm:$0xff]  ;;  %v17838_v44 = vld [vmem:[#allocation59_spill] sm:$0xff] }
 0x424   : > { %9974 = vmatprep.subr.msk.bf16.mxu0 %vm1868_vm1, %v12630_v25  ;;  %v1662_v25 = vmul.f32 0.35355338, %v17834_v27  ;;  %v1671_v43 = vmul.f32 0.35355338, %v17837_v21  ;;  %v1680_v22 = vmul.f32 0.35355338, %v17838_v44 }
 0x425   : > { %v1764_v57 = vpack.c.bf16 %v1673_v20, %v1672_v3 }
 0x426   : > { %v1759_v24 = vpack.c.bf16 %v1663_v35, %v1662_v25  ;;  %v13056_v35 = vld [vmem:[%s17256_s0 + $0x90] sm:$0xff] }
 0x429   : > { %9428 = vmatmul.mubr.msk.bf16.vlgmr.msra.gmra.mrb[24].mxu1 %vm1868_vm1, %v1757_v5 }
 0x42a   : > { %9431 = vmatprep.mubr.msk.bf16.mxu1 %vm1868_vm1, %v1758_v38  ;;  %9452 = vmatpush3.bf16.xpose.msra.mxu1 %v2791_v12  ;;  %v1768_v38 = vpack.c.bf16 %v1681_v37, %v1680_v22  ;;  %v2895_v12 = vsel %vm1868_vm1, %v12827_v11, 0  ;;  %v2898_v22 = vsel %vm1868_vm1, %v12856_v6, 0  ;;  %v17844_v37 = vld [vmem:[#allocation45_spill] sm:$0xff] }
 0x42b   : > { %9442 = vmatpush3.bf16.xpose.msra.mxu0 %v2699_v7  ;;  %9976 = vmatprep.subr.msk.bf16.mxu1 %vm1868_vm1, %v12732_v8  ;;  %v17839_v8 = vld [vmem:[#allocation21_spill] sm:$0xff] }
 0x42c   : > { %9979 = vmatprep.subr.msk.bf16.mxu0 %vm1868_vm1, %v12852_v18  ;;  %v1670_v54 = vmul.f32 0.35355338, %v17839_v8  ;;  %v2797_v18 = vsel %vm1868_vm1, %v12802_v59, 0 }
 0x42e   : > { %v1763_v5 = vpack.c.bf16 %v1671_v43, %v1670_v54  ;;  %v17842_v43 = vld [vmem:[#allocation32_spill] sm:$0xff] }
 0x42f   : > { %v1675_v44 = vmul.f32 0.35355338, %v17842_v43  ;;  %v17843_v54 = vld [vmem:[#allocation44_spill] sm:$0xff] }
 0x430   : > { %v1676_v48 = vmul.f32 0.35355338, %v17843_v54  ;;  %v17846_v54 = vld [vmem:[#allocation40_spill] sm:$0xff] }
 0x431   : > { %9432 = vmatmul.mubr.msk.bf16.gmra.mrb[28].mxu1 %vm1868_vm1, %v1759_v24 }
 0x432   : > { %9444 = vmatmul.mubr.msk.bf16.vlgmr.msra.gmra.mrb[64].mxu0 %vm1868_vm1, %v1761_v10  ;;  %9454 = vmatpush3.bf16.xpose.msra.mxu1 %v2794_v23  ;;  %v2800_v10 = vsel %vm1868_vm1, %v12759_v63, 0  ;;  %v2973_v23 = vpop.permute.xlu1 %2972 }
 0x433   : > { %9447 = vmatprep.mubr.msk.bf16.mxu0 %vm1868_vm1, %v1762_v40  ;;  %9459 = vmatprep.mubr.msk.bf16.mxu1 %vm1868_vm1, %v1764_v57  ;;  %v17841_v40 = vld [vmem:[#allocation31_spill] sm:$0xff] }
 0x434   : > { %9468 = vmatpush3.bf16.xpose.msra.mxu0 %v2892_v26  ;;  %9977 = vmatprep.subr.msk.bf16.mxu1 %vm1868_vm1, %v12802_v59  ;;  %v1674_v57 = vmul.f32 0.35355338, %v17841_v40 }
 0x435   : > { %9980 = vmatprep.subr.msk.bf16.mxu0 %vm1868_vm1, %v12827_v11 }
 0x43a   : > { %9448 = vmatmul.mubr.msk.bf16.gmra.mrb[68].mxu0 %vm1868_vm1, %v1763_v5  ;;  %9456 = vmatpush3.bf16.xpose.msra.mxu1 %v2797_v18  ;;  %v1677_v5 = vmul.f32 0.35355338, %v17844_v37  ;;  %v17847_v37 = vld [vmem:[#allocation41_spill] sm:$0xff] }
 0x43b   : > { %9475 = vmatprep.mubr.msk.bf16.mxu0 %vm1868_vm1, %v1768_v38  ;;  %v9349_v7 = vpop.f32.mrb[40].mxu0  ;;  %9978 = vmatprep.subr.msk.bf16.mxu1 %vm1868_vm1, %v12759_v63  ;;  %v13106_v63 = vld [vmem:[%s17256_s0 + $0xb0] sm:$0xff] }
 0x43c   : > { %9470 = vmatpush3.bf16.xpose.msra.mxu0 %v2895_v12  ;;  %v3523_v59 = vadd.f32 %v9349_v7, %v12664_v42  ;;  %v2129_v50 = vpop.f32.mrb[41].mxu0  ;;  %v13120_v7 = vld [vmem:[%s17256_s0 + $0xa0] sm:$0xff]  ;;  %v1766_v40 = vpack.c.bf16 %v1677_v5, %v1676_v48  ;;  %v1678_v48 = vmul.f32 0.35355338, %v17846_v54  ;;  %v1679_v5 = vmul.f32 0.35355338, %v17847_v37 }
 0x43d   : > { %9981 = vmatprep.subr.msk.bf16.mxu0 %vm1868_vm1, %v12856_v6  ;;  %v3521_v11 = vadd.f32 %v12669_v60, %v2129_v50  ;;  %v9350_v3 = vpop.f32.mrb[42].mxu0  ;;  %v13125_v50 = vld [vmem:[%s17256_s0 + $0xb8] sm:$0xff] }
 0x43e   : > { %v13075_v20 = vadd.f32 %v13056_v35, %v3523_v59  ;;  %v3524_v27 = vadd.f32 %v9350_v3, %v12692_v14  ;;  %v2132_v25 = vpop.f32.mrb[43].mxu0 }
 0x43f   : > { %v3522_v46 = vadd.f32 %v12683_v61, %v2132_v25  ;;  %v13085_v53 = vadd.f32 %v13067_v29, %v3521_v11 }
 0x440   : > { %v13088_v36 = vadd.f32 %v13072_v39, %v3524_v27  ;;  %v3848_v24 = vsel %vm3793_vm2, %v13075_v20, -inf }
 0x441   : > { %3849 = vmax.xlane.f32.xlu0 %v3848_v24  ;;  %v13096_v26 = vadd.f32 %v13082_v56, %v3522_v46  ;;  %v3842_v6 = vsel %vm3793_vm2, %v13085_v53, -inf  ;;  %v1765_v46 = vpack.c.bf16 %v1675_v44, %v1674_v57  ;;  %v2993_v57 = vsel %vm1868_vm1, %v2973_v23, 0 }
 0x442   : > { %9458 = vmatpush3.bf16.xpose.msra.mxu1 %v2800_v10  ;;  %v3851_v21 = vsel %vm3793_vm2, %v13088_v36, -inf  ;;  %v13137_v10 = vld [vmem:[%s17256_s0 + $0xa8] sm:$0xff] }
 0x443   : > { %v9353_v8 = vpop.f32.mrb[44].mxu0  ;;  %3852 = vmax.xlane.f32.xlu1 %v3851_v21  ;;  %9983 = vmatprep.subr.msk.bf16.mxu1 %vm1868_vm1, %v2973_v23  ;;  %v3845_v25 = vsel %vm3793_vm2, %v13096_v26, -inf  ;;  %v17848_v23 = vld [vmem:[#allocation4_spill] sm:$0xff] }
 0x444   : > { %9472 = vmatpush3.bf16.xpose.msra.mxu0 %v2898_v22  ;;  %v3527_v38 = vadd.f32 %v9353_v8, %v12718_v58  ;;  %v2145_v18 = vpop.f32.mrb[45].mxu0 }
 0x445   : > { %9982 = vmatprep.subr.msk.bf16.mxu0 %vm1868_vm1, %v12829_v52  ;;  %v3525_v12 = vadd.f32 %v12747_v31, %v2145_v18  ;;  %v9354_v59 = vpop.f32.mrb[46].mxu0  ;;  %3843 = vmax.xlane.f32.xlu0 %v3842_v6  ;;  %v1688_v18 = vmul.f32 0.35355338, %v17848_v23  ;;  %v17849_v6 = vld [vmem:[#allocation89_spill] sm:$0xff]  ;;  %v2996_v23 = vsel %vm1868_vm1, %v12866_v0, 0 }
 0x446   : > { %v13128_v11 = vadd.f32 %v13106_v63, %v3527_v38  ;;  %v3528_v3 = vadd.f32 %v9354_v59, %v12727_v34  ;;  %v2148_v27 = vpop.f32.mrb[47].mxu0  ;;  %v2901_v38 = vsel %vm1868_vm1, %v12829_v52, 0 }
 0x447   : > { %v3526_v24 = vadd.f32 %v12739_v32, %v2148_v27  ;;  %3846 = vmax.xlane.f32.xlu1 %v3845_v25  ;;  %v13140_v21 = vadd.f32 %v13120_v7, %v3525_v12  ;;  %v1689_v12 = vmul.f32 0.35355338, %v17849_v6  ;;  %v17851_v25 = vld [vmem:[#allocation12_spill] sm:$0xff] }
 0x448   : > { %v13143_v43 = vadd.f32 %v13125_v50, %v3528_v3  ;;  %v3860_v22 = vsel %vm3793_vm2, %v13128_v11, -inf  ;;  %v17850_v3 = vld [vmem:[#allocation53_spill] sm:$0xff] }
 0x449   : > { %17845 = vst [vmem:[#allocation35_spill] sm:$0xff] %v13140_v21  ;;  %3861 = vmax.xlane.f32.xlu0 %v3860_v22  ;;  %9460 = vmatmul.mubr.msk.bf16.vlgmr.msra.gmra.mrb[32].mxu1 %vm1868_vm1, %v1765_v46  ;;  %v13150_v44 = vadd.f32 %v13137_v10, %v3526_v24  ;;  %v3854_v59 = vsel %vm3793_vm2, %v13140_v21, -inf  ;;  %v1682_v27 = vmul.f32 0.35355338, %v17850_v3  ;;  %v17852_v46 = vld [vmem:[#allocation79_spill] sm:$0xff]  ;;  %v1772_v37 = vpack.c.bf16 %v1689_v12, %v1688_v18  ;;  %v17856_v12 = vld [vmem:[#allocation9_spill] sm:$0xff] }
 0x44a   : > { %9463 = vmatprep.mubr.msk.bf16.mxu1 %vm1868_vm1, %v1766_v40  ;;  %9484 = vmatpush3.bf16.xpose.msra.mxu1 %v2993_v57  ;;  %v3863_v8 = vsel %vm3793_vm2, %v13143_v43, -inf  ;;  %v1685_v52 = vmul.f32 0.35355338, %v17852_v46  ;;  %v1767_v40 = vpack.c.bf16 %v1679_v5, %v1678_v48  ;;  %v17853_v22 = vld [vmem:[#allocation51_spill] sm:$0xff]  ;;  %v3094_v48 = vsel %vm1868_vm1, %v17851_v25, 0 }
 0x44b   : > { %3864 = vmax.xlane.f32.xlu1 %v3863_v8  ;;  %9984 = vmatprep.subr.msk.bf16.mxu1 %vm1868_vm1, %v12866_v0  ;;  %v3857_v24 = vsel %vm3793_vm2, %v13150_v44, -inf  ;;  %v1683_v57 = vmul.f32 0.35355338, %v17853_v22  ;;  %v17854_v8 = vld [vmem:[#allocation72_spill] sm:$0xff]  ;;  %v17855_v5 = vld [vmem:[#allocation71_spill] sm:$0xff] }
 0x44c   : > { %9474 = vmatpush3.bf16.xpose.msra.mxu0 %v2901_v38  ;;  %v1684_v54 = vmul.f32 0.35355338, %v17854_v8  ;;  %v1687_v18 = vmul.f32 0.35355338, %v17855_v5  ;;  %v17857_v0 = vld [vmem:[#allocation20_spill] sm:$0xff]  ;;  %v17860_v8 = vld [vmem:[#allocation11_spill] sm:$0xff] }
 0x44d   : > { %9987 = vmatprep.subr.msk.bf16.mxu0 %vm1868_vm1, %v17851_v25  ;;  %3855 = vmax.xlane.f32.xlu0 %v3854_v59  ;;  %v1769_v38 = vpack.c.bf16 %v1683_v57, %v1682_v27  ;;  %v2977_v59 = vpop.permute.xlu0 %2976  ;;  %v1697_v3 = vmul.f32 0.35355338, %v17857_v0  ;;  %v17858_v27 = vld [vmem:[#allocation65_spill] sm:$0xff]  ;;  %v3097_v57 = vsel %vm1868_vm1, %v17856_v12, 0  ;;  %v17925_v21 = vld [vmem:[#allocation139_spill] sm:$0xff] }
 0x44e   : > { %v1770_v6 = vpack.c.bf16 %v1685_v52, %v1684_v54  ;;  %v1686_v46 = vmul.f32 0.35355338, %v17858_v27  ;;  %v17859_v52 = vld [vmem:[#allocation18_spill] sm:$0xff]  ;;  %v2999_v22 = vsel %vm1868_vm1, %v2977_v59, 0  ;;  %v3002_v54 = vsel %vm1868_vm1, %v12954_v41, 0 }
 0x44f   : > { %3858 = vmax.xlane.f32.xlu1 %v3857_v24  ;;  %v1696_v24 = vmul.f32 0.35355338, %v17859_v52  ;;  %v3195_v27 = vsel %vm1868_vm1, %v12805_v51, 0 }
 0x451   : > { %9464 = vmatmul.mubr.msk.bf16.gmra.mrb[36].mxu1 %vm1868_vm1, %v1767_v40  ;;  %v1771_v40 = vpack.c.bf16 %v1687_v18, %v1686_v46  ;;  %v1776_v25 = vpack.c.bf16 %v1697_v3, %v1696_v24  ;;  %v17864_v18 = vld [vmem:[#allocation13_spill] sm:$0xff] }
 0x452   : > { %9486 = vmatpush3.bf16.xpose.msra.mxu1 %v2996_v23  ;;  %9491 = vmatprep.mubr.msk.bf16.mxu1 %vm1868_vm1, %v1772_v37  ;;  %v17861_v37 = vld [vmem:[#allocation87_spill] sm:$0xff]  ;;  %v17866_v46 = vld [vmem:[#allocation105_spill] sm:$0xff]  ;;  %v3103_v24 = vsel %vm1868_vm1, %v17864_v18, 0 }
 0x453   : > { %9476 = vmatmul.mubr.msk.bf16.vlgmr.msra.gmra.mrb[72].mxu0 %vm1868_vm1, %v1769_v38  ;;  %9985 = vmatprep.subr.msk.bf16.mxu1 %vm1868_vm1, %v2977_v59  ;;  %v1690_v38 = vmul.f32 0.35355338, %v17861_v37  ;;  %v17862_v23 = vld [vmem:[#allocation7_spill] sm:$0xff]  ;;  %v3100_v59 = vsel %vm1868_vm1, %v17860_v8, 0  ;;  %v1695_v52 = vmul.f32 0.35355338, %v17866_v46 }
 0x454   : > { %9479 = vmatprep.mubr.msk.bf16.mxu0 %vm1868_vm1, %v1770_v6  ;;  %9500 = vmatpush3.bf16.xpose.msra.mxu0 %v3094_v48  ;;  %v1691_v6 = vmul.f32 0.35355338, %v17862_v23  ;;  %v17863_v48 = vld [vmem:[#allocation114_spill] sm:$0xff] }
 0x455   : > { %9988 = vmatprep.subr.msk.bf16.mxu0 %vm1868_vm1, %v17856_v12  ;;  %v1693_v5 = vmul.f32 0.35355338, %v17863_v48  ;;  %v17865_v12 = vld [vmem:[#allocation107_spill] sm:$0xff]  ;;  %v17870_v37 = vld [vmem:[#allocation98_spill] sm:$0xff] }
 0x456   : > { %v1692_v0 = vmul.f32 0.35355338, %v17865_v12  ;;  %v17874_v46 = vld [vmem:[#allocation26_spill] sm:$0xff] }
 0x458   : > { %v1774_v3 = vpack.c.bf16 %v1693_v5, %v1692_v0  ;;  %v17873_v5 = vld [vmem:[#allocation27_spill] sm:$0xff] }
 0x45a   : > { %9488 = vmatpush3.bf16.xpose.msra.mxu1 %v2999_v22 }
 0x45b   : > { %9480 = vmatmul.mubr.msk.bf16.gmra.mrb[76].mxu0 %vm1868_vm1, %v1771_v40  ;;  %9986 = vmatprep.subr.msk.bf16.mxu1 %vm1868_vm1, %v12954_v41  ;;  %v1773_v41 = vpack.c.bf16 %v1691_v6, %v1690_v38  ;;  %v17867_v40 = vld [vmem:[#allocation36_spill] sm:$0xff] }
 0x45c   : > { %9502 = vmatpush3.bf16.xpose.msra.mxu0 %v3097_v57  ;;  %9507 = vmatprep.mubr.msk.bf16.mxu0 %vm1868_vm1, %v1776_v25  ;;  %v1704_v22 = vmul.f32 0.35355338, %v17867_v40  ;;  %v17868_v25 = vld [vmem:[#allocation37_spill] sm:$0xff]  ;;  %v17871_v38 = vld [vmem:[#allocation28_spill] sm:$0xff]  ;;  %v17876_v40 = vld [vmem:[#allocation23_spill] sm:$0xff] }
 0x45d   : > { %9989 = vmatprep.subr.msk.bf16.mxu0 %vm1868_vm1, %v17860_v8  ;;  %v1705_v57 = vmul.f32 0.35355338, %v17868_v25  ;;  %v17869_v8 = vld [vmem:[#allocation17_spill] sm:$0xff]  ;;  %v1701_v23 = vmul.f32 0.35355338, %v17871_v38  ;;  %v17872_v6 = vld [vmem:[#allocation16_spill] sm:$0xff] }
 0x45e   : > { %v17877_v25 = vld [vmem:[#allocation57_spill] sm:$0xff] }
 0x45f   : > { %v1780_v12 = vpack.c.bf16 %v1705_v57, %v1704_v22  ;;  %v1702_v22 = vmul.f32 0.35355338, %v17876_v40  ;;  %v1713_v57 = vmul.f32 0.35355338, %v17877_v25  ;;  %v17881_v40 = vld [vmem:[#allocation47_spill] sm:$0xff] }
 0x462   : > { %9490 = vmatpush3.bf16.xpose.msra.mxu1 %v3002_v54  ;;  %v1699_v54 = vmul.f32 0.35355338, %v17869_v8 }
 0x463   : > { %9991 = vmatprep.subr.msk.bf16.mxu1 %vm1868_vm1, %v12805_v51  ;;  %v1694_v51 = vmul.f32 0.35355338, %v17870_v37  ;;  %v3299_v37 = vsel %vm1868_vm1, %v12837_v15, 0 }
 0x464   : > { %9504 = vmatpush3.bf16.xpose.msra.mxu0 %v3100_v59  ;;  %v1698_v59 = vmul.f32 0.35355338, %v17872_v6  ;;  %v13263_v6 = vld [vmem:[%s17256_s0 + $0xc0] sm:$0xff] }
 0x465   : > { %9990 = vmatprep.subr.msk.bf16.mxu0 %vm1868_vm1, %v17864_v18  ;;  %v1775_v48 = vpack.c.bf16 %v1695_v52, %v1694_v51  ;;  %v1700_v18 = vmul.f32 0.35355338, %v17873_v5  ;;  %v1703_v52 = vmul.f32 0.35355338, %v17874_v46  ;;  %v3204_v5 = vsel %vm1868_vm1, %v12780_v28, 0  ;;  %v17880_v46 = vld [vmem:[#allocation46_spill] sm:$0xff] }
 0x466   : > { %v1777_v0 = vpack.c.bf16 %v1699_v54, %v1698_v59 }
 0x467   : > { %v1779_v8 = vpack.c.bf16 %v1703_v52, %v1702_v22  ;;  %v1708_v52 = vmul.f32 0.35355338, %v17880_v46  ;;  %v17887_v46 = vld [vmem:[#allocation43_spill] sm:$0xff] }
 0x469   : > { %9492 = vmatmul.mubr.msk.bf16.vlgmr.msra.gmra.mrb[40].mxu1 %vm1868_vm1, %v1773_v41  ;;  %v3198_v41 = vsel %vm1868_vm1, %v12766_v47, 0 }
 0x46a   : > { %9495 = vmatprep.mubr.msk.bf16.mxu1 %vm1868_vm1, %v1774_v3  ;;  %9516 = vmatpush3.bf16.xpose.msra.mxu1 %v3195_v27  ;;  %v1778_v3 = vpack.c.bf16 %v1701_v23, %v1700_v18  ;;  %v3296_v27 = vsel %vm1868_vm1, %v12858_v2, 0  ;;  %v17878_v18 = vld [vmem:[#allocation33_spill] sm:$0xff] }
 0x46b   : > { %9992 = vmatprep.subr.msk.bf16.mxu1 %vm1868_vm1, %v12766_v47  ;;  %v17875_v47 = vld [vmem:[#allocation62_spill] sm:$0xff] }
 0x46c   : > { %9506 = vmatpush3.bf16.xpose.msra.mxu0 %v3103_v24  ;;  %v1712_v24 = vmul.f32 0.35355338, %v17875_v47 }
 0x46d   : > { %9995 = vmatprep.subr.msk.bf16.mxu0 %vm1868_vm1, %v12858_v2  ;;  %v3201_v2 = vsel %vm1868_vm1, %v12812_v62, 0 }
 0x46e   : > { %v1784_v54 = vpack.c.bf16 %v1713_v57, %v1712_v24  ;;  %v3302_v24 = vsel %vm1868_vm1, %v12864_v17, 0 }
 0x471   : > { %9496 = vmatmul.mubr.msk.bf16.gmra.mrb[44].mxu1 %vm1868_vm1, %v1775_v48  ;;  %v13268_v48 = vld [vmem:[%s17256_s0 + $0xd8] sm:$0xff] }
 0x472   : > { %9518 = vmatpush3.bf16.xpose.msra.mxu1 %v3198_v41  ;;  %9523 = vmatprep.mubr.msk.bf16.mxu1 %vm1868_vm1, %v1780_v12  ;;  %v1706_v12 = vmul.f32 0.35355338, %v17878_v18  ;;  %v13321_v18 = vld [vmem:[%s17256_s0 + $0xf8] sm:$0xff] }
 0x473   : > { %9508 = vmatmul.mubr.msk.bf16.vlgmr.msra.gmra.mrb[80].mxu0 %vm1868_vm1, %v1777_v0  ;;  %9993 = vmatprep.subr.msk.bf16.mxu1 %vm1868_vm1, %v12812_v62  ;;  %v13256_v62 = vld [vmem:[%s17256_s0 + $0xd0] sm:$0xff] }
 0x474   : > { %9511 = vmatprep.mubr.msk.bf16.mxu0 %vm1868_vm1, %v1778_v3  ;;  %9532 = vmatpush3.bf16.xpose.msra.mxu0 %v3296_v27  ;;  %v17879_v3 = vld [vmem:[#allocation34_spill] sm:$0xff] }
 0x475   : > { %9996 = vmatprep.subr.msk.bf16.mxu0 %vm1868_vm1, %v12837_v15  ;;  %v1707_v27 = vmul.f32 0.35355338, %v17879_v3 }
 0x47a   : > { %9520 = vmatpush3.bf16.xpose.msra.mxu1 %v3201_v2 }
 0x47b   : > { %9512 = vmatmul.mubr.msk.bf16.gmra.mrb[84].mxu0 %vm1868_vm1, %v1779_v8  ;;  %9994 = vmatprep.subr.msk.bf16.mxu1 %vm1868_vm1, %v12780_v28  ;;  %v13283_v28 = vld [vmem:[%s17256_s0 + $0xc8] sm:$0xff]  ;;  %v1781_v8 = vpack.c.bf16 %v1707_v27, %v1706_v12  ;;  %v17885_v12 = vld [vmem:[#allocation42_spill] sm:$0xff] }
 0x47c   : > { %9534 = vmatpush3.bf16.xpose.msra.mxu0 %v3299_v37  ;;  %9539 = vmatprep.mubr.msk.bf16.mxu0 %vm1868_vm1, %v1784_v54  ;;  %v13307_v54 = vld [vmem:[%s17256_s0 + $0xf0] sm:$0xff] }
 0x47d   : > { %9997 = vmatprep.subr.msk.bf16.mxu0 %vm1868_vm1, %v12864_v17 }
 0x47f   : > { %v9365_v51 = vpop.f32.mrb[8].mxu1 }
 0x480   : > { %v3531_v38 = vadd.f32 %v9365_v51, %v12664_v42  ;;  %v2230_v23 = vpop.f32.mrb[9].mxu1  ;;  %v3377_v42 = vpop.permute.xlu1 %3376 }
 0x481   : > { %v3529_v15 = vadd.f32 %v12669_v60, %v2230_v23  ;;  %v9366_v59 = vpop.f32.mrb[10].mxu1 }
 0x482   : > { %v13274_v0 = vadd.f32 %v13256_v62, %v3531_v38  ;;  %v3532_v60 = vadd.f32 %v9366_v59, %v12692_v14  ;;  %v2233_v41 = vpop.f32.mrb[11].mxu1  ;;  %9522 = vmatpush3.bf16.xpose.msra.mxu1 %v3204_v5  ;;  %v1709_v14 = vmul.f32 0.35355338, %v17881_v40  ;;  %v13316_v59 = vld [vmem:[%s17256_s0 + $0xe0] sm:$0xff]  ;;  %v13339_v40 = vld [vmem:[%s17256_s0 + $0xe8] sm:$0xff] }
 0x483   : > { %v3530_v47 = vadd.f32 %v12683_v61, %v2233_v41  ;;  %9999 = vmatprep.subr.msk.bf16.mxu1 %vm1868_vm1, %v3377_v42  ;;  %v13290_v22 = vadd.f32 %v13263_v6, %v3529_v15 }
 0x484   : > { %v13293_v25 = vadd.f32 %v13268_v48, %v3532_v60  ;;  %9536 = vmatpush3.bf16.xpose.msra.mxu0 %v3302_v24  ;;  %v3872_v61 = vsel %vm3793_vm2, %v13274_v0, -inf  ;;  %v1782_v37 = vpack.c.bf16 %v1709_v14, %v1708_v52  ;;  %v1710_v60 = vmul.f32 0.35355338, %v17885_v12  ;;  %v17889_v14 = vld [vmem:[#allocation93_spill] sm:$0xff] }
 0x485   : > { %17882 = vst [vmem:[#allocation96_spill] sm:$0xff] %v13290_v22  ;;  %9998 = vmatprep.subr.msk.bf16.mxu0 %vm1868_vm1, %v12839_v30  ;;  %3873 = vmax.xlane.f32.xlu0 %v3872_v61  ;;  %v13300_v17 = vadd.f32 %v13283_v28, %v3530_v47  ;;  %v3866_v23 = vsel %vm3793_vm2, %v13290_v22, -inf  ;;  %v1711_v52 = vmul.f32 0.35355338, %v17887_v46  ;;  %v17888_v47 = vld [vmem:[#allocation91_spill] sm:$0xff] }
 0x486   : > { %17883 = vst [vmem:[#allocation15_spill] sm:$0xff] %v13293_v25  ;;  %v3875_v57 = vsel %vm3793_vm2, %v13293_v25, -inf  ;;  %v1720_v24 = vmul.f32 0.35355338, %v17888_v47  ;;  %v1721_v61 = vmul.f32 0.35355338, %v17889_v14 }
 0x487   : > { %17884 = vst [vmem:[#allocation25_spill] sm:$0xff] %v13300_v17  ;;  %3876 = vmax.xlane.f32.xlu1 %v3875_v57  ;;  %v9369_v2 = vpop.f32.mrb[12].mxu1  ;;  %v3869_v27 = vsel %vm3793_vm2, %v13300_v17, -inf }
 0x488   : > { %v3535_v51 = vadd.f32 %v9369_v2, %v12718_v58  ;;  %v2246_v38 = vpop.f32.mrb[13].mxu1  ;;  %v3397_v58 = vsel %vm1868_vm1, %v3377_v42, 0  ;;  %v17892_v2 = vld [vmem:[#allocation54_spill] sm:$0xff] }
 0x489   : > { %v3533_v15 = vadd.f32 %v12747_v31, %v2246_v38  ;;  %3867 = vmax.xlane.f32.xlu0 %v3866_v23  ;;  %v9370_v5 = vpop.f32.mrb[14].mxu1  ;;  %9524 = vmatmul.mubr.msk.bf16.vlgmr.msra.gmra.mrb[48].mxu1 %vm1868_vm1, %v1781_v8 }
 0x48a   : > { %v13327_v31 = vadd.f32 %v13307_v54, %v3535_v51  ;;  %v3536_v41 = vadd.f32 %v9370_v5, %v12727_v34  ;;  %v2249_v3 = vpop.f32.mrb[15].mxu1  ;;  %9527 = vmatprep.mubr.msk.bf16.mxu1 %vm1868_vm1, %v1782_v37  ;;  %9548 = vmatpush3.bf16.xpose.msra.mxu1 %v3397_v58  ;;  %v3305_v34 = vsel %vm1868_vm1, %v12839_v30, 0  ;;  %v1714_v37 = vmul.f32 0.35355338, %v17892_v2  ;;  %v17893_v51 = vld [vmem:[#allocation19_spill] sm:$0xff]  ;;  %v17894_v30 = vld [vmem:[#allocation81_spill] sm:$0xff] }
 0x48b   : > { %v3534_v42 = vadd.f32 %v12739_v32, %v2249_v3  ;;  %3870 = vmax.xlane.f32.xlu1 %v3869_v27  ;;  %10000 = vmatprep.subr.msk.bf16.mxu1 %vm1868_vm1, %v12879_v45  ;;  %v13347_v57 = vadd.f32 %v13316_v59, %v3533_v15  ;;  %v1717_v38 = vmul.f32 0.35355338, %v17894_v30  ;;  %v1783_v5 = vpack.c.bf16 %v1711_v52, %v1710_v60  ;;  %v17896_v58 = vld [vmem:[#allocation52_spill] sm:$0xff]  ;;  %v3381_v52 = vpop.permute.xlu0 %3380 }
 0x48c   : > { %17886 = vst [vmem:[#allocation24_spill] sm:$0xff] %v13327_v31  ;;  %v13350_v8 = vadd.f32 %v13321_v18, %v3536_v41  ;;  %9538 = vmatpush3.bf16.xpose.msra.mxu0 %v3305_v34  ;;  %v3884_v32 = vsel %vm3793_vm2, %v13327_v31, -inf  ;;  %v1715_v12 = vmul.f32 0.35355338, %v17896_v58  ;;  %v17897_v41 = vld [vmem:[#allocation75_spill] sm:$0xff]  ;;  %v1788_v27 = vpack.c.bf16 %v1721_v61, %v1720_v24  ;;  %v17898_v24 = vld [vmem:[#allocation73_spill] sm:$0xff] }
 0x48d   : > { %17890 = vst [vmem:[#allocation59_spill] sm:$0xff] %v13347_v57  ;;  %9563 = vmatprep.subr.bf16.mxu0 %v17893_v51  ;;  %3885 = vmax.xlane.f32.xlu0 %v3884_v32  ;;  %v13358_v23 = vadd.f32 %v13339_v40, %v3534_v42  ;;  %v1716_v3 = vmul.f32 0.35355338, %v17897_v41  ;;  %v3878_v46 = vsel %vm3793_vm2, %v13347_v57, -inf  ;;  %v3400_v42 = vsel %vm1868_vm1, %v12879_v45, 0  ;;  %v17899_v45 = vld [vmem:[#allocation22_spill] sm:$0xff] }
 0x48e   : > { %17891 = vst [vmem:[#allocation21_spill] sm:$0xff] %v13350_v8  ;;  %v3887_v15 = vsel %vm3793_vm2, %v13350_v8, -inf  ;;  %v1785_v47 = vpack.c.bf16 %v1715_v12, %v1714_v37  ;;  %v1719_v14 = vmul.f32 0.35355338, %v17898_v24  ;;  %v17900_v61 = vld [vmem:[#allocation69_spill] sm:$0xff]  ;;  %v3403_v30 = vsel %vm1868_vm1, %v3381_v52, 0 }
 0x48f   : > { %17895 = vst [vmem:[#allocation55_spill] sm:$0xff] %v13358_v23  ;;  %3888 = vmax.xlane.f32.xlu1 %v3887_v15  ;;  %v1786_v34 = vpack.c.bf16 %v1717_v38, %v1716_v3  ;;  %v3881_v60 = vsel %vm3793_vm2, %v13358_v23, -inf  ;;  %v1718_v32 = vmul.f32 0.35355338, %v17900_v61  ;;  %v17901_v37 = vld [vmem:[#allocation29_spill] sm:$0xff]  ;;  %v3383_v38 = vpop.permute.xlu1 %3382  ;;  %v17903_v15 = vld [vmem:[#allocation39_spill] sm:$0xff] }
 0x490   : > { %v13392_v58 = vld [vmem:[%s17262_s6 + $0x50] sm:$0xff]  ;;  %v17904_v12 = vld [vmem:[#allocation2_spill] sm:$0xff]  ;;  %v17905_v3 = vld [vmem:[#allocation5_spill] sm:$0xff] }
 0x491   : > { %3879 = vmax.xlane.f32.xlu0 %v3878_v46  ;;  %9528 = vmatmul.mubr.msk.bf16.gmra.mrb[52].mxu1 %vm1868_vm1, %v1783_v5  ;;  %v1787_v2 = vpack.c.bf16 %v1719_v14, %v1718_v32  ;;  %v3406_v5 = vsel %vm1868_vm1, %v3383_v38, 0  ;;  %v1722_v41 = vmul.f32 0.35355338, %v17904_v12  ;;  %v17906_v46 = vld [vmem:[#allocation67_spill] sm:$0xff]  ;;  %v17908_v61 = vld [vmem:[#allocation110_spill] sm:$0xff] }
 0x492   : > { %9550 = vmatpush3.bf16.xpose.msra.mxu1 %v3400_v42  ;;  %9555 = vmatprep.mubr.msk.bf16.mxu1 %vm1868_vm1, %v1788_v27  ;;  %v1723_v27 = vmul.f32 0.35355338, %v17905_v3  ;;  %v17907_v42 = vld [vmem:[#allocation118_spill] sm:$0xff]  ;;  %v1724_v32 = vmul.f32 0.35355338, %v17908_v61  ;;  %v17912_v61 = vld [vmem:[#allocation109_spill] sm:$0xff] }
 0x493   : > { %9540 = vmatmul.mubr.msk.bf16.vlgmr.msra.gmra.mrb[88].mxu0 %vm1868_vm1, %v1785_v47  ;;  %3882 = vmax.xlane.f32.xlu1 %v3881_v60  ;;  %v13400_v47 = vld [vmem:[%s17262_s6 + $0x40] sm:$0xff] }
 0x494   : > { %9543 = vmatprep.mubr.msk.bf16.mxu0 %vm1868_vm1, %v1786_v34  ;;  %9564 = vmatpush3.bf16.msra.mxu0 %v17893_v51  ;;  %v17902_v51 = vld [vmem:[#allocation30_spill] sm:$0xff]  ;;  %v1725_v34 = vmul.f32 0.35355338, %v17907_v42 }
 0x495   : > { %10001 = vmatprep.subr.msk.bf16.mxu1 %vm1868_vm1, %v3381_v52  ;;  %9565 = vmatprep.subr.bf16.mxu0 %v17899_v45  ;;  %v13406_v52 = vld [vmem:[%s17262_s6 + $0x58] sm:$0xff] }
 0x496   : > { %v1790_v3 = vpack.c.bf16 %v1725_v34, %v1724_v32  ;;  %v1727_v32 = vmul.f32 0.35355338, %v17912_v61 }
 0x498   : > { %9566 = vmatpush3.bf16.msra.mxu0 %v17899_v45  ;;  %v13412_v45 = vld [vmem:[%s17262_s6 + $0x48] sm:$0xff] }
 0x499   : > { %9567 = vmatprep.subr.bf16.mxu0 %v17901_v37 }
 0x49a   : > { %9552 = vmatpush3.bf16.xpose.msra.mxu1 %v3403_v30  ;;  %v1789_v30 = vpack.c.bf16 %v1723_v27, %v1722_v41  ;;  %v13437_v27 = vld [vmem:[%s17256_s0 + $0x18] sm:$0xff] }
 0x49b   : > { %9544 = vmatmul.mubr.msk.bf16.gmra.mrb[92].mxu0 %vm1868_vm1, %v1787_v2  ;;  %10002 = vmatprep.subr.msk.bf16.mxu1 %vm1868_vm1, %v3383_v38  ;;  %v13419_v38 = vld [vmem:[%s17256_s0 + $0x10] sm:$0xff] }
 0x49c   : > { %9568 = vmatpush3.bf16.msra.mxu0 %v17901_v37 }
 0x49d   : > { %9569 = vmatprep.subr.bf16.mxu0 %v17902_v51 }
 0x4a0   : > { %9570 = vmatpush3.bf16.msra.mxu0 %v17902_v51 }
 0x4a1   : > { %9579 = vmatprep.subr.bf16.mxu0 %v17903_v15 }
 0x4a2   : > { %9554 = vmatpush3.bf16.xpose.msra.mxu1 %v3406_v5 }
 0x4a3   : > { %9595 = vmatprep.subr.bf16.mxu1 %v17906_v46 }
 0x4a4   : > { %v9381_v60 = vpop.f32.mrb[48].mxu0 }
 0x4a5   : > { %v3539_v24 = vadd.f32 %v9381_v60, %v13392_v58  ;;  %v2331_v14 = vpop.f32.mrb[49].mxu0  ;;  %v13429_v60 = vld [vmem:[%s17256_s0] sm:$0xff] }
 0x4a6   : > { %v3537_v2 = vadd.f32 %v13400_v47, %v2331_v14  ;;  %v9382_v37 = vpop.f32.mrb[50].mxu0  ;;  %v13449_v14 = vld [vmem:[%s17262_s6 + $0x70] sm:$0xff] }
 0x4a7   : > { %v13422_v51 = vadd.f32 %v13419_v38, %v3539_v24  ;;  %v3540_v5 = vadd.f32 %v9382_v37, %v13406_v52  ;;  %v2334_v12 = vpop.f32.mrb[51].mxu0 }
 0x4a8   : > { %v3538_v42 = vadd.f32 %v13412_v45, %v2334_v12  ;;  %v13432_v41 = vadd.f32 %v13429_v60, %v3537_v2  ;;  %v13455_v2 = vld [vmem:[%s17256_s0 + $0x8] sm:$0xff] }
 0x4a9   : > { %17909 = vst [vmem:[#allocation31_spill] sm:$0xff] %v13422_v51  ;;  %v13440_v24 = vadd.f32 %v13437_v27, %v3540_v5  ;;  %9556 = vmatmul.mubr.msk.bf16.vlgmr.msra.gmra.mrb[56].mxu1 %vm1868_vm1, %v1789_v30  ;;  %v3896_v34 = vsel %vm3793_vm2, %v13422_v51, -inf  ;;  %v13466_v5 = vld [vmem:[%s17262_s6 + $0x60] sm:$0xff]  ;;  %v17914_v12 = vld [vmem:[#allocation63_spill] sm:$0xff] }
 0x4aa   : > { %17910 = vst [vmem:[#allocation32_spill] sm:$0xff] %v13432_v41  ;;  %3897 = vmax.xlane.f32.xlu0 %v3896_v34  ;;  %9559 = vmatprep.mubr.msk.bf16.mxu1 %vm1868_vm1, %v1790_v3  ;;  %v13458_v37 = vadd.f32 %v13455_v2, %v3538_v42  ;;  %v13472_v34 = vld [vmem:[%s17262_s6 + $0x78] sm:$0xff]  ;;  %v13481_v51 = vld [vmem:[%s17262_s6 + $0x68] sm:$0xff] }
 0x4ab   : > { %17911 = vst [vmem:[#allocation44_spill] sm:$0xff] %v13440_v24  ;;  %9596 = vmatpush3.bf16.msra.mxu1 %v17906_v46  ;;  %v3899_v30 = vsel %vm3793_vm2, %v13440_v24, -inf  ;;  %v17915_v42 = vld [vmem:[#allocation101_spill] sm:$0xff]  ;;  %v3890_v24 = vsel %vm3793_vm2, %v13432_v41, -inf }
 0x4ac   : > { %17913 = vst [vmem:[#allocation45_spill] sm:$0xff] %v13458_v37  ;;  %9597 = vmatprep.subr.bf16.mxu1 %v17914_v12  ;;  %3900 = vmax.xlane.f32.xlu1 %v3899_v30  ;;  %v9385_v3 = vpop.f32.mrb[52].mxu0  ;;  %v1726_v61 = vmul.f32 0.35355338, %v17915_v42  ;;  %v13487_v42 = vld [vmem:[%s17256_s0 + $0x30] sm:$0xff]  ;;  %v3893_v57 = vsel %vm3793_vm2, %v13458_v37, -inf }
 0x4ad   : > { %v3543_v46 = vadd.f32 %v9385_v3, %v13449_v14  ;;  %v2347_v15 = vpop.f32.mrb[53].mxu0  ;;  %v17922_v37 = vld [vmem:[#allocation122_spill] sm:$0xff] }
 0x4ae   : > { %v3541_v30 = vadd.f32 %v13466_v5, %v2347_v15  ;;  %3891 = vmax.xlane.f32.xlu0 %v3890_v24  ;;  %v9386_v23 = vpop.f32.mrb[54].mxu0  ;;  %v1791_v8 = vpack.c.bf16 %v1727_v32, %v1726_v61  ;;  %v17917_v24 = vld [vmem:[#allocation82_spill] sm:$0xff] }
 0x4af   : > { %v13490_v3 = vadd.f32 %v13487_v42, %v3543_v46  ;;  %v3544_v41 = vadd.f32 %v9386_v23, %v13472_v34  ;;  %9598 = vmatpush3.bf16.msra.mxu1 %v17914_v12  ;;  %v2350_v17 = vpop.f32.mrb[55].mxu0  ;;  %v13501_v32 = vld [vmem:[%s17256_s0 + $0x20] sm:$0xff]  ;;  %v13509_v23 = vld [vmem:[%s17256_s0 + $0x38] sm:$0xff] }
 0x4b0   : > { %v3542_v15 = vadd.f32 %v13481_v51, %v2350_v17  ;;  %9599 = vmatprep.subr.bf16.mxu1 %v17917_v24  ;;  %3894 = vmax.xlane.f32.xlu1 %v3893_v57  ;;  %v13504_v61 = vadd.f32 %v13501_v32, %v3541_v30  ;;  %v13520_v57 = vld [vmem:[%s17256_s0 + $0x28] sm:$0xff]  ;;  %v17921_v30 = vld [vmem:[#allocation84_spill] sm:$0xff] }
 0x4b1   : > { %17916 = vst [vmem:[#allocation40_spill] sm:$0xff] %v13490_v3  ;;  %v13512_v12 = vadd.f32 %v13509_v23, %v3544_v41  ;;  %9560 = vmatmul.mubr.msk.bf16.gmra.mrb[60].mxu1 %vm1868_vm1, %v1791_v8  ;;  %v3908_v17 = vsel %vm3793_vm2, %v13490_v3, -inf }
 0x4b2   : > { %17918 = vst [vmem:[#allocation41_spill] sm:$0xff] %v13504_v61  ;;  %3909 = vmax.xlane.f32.xlu0 %v3908_v17  ;;  %v13523_v46 = vadd.f32 %v13520_v57, %v3542_v15  ;;  %v3902_v8 = vsel %vm3793_vm2, %v13504_v61, -inf }
 0x4b3   : > { %17919 = vst [vmem:[#allocation4_spill] sm:$0xff] %v13512_v12  ;;  %9600 = vmatpush3.bf16.msra.mxu1 %v17917_v24  ;;  %v3911_v41 = vsel %vm3793_vm2, %v13512_v12, -inf }
 0x4b4   : > { %17920 = vst [vmem:[#allocation89_spill] sm:$0xff] %v13523_v46  ;;  %9601 = vmatprep.subr.bf16.mxu1 %v17921_v30  ;;  %3912 = vmax.xlane.f32.xlu1 %v3911_v41  ;;  %v3905_v17 = vsel %vm3793_vm2, %v13523_v46, -inf  ;;  %v17923_v41 = vld [vmem:[#allocation138_spill] sm:$0xff] }
 0x4b6   : > { %3903 = vmax.xlane.f32.xlu0 %v3902_v8 }
 0x4b7   : > { %9602 = vmatpush3.bf16.msra.mxu1 %v17921_v30 }
 0x4b8   : > { %9627 = vmatprep.subr.bf16.mxu1 %v17922_v37  ;;  %3906 = vmax.xlane.f32.xlu1 %v3905_v17  ;;  %v17927_v37 = vld [vmem:[#allocation140_spill] sm:$0xff] }
 0x4c0   : > { %v9397_v15 = vpop.f32.mrb[16].mxu1 }
 0x4c1   : > { %v3547_v24 = vadd.f32 %v9397_v15, %v13392_v58  ;;  %v2432_v3 = vpop.f32.mrb[17].mxu1 }
 0x4c2   : > { %v3545_v12 = vadd.f32 %v13400_v47, %v2432_v3  ;;  %v9398_v25 = vpop.f32.mrb[18].mxu1  ;;  %v17929_v3 = vld [vmem:[#allocation142_spill] sm:$0xff] }
 0x4c3   : > { %v13538_v31 = vadd.f32 %v17923_v41, %v3547_v24  ;;  %v3548_v8 = vadd.f32 %v9398_v25, %v13406_v52  ;;  %v2435_v61 = vpop.f32.mrb[19].mxu1 }
 0x4c4   : > { %v3546_v30 = vadd.f32 %v13412_v45, %v2435_v61  ;;  %v13543_v46 = vadd.f32 %v17925_v21, %v3545_v12 }
 0x4c5   : > { %17924 = vst [vmem:[#allocation53_spill] sm:$0xff] %v13538_v31  ;;  %v13546_v17 = vadd.f32 %v17927_v37, %v3548_v8  ;;  %v3920_v15 = vsel %vm3793_vm2, %v13538_v31, -inf }
 0x4c6   : > { %17926 = vst [vmem:[#allocation12_spill] sm:$0xff] %v13543_v46  ;;  %3921 = vmax.xlane.f32.xlu0 %v3920_v15  ;;  %v13551_v22 = vadd.f32 %v17929_v3, %v3546_v30  ;;  %v3914_v21 = vsel %vm3793_vm2, %v13543_v46, -inf  ;;  %v17938_v46 = vld [vmem:[#allocation127_spill] sm:$0xff] }
 0x4c7   : > { %17928 = vst [vmem:[#allocation79_spill] sm:$0xff] %v13546_v17  ;;  %v3923_v24 = vsel %vm3793_vm2, %v13546_v17, -inf }
 0x4c8   : > { %17930 = vst [vmem:[#allocation51_spill] sm:$0xff] %v13551_v22  ;;  %3924 = vmax.xlane.f32.xlu1 %v3923_v24  ;;  %v9401_v25 = vpop.f32.mrb[20].mxu1  ;;  %v3917_v3 = vsel %vm3793_vm2, %v13551_v22, -inf }
 0x4c9   : > { %v3551_v61 = vadd.f32 %v9401_v25, %v13449_v14  ;;  %v2448_v41 = vpop.f32.mrb[21].mxu1 }
 0x4ca   : > { %v3549_v37 = vadd.f32 %v13466_v5, %v2448_v41  ;;  %3915 = vmax.xlane.f32.xlu0 %v3914_v21  ;;  %v9402_v12 = vpop.f32.mrb[22].mxu1 }
 0x4cb   : > { %v13560_v8 = vadd.f32 %v12925_v33, %v3551_v61  ;;  %v3552_v30 = vadd.f32 %v9402_v12, %v13472_v34  ;;  %v2451_v15 = vpop.f32.mrb[23].mxu1 }
 0x4cc   : > { %v3550_v24 = vadd.f32 %v13481_v51, %v2451_v15  ;;  %3918 = vmax.xlane.f32.xlu1 %v3917_v3  ;;  %v13567_v25 = vadd.f32 %v12940_v16, %v3549_v37 }
 0x4cd   : > { %17931 = vst [vmem:[#allocation72_spill] sm:$0xff] %v13560_v8  ;;  %v13570_v17 = vadd.f32 %v12945_v13, %v3552_v30  ;;  %v3932_v41 = vsel %vm3793_vm2, %v13560_v8, -inf  ;;  %v3802_v13 = vpop.xlane.xlu0 %3801  ;;  %v17935_v30 = vld [vmem:[#allocation125_spill] sm:$0xff] }
 0x4ce   : > { %17932 = vst [vmem:[#allocation71_spill] sm:$0xff] %v13567_v25  ;;  %3933 = vmax.xlane.f32.xlu0 %v3932_v41  ;;  %v13575_v33 = vadd.f32 %v12960_v4, %v3550_v24  ;;  %v3926_v21 = vsel %vm3793_vm2, %v13567_v25, -inf  ;;  %v4180_v15 = vsub.f32 %v17935_v30, %v3802_v13  ;;  %v17936_v41 = vld [vmem:[#allocation129_spill] sm:$0xff]  ;;  %v3799_v25 = vpop.xlane.xlu1 %3798 }
 0x4cf   : > { %17933 = vst [vmem:[#allocation9_spill] sm:$0xff] %v13570_v17  ;;  %v3935_v61 = vsel %vm3793_vm2, %v13570_v17, -inf }
 0x4d0   : > { %17934 = vst [vmem:[#allocation20_spill] sm:$0xff] %v13575_v33  ;;  %3936 = vmax.xlane.f32.xlu1 %v3935_v61  ;;  %v3929_v16 = vsel %vm3793_vm2, %v13575_v33, -inf  ;;  %v4310_v8 = vmul.f32 1.442695, %v4180_v15 }
 0x4d1   : > { %v3796_v37 = vpop.xlane.xlu0 %3795 }
 0x4d2   : > { %3927 = vmax.xlane.f32.xlu0 %v3926_v21  ;;  %v4178_v31 = vsub.f32 %v17938_v46, %v3796_v37  ;;  %10337 = vpow2.f32 %v4310_v8 }
 0x4d4   : > { %3930 = vmax.xlane.f32.xlu1 %v3929_v16 }
 0x4d5   : > { %v3805_v12 = vpop.xlane.xlu0 %3804 }
 0x4d6   : > { %v4181_v17 = vsub.f32 %v17936_v41, %v3805_v12 }
 0x4e4   : > { %v9413_v3 = vpop.f32.mrb[56].mxu0 }
 0x4e5   : > { %v3555_v4 = vadd.f32 %v9413_v3, %v13392_v58  ;;  %v2533_v24 = vpop.f32.mrb[57].mxu0 }
 0x4e6   : > { %v3553_v61 = vadd.f32 %v13400_v47, %v2533_v24  ;;  %v9414_v22 = vpop.f32.mrb[58].mxu0  ;;  %v17941_v24 = vld [vmem:[#allocation128_spill] sm:$0xff] }
 0x4e7   : > { %v13588_v21 = vadd.f32 %v13056_v35, %v3555_v4  ;;  %v3556_v16 = vadd.f32 %v9414_v22, %v13406_v52  ;;  %v2536_v33 = vpop.f32.mrb[59].mxu0  ;;  %v4179_v35 = vsub.f32 %v17941_v24, %v3799_v25  ;;  %v4312_v4 = vmul.f32 1.442695, %v4181_v17  ;;  %v3817_v17 = vpop.xlane.xlu1 %3816 }
 0x4e8   : > { %v3554_v13 = vadd.f32 %v13412_v45, %v2536_v33  ;;  %v13594_v30 = vadd.f32 %v13067_v29, %v3553_v61  ;;  %v4306_v33 = vmul.f32 1.442695, %v4178_v31  ;;  %v3814_v61 = vpop.xlane.xlu0 %3813 }
 0x4e9   : > { %17937 = vst [vmem:[#allocation65_spill] sm:$0xff] %v13588_v21  ;;  %v13597_v12 = vadd.f32 %v13072_v39, %v3556_v16  ;;  %v3944_v3 = vsel %vm3793_vm2, %v13588_v21, -inf  ;;  %v4308_v41 = vmul.f32 1.442695, %v4179_v35  ;;  %10339 = vpow2.f32 %v4312_v4 }
 0x4ea   : > { %17939 = vst [vmem:[#allocation18_spill] sm:$0xff] %v13594_v30  ;;  %3945 = vmax.xlane.f32.xlu0 %v3944_v3  ;;  %v13603_v22 = vadd.f32 %v13082_v56, %v3554_v13  ;;  %v3938_v15 = vsel %vm3793_vm2, %v13594_v30, -inf  ;;  %10341 = vpow2.f32 %v4306_v33  ;;  %v17947_v33 = vld [vmem:[#allocation130_spill] sm:$0xff] }
 0x4eb   : > { %17940 = vst [vmem:[#allocation11_spill] sm:$0xff] %v13597_v12  ;;  %v3947_v46 = vsel %vm3793_vm2, %v13597_v12, -inf  ;;  %10343 = vpow2.f32 %v4308_v41 }
 0x4ec   : > { %17942 = vst [vmem:[#allocation87_spill] sm:$0xff] %v13603_v22  ;;  %3948 = vmax.xlane.f32.xlu1 %v3947_v46  ;;  %v9417_v29 = vpop.f32.mrb[60].mxu0  ;;  %v3941_v13 = vsel %vm3793_vm2, %v13603_v22, -inf }
 0x4ed   : > { %v3559_v39 = vadd.f32 %v9417_v29, %v13449_v14  ;;  %v2549_v37 = vpop.f32.mrb[61].mxu0  ;;  %v4184_v29 = vsub.f32 %v17947_v33, %v3814_v61 }
 0x4ee   : > { %v3557_v25 = vadd.f32 %v13466_v5, %v2549_v37  ;;  %3939 = vmax.xlane.f32.xlu0 %v3938_v15  ;;  %v9418_v56 = vpop.f32.mrb[62].mxu0  ;;  %v13634_v37 = vpop.eup %10337  ;;  %v17948_v15 = vld [vmem:[#allocation131_spill] sm:$0xff] }
 0x4ef   : > { %v13612_v16 = vadd.f32 %v13106_v63, %v3559_v39  ;;  %v3560_v31 = vadd.f32 %v9418_v56, %v13472_v34  ;;  %v2552_v8 = vpop.f32.mrb[63].mxu0  ;;  %v3811_v39 = vpop.xlane.xlu1 %3810  ;;  %v4318_v56 = vmul.f32 1.442695, %v4184_v29 }
 0x4f0   : > { %v3558_v3 = vadd.f32 %v13481_v51, %v2552_v8  ;;  %3942 = vmax.xlane.f32.xlu1 %v3941_v13  ;;  %v13619_v24 = vadd.f32 %v13120_v7, %v3557_v25  ;;  %v3808_v7 = vpop.xlane.xlu0 %3807  ;;  %v4185_v25 = vsub.f32 %v17948_v15, %v3817_v17  ;;  %v4568_v13 = vsel %vm3793_vm2, %v13634_v37, 0.0 }
 0x4f1   : > { %17943 = vst [vmem:[#allocation7_spill] sm:$0xff] %v13612_v16  ;;  %v13622_v35 = vadd.f32 %v13125_v50, %v3560_v31  ;;  %v3956_v63 = vsel %vm3793_vm2, %v13612_v16, -inf  ;;  %v17949_v31 = vld [vmem:[#allocation133_spill] sm:$0xff]  ;;  %10345 = vpow2.f32 %v4318_v56 }
 0x4f2   : > { %17944 = vst [vmem:[#allocation114_spill] sm:$0xff] %v13619_v24  ;;  %3957 = vmax.xlane.f32.xlu0 %v3956_v63  ;;  %v13627_v4 = vadd.f32 %v13137_v10, %v3558_v3  ;;  %v3950_v50 = vsel %vm3793_vm2, %v13619_v24, -inf  ;;  %v4182_v8 = vsub.f32 %v17949_v31, %v3808_v7  ;;  %v4320_v63 = vmul.f32 1.442695, %v4185_v25 }
 0x4f3   : > { %17945 = vst [vmem:[#allocation13_spill] sm:$0xff] %v13622_v35  ;;  %v3959_v46 = vsel %vm3793_vm2, %v13622_v35, -inf  ;;  %v13639_v41 = vpop.eup %10339  ;;  %v13642_v61 = vpop.xlane.xlu1 %3828  ;;  %v17956_v35 = vld [vmem:[#allocation143_spill] sm:$0xff] }
 0x4f4   : > { %17946 = vst [vmem:[#allocation107_spill] sm:$0xff] %v13627_v4  ;;  %3960 = vmax.xlane.f32.xlu1 %v3959_v46  ;;  %v3953_v10 = vsel %vm3793_vm2, %v13627_v4, -inf  ;;  %v13646_v3 = vpop.eup %10341  ;;  %v17950_v46 = vld [vmem:[#allocation132_spill] sm:$0xff]  ;;  %v4571_v33 = vsel %vm3793_vm2, %v13639_v41, 0.0  ;;  %v4314_v29 = vmul.f32 1.442695, %v4182_v8  ;;  %v3826_v15 = vpop.xlane.xlu0 %3825  ;;  %10347 = vpow2.f32 %v4320_v63 }
 0x4f5   : > { %v4183_v17 = vsub.f32 %v17950_v46, %v3811_v39  ;;  %v4562_v4 = vsel %vm3793_vm2, %v13646_v3, 0.0 }
 0x4f6   : > { %3951 = vmax.xlane.f32.xlu0 %v3950_v50  ;;  %v13651_v50 = vpop.eup %10343  ;;  %10349 = vpow2.f32 %v4314_v29 }
 0x4f7   : > { %v4316_v25 = vmul.f32 1.442695, %v4183_v17  ;;  %v13656_v39 = vpop.xlane.xlu1 %3822 }
 0x4f8   : > { %3954 = vmax.xlane.f32.xlu1 %v3953_v10 }
 0x4f9   : > { %10351 = vpow2.f32 %v4316_v25 }
 0x4fa   : > { %4569 = vadd.xlane.f32.xlu0 %v4568_v13 }
 0x4fc   : > { %v9429_v7 = vpop.f32.mrb[24].mxu1  ;;  %4572 = vadd.xlane.f32.xlu1 %v4571_v33 }
 0x4fd   : > { %v3563_v10 = vadd.f32 %v9429_v7, %v13392_v58  ;;  %v2634_v31 = vpop.f32.mrb[25].mxu1  ;;  %v4565_v58 = vsel %vm3793_vm2, %v13651_v50, 0.0 }
 0x4fe   : > { %v3561_v13 = vadd.f32 %v13400_v47, %v2634_v31  ;;  %v9430_v46 = vpop.f32.mrb[26].mxu1  ;;  %4563 = vadd.xlane.f32.xlu0 %v4562_v4  ;;  %v13681_v31 = vpop.eup %10345 }
 0x4ff   : > { %v13660_v56 = vadd.f32 %v13256_v62, %v3563_v10  ;;  %v3564_v8 = vadd.f32 %v9430_v46, %v13406_v52  ;;  %v2637_v33 = vpop.f32.mrb[27].mxu1  ;;  %v3820_v52 = vpop.xlane.xlu0 %3819 }
 0x500   : > { %v3562_v7 = vadd.f32 %v13412_v45, %v2637_v33  ;;  %4566 = vadd.xlane.f32.xlu1 %v4565_v58  ;;  %v13667_v63 = vadd.f32 %v13263_v6, %v3561_v13  ;;  %v3841_v45 = vpop.xlane.xlu1 %3840  ;;  %v17955_v13 = vld [vmem:[#allocation141_spill] sm:$0xff]  ;;  %v4186_v22 = vsub.f32 %v17956_v35, %v3820_v52 }
 0x501   : > { %17951 = vst [vmem:[#allocation105_spill] sm:$0xff] %v13660_v56  ;;  %v13670_v47 = vadd.f32 %v13268_v48, %v3564_v8  ;;  %v3968_v62 = vsel %vm3793_vm2, %v13660_v56, -inf  ;;  %v4188_v25 = vsub.f32 %v17955_v13, %v3826_v15  ;;  %v4580_v15 = vsel %vm3793_vm2, %v13681_v31, 0.0 }
 0x502   : > { %17952 = vst [vmem:[#allocation36_spill] sm:$0xff] %v13667_v63  ;;  %3969 = vmax.xlane.f32.xlu0 %v3968_v62  ;;  %v13675_v4 = vadd.f32 %v13283_v28, %v3562_v7  ;;  %v3962_v48 = vsel %vm3793_vm2, %v13667_v63, -inf  ;;  %v13688_v7 = vpop.eup %10347 }
 0x503   : > { %17953 = vst [vmem:[#allocation37_spill] sm:$0xff] %v13670_v47  ;;  %v3971_v17 = vsel %vm3793_vm2, %v13670_v47, -inf  ;;  %v13697_v13 = vpop.eup %10349  ;;  %v4583_v12 = vsel %vm3793_vm2, %v13688_v7, 0.0 }
 0x504   : > { %17954 = vst [vmem:[#allocation17_spill] sm:$0xff] %v13675_v4  ;;  %v9433_v29 = vpop.f32.mrb[28].mxu1  ;;  %3972 = vmax.xlane.f32.xlu1 %v3971_v17  ;;  %v3965_v58 = vsel %vm3793_vm2, %v13675_v4, -inf  ;;  %v13692_v17 = vpop.xlane.xlu0 %3837  ;;  %v4574_v35 = vsel %vm3793_vm2, %v13697_v13, 0.0 }
 0x505   : > { %v9445_v6 = vpop.f32.mrb[64].mxu0  ;;  %v2650_v10 = vpop.f32.mrb[29].mxu1  ;;  %v3567_v47 = vadd.f32 %v9433_v29, %v13449_v14 }
 0x506   : > { %v2735_v46 = vpop.f32.mrb[65].mxu0  ;;  %v9434_v8 = vpop.f32.mrb[30].mxu1  ;;  %3963 = vmax.xlane.f32.xlu0 %v3962_v48  ;;  %v4326_v48 = vmul.f32 1.442695, %v4188_v25  ;;  %v3565_v56 = vadd.f32 %v13466_v5, %v2650_v10 }
 0x507   : > { %v13684_v28 = vpop.f32.mrb[66].mxu0  ;;  %v2653_v33 = vpop.f32.mrb[31].mxu1  ;;  %v3568_v4 = vadd.f32 %v9434_v8, %v13472_v34  ;;  %v13707_v29 = vadd.f32 %v13307_v54, %v3567_v47  ;;  %v17958_v34 = vld [vmem:[#allocation144_spill] sm:$0xff]  ;;  %v4322_v8 = vmul.f32 1.442695, %v4186_v22 }
 0x508   : > { %v13690_v62 = vpop.f32.mrb[67].mxu0  ;;  %3966 = vmax.xlane.f32.xlu1 %v3965_v58  ;;  %v13703_v63 = vpop.eup %10351  ;;  %v4193_v58 = vsub.f32 %v12966_v49, %v3841_v45  ;;  %10353 = vpow2.f32 %v4326_v48  ;;  %v4189_v52 = vsub.f32 %v17958_v34, %v13642_v61  ;;  %v13719_v49 = vld [vmem:[%s17262_s6 + $0x90] sm:$0xff]  ;;  %v3566_v47 = vadd.f32 %v13481_v51, %v2653_v33 }
 0x509   : > { %v3835_v14 = vpop.xlane.xlu1 %3834  ;;  %17957 = vst [vmem:[#allocation98_spill] sm:$0xff] %v13707_v29  ;;  %v13723_v54 = vpop.xlane.xlu0 %3831  ;;  %v13726_v5 = vadd.f32 %v13321_v18, %v3568_v4  ;;  %v4577_v22 = vsel %vm3793_vm2, %v13703_v63, 0.0  ;;  %v3571_v48 = vadd.f32 %v9445_v6, %v13719_v49  ;;  %v3980_v18 = vsel %vm3793_vm2, %v13707_v29, -inf }
 0x50a   : > { %4581 = vadd.xlane.f32.xlu0 %v4580_v15  ;;  %v4336_v61 = vmul.f32 1.442695, %v4193_v58  ;;  %v4191_v10 = vsub.f32 %v12974_v9, %v3835_v14  ;;  %v4328_v51 = vmul.f32 1.442695, %v4189_v52  ;;  %10355 = vpow2.f32 %v4322_v8  ;;  %v13747_v9 = vld [vmem:[%s17262_s6 + $0x80] sm:$0xff] }
 0x50b   : > { %17959 = vst [vmem:[#allocation28_spill] sm:$0xff] %v13726_v5  ;;  %v4187_v4 = vsub.f32 %v12917_v55, %v13656_v39  ;;  %v13752_v6 = vadd.f32 %v13339_v40, %v3566_v47  ;;  %v13757_v58 = vadd.f32 %v13419_v38, %v3571_v48  ;;  %v3569_v55 = vadd.f32 %v13747_v9, %v2735_v46 }
 0x50c   : > { %4584 = vadd.xlane.f32.xlu1 %v4583_v12  ;;  %10357 = vpow2.f32 %v4336_v61 }
 0x50d   : > { %v13710_v25 = vpop.f32.mrb[68].mxu0  ;;  %v13749_v33 = vpop.xlane.xlu0 %3849  ;;  %17961 = vst [vmem:[#allocation27_spill] sm:$0xff] %v13752_v6  ;;  %17962 = vst [vmem:[#allocation26_spill] sm:$0xff] %v13757_v58  ;;  %10359 = vpow2.f32 %v4328_v51  ;;  %v4324_v14 = vmul.f32 1.442695, %v4187_v4  ;;  %v3977_v40 = vsel %vm3793_vm2, %v13752_v6, -inf  ;;  %v13767_v38 = vadd.f32 %v13429_v60, %v3569_v55 }
 0x50e   : > { %v13721_v12 = vpop.f32.mrb[69].mxu0  ;;  %4575 = vadd.xlane.f32.xlu0 %v4574_v35  ;;  %v13738_v35 = vadd.f32 %v13316_v59, %v3565_v56  ;;  %v3983_v59 = vsel %vm3793_vm2, %v13726_v5, -inf  ;;  %v4332_v56 = vmul.f32 1.442695, %v4191_v10  ;;  %v3853_v52 = vpop.xlane.xlu1 %3852  ;;  %v3992_v46 = vsel %vm3793_vm2, %v13757_v58, -inf  ;;  %v13789_v4 = vld [vmem:[%s17262_s6 + $0xb0] sm:$0xff] }
 0x50f   : > { %v13729_v45 = vpop.f32.mrb[70].mxu0  ;;  %17964 = vst [vmem:[#allocation23_spill] sm:$0xff] %v13767_v38  ;;  %v3986_v60 = vsel %vm3793_vm2, %v13767_v38, -inf  ;;  %v4192_v51 = vsub.f32 %v12949_v1, %v13692_v17  ;;  %v13805_v17 = vld [vmem:[%s17262_s6 + $0x98] sm:$0xff] }
 0x510   : > { %v13734_v15 = vpop.f32.mrb[71].mxu0  ;;  %4578 = vadd.xlane.f32.xlu1 %v4577_v22  ;;  %17960 = vst [vmem:[#allocation16_spill] sm:$0xff] %v13738_v35  ;;  %v3974_v39 = vsel %vm3793_vm2, %v13738_v35, -inf  ;;  %10361 = vpow2.f32 %v4332_v56 }
 0x511   : > { %v3844_v8 = vpop.xlane.xlu0 %3843  ;;  %10363 = vpow2.f32 %v4324_v14  ;;  %v4197_v14 = vsub.f32 %v13088_v36, %v3853_v52  ;;  %v13818_v36 = vld [vmem:[%s17262_s6 + $0xa0] sm:$0xff]  ;;  %v3572_v52 = vadd.f32 %v13684_v28, %v13805_v17 }
 0x512   : > { %3981 = vmax.xlane.f32.xlu0 %v3980_v18  ;;  %v13764_v34 = vpop.eup %10353  ;;  %v4194_v61 = vsub.f32 %v13085_v53, %v3844_v8  ;;  %v13793_v53 = vpop.xlane.xlu1 %3846  ;;  %v3573_v28 = vadd.f32 %v13818_v36, %v13721_v12 }
 0x513   : > { %17963 = vst [vmem:[#allocation62_spill] sm:$0xff] %v13764_v34  ;;  %v4592_v47 = vsel %vm3793_vm2, %v13764_v34, 0.0  ;;  %v17998_v34 = vld [vmem:[#allocation59_spill] sm:$0xff] }
 0x514   : > { %3984 = vmax.xlane.f32.xlu1 %v3983_v59  ;;  %v13773_v22 = vpop.eup %10355  ;;  %v4338_v1 = vmul.f32 1.442695, %v4194_v61 }
 0x515   : > { %17965 = vst [vmem:[#allocation57_spill] sm:$0xff] %v13773_v22  ;;  %v4586_v55 = vsel %vm3793_vm2, %v13773_v22, 0.0 }
 0x516   : > { %3975 = vmax.xlane.f32.xlu0 %v3974_v39  ;;  %v13782_v18 = vpop.eup %10357  ;;  %10365 = vpow2.f32 %v4338_v1 }
 0x517   : > { %17966 = vst [vmem:[#allocation33_spill] sm:$0xff] %v13782_v18  ;;  %v13799_v39 = vpop.eup %10359  ;;  %v4607_v8 = vsel %vm3793_vm2, %v13782_v18, 0.0 }
 0x518   : > { %3978 = vmax.xlane.f32.xlu1 %v3977_v40  ;;  %17967 = vst [vmem:[#allocation34_spill] sm:$0xff] %v13799_v39  ;;  %v3575_v40 = vadd.f32 %v13710_v25, %v13789_v4  ;;  %v4595_v25 = vsel %vm3793_vm2, %v13799_v39, 0.0  ;;  %v18000_v39 = vld [vmem:[#allocation25_spill] sm:$0xff] }
 0x51a   : > { %3993 = vmax.xlane.f32.xlu0 %v3992_v46  ;;  %v13811_v46 = vpop.eup %10361 }
 0x51b   : > { %17968 = vst [vmem:[#allocation46_spill] sm:$0xff] %v13811_v46  ;;  %v13824_v61 = vpop.eup %10363 }
 0x51c   : > { %v13776_v10 = vpop.f32.mrb[32].mxu1  ;;  %4593 = vadd.xlane.f32.xlu1 %v4592_v47  ;;  %v4334_v47 = vmul.f32 1.442695, %v4192_v51  ;;  %17969 = vst [vmem:[#allocation47_spill] sm:$0xff] %v13824_v61  ;;  %v3865_v51 = vpop.xlane.xlu1 %3864 }
 0x51d   : > { %v13778_v48 = vpop.f32.mrb[33].mxu1 }
 0x51e   : > { %v13791_v59 = vpop.f32.mrb[34].mxu1  ;;  %3987 = vmax.xlane.f32.xlu0 %v3986_v60  ;;  %v4190_v60 = vsub.f32 %v12963_v19, %v13723_v54  ;;  %v13829_v19 = vld [vmem:[%s17262_s6 + $0x88] sm:$0xff]  ;;  %10367 = vpow2.f32 %v4334_v47  ;;  %v4589_v47 = vsel %vm3793_vm2, %v13824_v61, 0.0 }
 0x51f   : > { %v13795_v56 = vpop.f32.mrb[35].mxu1 }
 0x520   : > { %4587 = vadd.xlane.f32.xlu1 %v4586_v55  ;;  %v4344_v55 = vmul.f32 1.442695, %v4197_v14  ;;  %v4601_v14 = vsel %vm3793_vm2, %v13811_v46, 0.0  ;;  %v4330_v1 = vmul.f32 1.442695, %v4190_v60  ;;  %v13880_v58 = vpop.eup %10365 }
 0x521   : > { %17974 = vst [vmem:[#allocation54_spill] sm:$0xff] %v13880_v58 }
 0x522   : > { %4608 = vadd.xlane.f32.xlu0 %v4607_v8  ;;  %v13834_v8 = vadd.f32 %v13487_v42, %v3575_v40  ;;  %v3570_v42 = vadd.f32 %v13829_v19, %v13690_v62  ;;  %10369 = vpow2.f32 %v4344_v55 }
 0x523   : > { %10371 = vpow2.f32 %v4330_v1  ;;  %v4196_v1 = vsub.f32 %v13075_v20, %v13749_v33  ;;  %v13897_v20 = vld [vmem:[%s17262_s6 + $0xb8] sm:$0xff] }
 0x524   : > { %v13831_v54 = vpop.f32.mrb[36].mxu1  ;;  %4596 = vadd.xlane.f32.xlu1 %v4595_v25  ;;  %17970 = vst [vmem:[#allocation42_spill] sm:$0xff] %v13834_v8  ;;  %v13845_v25 = vadd.f32 %v13437_v27, %v3572_v52  ;;  %v13859_v27 = vpop.xlane.xlu0 %3861  ;;  %v13862_v52 = vadd.f32 %v13501_v32, %v3573_v28  ;;  %v4004_v38 = vsel %vm3793_vm2, %v13834_v8, -inf  ;;  %v4201_v32 = vsub.f32 %v13143_v43, %v3865_v51 }
 0x525   : > { %v13838_v5 = vpop.f32.mrb[37].mxu1  ;;  %v3859_v28 = vpop.xlane.xlu1 %3858 }
 0x526   : > { %v9477_v35 = vpop.f32.mrb[72].mxu0  ;;  %v13842_v29 = vpop.f32.mrb[38].mxu1  ;;  %4602 = vadd.xlane.f32.xlu0 %v4601_v14  ;;  %17971 = vst [vmem:[#allocation43_spill] sm:$0xff] %v13845_v25  ;;  %17972 = vst [vmem:[#allocation91_spill] sm:$0xff] %v13862_v52 }
 0x527   : > { %v13850_v40 = vadd.f32 %v9477_v35, %v13719_v49  ;;  %v2937_v12 = vpop.f32.mrb[73].mxu0  ;;  %v13852_v6 = vpop.f32.mrb[39].mxu1 }
 0x528   : > { %v13857_v60 = vadd.f32 %v13747_v9, %v2937_v12  ;;  %v9478_v14 = vpop.f32.mrb[74].mxu0  ;;  %4590 = vadd.xlane.f32.xlu1 %v4589_v47  ;;  %v13873_v12 = vadd.f32 %v13455_v2, %v3570_v42  ;;  %v3995_v47 = vsel %vm3793_vm2, %v13845_v25, -inf  ;;  %v13891_v51 = vpop.eup %10367  ;;  %v4199_v25 = vsub.f32 %v13150_v44, %v3859_v28 }
 0x529   : > { %v13865_v62 = vadd.f32 %v9478_v14, %v13805_v17  ;;  %v2940_v35 = vpop.f32.mrb[75].mxu0  ;;  %v3998_v14 = vsel %vm3793_vm2, %v13862_v52, -inf  ;;  %17975 = vst [vmem:[#allocation19_spill] sm:$0xff] %v13891_v51 }
 0x52a   : > { %v13870_v55 = vadd.f32 %v13829_v19, %v2940_v35  ;;  %4005 = vmax.xlane.f32.xlu0 %v4004_v38  ;;  %17973 = vst [vmem:[#allocation93_spill] sm:$0xff] %v13873_v12  ;;  %v13884_v38 = vpop.xlane.xlu0 %3855  ;;  %v3989_v43 = vsel %vm3793_vm2, %v13873_v12, -inf  ;;  %v4610_v12 = vsel %vm3793_vm2, %v13880_v58, 0.0  ;;  %v4348_v58 = vmul.f32 1.442695, %v4199_v25 }
 0x52c   : > { %3996 = vmax.xlane.f32.xlu1 %v3995_v47  ;;  %v4352_v47 = vmul.f32 1.442695, %v4201_v32  ;;  %v3579_v32 = vadd.f32 %v13776_v10, %v13719_v49  ;;  %v13914_v8 = vpop.eup %10369  ;;  %v3576_v10 = vadd.f32 %v13729_v45, %v13897_v20  ;;  %v3577_v45 = vadd.f32 %v13747_v9, %v13778_v48 }
 0x52d   : > { %17976 = vst [vmem:[#allocation81_spill] sm:$0xff] %v13914_v8  ;;  %v13925_v46 = vpop.eup %10371 }
 0x52e   : > { %v9481_v35 = vpop.f32.mrb[76].mxu0  ;;  %3999 = vmax.xlane.f32.xlu0 %v3998_v14  ;;  %v3874_v18 = vpop.xlane.xlu0 %3873  ;;  %17977 = vst [vmem:[#allocation52_spill] sm:$0xff] %v13925_v46  ;;  %10373 = vpow2.f32 %v4352_v47  ;;  %v13942_v25 = vadd.f32 %v13509_v23, %v3576_v10 }
 0x52f   : > { %v13887_v2 = vadd.f32 %v9481_v35, %v13789_v4  ;;  %v2953_v42 = vpop.f32.mrb[77].mxu0  ;;  %v13905_v35 = vld [vmem:[%s17262_s6 + $0xa8] sm:$0xff]  ;;  %v4204_v10 = vsub.f32 %v13274_v0, %v3874_v18 }
 0x530   : > { %v13900_v33 = vadd.f32 %v13818_v36, %v2953_v42  ;;  %v9482_v14 = vpop.f32.mrb[78].mxu0  ;;  %3990 = vmax.xlane.f32.xlu1 %v3989_v43  ;;  %v4342_v42 = vmul.f32 1.442695, %v4196_v1  ;;  %v4195_v43 = vsub.f32 %v13096_v26, %v13793_v53  ;;  %v13930_v26 = vld [vmem:[%s17256_s0 + $0x50] sm:$0xff]  ;;  %17979 = vst [vmem:[#allocation73_spill] sm:$0xff] %v13942_v25  ;;  %v3574_v47 = vadd.f32 %v13905_v35, %v13734_v15 }
 0x531   : > { %v13910_v44 = vadd.f32 %v9482_v14, %v13897_v20  ;;  %v2956_v28 = vpop.f32.mrb[79].mxu0  ;;  %v4604_v14 = vsel %vm3793_vm2, %v13891_v51, 0.0  ;;  %v13933_v53 = vadd.f32 %v13930_v26, %v3579_v32  ;;  %v4598_v32 = vsel %vm3793_vm2, %v13925_v46, 0.0 }
 0x532   : > { %v13919_v52 = vadd.f32 %v13905_v35, %v2956_v28  ;;  %4611 = vadd.xlane.f32.xlu0 %v4610_v12  ;;  %v4619_v12 = vsel %vm3793_vm2, %v13914_v8, 0.0  ;;  %10375 = vpow2.f32 %v4342_v42  ;;  %v4340_v1 = vmul.f32 1.442695, %v4195_v43  ;;  %v13939_v28 = vpop.xlane.xlu1 %3876  ;;  %v3868_v48 = vpop.xlane.xlu0 %3867  ;;  %v13951_v42 = vld [vmem:[%s17256_s0 + $0x40] sm:$0xff] }
 0x533   : > { %17978 = vst [vmem:[#allocation75_spill] sm:$0xff] %v13933_v53  ;;  %10377 = vpow2.f32 %v4348_v58  ;;  %17980 = vst [vmem:[#allocation22_spill] sm:$0xff] %v13951_v42  ;;  %v13954_v43 = vadd.f32 %v13951_v42, %v3577_v45  ;;  %v4016_v23 = vsel %vm3793_vm2, %v13933_v53, -inf  ;;  %v13959_v15 = vadd.f32 %v13520_v57, %v3574_v47 }
 0x534   : > { %4605 = vadd.xlane.f32.xlu1 %v4604_v14  ;;  %10379 = vpow2.f32 %v4340_v1  ;;  %v4007_v58 = vsel %vm3793_vm2, %v13942_v25, -inf  ;;  %v4200_v57 = vsub.f32 %v13128_v11, %v13859_v27  ;;  %v4358_v53 = vmul.f32 1.442695, %v4204_v10  ;;  %v17985_v25 = vld [vmem:[#allocation96_spill] sm:$0xff] }
 0x535   : > { %17981 = vst [vmem:[#allocation69_spill] sm:$0xff] %v13954_v43  ;;  %17982 = vst [vmem:[#allocation29_spill] sm:$0xff] %v13959_v15  ;;  %v4010_v1 = vsel %vm3793_vm2, %v13954_v43, -inf  ;;  %v4202_v8 = vsub.f32 %v17985_v25, %v3868_v48  ;;  %v3580_v25 = vadd.f32 %v13791_v59, %v13805_v17  ;;  %v3581_v59 = vadd.f32 %v13818_v36, %v13838_v5  ;;  %v14030_v5 = vld [vmem:[%s17256_s0 + $0x58] sm:$0xff] }
 0x536   : > { %4620 = vadd.xlane.f32.xlu0 %v4619_v12  ;;  %v13964_v14 = vpop.xlane.xlu1 %3870  ;;  %v13978_v18 = vpop.xlane.xlu0 %3885  ;;  %10381 = vpow2.f32 %v4358_v53 }
 0x537   : > { %v4203_v30 = vsub.f32 %v18000_v39, %v13964_v14 }
 0x538   : > { %4599 = vadd.xlane.f32.xlu1 %v4598_v32 }
 0x53a   : > { %4017 = vmax.xlane.f32.xlu0 %v4016_v23  ;;  %v13971_v23 = vpop.eup %10373  ;;  %v13999_v46 = vpop.xlane.xlu1 %3888 }
 0x53b   : > { %17983 = vst [vmem:[#allocation30_spill] sm:$0xff] %v13971_v23  ;;  %v4631_v27 = vsel %vm3793_vm2, %v13971_v23, 0.0 }
 0x53c   : > { %v9493_v12 = vpop.f32.mrb[40].mxu1  ;;  %4008 = vmax.xlane.f32.xlu1 %v4007_v58  ;;  %v13985_v43 = vpop.eup %10375 }
 0x53d   : > { %v13967_v45 = vadd.f32 %v9493_v12, %v13719_v49  ;;  %v3038_v32 = vpop.f32.mrb[41].mxu1  ;;  %v4001_v12 = vsel %vm3793_vm2, %v13959_v15, -inf  ;;  %17984 = vst [vmem:[#allocation2_spill] sm:$0xff] %v13985_v43  ;;  %v4616_v48 = vsel %vm3793_vm2, %v13985_v43, 0.0 }
 0x53e   : > { %v13976_v47 = vadd.f32 %v13747_v9, %v3038_v32  ;;  %v9494_v0 = vpop.f32.mrb[42].mxu1  ;;  %4011 = vmax.xlane.f32.xlu0 %v4010_v1  ;;  %v3583_v9 = vadd.f32 %v13831_v54, %v13789_v4  ;;  %v13995_v32 = vpop.eup %10377  ;;  %v4350_v1 = vmul.f32 1.442695, %v4200_v57  ;;  %v4354_v54 = vmul.f32 1.442695, %v4202_v8 }
 0x53f   : > { %v13981_v58 = vadd.f32 %v9494_v0, %v13805_v17  ;;  %v3041_v49 = vpop.f32.mrb[43].mxu1  ;;  %17986 = vst [vmem:[#allocation5_spill] sm:$0xff] %v13995_v32  ;;  %v17987_v0 = vld [vmem:[#allocation35_spill] sm:$0xff]  ;;  %v14005_v10 = vpop.eup %10379  ;;  %v4625_v8 = vsel %vm3793_vm2, %v13995_v32, 0.0 }
 0x540   : > { %v13989_v11 = vadd.f32 %v13829_v19, %v3041_v49  ;;  %4002 = vmax.xlane.f32.xlu1 %v4001_v12  ;;  %v4198_v15 = vsub.f32 %v17987_v0, %v13884_v38  ;;  %17988 = vst [vmem:[#allocation67_spill] sm:$0xff] %v14005_v10  ;;  %v3880_v12 = vpop.xlane.xlu0 %3879  ;;  %v14010_v38 = vld [vmem:[%s17256_s0 + $0x70] sm:$0xff]  ;;  %10383 = vpow2.f32 %v4350_v1 }
 0x541   : > { %v14013_v57 = vadd.f32 %v14010_v38, %v3583_v9  ;;  %v3578_v9 = vadd.f32 %v13829_v19, %v13795_v56  ;;  %10385 = vpow2.f32 %v4354_v54 }
 0x542   : > { %4632 = vadd.xlane.f32.xlu0 %v4631_v27  ;;  %v4346_v53 = vmul.f32 1.442695, %v4198_v15 }
 0x543   : > { %17989 = vst [vmem:[#allocation118_spill] sm:$0xff] %v14013_v57  ;;  %v4028_v54 = vsel %vm3793_vm2, %v14013_v57, -inf  ;;  %v17996_v57 = vld [vmem:[#allocation15_spill] sm:$0xff] }
 0x544   : > { %v9497_v49 = vpop.f32.mrb[44].mxu1  ;;  %4617 = vadd.xlane.f32.xlu1 %v4616_v48  ;;  %v14056_v19 = vpop.xlane.xlu0 %3897  ;;  %10387 = vpow2.f32 %v4346_v53  ;;  %v4205_v24 = vsub.f32 %v17996_v57, %v13939_v28 }
 0x545   : > { %v14018_v17 = vadd.f32 %v9497_v49, %v13789_v4  ;;  %v3054_v27 = vpop.f32.mrb[45].mxu1  ;;  %v14033_v4 = vadd.f32 %v14030_v5, %v3580_v25  ;;  %v4613_v49 = vsel %vm3793_vm2, %v14005_v10, 0.0  ;;  %v14051_v25 = vld [vmem:[%s17256_s0 + $0x60] sm:$0xff] }
 0x546   : > { %v14022_v0 = vpop.f32.mrb[80].mxu0  ;;  %v14025_v48 = vadd.f32 %v13818_v36, %v3054_v27  ;;  %v9498_v23 = vpop.f32.mrb[46].mxu1  ;;  %4626 = vadd.xlane.f32.xlu0 %v4625_v8  ;;  %17991 = vst [vmem:[#allocation109_spill] sm:$0xff] %v14051_v25  ;;  %v14054_v56 = vadd.f32 %v14051_v25, %v3581_v59 }
 0x547   : > { %17990 = vst [vmem:[#allocation110_spill] sm:$0xff] %v14033_v4  ;;  %v14037_v1 = vpop.f32.mrb[81].mxu0  ;;  %v14040_v15 = vadd.f32 %v9498_v23, %v13897_v20  ;;  %v3057_v36 = vpop.f32.mrb[47].mxu1  ;;  %v4019_v10 = vsel %vm3793_vm2, %v14033_v4, -inf }
 0x548   : > { %v14044_v27 = vpop.xlane.xlu1 %3882  ;;  %v14046_v8 = vpop.f32.mrb[82].mxu0  ;;  %4614 = vadd.xlane.f32.xlu1 %v4613_v49  ;;  %17992 = vst [vmem:[#allocation63_spill] sm:$0xff] %v14054_v56  ;;  %v14059_v23 = vadd.f32 %v13905_v35, %v3057_v36  ;;  %v14068_v49 = vld [vmem:[%s17256_s0 + $0x48] sm:$0xff]  ;;  %v17994_v36 = vld [vmem:[#allocation24_spill] sm:$0xff]  ;;  %v4022_v53 = vsel %vm3793_vm2, %v14054_v56, -inf  ;;  %v4206_v56 = vsub.f32 %v17998_v34, %v3880_v12  ;;  %v3584_v34 = vadd.f32 %v13842_v29, %v13897_v20 }
 0x549   : > { %v14061_v32 = vpop.f32.mrb[83].mxu0  ;;  %v14071_v59 = vadd.f32 %v14068_v49, %v3578_v9  ;;  %v4208_v43 = vsub.f32 %v17994_v36, %v13978_v18  ;;  %v14087_v9 = vpop.xlane.xlu0 %3891  ;;  %v4356_v20 = vmul.f32 1.442695, %v4203_v30  ;;  %v14144_v30 = vld [vmem:[%s17256_s0 + $0x80] sm:$0xff] }
 0x54a   : > { %4029 = vmax.xlane.f32.xlu0 %v4028_v54  ;;  %v14081_v54 = vpop.eup %10381  ;;  %18007 = vst [vmem:[#allocation128_spill] sm:$0xff] %v14144_v30 }
 0x54b   : > { %17993 = vst [vmem:[#allocation101_spill] sm:$0xff] %v14071_v59  ;;  %17995 = vst [vmem:[#allocation82_spill] sm:$0xff] %v14081_v54  ;;  %v4013_v18 = vsel %vm3793_vm2, %v14071_v59, -inf  ;;  %v14093_v36 = vpop.eup %10383  ;;  %v4640_v28 = vsel %vm3793_vm2, %v14081_v54, 0.0 }
 0x54c   : > { %v14077_v51 = vpop.xlane.xlu1 %3900  ;;  %4020 = vmax.xlane.f32.xlu1 %v4019_v10  ;;  %17997 = vst [vmem:[#allocation84_spill] sm:$0xff] %v14093_v36  ;;  %v4366_v10 = vmul.f32 1.442695, %v4208_v43  ;;  %v14102_v57 = vpop.eup %10385  ;;  %v4628_v43 = vsel %vm3793_vm2, %v14093_v36, 0.0 }
 0x54d   : > { %17999 = vst [vmem:[#allocation138_spill] sm:$0xff] %v14102_v57  ;;  %v14123_v14 = vpop.xlane.xlu0 %3909  ;;  %v4634_v29 = vsel %vm3793_vm2, %v14102_v57, 0.0 }
 0x54e   : > { %v14085_v16 = vpop.f32.mrb[84].mxu0  ;;  %4023 = vmax.xlane.f32.xlu0 %v4022_v53  ;;  %v4360_v53 = vmul.f32 1.442695, %v4205_v24  ;;  %v14112_v12 = vpop.eup %10387  ;;  %10389 = vpow2.f32 %v4366_v10  ;;  %v14117_v24 = vld [vmem:[%s17256_s0 + $0x90] sm:$0xff] }
 0x54f   : > { %v14089_v4 = vpop.f32.mrb[85].mxu0  ;;  %18002 = vst [vmem:[#allocation140_spill] sm:$0xff] %v14112_v12  ;;  %v14121_v39 = vadd.f32 %v14117_v24, %v13850_v40  ;;  %v3582_v40 = vadd.f32 %v13905_v35, %v13852_v6  ;;  %v14155_v6 = vld [vmem:[%s17256_s0 + $0x68] sm:$0xff] }
 0x550   : > { %v14096_v61 = vpop.f32.mrb[86].mxu0  ;;  %4014 = vmax.xlane.f32.xlu1 %v4013_v18  ;;  %v14106_v59 = vpop.xlane.xlu1 %3894  ;;  %v4362_v18 = vmul.f32 1.442695, %v4206_v56  ;;  %10391 = vpow2.f32 %v4360_v53  ;;  %v14130_v56 = vld [vmem:[%s17256_s0 + $0x78] sm:$0xff]  ;;  %v14148_v53 = vadd.f32 %v14144_v30, %v13857_v60 }
 0x551   : > { %v14098_v22 = vpop.f32.mrb[87].mxu0  ;;  %18001 = vst [vmem:[#allocation139_spill] sm:$0xff] %v14106_v59  ;;  %18003 = vst [vmem:[#allocation142_spill] sm:$0xff] %v14121_v39  ;;  %v14133_v10 = vadd.f32 %v14130_v56, %v3584_v34  ;;  %v4040_v34 = vsel %vm3793_vm2, %v14121_v39, -inf  ;;  %v14158_v35 = vadd.f32 %v14155_v6, %v3582_v40  ;;  %v18011_v39 = vld [vmem:[#allocation21_spill] sm:$0xff] }
 0x552   : > { %4641 = vadd.xlane.f32.xlu0 %v4640_v28  ;;  %18004 = vst [vmem:[#allocation125_spill] sm:$0xff] %v14130_v56  ;;  %v4622_v28 = vsel %vm3793_vm2, %v14112_v12, 0.0  ;;  %10393 = vpow2.f32 %v4362_v18  ;;  %18008 = vst [vmem:[#allocation130_spill] sm:$0xff] %v14148_v53  ;;  %v14160_v18 = vpop.xlane.xlu0 %3903  ;;  %v4209_v54 = vsub.f32 %v18011_v39, %v13999_v46  ;;  %v18015_v39 = vld [vmem:[#allocation55_spill] sm:$0xff] }
 0x553   : > { %18005 = vst [vmem:[#allocation129_spill] sm:$0xff] %v14133_v10  ;;  %10395 = vpow2.f32 %v4356_v20  ;;  %18009 = vst [vmem:[#allocation131_spill] sm:$0xff] %v14158_v35  ;;  %v4034_v20 = vsel %vm3793_vm2, %v14148_v53, -inf }
 0x554   : > { %4629 = vadd.xlane.f32.xlu1 %v4628_v43  ;;  %v14139_v43 = vpop.xlane.xlu1 %3912  ;;  %v4368_v46 = vmul.f32 1.442695, %v4209_v54 }
 0x555   : > { %18006 = vst [vmem:[#allocation127_spill] sm:$0xff] %v14139_v43  ;;  %v14240_v43 = vld [vmem:[%s17262_s6 + $0xd8] sm:$0xff] }
 0x556   : > { %4635 = vadd.xlane.f32.xlu0 %v4634_v29  ;;  %v4031_v29 = vsel %vm3793_vm2, %v14133_v10, -inf  ;;  %v14178_v12 = vpop.xlane.xlu0 %3921  ;;  %10397 = vpow2.f32 %v4368_v46 }
 0x558   : > { %4623 = vadd.xlane.f32.xlu1 %v4622_v28  ;;  %v14174_v40 = vpop.xlane.xlu1 %3906 }
 0x559   : > { %18012 = vst [vmem:[#allocation132_spill] sm:$0xff] %v14174_v40  ;;  %v4207_v40 = vsub.f32 %v18015_v39, %v14044_v27 }
 0x55a   : > { %4041 = vmax.xlane.f32.xlu0 %v4040_v34  ;;  %v14170_v34 = vpop.eup %10389  ;;  %v14209_v27 = vpop.xlane.xlu0 %3915 }
 0x55b   : > { %18010 = vst [vmem:[#allocation133_spill] sm:$0xff] %v14170_v34  ;;  %v14184_v36 = vpop.eup %10391  ;;  %v4652_v53 = vsel %vm3793_vm2, %v14170_v34, 0.0  ;;  %v4364_v34 = vmul.f32 1.442695, %v4207_v40 }
 0x55c   : > { %v14164_v60 = vpop.f32.mrb[48].mxu1  ;;  %4032 = vmax.xlane.f32.xlu1 %v4031_v29  ;;  %v4025_v29 = vsel %vm3793_vm2, %v14158_v35, -inf  ;;  %18013 = vst [vmem:[#allocation141_spill] sm:$0xff] %v14184_v36  ;;  %v14188_v30 = vpop.eup %10393  ;;  %v4643_v56 = vsel %vm3793_vm2, %v14184_v36, 0.0 }
 0x55d   : > { %v14166_v28 = vpop.f32.mrb[49].mxu1  ;;  %18014 = vst [vmem:[#allocation143_spill] sm:$0xff] %v14188_v30  ;;  %v14196_v21 = vpop.eup %10395  ;;  %v4646_v39 = vsel %vm3793_vm2, %v14188_v30, 0.0  ;;  %v14231_v30 = vld [vmem:[%s17262_s6 + $0xc0] sm:$0xff]  ;;  %10399 = vpow2.f32 %v4364_v34 }
 0x55e   : > { %v14176_v57 = vpop.f32.mrb[50].mxu1  ;;  %4035 = vmax.xlane.f32.xlu0 %v4034_v20  ;;  %v14192_v20 = vpop.xlane.xlu1 %3924  ;;  %18017 = vst [vmem:[#allocation96_spill] sm:$0xff] %v14196_v21 }
 0x55f   : > { %v14180_v10 = vpop.f32.mrb[51].mxu1  ;;  %18016 = vst [vmem:[#allocation144_spill] sm:$0xff] %v14192_v20  ;;  %v14222_v20 = vld [vmem:[%s17256_s0 + $0x98] sm:$0xff] }
 0x560   : > { %4026 = vmax.xlane.f32.xlu1 %v4025_v29  ;;  %v14203_v29 = vld [vmem:[%s17256_s0 + $0xb0] sm:$0xff]  ;;  %18021 = vst [vmem:[#allocation59_spill] sm:$0xff] %v14222_v20 }
 0x561   : > { %v14207_v54 = vadd.f32 %v14203_v29, %v13887_v2  ;;  %v14226_v2 = vadd.f32 %v14222_v20, %v13865_v62  ;;  %v14248_v20 = vld [vmem:[%s17256_s0 + $0xa0] sm:$0xff] }
 0x562   : > { %4653 = vadd.xlane.f32.xlu0 %v4652_v53  ;;  %18024 = vst [vmem:[#allocation55_spill] sm:$0xff] %v14248_v20  ;;  %v14252_v25 = vadd.f32 %v14248_v20, %v13900_v33  ;;  %v14277_v20 = vld [vmem:[%s17256_s0 + $0xd0] sm:$0xff] }
 0x563   : > { %18018 = vst [vmem:[#allocation35_spill] sm:$0xff] %v14207_v54  ;;  %18022 = vst [vmem:[#allocation25_spill] sm:$0xff] %v14226_v2  ;;  %v14281_v34 = vadd.f32 %v14277_v20, %v13967_v45 }
 0x564   : > { %v14198_v35 = vpop.f32.mrb[52].mxu1  ;;  %4644 = vadd.xlane.f32.xlu1 %v4643_v56  ;;  %18025 = vst [vmem:[#allocation145_spill] sm:$0xff] %v14252_v25  ;;  %18029 = vst [vmem:[#allocation149_spill] sm:$0xff] %v14277_v20 }
 0x565   : > { %v14211_v53 = vpop.f32.mrb[53].mxu1  ;;  %18030 = vst [vmem:[#allocation150_spill] sm:$0xff] %v14281_v34 }
 0x566   : > { %18019 = vst [vmem:[#allocation24_spill] sm:$0xff] %v14211_v53  ;;  %v14215_v36 = vpop.f32.mrb[88].mxu0  ;;  %v14217_v56 = vpop.f32.mrb[54].mxu1  ;;  %4647 = vadd.xlane.f32.xlu0 %v4646_v39  ;;  %v4637_v39 = vsel %vm3793_vm2, %v14196_v21, 0.0 }
 0x567   : > { %18020 = vst [vmem:[#allocation15_spill] sm:$0xff] %v14217_v56  ;;  %v3341_v40 = vpop.f32.mrb[89].mxu0  ;;  %v14233_v46 = vpop.f32.mrb[55].mxu1 }
 0x568   : > { %v14243_v56 = vadd.f32 %v14231_v30, %v3341_v40  ;;  %v9542_v62 = vpop.f32.mrb[90].mxu0  ;;  %4638 = vadd.xlane.f32.xlu1 %v4637_v39  ;;  %v14254_v21 = vpop.xlane.xlu1 %3918  ;;  %v4052_v40 = vsel %vm3793_vm2, %v14207_v54, -inf  ;;  %v14266_v39 = vld [vmem:[%s17256_s0 + $0x88] sm:$0xff]  ;;  %v4046_v54 = vsel %vm3793_vm2, %v14252_v25, -inf  ;;  %v14307_v25 = vld [vmem:[%s17256_s0 + $0xc0] sm:$0xff] }
 0x569   : > { %18026 = vst [vmem:[#allocation146_spill] sm:$0xff] %v14254_v21  ;;  %v14257_v53 = vadd.f32 %v9542_v62, %v14240_v43  ;;  %v14259_v42 = vpop.f32.mrb[91].mxu0  ;;  %v14270_v33 = vadd.f32 %v14266_v39, %v13870_v55  ;;  %v4043_v62 = vsel %vm3793_vm2, %v14226_v2, -inf  ;;  %v14290_v55 = vld [vmem:[%s17262_s6 + $0xd0] sm:$0xff]  ;;  %18035 = vst [vmem:[#allocation155_spill] sm:$0xff] %v14307_v25 }
 0x56a   : > { %18023 = vst [vmem:[#allocation21_spill] sm:$0xff] %v14243_v56  ;;  %4053 = vmax.xlane.f32.xlu0 %v4052_v40  ;;  %v14283_v40 = vpop.xlane.xlu0 %3933 }
 0x56b   : > { %18027 = vst [vmem:[#allocation147_spill] sm:$0xff] %v14257_v53  ;;  %18028 = vst [vmem:[#allocation148_spill] sm:$0xff] %v14270_v33  ;;  %v4037_v45 = vsel %vm3793_vm2, %v14270_v33, -inf  ;;  %v14300_v53 = vpop.eup %10397  ;;  %v4064_v33 = vsel %vm3793_vm2, %v14281_v34, -inf  ;;  %v14339_v34 = vld [vmem:[%s17256_s0 + $0xb8] sm:$0xff] }
 0x56c   : > { %4044 = vmax.xlane.f32.xlu1 %v4043_v62  ;;  %v14294_v2 = vpop.xlane.xlu1 %3936  ;;  %18033 = vst [vmem:[#allocation153_spill] sm:$0xff] %v14300_v53  ;;  %v14323_v20 = vpop.eup %10399  ;;  %18040 = vst [vmem:[#allocation160_spill] sm:$0xff] %v14339_v34 }
 0x56d   : > { %18031 = vst [vmem:[#allocation151_spill] sm:$0xff] %v14294_v2  ;;  %v3603_v2 = vadd.f32 %v14022_v0, %v14290_v55  ;;  %18037 = vst [vmem:[#allocation157_spill] sm:$0xff] %v14323_v20  ;;  %v3601_v0 = vadd.f32 %v14231_v30, %v14037_v1  ;;  %v4649_v1 = vsel %vm3793_vm2, %v14323_v20, 0.0  ;;  %v14363_v20 = vld [vmem:[%s17256_s0 + $0xa8] sm:$0xff] }
 0x56e   : > { %v14292_v62 = vpop.f32.mrb[92].mxu0  ;;  %4047 = vmax.xlane.f32.xlu0 %v4046_v54  ;;  %v14311_v54 = vadd.f32 %v14307_v25, %v13976_v47  ;;  %v11001_v47 = vld [vmem:[%s17256_s0 + $0x10] sm:$0xff] }
 0x56f   : > { %v14296_v21 = vpop.f32.mrb[93].mxu0  ;;  %v14328_v25 = vadd.f32 %v11001_v47, %v3603_v2  ;;  %v11003_v47 = vld [vmem:[%s17256_s0] sm:$0xff] }
 0x570   : > { %18032 = vst [vmem:[#allocation152_spill] sm:$0xff] %v14296_v21  ;;  %v14302_v56 = vpop.f32.mrb[94].mxu0  ;;  %4038 = vmax.xlane.f32.xlu1 %v4037_v45  ;;  %18036 = vst [vmem:[#allocation156_spill] sm:$0xff] %v14311_v54  ;;  %v4655_v45 = vsel %vm3793_vm2, %v14300_v53, 0.0  ;;  %v14332_v59 = vpop.xlane.xlu1 %3930 }
 0x571   : > { %18034 = vst [vmem:[#allocation154_spill] sm:$0xff] %v14302_v56  ;;  %v14315_v21 = vpop.f32.mrb[95].mxu0  ;;  %v14319_v56 = vpop.xlane.xlu0 %3927  ;;  %18038 = vst [vmem:[#allocation158_spill] sm:$0xff] %v14328_v25 }
 0x572   : > { %4065 = vmax.xlane.f32.xlu0 %v4064_v33  ;;  %18039 = vst [vmem:[#allocation159_spill] sm:$0xff] %v14332_v59  ;;  %v4058_v33 = vsel %vm3793_vm2, %v14311_v54, -inf  ;;  %v3612_v54 = vadd.f32 %v14176_v57, %v14240_v43 }
 0x574   : > { %4656 = vadd.xlane.f32.xlu1 %v4655_v45  ;;  %v14343_v45 = vadd.f32 %v14339_v34, %v13910_v44  ;;  %v4088_v44 = vsel %vm3793_vm2, %v14328_v25, -inf  ;;  %v14381_v59 = vadd.f32 %v14030_v5, %v3612_v54  ;;  %v14398_v5 = vld [vmem:[%s17256_s0 + $0xd8] sm:$0xff] }
 0x575   : > { %18051 = vst [vmem:[#allocation169_spill] sm:$0xff] %v14398_v5 }
 0x576   : > { %4059 = vmax.xlane.f32.xlu0 %v4058_v33  ;;  %18041 = vst [vmem:[#allocation161_spill] sm:$0xff] %v14343_v45  ;;  %v14352_v33 = vadd.f32 %v11003_v47, %v3601_v0  ;;  %v4055_v57 = vsel %vm3793_vm2, %v14343_v45, -inf  ;;  %v18047_v47 = vld [vmem:[#allocation31_spill] sm:$0xff] }
 0x577   : > { %v14345_v2 = vpop.xlane.xlu0 %3945  ;;  %18048 = vst [vmem:[#allocation31_spill] sm:$0xff] %v14381_v59 }
 0x578   : > { %18042 = vst [vmem:[#allocation162_spill] sm:$0xff] %v14345_v2  ;;  %4650 = vadd.xlane.f32.xlu1 %v4649_v1  ;;  %18043 = vst [vmem:[#allocation163_spill] sm:$0xff] %v14352_v33  ;;  %v14367_v1 = vadd.f32 %v14363_v20, %v13919_v52 }
 0x579   : > { %v14356_v53 = vpop.xlane.xlu1 %3948 }
 0x57a   : > { %18044 = vst [vmem:[#allocation164_spill] sm:$0xff] %v14356_v53  ;;  %4089 = vmax.xlane.f32.xlu0 %v4088_v44  ;;  %18045 = vst [vmem:[#allocation165_spill] sm:$0xff] %v14367_v1  ;;  %v4212_v53 = vsub.f32 %v18047_v47, %v14056_v19  ;;  %v14378_v44 = vld [vmem:[%s17262_s6 + $0xc8] sm:$0xff]  ;;  %v4082_v19 = vsel %vm3793_vm2, %v14352_v33, -inf  ;;  %v18054_v33 = vld [vmem:[#allocation32_spill] sm:$0xff] }
 0x57b   : > { %v14369_v0 = vpop.xlane.xlu0 %3939  ;;  %v3610_v52 = vadd.f32 %v14378_v44, %v14180_v10 }
 0x57c   : > { %18046 = vst [vmem:[#allocation166_spill] sm:$0xff] %v14369_v0  ;;  %v9557_v25 = vpop.f32.mrb[56].mxu1  ;;  %4056 = vmax.xlane.f32.xlu1 %v4055_v57 }
 0x57d   : > { %v14386_v34 = vadd.f32 %v9557_v25, %v14290_v55  ;;  %v14388_v45 = vpop.xlane.xlu1 %3942  ;;  %v3442_v0 = vpop.f32.mrb[57].mxu1  ;;  %v14402_v25 = vadd.f32 %v14398_v5, %v13981_v58  ;;  %v14421_v58 = vadd.f32 %v14068_v49, %v3610_v52 }
 0x57e   : > { %18049 = vst [vmem:[#allocation167_spill] sm:$0xff] %v14388_v45  ;;  %v14393_v47 = vadd.f32 %v14231_v30, %v3442_v0  ;;  %v9558_v2 = vpop.f32.mrb[58].mxu1  ;;  %4083 = vmax.xlane.f32.xlu0 %v4082_v19  ;;  %v4049_v0 = vsel %vm3793_vm2, %v14367_v1, -inf  ;;  %v4374_v19 = vmul.f32 1.442695, %v4212_v53  ;;  %v4210_v45 = vsub.f32 %v18054_v33, %v14087_v9  ;;  %v14432_v9 = vld [vmem:[%s17256_s0 + $0xc8] sm:$0xff] }
 0x57f   : > { %18052 = vst [vmem:[#allocation170_spill] sm:$0xff] %v14402_v25  ;;  %v14405_v10 = vadd.f32 %v9558_v2, %v14240_v43  ;;  %v14407_v54 = vpop.f32.mrb[59].mxu1  ;;  %v14409_v57 = vpop.xlane.xlu0 %3957  ;;  %18055 = vst [vmem:[#allocation32_spill] sm:$0xff] %v14421_v58  ;;  %v4115_v53 = vsel %vm3793_vm2, %v14381_v59, -inf  ;;  %v14436_v33 = vadd.f32 %v14432_v9, %v13989_v11  ;;  %v14450_v59 = vld [vmem:[%s17262_s6 + $0xe0] sm:$0xff] }
 0x580   : > { %18050 = vst [vmem:[#allocation168_spill] sm:$0xff] %v14393_v47  ;;  %v14418_v47 = vld [vmem:[%s17262_s6 + $0xf0] sm:$0xff]  ;;  %4050 = vmax.xlane.f32.xlu1 %v4049_v0  ;;  %10401 = vpow2.f32 %v4374_v19  ;;  %v4370_v52 = vmul.f32 1.442695, %v4210_v45  ;;  %v14445_v0 = vld [vmem:[%s17262_s6 + $0xe8] sm:$0xff] }
 0x581   : > { %18053 = vst [vmem:[#allocation171_spill] sm:$0xff] %v14405_v10  ;;  %v3615_v2 = vadd.f32 %v14198_v35, %v14418_v47  ;;  %v14425_v5 = vpop.xlane.xlu1 %3960  ;;  %18057 = vst [vmem:[#allocation173_spill] sm:$0xff] %v14436_v33  ;;  %v4067_v35 = vsel %vm3793_vm2, %v14402_v25, -inf  ;;  %v3614_v25 = vadd.f32 %v14445_v0, %v14233_v46  ;;  %v14475_v46 = vld [vmem:[%s17256_s0 + $0xf0] sm:$0xff] }
 0x582   : > { %18056 = vst [vmem:[#allocation172_spill] sm:$0xff] %v14425_v5  ;;  %4116 = vmax.xlane.f32.xlu0 %v4115_v53  ;;  %v14467_v5 = vld [vmem:[%s17262_s6 + $0xf8] sm:$0xff]  ;;  %10403 = vpow2.f32 %v4370_v52 }
 0x583   : > { %v14438_v49 = vpop.xlane.xlu0 %3951  ;;  %v14453_v11 = vadd.f32 %v14010_v38, %v3615_v2 }
 0x584   : > { %18058 = vst [vmem:[#allocation174_spill] sm:$0xff] %v14438_v49  ;;  %v9561_v53 = vpop.f32.mrb[60].mxu1  ;;  %4068 = vmax.xlane.f32.xlu1 %v4067_v35  ;;  %v4109_v35 = vsel %vm3793_vm2, %v14421_v58, -inf }
 0x585   : > { %18059 = vst [vmem:[#allocation175_spill] sm:$0xff] %v14453_v11  ;;  %v14458_v45 = vadd.f32 %v9561_v53, %v14418_v47  ;;  %v14460_v19 = vpop.xlane.xlu1 %3954  ;;  %v3458_v1 = vpop.f32.mrb[61].mxu1  ;;  %v14479_v53 = vadd.f32 %v14475_v46, %v14018_v17  ;;  %v4124_v17 = vsel %vm3793_vm2, %v14453_v11, -inf }
 0x586   : > { %18060 = vst [vmem:[#allocation176_spill] sm:$0xff] %v14460_v19  ;;  %v14470_v38 = vadd.f32 %v14450_v59, %v3458_v1  ;;  %v9562_v2 = vpop.f32.mrb[62].mxu1  ;;  %4110 = vmax.xlane.f32.xlu0 %v4109_v35  ;;  %v4061_v1 = vsel %vm3793_vm2, %v14436_v33, -inf }
 0x587   : > { %18062 = vst [vmem:[#allocation178_spill] sm:$0xff] %v14479_v53  ;;  %v14482_v58 = vadd.f32 %v9562_v2, %v14467_v5  ;;  %v3461_v19 = vpop.f32.mrb[63].mxu1  ;;  %v4570_v10 = vpop.xlane.xlu0 %4569  ;;  %v14497_v2 = vld [vmem:[%s17256_s0 + $0xe0] sm:$0xff] }
 0x588   : > { %18061 = vst [vmem:[#allocation177_spill] sm:$0xff] %v14470_v38  ;;  %v14487_v35 = vadd.f32 %v14445_v0, %v3461_v19  ;;  %4062 = vmax.xlane.f32.xlu1 %v4061_v1  ;;  %v14490_v38 = vadd.f32 %v14155_v6, %v3614_v25  ;;  %v14501_v52 = vadd.f32 %v14497_v2, %v14025_v48  ;;  %v4076_v6 = vsel %vm3793_vm2, %v14479_v53, -inf  ;;  %v18065_v25 = vld [vmem:[#allocation40_spill] sm:$0xff]  ;;  %v14514_v48 = vld [vmem:[%s17256_s0 + $0xf8] sm:$0xff] }
 0x589   : > { %v4573_v49 = vpop.xlane.xlu1 %4572  ;;  %v4216_v1 = vsub.f32 %v18065_v25, %v14123_v14  ;;  %18067 = vst [vmem:[#allocation181_spill] sm:$0xff] %v14514_v48  ;;  %v3604_v53 = vadd.f32 %v14046_v8, %v14240_v43  ;;  %v3618_v43 = vadd.f32 %v14378_v44, %v14259_v42 }
 0x58a   : > { %18063 = vst [vmem:[#allocation179_spill] sm:$0xff] %v14490_v38  ;;  %4125 = vmax.xlane.f32.xlu0 %v4124_v17  ;;  %18064 = vst [vmem:[#allocation180_spill] sm:$0xff] %v14501_v52  ;;  %10405 = vrcp.f32 %v4573_v49  ;;  %v4121_v11 = vsel %vm3793_vm2, %v14490_v38, -inf  ;;  %v14509_v33 = vpop.eup %10401  ;;  %v14518_v49 = vadd.f32 %v14514_v48, %v14040_v15  ;;  %v3602_v48 = vadd.f32 %v14378_v44, %v14061_v32 }
 0x58b   : > { %v4564_v19 = vpop.xlane.xlu0 %4563  ;;  %18066 = vst [vmem:[#allocation40_spill] sm:$0xff] %v14509_v33  ;;  %v4664_v38 = vsel %vm3793_vm2, %v14509_v33, 0.0 }
 0x58c   : > { %10407 = vrcp.f32 %v4564_v19  ;;  %4077 = vmax.xlane.f32.xlu1 %v4076_v6  ;;  %18068 = vst [vmem:[#allocation182_spill] sm:$0xff] %v14518_v49  ;;  %v4382_v19 = vmul.f32 1.442695, %v4216_v1  ;;  %v18069_v6 = vld [vmem:[#allocation41_spill] sm:$0xff]  ;;  %v14532_v15 = vpop.eup %10403  ;;  %v14539_v1 = vld [vmem:[%s17256_s0 + $0xe8] sm:$0xff] }
 0x58d   : > { %10409 = vrcp.f32 %v4570_v10  ;;  %v4567_v17 = vpop.xlane.xlu1 %4566  ;;  %v4070_v10 = vsel %vm3793_vm2, %v14501_v52, -inf  ;;  %v4214_v25 = vsub.f32 %v18069_v6, %v14160_v18  ;;  %18070 = vst [vmem:[#allocation41_spill] sm:$0xff] %v14532_v15  ;;  %v14543_v18 = vadd.f32 %v14539_v1, %v14059_v23 }
 0x58e   : > { %10411 = vrcp.f32 %v4567_v17  ;;  %4122 = vmax.xlane.f32.xlu0 %v4121_v11  ;;  %v3619_v11 = vadd.f32 %v14215_v36, %v14290_v55  ;;  %v4658_v23 = vsel %vm3793_vm2, %v14532_v15, 0.0  ;;  %v14569_v15 = vadd.f32 %v14266_v39, %v3618_v43 }
 0x58f   : > { %v14520_v14 = vpop.xlane.xlu0 %3969  ;;  %18071 = vst [vmem:[#allocation183_spill] sm:$0xff] %v14543_v18  ;;  %10413 = vpow2.f32 %v4382_v19  ;;  %v4378_v6 = vmul.f32 1.442695, %v4214_v25  ;;  %v11011_v25 = vld [vmem:[%s17256_s0 + $0x18] sm:$0xff]  ;;  %v4073_v42 = vsel %vm3793_vm2, %v14543_v18, -inf  ;;  %v3607_v39 = vadd.f32 %v14085_v16, %v14418_v47 }
 0x590   : > { %4071 = vmax.xlane.f32.xlu1 %v4070_v10  ;;  %v4079_v10 = vsel %vm3793_vm2, %v14518_v49, -inf  ;;  %v14550_v8 = vadd.f32 %v14117_v24, %v3619_v11  ;;  %v14563_v24 = vadd.f32 %v11011_v25, %v3604_v53  ;;  %18075 = vst [vmem:[#allocation187_spill] sm:$0xff] %v14569_v15  ;;  %v11012_v25 = vld [vmem:[%s17256_s0 + $0x8] sm:$0xff] }
 0x591   : > { %v14528_v17 = vpop.xlane.xlu1 %3972  ;;  %10415 = vpow2.f32 %v4378_v6  ;;  %v14578_v18 = vadd.f32 %v11012_v25, %v3602_v48  ;;  %v3623_v25 = vadd.f32 %v14292_v62, %v14418_v47 }
 0x592   : > { %4665 = vadd.xlane.f32.xlu0 %v4664_v38  ;;  %18072 = vst [vmem:[#allocation184_spill] sm:$0xff] %v14550_v8  ;;  %18074 = vst [vmem:[#allocation186_spill] sm:$0xff] %v14563_v24 }
 0x593   : > { %v14545_v36 = vpop.xlane.xlu0 %3963  ;;  %18076 = vst [vmem:[#allocation188_spill] sm:$0xff] %v14578_v18 }
 0x594   : > { %4080 = vmax.xlane.f32.xlu1 %v4079_v10  ;;  %v10406_v38 = vpop.eup %10405 }
 0x595   : > { %v14554_v52 = vpop.xlane.xlu1 %3966  ;;  %v5077_v49 = vmul.f32 %v10406_v38, %v13639_v41  ;;  %v4091_v38 = vsel %vm3793_vm2, %v14563_v24, -inf }
 0x596   : > { %18073 = vst [vmem:[#allocation185_spill] sm:$0xff] %v14554_v52  ;;  %v10408_v33 = vpop.eup %10407  ;;  %4659 = vadd.xlane.f32.xlu0 %v4658_v23  ;;  %v4136_v23 = vsel %vm3793_vm2, %v14550_v8, -inf }
 0x597   : > { %v10410_v19 = vpop.eup %10409  ;;  %v4582_v11 = vpop.xlane.xlu0 %4581  ;;  %v5074_v52 = vmul.f32 %v10408_v33, %v13646_v3 }
 0x598   : > { %v10412_v10 = vpop.eup %10411  ;;  %4074 = vmax.xlane.f32.xlu1 %v4073_v42  ;;  %v5076_v41 = vmul.f32 %v10410_v19, %v13634_v37  ;;  %v4133_v37 = vsel %vm3793_vm2, %v14569_v15, -inf  ;;  %v18079_v19 = vld [vmem:[#allocation39_spill] sm:$0xff]  ;;  %v4085_v42 = vsel %vm3793_vm2, %v14578_v18, -inf  ;;  %v18117_v15 = vld [vmem:[#allocation89_spill] sm:$0xff] }
 0x599   : > { %v4585_v32 = vpop.xlane.xlu1 %4584  ;;  %v5075_v53 = vmul.f32 %v10412_v10, %v13651_v50  ;;  %v18077_v50 = vld [vmem:[#allocation53_spill] sm:$0xff]  ;;  %v14590_v16 = vpop.eup %10413 }
 0x59a   : > { %4137 = vmax.xlane.f32.xlu0 %v4136_v23  ;;  %10417 = vrcp.f32 %v4585_v32  ;;  %v4220_v33 = vsub.f32 %v18077_v50, %v14178_v12  ;;  %v5203_v43 = vpack.c.bf16 %v5077_v49, %v5076_v41  ;;  %v11013_v12 = vld [vmem:[%s17256_s0 + $0x30] sm:$0xff]  ;;  %v3605_v49 = vadd.f32 %v14450_v59, %v14089_v4 }
 0x59b   : > { %v4576_v6 = vpop.xlane.xlu0 %4575  ;;  %v5202_v3 = vpack.c.bf16 %v5075_v53, %v5074_v52  ;;  %v14596_v52 = vadd.f32 %v11013_v12, %v3607_v39  ;;  %v18080_v32 = vld [vmem:[#allocation12_spill] sm:$0xff]  ;;  %v18081_v53 = vld [vmem:[#allocation38_spill] sm:$0xff]  ;;  %v4676_v4 = vsel %vm3793_vm2, %v14590_v16, 0.0  ;;  %v14614_v39 = vpop.eup %10415 }
 0x59c   : > { %10419 = vrcp.f32 %v4576_v6  ;;  %4092 = vmax.xlane.f32.xlu1 %v4091_v38  ;;  %v4390_v10 = vmul.f32 1.442695, %v4220_v33  ;;  %v4218_v23 = vsub.f32 %v18080_v32, %v14209_v27  ;;  %v11014_v6 = vld [vmem:[%s17256_s0 + $0x20] sm:$0xff]  ;;  %v3608_v27 = vadd.f32 %v14096_v61, %v14467_v5  ;;  %v18083_v50 = vld [vmem:[#allocation48_spill] sm:$0xff] }
 0x59d   : > { %10421 = vrcp.f32 %v4582_v11  ;;  %v4579_v48 = vpop.xlane.xlu1 %4578  ;;  %9571 = vmatprep.mubr.msk.bf16.mxu0 %vm3793_vm2, %v5202_v3  ;;  %18078 = vst [vmem:[#allocation53_spill] sm:$0xff] %v14596_v52  ;;  %v14619_v38 = vadd.f32 %v11014_v6, %v3605_v49  ;;  %v4100_v47 = vsel %vm3793_vm2, %v14596_v52, -inf }
 0x59e   : > { %10423 = vrcp.f32 %v4579_v48  ;;  %4134 = vmax.xlane.f32.xlu0 %v4133_v37  ;;  %9572 = vmatmul.mubr.msk.bf16.vlgmr.msra.gmra.mrb[96].mxu0 %vm3793_vm2, %v5203_v43  ;;  %v4386_v3 = vmul.f32 1.442695, %v4218_v23  ;;  %v14630_v43 = vadd.f32 %v14203_v29, %v3623_v25  ;;  %v3622_v48 = vadd.f32 %v14445_v0, %v14315_v21  ;;  %v18086_v23 = vld [vmem:[#allocation44_spill] sm:$0xff]  ;;  %v18087_v25 = vld [vmem:[#allocation49_spill] sm:$0xff] }
 0x59f   : > { %9580 = vmatpush3.bf16.msra.mxu0 %v18079_v19  ;;  %v14601_v11 = vpop.xlane.xlu0 %3981  ;;  %18082 = vst [vmem:[#allocation39_spill] sm:$0xff] %v14619_v38  ;;  %10425 = vpow2.f32 %v4390_v10  ;;  %v4670_v37 = vsel %vm3793_vm2, %v14614_v39, 0.0  ;;  %v11015_v19 = vld [vmem:[%s17256_s0 + $0x38] sm:$0xff]  ;;  %v3606_v29 = vadd.f32 %v14445_v0, %v14098_v22  ;;  %v4094_v10 = vsel %vm3793_vm2, %v14619_v38, -inf  ;;  %v18187_v38 = vld [vmem:[#allocation167_spill] sm:$0xff] }
 0x5a0   : > { %9581 = vmatprep.subr.bf16.mxu0 %v18081_v53  ;;  %4086 = vmax.xlane.f32.xlu1 %v4085_v42  ;;  %18084 = vst [vmem:[#allocation12_spill] sm:$0xff] %v14630_v43  ;;  %v14641_v42 = vadd.f32 %v11015_v19, %v3608_v27  ;;  %10427 = vpow2.f32 %v4386_v3  ;;  %v14655_v6 = vadd.f32 %v14363_v20, %v3622_v48  ;;  %v4148_v0 = vsel %vm3793_vm2, %v14630_v43, -inf  ;;  %v18091_v48 = vld [vmem:[#allocation100_spill] sm:$0xff] }
 0x5a1   : > { %v14610_v41 = vpop.xlane.xlu1 %3984 }
 0x5a2   : > { %4677 = vadd.xlane.f32.xlu0 %v4676_v4  ;;  %18085 = vst [vmem:[#allocation38_spill] sm:$0xff] %v14641_v42  ;;  %18088 = vst [vmem:[#allocation48_spill] sm:$0xff] %v14655_v6 }
 0x5a3   : > { %9582 = vmatpush3.bf16.msra.mxu0 %v18081_v53  ;;  %v14624_v62 = vpop.xlane.xlu0 %3975  ;;  %v4213_v53 = vsub.f32 %v18086_v23, %v14077_v51  ;;  %v18093_v23 = vld [vmem:[#allocation71_spill] sm:$0xff] }
 0x5a4   : > { %9583 = vmatprep.subr.bf16.mxu0 %v18083_v50  ;;  %4101 = vmax.xlane.f32.xlu1 %v4100_v47  ;;  %v10418_v33 = vpop.eup %10417 }
 0x5a5   : > { %v14634_v61 = vpop.xlane.xlu1 %3978  ;;  %v5081_v4 = vmul.f32 %v10418_v33, %v13688_v7  ;;  %v11016_v7 = vld [vmem:[%s17256_s0 + $0x28] sm:$0xff]  ;;  %v3611_v33 = vadd.f32 %v14164_v60, %v14290_v55 }
 0x5a6   : > { %v10420_v12 = vpop.eup %10419  ;;  %4671 = vadd.xlane.f32.xlu0 %v4670_v37  ;;  %v14667_v20 = vadd.f32 %v11016_v7, %v3606_v29  ;;  %v4376_v37 = vmul.f32 1.442695, %v4213_v53  ;;  %v3609_v29 = vadd.f32 %v14231_v30, %v14166_v28  ;;  %v4222_v53 = vsub.f32 %v18093_v23, %v14319_v56  ;;  %v18096_v30 = vld [vmem:[#allocation22_spill] sm:$0xff] }
 0x5a7   : > { %v10422_v49 = vpop.eup %10421  ;;  %9584 = vmatpush3.bf16.msra.mxu0 %v18083_v50  ;;  %v14646_v21 = vpop.xlane.xlu0 %3993  ;;  %v5078_v27 = vmul.f32 %v10420_v12, %v13697_v13  ;;  %v18089_v50 = vld [vmem:[#allocation72_spill] sm:$0xff]  ;;  %v14684_v19 = vadd.f32 %v13930_v26, %v3611_v33  ;;  %v18094_v26 = vld [vmem:[#allocation139_spill] sm:$0xff]  ;;  %v18099_v33 = vld [vmem:[#allocation149_spill] sm:$0xff] }
 0x5a8   : > { %v10424_v32 = vpop.eup %10423  ;;  %9585 = vmatprep.subr.bf16.mxu0 %v18087_v25  ;;  %4095 = vmax.xlane.f32.xlu1 %v4094_v10  ;;  %v4224_v51 = vsub.f32 %v18089_v50, %v14283_v40  ;;  %v5080_v3 = vmul.f32 %v10422_v49, %v13681_v31  ;;  %18090 = vst [vmem:[#allocation44_spill] sm:$0xff] %v14667_v20  ;;  %v4145_v49 = vsel %vm3793_vm2, %v14655_v6, -inf  ;;  %10429 = vpow2.f32 %v4376_v37  ;;  %v18098_v50 = vld [vmem:[#allocation24_spill] sm:$0xff] }
 0x5a9   : > { %v4594_v22 = vpop.xlane.xlu1 %4593  ;;  %v5079_v47 = vmul.f32 %v10424_v32, %v13703_v63  ;;  %v4103_v63 = vsel %vm3793_vm2, %v14641_v42, -inf  ;;  %v14680_v60 = vpop.eup %10425  ;;  %18092 = vst [vmem:[#allocation49_spill] sm:$0xff] %v14684_v19  ;;  %v4097_v32 = vsel %vm3793_vm2, %v14667_v20, -inf  ;;  %v14701_v28 = vadd.f32 %v18096_v30, %v3609_v29  ;;  %v18116_v6 = vld [vmem:[#allocation132_spill] sm:$0xff]  ;;  %v18165_v20 = vld [vmem:[#allocation81_spill] sm:$0xff] }
 0x5aa   : > { %4149 = vmax.xlane.f32.xlu0 %v4148_v0  ;;  %v5205_v31 = vpack.c.bf16 %v5081_v4, %v5080_v3  ;;  %v4398_v55 = vmul.f32 1.442695, %v4224_v51  ;;  %v4688_v4 = vsel %vm3793_vm2, %v14680_v60, 0.0  ;;  %v14696_v0 = vpop.eup %10427  ;;  %v3613_v51 = vadd.f32 %v14450_v59, %v18098_v50  ;;  %v18109_v50 = vld [vmem:[#allocation125_spill] sm:$0xff]  ;;  %v18164_v42 = vld [vmem:[#allocation20_spill] sm:$0xff] }
 0x5ab   : > { %9586 = vmatpush3.bf16.msra.mxu0 %v18087_v25  ;;  %v14672_v13 = vpop.xlane.xlu0 %3987  ;;  %v5204_v40 = vpack.c.bf16 %v5079_v47, %v5078_v27  ;;  %v18095_v27 = vld [vmem:[#allocation45_spill] sm:$0xff]  ;;  %18097 = vst [vmem:[#allocation72_spill] sm:$0xff] %v14701_v28  ;;  %v4112_v3 = vsel %vm3793_vm2, %v14684_v19, -inf  ;;  %v4394_v7 = vmul.f32 1.442695, %v4222_v53  ;;  %v4682_v37 = vsel %vm3793_vm2, %v14696_v0, 0.0 }
 0x5ac   : > { %9611 = vmatprep.subr.bf16.mxu0 %v18091_v48  ;;  %4104 = vmax.xlane.f32.xlu1 %v4103_v63  ;;  %v4211_v47 = vsub.f32 %v18095_v27, %v18094_v26  ;;  %10431 = vpow2.f32 %v4398_v55  ;;  %v14711_v63 = vadd.f32 %v18099_v33, %v14386_v34  ;;  %v18101_v55 = vld [vmem:[#allocation109_spill] sm:$0xff]  ;;  %v4106_v34 = vsel %vm3793_vm2, %v14701_v28, -inf  ;;  %v18107_v26 = vld [vmem:[#allocation162_spill] sm:$0xff] }
 0x5ad   : > { %v4588_v12 = vpop.xlane.xlu1 %4587  ;;  %9575 = vmatprep.mubr.msk.bf16.mxu0 %vm3793_vm2, %v5204_v40  ;;  %v3626_v40 = vadd.f32 %v14378_v44, %v14407_v54  ;;  %v14718_v29 = vadd.f32 %v18101_v55, %v3613_v51  ;;  %v18104_v44 = vld [vmem:[#allocation127_spill] sm:$0xff]  ;;  %v18105_v54 = vld [vmem:[#allocation4_spill] sm:$0xff]  ;;  %v18108_v27 = vld [vmem:[#allocation65_spill] sm:$0xff]  ;;  %v4215_v8 = vsub.f32 %v18117_v15, %v18116_v6  ;;  %v14779_v15 = vadd.f32 %v14475_v46, %v14458_v45 }
 0x5ae   : > { %4146 = vmax.xlane.f32.xlu0 %v4145_v49  ;;  %9576 = vmatmul.mubr.msk.bf16.gmra.mrb[100].mxu0 %vm3793_vm2, %v5205_v31  ;;  %18100 = vst [vmem:[#allocation100_spill] sm:$0xff] %v14711_v63  ;;  %v4372_v49 = vmul.f32 1.442695, %v4211_v47  ;;  %v4228_v47 = vsub.f32 %v18108_v27, %v18107_v26  ;;  %v18113_v27 = vld [vmem:[#allocation34_spill] sm:$0xff] }
 0x5af   : > { %v14688_v10 = vpop.xlane.xlu0 %4608  ;;  %18102 = vst [vmem:[#allocation71_spill] sm:$0xff] %v14718_v29  ;;  %v14729_v53 = vadd.f32 %v14432_v9, %v3626_v40  ;;  %v4118_v9 = vsel %vm3793_vm2, %v14718_v29, -inf  ;;  %18120 = vst [vmem:[#allocation22_spill] sm:$0xff] %v14779_v15  ;;  %v18162_v29 = vld [vmem:[#allocation67_spill] sm:$0xff] }
 0x5b0   : > { %4098 = vmax.xlane.f32.xlu1 %v4097_v32  ;;  %v4406_v55 = vmul.f32 1.442695, %v4228_v47  ;;  %v18114_v47 = vld [vmem:[#allocation57_spill] sm:$0xff] }
 0x5b1   : > { %v4597_v25 = vpop.xlane.xlu1 %4596  ;;  %18106 = vst [vmem:[#allocation139_spill] sm:$0xff] %v14729_v53 }
 0x5b2   : > { %4689 = vadd.xlane.f32.xlu0 %v4688_v4  ;;  %10433 = vrcp.f32 %v4597_v25  ;;  %v4160_v4 = vsel %vm3793_vm2, %v14711_v63, -inf  ;;  %v14737_v30 = vpop.eup %10429  ;;  %v18115_v63 = vld [vmem:[#allocation47_spill] sm:$0xff] }
 0x5b3   : > { %v14705_v56 = vpop.xlane.xlu0 %4602  ;;  %10435 = vrcp.f32 %v4588_v12  ;;  %v18103_v12 = vld [vmem:[#allocation15_spill] sm:$0xff] }
 0x5b4   : > { %4113 = vmax.xlane.f32.xlu1 %v4112_v3  ;;  %10437 = vrcp.f32 %v4594_v22  ;;  %v3616_v32 = vadd.f32 %v18103_v12, %v14467_v5  ;;  %v4217_v22 = vsub.f32 %v18105_v54, %v18104_v44  ;;  %v18111_v54 = vld [vmem:[#allocation166_spill] sm:$0xff] }
 0x5b5   : > { %v4591_v31 = vpop.xlane.xlu1 %4590 }
 0x5b6   : > { %10439 = vrcp.f32 %v4591_v31  ;;  %4683 = vadd.xlane.f32.xlu0 %v4682_v37  ;;  %v14740_v51 = vadd.f32 %v18109_v50, %v3616_v32  ;;  %v4384_v40 = vmul.f32 1.442695, %v4217_v22  ;;  %v4157_v37 = vsel %vm3793_vm2, %v14729_v53, -inf }
 0x5b7   : > { %v14722_v23 = vpop.xlane.xlu0 %4005  ;;  %10441 = vpow2.f32 %v4394_v7  ;;  %v14746_v7 = vpop.eup %10431 }
 0x5b8   : > { %4107 = vmax.xlane.f32.xlu1 %v4106_v34  ;;  %10443 = vpow2.f32 %v4372_v49  ;;  %18110 = vst [vmem:[#allocation45_spill] sm:$0xff] %v14740_v51  ;;  %v4127_v34 = vsel %vm3793_vm2, %v14740_v51, -inf  ;;  %v18118_v51 = vld [vmem:[#allocation62_spill] sm:$0xff] }
 0x5b9   : > { %v14731_v25 = vpop.xlane.xlu1 %3996  ;;  %10445 = vpow2.f32 %v4384_v40  ;;  %v4667_v40 = vsel %vm3793_vm2, %v14737_v30, 0.0 }
 0x5ba   : > { %4161 = vmax.xlane.f32.xlu0 %v4160_v4  ;;  %v18112_v4 = vld [vmem:[#allocation18_spill] sm:$0xff]  ;;  %10447 = vpow2.f32 %v4406_v55 }
 0x5bb   : > { %v14742_v3 = vpop.xlane.xlu0 %3999  ;;  %v4226_v26 = vsub.f32 %v18112_v4, %v18111_v54 }
 0x5bc   : > { %4119 = vmax.xlane.f32.xlu1 %v4118_v9  ;;  %v10434_v33 = vpop.eup %10433  ;;  %v4700_v9 = vsel %vm3793_vm2, %v14746_v7, 0.0 }
 0x5bd   : > { %v14748_v31 = vpop.xlane.xlu1 %3990  ;;  %v10436_v49 = vpop.eup %10435  ;;  %v5085_v22 = vmul.f32 %v10434_v33, %v18113_v27 }
 0x5be   : > { %4158 = vmax.xlane.f32.xlu0 %v4157_v37  ;;  %v10438_v12 = vpop.eup %10437  ;;  %v5082_v37 = vmul.f32 %v10436_v49, %v18114_v47  ;;  %v4402_v49 = vmul.f32 1.442695, %v4226_v26  ;;  %v18125_v26 = vld [vmem:[#allocation114_spill] sm:$0xff] }
 0x5bf   : > { %v14752_v32 = vpop.xlane.xlu0 %4611  ;;  %v5084_v54 = vmul.f32 %v10438_v12, %v18118_v51  ;;  %v4380_v51 = vmul.f32 1.442695, %v4215_v8  ;;  %v18124_v12 = vld [vmem:[#allocation174_spill] sm:$0xff] }
 0x5c0   : > { %v10440_v44 = vpop.eup %10439  ;;  %4128 = vmax.xlane.f32.xlu1 %v4127_v34  ;;  %v4230_v8 = vsub.f32 %v18125_v26, %v18124_v12 }
 0x5c1   : > { %v4606_v50 = vpop.xlane.xlu1 %4605  ;;  %v5083_v53 = vmul.f32 %v10440_v44, %v18115_v63  ;;  %v14763_v43 = vpop.eup %10441  ;;  %v18119_v63 = vld [vmem:[#allocation7_spill] sm:$0xff]  ;;  %v5207_v27 = vpack.c.bf16 %v5085_v22, %v5084_v54  ;;  %v18126_v22 = vld [vmem:[#allocation94_spill] sm:$0xff]  ;;  %v4172_v54 = vsel %vm3793_vm2, %v14779_v15, -inf }
 0x5c2   : > { %4701 = vadd.xlane.f32.xlu0 %v4700_v9  ;;  %10449 = vrcp.f32 %v4606_v50  ;;  %v14772_v4 = vpop.eup %10443  ;;  %v4232_v44 = vsub.f32 %v18119_v63, %v14409_v57  ;;  %v18121_v57 = vld [vmem:[#allocation21_spill] sm:$0xff]  ;;  %v18127_v50 = vld [vmem:[#allocation144_spill] sm:$0xff]  ;;  %v18128_v9 = vld [vmem:[#allocation79_spill] sm:$0xff] }
 0x5c3   : > { %v14768_v33 = vpop.xlane.xlu0 %4620  ;;  %v5206_v34 = vpack.c.bf16 %v5083_v53, %v5082_v37  ;;  %10451 = vrcp.f32 %v14705_v56  ;;  %v4694_v53 = vsel %vm3793_vm2, %v14763_v43, 0.0  ;;  %v18122_v56 = vld [vmem:[#allocation128_spill] sm:$0xff]  ;;  %v4661_v46 = vsel %vm3793_vm2, %v14772_v4, 0.0  ;;  %v18131_v63 = vld [vmem:[#allocation147_spill] sm:$0xff] }
 0x5c4   : > { %4668 = vadd.xlane.f32.xlu1 %v4667_v40  ;;  %10453 = vrcp.f32 %v14688_v10  ;;  %v14788_v55 = vadd.f32 %v18122_v56, %v18121_v57  ;;  %v4414_v10 = vmul.f32 1.442695, %v4232_v44  ;;  %v4221_v47 = vsub.f32 %v18128_v9, %v18127_v50  ;;  %v18130_v40 = vld [vmem:[#allocation105_spill] sm:$0xff]  ;;  %v18132_v44 = vld [vmem:[#allocation59_spill] sm:$0xff]  ;;  %v18136_v9 = vld [vmem:[#allocation36_spill] sm:$0xff] }
 0x5c5   : > { %v4600_v6 = vpop.xlane.xlu1 %4599  ;;  %9587 = vmatprep.mubr.msk.bf16.mxu0 %vm3793_vm2, %v5206_v34  ;;  %v14802_v37 = vadd.f32 %v14539_v1, %v14487_v35  ;;  %v4236_v34 = vsub.f32 %v18130_v40, %v14520_v14  ;;  %v18138_v40 = vld [vmem:[#allocation19_spill] sm:$0xff] }
 0x5c6   : > { %10455 = vrcp.f32 %v4600_v6  ;;  %4695 = vadd.xlane.f32.xlu0 %v4694_v53  ;;  %9588 = vmatmul.mubr.msk.bf16.vlgmr.msra.gmra.mrb[104].mxu0 %vm3793_vm2, %v5207_v27  ;;  %18123 = vst [vmem:[#allocation24_spill] sm:$0xff] %v14788_v55  ;;  %v14814_v27 = vadd.f32 %v18132_v44, %v18131_v63  ;;  %v4130_v1 = vsel %vm3793_vm2, %v14788_v55, -inf  ;;  %v4410_v53 = vmul.f32 1.442695, %v4230_v8 }
 0x5c7   : > { %9612 = vmatpush3.bf16.msra.mxu0 %v18091_v48  ;;  %v14791_v45 = vpop.xlane.xlu0 %4017  ;;  %10457 = vpow2.f32 %v4402_v49  ;;  %18129 = vst [vmem:[#allocation149_spill] sm:$0xff] %v14802_v37  ;;  %v14810_v49 = vpop.eup %10445  ;;  %v4392_v57 = vmul.f32 1.442695, %v4221_v47  ;;  %v4422_v26 = vmul.f32 1.442695, %v4236_v34  ;;  %v4234_v47 = vsub.f32 %v18136_v9, %v14545_v36  ;;  %v18143_v36 = vld [vmem:[#allocation33_spill] sm:$0xff] }
 0x5c8   : > { %9613 = vmatprep.subr.bf16.mxu0 %v18126_v22  ;;  %4662 = vadd.xlane.f32.xlu1 %v4661_v46  ;;  %10459 = vpow2.f32 %v4380_v51  ;;  %18133 = vst [vmem:[#allocation109_spill] sm:$0xff] %v14814_v27  ;;  %v14821_v6 = vpop.eup %10447  ;;  %v18135_v51 = vld [vmem:[#allocation121_spill] sm:$0xff]  ;;  %v4169_v46 = vsel %vm3793_vm2, %v14802_v37, -inf  ;;  %v18144_v9 = vld [vmem:[#allocation152_spill] sm:$0xff] }
 0x5c9   : > { %v14804_v48 = vpop.xlane.xlu1 %4008  ;;  %18134 = vst [vmem:[#allocation15_spill] sm:$0xff] %v14821_v6  ;;  %10461 = vpow2.f32 %v4414_v10  ;;  %v4139_v10 = vsel %vm3793_vm2, %v14814_v27, -inf  ;;  %v4712_v44 = vsel %vm3793_vm2, %v14821_v6, 0.0  ;;  %v18142_v27 = vld [vmem:[#allocation51_spill] sm:$0xff] }
 0x5ca   : > { %4173 = vmax.xlane.f32.xlu0 %v4172_v54  ;;  %10463 = vpow2.f32 %v4410_v53  ;;  %v18137_v54 = vld [vmem:[#allocation116_spill] sm:$0xff]  ;;  %v18141_v53 = vld [vmem:[#allocation146_spill] sm:$0xff] }
 0x5cb   : > { %9614 = vmatpush3.bf16.msra.mxu0 %v18126_v22  ;;  %v14817_v35 = vpop.xlane.xlu0 %4011  ;;  %10465 = vpow2.f32 %v4392_v57  ;;  %v4219_v55 = vsub.f32 %v18142_v27, %v18141_v53  ;;  %v18145_v27 = vld [vmem:[#allocation26_spill] sm:$0xff]  ;;  %v18151_v53 = vld [vmem:[#allocation23_spill] sm:$0xff] }
 0x5cc   : > { %9615 = vmatprep.subr.bf16.mxu0 %v18135_v51  ;;  %4131 = vmax.xlane.f32.xlu1 %v4130_v1  ;;  %v10450_v14 = vpop.eup %10449  ;;  %v18139_v1 = vld [vmem:[#allocation52_spill] sm:$0xff]  ;;  %10467 = vpow2.f32 %v4422_v26  ;;  %v4244_v26 = vsub.f32 %v18145_v27, %v14646_v21  ;;  %v18148_v21 = vld [vmem:[#allocation55_spill] sm:$0xff] }
 0x5cd   : > { %v14824_v56 = vpop.xlane.xlu1 %4002  ;;  %v10452_v12 = vpop.eup %10451  ;;  %v5088_v63 = vmul.f32 %v10450_v14, %v18138_v40  ;;  %v3621_v14 = vadd.f32 %v14450_v59, %v18144_v9 }
 0x5ce   : > { %4170 = vmax.xlane.f32.xlu0 %v4169_v46  ;;  %v10454_v22 = vpop.eup %10453  ;;  %v18140_v46 = vld [vmem:[#allocation46_spill] sm:$0xff] }
 0x5cf   : > { %9616 = vmatpush3.bf16.msra.mxu0 %v18135_v51  ;;  %v14829_v50 = vpop.xlane.xlu0 %4632  ;;  %v5087_v15 = vmul.f32 %v10452_v12, %v18140_v46  ;;  %v4679_v12 = vsel %vm3793_vm2, %v14810_v49, 0.0  ;;  %v4438_v46 = vmul.f32 1.442695, %v4244_v26  ;;  %v18156_v26 = vld [vmem:[#allocation160_spill] sm:$0xff] }
 0x5d0   : > { %v10456_v8 = vpop.eup %10455  ;;  %9617 = vmatprep.subr.bf16.mxu0 %v18137_v54  ;;  %4140 = vmax.xlane.f32.xlu1 %v4139_v10  ;;  %v5089_v10 = vmul.f32 %v10454_v22, %v18143_v36  ;;  %v18146_v22 = vld [vmem:[#allocation14_spill] sm:$0xff]  ;;  %v18152_v36 = vld [vmem:[#allocation151_spill] sm:$0xff] }
 0x5d1   : > { %v4618_v34 = vpop.xlane.xlu1 %4617  ;;  %v5086_v51 = vmul.f32 %v10456_v8, %v18139_v1  ;;  %v14841_v37 = vpop.eup %10457  ;;  %v4418_v1 = vmul.f32 1.442695, %v4234_v47  ;;  %v4388_v47 = vmul.f32 1.442695, %v4219_v55  ;;  %v4242_v55 = vsub.f32 %v18151_v53, %v14672_v13 }
 0x5d2   : > { %4713 = vadd.xlane.f32.xlu0 %v4712_v44  ;;  %10469 = vrcp.f32 %v4618_v34  ;;  %v14853_v40 = vpop.eup %10459  ;;  %v5209_v59 = vpack.c.bf16 %v5089_v10, %v5088_v63  ;;  %v18150_v63 = vld [vmem:[#allocation154_spill] sm:$0xff]  ;;  %v18153_v10 = vld [vmem:[#allocation9_spill] sm:$0xff] }
 0x5d3   : > { %9618 = vmatpush3.bf16.msra.mxu0 %v18137_v54  ;;  %v14849_v57 = vpop.xlane.xlu0 %4626  ;;  %v5208_v8 = vpack.c.bf16 %v5087_v15, %v5086_v51  ;;  %10471 = vrcp.f32 %v14752_v32  ;;  %v4706_v15 = vsel %vm3793_vm2, %v14841_v37, 0.0  ;;  %v14863_v34 = vpop.eup %10461  ;;  %v14867_v32 = vadd.f32 %v18148_v21, %v3621_v14 }
 0x5d4   : > { %9643 = vmatprep.subr.bf16.mxu0 %v18146_v22  ;;  %4680 = vadd.xlane.f32.xlu1 %v4679_v12  ;;  %10473 = vrcp.f32 %v14768_v33  ;;  %18147 = vst [vmem:[#allocation127_spill] sm:$0xff] %v14863_v34  ;;  %v3624_v44 = vadd.f32 %v18150_v63, %v14467_v5  ;;  %v4673_v51 = vsel %vm3793_vm2, %v14853_v40, 0.0  ;;  %v4225_v9 = vsub.f32 %v18153_v10, %v18152_v36  ;;  %v14883_v5 = vpop.eup %10463 }
 0x5d5   : > { %v4615_v54 = vpop.xlane.xlu1 %4614  ;;  %9591 = vmatprep.mubr.msk.bf16.mxu0 %vm3793_vm2, %v5208_v8  ;;  %18149 = vst [vmem:[#allocation4_spill] sm:$0xff] %v14867_v32  ;;  %v4724_v14 = vsel %vm3793_vm2, %v14863_v34, 0.0  ;;  %18154 = vst [vmem:[#allocation162_spill] sm:$0xff] %v14883_v5  ;;  %v18155_v8 = vld [vmem:[#allocation27_spill] sm:$0xff]  ;;  %v4434_v21 = vmul.f32 1.442695, %v4242_v55 }
 0x5d6   : > { %10475 = vrcp.f32 %v4615_v54  ;;  %4707 = vadd.xlane.f32.xlu0 %v4706_v15  ;;  %9592 = vmatmul.mubr.msk.bf16.gmra.mrb[108].mxu0 %vm3793_vm2, %v5209_v59  ;;  %v4239_v27 = vsub.f32 %v18155_v8, %v14634_v61  ;;  %v14890_v13 = vadd.f32 %v18156_v26, %v3624_v44  ;;  %v4142_v54 = vsel %vm3793_vm2, %v14867_v32, -inf }
 0x5d7   : > { %v14871_v33 = vpop.xlane.xlu0 %4029  ;;  %10477 = vpow2.f32 %v4418_v1  ;;  %v14887_v1 = vpop.eup %10465  ;;  %v4400_v63 = vmul.f32 1.442695, %v4225_v9  ;;  %v4718_v61 = vsel %vm3793_vm2, %v14883_v5, 0.0  ;;  %v18160_v9 = vld [vmem:[#allocation2_spill] sm:$0xff] }
 0x5d8   : > { %4674 = vadd.xlane.f32.xlu1 %v4673_v51  ;;  %10479 = vpow2.f32 %v4388_v47  ;;  %18157 = vst [vmem:[#allocation65_spill] sm:$0xff] %v14890_v13  ;;  %v14896_v15 = vpop.eup %10467  ;;  %v4428_v44 = vmul.f32 1.442695, %v4239_v27 }
 0x5d9   : > { %v14879_v12 = vpop.xlane.xlu1 %4020  ;;  %18158 = vst [vmem:[#allocation125_spill] sm:$0xff] %v14896_v15  ;;  %10481 = vpow2.f32 %v4438_v46  ;;  %v18159_v46 = vld [vmem:[#allocation91_spill] sm:$0xff]  ;;  %v4736_v27 = vsel %vm3793_vm2, %v14896_v15, 0.0  ;;  %v18185_v15 = vld [vmem:[#allocation5_spill] sm:$0xff] }
 0x5da   : > { %4725 = vadd.xlane.f32.xlu0 %v4724_v14  ;;  %v4151_v14 = vsel %vm3793_vm2, %v14890_v13, -inf  ;;  %10483 = vpow2.f32 %v4434_v21  ;;  %v4246_v55 = vsub.f32 %v18159_v46, %v14742_v3  ;;  %v18163_v13 = vld [vmem:[#allocation159_spill] sm:$0xff] }
 0x5db   : > { %v14892_v59 = vpop.xlane.xlu0 %4023  ;;  %10485 = vpow2.f32 %v4400_v63  ;;  %v4223_v21 = vsub.f32 %v18164_v42, %v18163_v13  ;;  %v4691_v63 = vsel %vm3793_vm2, %v14887_v1, 0.0 }
 0x5dc   : > { %4143 = vmax.xlane.f32.xlu1 %v4142_v54  ;;  %v10470_v47 = vpop.eup %10469  ;;  %10487 = vpow2.f32 %v4428_v44 }
 0x5dd   : > { %v14898_v51 = vpop.xlane.xlu1 %4014  ;;  %v10472_v53 = vpop.eup %10471  ;;  %v5092_v26 = vmul.f32 %v10470_v47, %v18160_v9 }
 0x5de   : > { %4719 = vadd.xlane.f32.xlu0 %v4718_v61  ;;  %v10474_v36 = vpop.eup %10473  ;;  %v18161_v61 = vld [vmem:[#allocation54_spill] sm:$0xff] }
 0x5df   : > { %v14902_v10 = vpop.xlane.xlu0 %4641  ;;  %v5090_v32 = vmul.f32 %v10472_v53, %v18161_v61  ;;  %v5093_v3 = vmul.f32 %v10474_v36, %v18165_v20 }
 0x5e0   : > { %v10476_v8 = vpop.eup %10475  ;;  %4152 = vmax.xlane.f32.xlu1 %v4151_v14 }
 0x5e1   : > { %v4630_v54 = vpop.xlane.xlu1 %4629  ;;  %v5091_v28 = vmul.f32 %v10476_v8, %v18162_v29  ;;  %v14913_v19 = vpop.eup %10477  ;;  %v18166_v29 = vld [vmem:[#allocation98_spill] sm:$0xff]  ;;  %v4442_v8 = vmul.f32 1.442695, %v4246_v55  ;;  %v5211_v9 = vpack.c.bf16 %v5093_v3, %v5092_v26 }
 0x5e2   : > { %4737 = vadd.xlane.f32.xlu0 %v4736_v27  ;;  %10489 = vrcp.f32 %v4630_v54  ;;  %v14922_v46 = vpop.eup %10479  ;;  %v4240_v53 = vsub.f32 %v18166_v29, %v14601_v11  ;;  %v4730_v20 = vsel %vm3793_vm2, %v14913_v19, 0.0  ;;  %v18168_v11 = vld [vmem:[#allocation168_spill] sm:$0xff]  ;;  %v18172_v26 = vld [vmem:[#allocation42_spill] sm:$0xff] }
 0x5e3   : > { %v14918_v47 = vpop.xlane.xlu0 %4635  ;;  %v5210_v14 = vpack.c.bf16 %v5091_v28, %v5090_v32  ;;  %10491 = vrcp.f32 %v14849_v57  ;;  %v14931_v13 = vpop.eup %10481  ;;  %v4396_v28 = vmul.f32 1.442695, %v4223_v21  ;;  %v18169_v32 = vld [vmem:[#allocation155_spill] sm:$0xff]  ;;  %v18171_v57 = vld [vmem:[#allocation122_spill] sm:$0xff]  ;;  %v4685_v36 = vsel %vm3793_vm2, %v14922_v46, 0.0  ;;  %v18173_v27 = vld [vmem:[#allocation8_spill] sm:$0xff] }
 0x5e4   : > { %4692 = vadd.xlane.f32.xlu1 %v4691_v63  ;;  %10493 = vrcp.f32 %v14829_v50  ;;  %18167 = vst [vmem:[#allocation166_spill] sm:$0xff] %v14931_v13  ;;  %v14936_v44 = vadd.f32 %v18169_v32, %v18168_v11  ;;  %v4430_v55 = vmul.f32 1.442695, %v4240_v53  ;;  %v4248_v54 = vsub.f32 %v18172_v26, %v14722_v23  ;;  %v14950_v3 = vpop.eup %10483  ;;  %v18175_v63 = vld [vmem:[#allocation164_spill] sm:$0xff]  ;;  %v18178_v23 = vld [vmem:[#allocation169_spill] sm:$0xff]  ;;  %v18181_v32 = vld [vmem:[#allocation10_spill] sm:$0xff] }
 0x5e5   : > { %v4624_v42 = vpop.xlane.xlu1 %4623  ;;  %9603 = vmatprep.mubr.msk.bf16.mxu1 %vm3793_vm2, %v5210_v14  ;;  %v4760_v21 = vsel %vm3793_vm2, %v14931_v13, 0.0  ;;  %18174 = vst [vmem:[#allocation34_spill] sm:$0xff] %v14950_v3  ;;  %v18176_v14 = vld [vmem:[#allocation11_spill] sm:$0xff]  ;;  %v14954_v53 = vpop.eup %10485  ;;  %v4754_v26 = vsel %vm3793_vm2, %v14950_v3, 0.0  ;;  %v18207_v3 = vld [vmem:[#allocation82_spill] sm:$0xff] }
 0x5e6   : > { %10495 = vrcp.f32 %v4624_v42  ;;  %4731 = vadd.xlane.f32.xlu0 %v4730_v20  ;;  %9604 = vmatmul.mubr.msk.bf16.vlgmr.msra.gmra.mrb[64].mxu1 %vm3793_vm2, %v5211_v9  ;;  %18170 = vst [vmem:[#allocation18_spill] sm:$0xff] %v14936_v44  ;;  %v4229_v29 = vsub.f32 %v18176_v14, %v18175_v63  ;;  %v18177_v9 = vld [vmem:[#allocation171_spill] sm:$0xff]  ;;  %v4154_v20 = vsel %vm3793_vm2, %v14936_v44, -inf  ;;  %v14965_v11 = vpop.eup %10487 }
 0x5e7   : > { %9628 = vmatpush3.bf16.msra.mxu1 %v18171_v57  ;;  %v14939_v50 = vpop.xlane.xlu0 %4041  ;;  %10497 = vpow2.f32 %v4442_v8  ;;  %v14958_v8 = vadd.f32 %v18178_v23, %v18177_v9  ;;  %18180 = vst [vmem:[#allocation47_spill] sm:$0xff] %v14965_v11  ;;  %v18182_v9 = vld [vmem:[#allocation124_spill] sm:$0xff] }
 0x5e8   : > { %9629 = vmatprep.subr.bf16.mxu1 %v18173_v27  ;;  %4686 = vadd.xlane.f32.xlu1 %v4685_v36  ;;  %10499 = vpow2.f32 %v4396_v28  ;;  %v4446_v28 = vmul.f32 1.442695, %v4248_v54  ;;  %v18183_v23 = vld [vmem:[#allocation84_spill] sm:$0xff] }
 0x5e9   : > { %v14946_v61 = vpop.xlane.xlu1 %4032  ;;  %18179 = vst [vmem:[#allocation57_spill] sm:$0xff] %v14958_v8  ;;  %10501 = vpow2.f32 %v4430_v55  ;;  %v4163_v55 = vsel %vm3793_vm2, %v14958_v8, -inf  ;;  %v18188_v8 = vld [vmem:[#allocation87_spill] sm:$0xff] }
 0x5ea   : > { %4761 = vadd.xlane.f32.xlu0 %v4760_v21  ;;  %10503 = vpow2.f32 %v4446_v28  ;;  %v4227_v24 = vsub.f32 %v18188_v8, %v18187_v38  ;;  %v18189_v28 = vld [vmem:[#allocation30_spill] sm:$0xff] }
 0x5eb   : > { %9630 = vmatpush3.bf16.msra.mxu1 %v18173_v27  ;;  %v14961_v42 = vpop.xlane.xlu0 %4035  ;;  %v4408_v27 = vmul.f32 1.442695, %v4229_v29  ;;  %v4745_v29 = vsel %vm3793_vm2, %v14965_v11, 0.0  ;;  %v18204_v11 = vld [vmem:[#allocation96_spill] sm:$0xff] }
 0x5ec   : > { %9631 = vmatprep.subr.bf16.mxu1 %v18181_v32  ;;  %4155 = vmax.xlane.f32.xlu1 %v4154_v20  ;;  %v10490_v57 = vpop.eup %10489 }
 0x5ed   : > { %v14968_v36 = vpop.xlane.xlu1 %4026  ;;  %v10492_v21 = vpop.eup %10491  ;;  %v5096_v20 = vmul.f32 %v10490_v57, %v18183_v23  ;;  %10505 = vpow2.f32 %v4408_v27  ;;  %v4404_v27 = vmul.f32 1.442695, %v4227_v24 }
 0x5ee   : > { %4755 = vadd.xlane.f32.xlu0 %v4754_v26  ;;  %v10494_v63 = vpop.eup %10493  ;;  %v18184_v26 = vld [vmem:[#allocation140_spill] sm:$0xff] }
 0x5ef   : > { %9632 = vmatpush3.bf16.msra.mxu1 %v18181_v32  ;;  %v14973_v14 = vpop.xlane.xlu0 %4653  ;;  %v5095_v32 = vmul.f32 %v10492_v21, %v18185_v15  ;;  %v5097_v18 = vmul.f32 %v10494_v63, %v18189_v28  ;;  %v18190_v15 = vld [vmem:[#allocation134_spill] sm:$0xff]  ;;  %v18193_v63 = vld [vmem:[#allocation13_spill] sm:$0xff] }
 0x5f0   : > { %v10496_v54 = vpop.eup %10495  ;;  %9633 = vmatprep.subr.bf16.mxu1 %v18182_v9  ;;  %4164 = vmax.xlane.f32.xlu1 %v4163_v55  ;;  %v4703_v55 = vsel %vm3793_vm2, %v14954_v53, 0.0 }
 0x5f1   : > { %v4645_v44 = vpop.xlane.xlu1 %4644  ;;  %v5094_v13 = vmul.f32 %v10496_v54, %v18184_v26  ;;  %v14983_v52 = vpop.eup %10497  ;;  %v5213_v21 = vpack.c.bf16 %v5097_v18, %v5096_v20  ;;  %v18197_v26 = vld [vmem:[#allocation107_spill] sm:$0xff] }
 0x5f2   : > { %18186 = vst [vmem:[#allocation132_spill] sm:$0xff] %v14983_v52  ;;  %4746 = vadd.xlane.f32.xlu0 %v4745_v29  ;;  %10507 = vrcp.f32 %v4645_v44  ;;  %v14991_v54 = vpop.eup %10499  ;;  %v4766_v44 = vsel %vm3793_vm2, %v14983_v52, 0.0  ;;  %v18196_v29 = vld [vmem:[#allocation176_spill] sm:$0xff]  ;;  %v18203_v52 = vld [vmem:[#allocation138_spill] sm:$0xff] }
 0x5f3   : > { %9634 = vmatpush3.bf16.msra.mxu1 %v18182_v9  ;;  %v4648_v57 = vpop.xlane.xlu0 %4647  ;;  %v5212_v23 = vpack.c.bf16 %v5095_v32, %v5094_v13  ;;  %10509 = vrcp.f32 %v14918_v47  ;;  %v14999_v8 = vpop.eup %10501  ;;  %v18192_v13 = vld [vmem:[#allocation172_spill] sm:$0xff]  ;;  %v18194_v47 = vld [vmem:[#allocation177_spill] sm:$0xff]  ;;  %v4697_v20 = vsel %vm3793_vm2, %v14991_v54, 0.0  ;;  %v4231_v24 = vsub.f32 %v18197_v26, %v18196_v29 }
 0x5f4   : > { %9659 = vmatprep.subr.bf16.mxu1 %v18190_v15  ;;  %4704 = vadd.xlane.f32.xlu1 %v4703_v55  ;;  %10511 = vrcp.f32 %v14902_v10  ;;  %18191 = vst [vmem:[#allocation89_spill] sm:$0xff] %v14999_v8  ;;  %v4233_v9 = vsub.f32 %v18193_v63, %v18192_v13  ;;  %v15006_v18 = vadd.f32 %v14497_v2, %v18194_v47  ;;  %v4748_v28 = vsel %vm3793_vm2, %v14999_v8, 0.0  ;;  %v15018_v55 = vpop.eup %10503  ;;  %v18199_v2 = vld [vmem:[#allocation37_spill] sm:$0xff] }
 0x5f5   : > { %v4639_v38 = vpop.xlane.xlu1 %4638  ;;  %9607 = vmatprep.mubr.msk.bf16.mxu1 %vm3793_vm2, %v5212_v23  ;;  %18198 = vst [vmem:[#allocation7_spill] sm:$0xff] %v15018_v55  ;;  %v4412_v29 = vmul.f32 1.442695, %v4231_v24 }
 0x5f6   : > { %10513 = vrcp.f32 %v4639_v38  ;;  %4767 = vadd.xlane.f32.xlu0 %v4766_v44  ;;  %9608 = vmatmul.mubr.msk.bf16.gmra.mrb[68].mxu1 %vm3793_vm2, %v5213_v21  ;;  %18195 = vst [vmem:[#allocation62_spill] sm:$0xff] %v15006_v18  ;;  %v4416_v23 = vmul.f32 1.442695, %v4233_v9  ;;  %v4237_v21 = vsub.f32 %v18199_v2, %v14528_v17  ;;  %v18200_v38 = vld [vmem:[#allocation181_spill] sm:$0xff]  ;;  %v4166_v63 = vsel %vm3793_vm2, %v15006_v18, -inf }
 0x5f7   : > { %v15008_v10 = vpop.xlane.xlu0 %4053  ;;  %10515 = vpow2.f32 %v4404_v27  ;;  %v15024_v44 = vadd.f32 %v18200_v38, %v14482_v58  ;;  %v15030_v47 = vpop.eup %10505  ;;  %v4772_v17 = vsel %vm3793_vm2, %v15018_v55, 0.0  ;;  %v18202_v18 = vld [vmem:[#allocation141_spill] sm:$0xff] }
 0x5f8   : > { %4698 = vadd.xlane.f32.xlu1 %v4697_v20  ;;  %10517 = vpow2.f32 %v4416_v23  ;;  %v4424_v26 = vmul.f32 1.442695, %v4237_v21  ;;  %v18205_v23 = vld [vmem:[#allocation185_spill] sm:$0xff] }
 0x5f9   : > { %v15014_v32 = vpop.xlane.xlu1 %4044  ;;  %18201 = vst [vmem:[#allocation21_spill] sm:$0xff] %v15024_v44  ;;  %v4175_v2 = vsel %vm3793_vm2, %v15024_v44, -inf  ;;  %10519 = vpow2.f32 %v4412_v29  ;;  %v18206_v21 = vld [vmem:[#allocation17_spill] sm:$0xff]  ;;  %v4715_v44 = vsel %vm3793_vm2, %v15030_v47, 0.0 }
 0x5fa   : > { %4749 = vadd.xlane.f32.xlu0 %v4748_v28  ;;  %10521 = vpow2.f32 %v4424_v26 }
 0x5fb   : > { %v15026_v13 = vpop.xlane.xlu0 %4047 }
 0x5fc   : > { %4167 = vmax.xlane.f32.xlu1 %v4166_v63  ;;  %v10508_v20 = vpop.eup %10507 }
 0x5fd   : > { %v15032_v27 = vpop.xlane.xlu1 %4038  ;;  %v10510_v9 = vpop.eup %10509  ;;  %v5101_v63 = vmul.f32 %v10508_v20, %v18202_v18 }
 0x5fe   : > { %4773 = vadd.xlane.f32.xlu0 %v4772_v17  ;;  %v10512_v58 = vpop.eup %10511  ;;  %v5098_v8 = vmul.f32 %v10510_v9, %v18203_v52  ;;  %v4235_v17 = vsub.f32 %v18206_v21, %v18205_v23 }
 0x5ff   : > { %v15036_v28 = vpop.xlane.xlu0 %4065  ;;  %v5100_v34 = vmul.f32 %v10512_v58, %v18207_v3  ;;  %v18209_v3 = vld [vmem:[#allocation43_spill] sm:$0xff] }
 0x600   : > { %v10514_v38 = vpop.eup %10513  ;;  %4176 = vmax.xlane.f32.xlu1 %v4175_v2  ;;  %v4245_v9 = vsub.f32 %v18209_v3, %v14731_v25  ;;  %v18212_v25 = vld [vmem:[#allocation93_spill] sm:$0xff] }
 0x601   : > { %v4657_v24 = vpop.xlane.xlu1 %4656  ;;  %v5099_v55 = vmul.f32 %v10514_v38, %v18204_v11  ;;  %v15050_v20 = vpop.eup %10515  ;;  %v5215_v29 = vpack.c.bf16 %v5101_v63, %v5100_v34  ;;  %v4420_v11 = vmul.f32 1.442695, %v4235_v17  ;;  %v4243_v26 = vsub.f32 %v18212_v25, %v14748_v31  ;;  %v18214_v63 = vld [vmem:[#allocation135_spill] sm:$0xff]  ;;  %v18215_v31 = vld [vmem:[#allocation16_spill] sm:$0xff] }
 0x602   : > { %10523 = vrcp.f32 %v4657_v24  ;;  %v4709_v34 = vsel %vm3793_vm2, %v15050_v20, 0.0  ;;  %v4238_v17 = vsub.f32 %v18215_v31, %v14624_v62  ;;  %v18218_v25 = vld [vmem:[#allocation143_spill] sm:$0xff]  ;;  %v18221_v31 = vld [vmem:[#allocation133_spill] sm:$0xff] }
 0x603   : > { %v15046_v5 = vpop.xlane.xlu0 %4059  ;;  %v5214_v18 = vpack.c.bf16 %v5099_v55, %v5098_v8  ;;  %10525 = vrcp.f32 %v4648_v57  ;;  %v15062_v57 = vpop.eup %10517 }
 0x604   : > { %18208 = vst [vmem:[#allocation128_spill] sm:$0xff] %v15046_v5  ;;  %4716 = vadd.xlane.f32.xlu1 %v4715_v44  ;;  %10527 = vrcp.f32 %v14973_v14  ;;  %18210 = vst [vmem:[#allocation174_spill] sm:$0xff] %v15062_v57  ;;  %v18211_v14 = vld [vmem:[#allocation126_spill] sm:$0xff]  ;;  %v4440_v44 = vmul.f32 1.442695, %v4245_v9  ;;  %v15069_v58 = vpop.eup %10519  ;;  %v4727_v2 = vsel %vm3793_vm2, %v15062_v57, 0.0 }
 0x605   : > { %v4651_v52 = vpop.xlane.xlu1 %4650  ;;  %9619 = vmatprep.mubr.msk.bf16.mxu0 %vm3793_vm2, %v5214_v18  ;;  %v15076_v38 = vpop.eup %10521  ;;  %v4436_v18 = vmul.f32 1.442695, %v4243_v26  ;;  %v18217_v9 = vld [vmem:[#allocation153_spill] sm:$0xff] }
 0x606   : > { %10529 = vrcp.f32 %v4651_v52  ;;  %9620 = vmatmul.mubr.msk.bf16.vlgmr.msra.gmra.mrb[112].mxu0 %vm3793_vm2, %v5215_v29  ;;  %18213 = vst [vmem:[#allocation114_spill] sm:$0xff] %v15076_v38  ;;  %v18219_v5 = vld [vmem:[#allocation157_spill] sm:$0xff] }
 0x607   : > { %9644 = vmatpush3.bf16.msra.mxu0 %v18146_v22  ;;  %v15058_v8 = vpop.xlane.xlu0 %4089  ;;  %10531 = vpow2.f32 %v4420_v11  ;;  %v4721_v11 = vsel %vm3793_vm2, %v15069_v58, 0.0  ;;  %v18220_v26 = vld [vmem:[#allocation29_spill] sm:$0xff] }
 0x608   : > { %9645 = vmatprep.subr.bf16.mxu0 %v18211_v14  ;;  %4710 = vadd.xlane.f32.xlu1 %v4709_v34  ;;  %10533 = vpow2.f32 %v4440_v44  ;;  %v4426_v44 = vmul.f32 1.442695, %v4238_v17 }
 0x609   : > { %v15065_v55 = vpop.xlane.xlu1 %4056  ;;  %10535 = vpow2.f32 %v4436_v18 }
 0x60a   : > { %10537 = vpow2.f32 %v4426_v44 }
 0x60b   : > { %9646 = vmatpush3.bf16.msra.mxu0 %v18211_v14  ;;  %v15072_v22 = vpop.xlane.xlu0 %4083 }
 0x60c   : > { %9647 = vmatprep.subr.bf16.mxu0 %v18214_v63  ;;  %4728 = vadd.xlane.f32.xlu1 %v4727_v2  ;;  %v10524_v24 = vpop.eup %10523 }
 0x60d   : > { %v15079_v23 = vpop.xlane.xlu1 %4050  ;;  %v10526_v21 = vpop.eup %10525  ;;  %v5105_v34 = vmul.f32 %v10524_v24, %v18217_v9 }
 0x60e   : > { %v10528_v29 = vpop.eup %10527  ;;  %v5102_v2 = vmul.f32 %v10526_v21, %v18218_v25  ;;  %v18223_v21 = vld [vmem:[#allocation74_spill] sm:$0xff] }
 0x60f   : > { %9648 = vmatpush3.bf16.msra.mxu0 %v18214_v63  ;;  %v15084_v52 = vpop.xlane.xlu0 %4116  ;;  %v4247_v63 = vsub.f32 %v18220_v26, %v14824_v56  ;;  %v18224_v56 = vld [vmem:[#allocation28_spill] sm:$0xff] }
 0x610   : > { %18216 = vst [vmem:[#allocation94_spill] sm:$0xff] %v15084_v52  ;;  %v10530_v3 = vpop.eup %10529  ;;  %4722 = vadd.xlane.f32.xlu1 %v4721_v11  ;;  %v5104_v52 = vmul.f32 %v10528_v29, %v18221_v31  ;;  %v4739_v11 = vsel %vm3793_vm2, %v15076_v38, 0.0  ;;  %v4241_v18 = vsub.f32 %v18224_v56, %v14610_v41  ;;  %v18229_v41 = vld [vmem:[#allocation73_spill] sm:$0xff] }
 0x611   : > { %v15089_v14 = vpop.xlane.xlu1 %4068  ;;  %v5103_v62 = vmul.f32 %v10530_v3, %v18219_v5  ;;  %v15100_v24 = vpop.eup %10531  ;;  %v4444_v29 = vmul.f32 1.442695, %v4247_v63 }
 0x612   : > { %v5217_v5 = vpack.c.bf16 %v5105_v34, %v5104_v52  ;;  %v4733_v9 = vsel %vm3793_vm2, %v15100_v24, 0.0  ;;  %v15114_v25 = vpop.eup %10533  ;;  %v18227_v52 = vld [vmem:[#allocation66_spill] sm:$0xff] }
 0x613   : > { %v15096_v57 = vpop.xlane.xlu0 %4110  ;;  %v5216_v6 = vpack.c.bf16 %v5103_v62, %v5102_v2  ;;  %18226 = vst [vmem:[#allocation105_spill] sm:$0xff] %v15114_v25  ;;  %v4249_v2 = vsub.f32 %v18229_v41, %v14804_v48  ;;  %10539 = vpow2.f32 %v4444_v29  ;;  %v4763_v44 = vsel %vm3793_vm2, %v15114_v25, 0.0  ;;  %v15126_v26 = vpop.eup %10535  ;;  %v18233_v48 = vld [vmem:[#allocation101_spill] sm:$0xff]  ;;  %v18236_v41 = vld [vmem:[#allocation130_spill] sm:$0xff] }
 0x614   : > { %18222 = vst [vmem:[#allocation144_spill] sm:$0xff] %v15096_v57  ;;  %4740 = vadd.xlane.f32.xlu1 %v4739_v11  ;;  %5717 = vrot.lane.b32.xlu0 %v18223_v21, %s11061_s28  ;;  %v4757_v21 = vsel %vm3793_vm2, %v15126_v26, 0.0  ;;  %v4251_v56 = vsub.f32 %v18233_v48, %v14898_v51 }
 0x615   : > { %v15104_v17 = vpop.xlane.xlu1 %4062  ;;  %9623 = vmatprep.mubr.msk.bf16.mxu0 %vm3793_vm2, %v5216_v6  ;;  %v4432_v6 = vmul.f32 1.442695, %v4241_v18  ;;  %v4448_v31 = vmul.f32 1.442695, %v4249_v2  ;;  %v4258_v2 = vsub.f32 %v18236_v41, %v14961_v42 }
 0x616   : > { %9624 = vmatmul.mubr.msk.bf16.gmra.mrb[116].mxu0 %vm3793_vm2, %v5217_v5  ;;  %v15134_v5 = vpop.eup %10537 }
 0x617   : > { %v15110_v3 = vpop.xlane.xlu0 %4125  ;;  %10541 = vpow2.f32 %v4432_v6  ;;  %18232 = vst [vmem:[#allocation36_spill] sm:$0xff] %v15134_v5  ;;  %v4452_v6 = vmul.f32 1.442695, %v4251_v56 }
 0x618   : > { %18225 = vst [vmem:[#allocation79_spill] sm:$0xff] %v15110_v3  ;;  %4734 = vadd.xlane.f32.xlu1 %v4733_v9  ;;  %5978 = vrot.lane.b32.xlu0 %v18227_v52, %s11061_s28  ;;  %10543 = vpow2.f32 %v4448_v31  ;;  %v4742_v9 = vsel %vm3793_vm2, %v15134_v5, 0.0  ;;  %v18239_v31 = vld [vmem:[#allocation75_spill] sm:$0xff]  ;;  %v18265_v5 = vld [vmem:[#allocation104_spill] sm:$0xff] }
 0x619   : > { %v15118_v34 = vpop.xlane.xlu1 %4077  ;;  %v4252_v3 = vsub.f32 %v18239_v31, %v14791_v45  ;;  %10545 = vpow2.f32 %v4452_v6 }
 0x61a   : > { %18228 = vst [vmem:[#allocation147_spill] sm:$0xff] %v15118_v34 }
 0x61b   : > { %v15122_v62 = vpop.xlane.xlu0 %4122 }
 0x61c   : > { %18230 = vst [vmem:[#allocation59_spill] sm:$0xff] %v15122_v62  ;;  %4764 = vadd.xlane.f32.xlu1 %v4763_v44  ;;  %v4466_v62 = vmul.f32 1.442695, %v4258_v2 }
 0x61d   : > { %v15128_v63 = vpop.xlane.xlu1 %4071  ;;  %v15142_v52 = vpop.eup %10539 }
 0x61e   : > { %18231 = vst [vmem:[#allocation121_spill] sm:$0xff] %v15128_v63  ;;  %18235 = vst [vmem:[#allocation19_spill] sm:$0xff] %v15142_v52  ;;  %v4769_v51 = vsel %vm3793_vm2, %v15142_v52, 0.0  ;;  %v18242_v52 = vld [vmem:[#allocation142_spill] sm:$0xff]  ;;  %10547 = vpow2.f32 %v4466_v62 }
 0x61f   : > { %v15130_v11 = vpop.xlane.xlu0 %4665  ;;  %v4260_v25 = vsub.f32 %v18242_v52, %v14939_v50 }
 0x620   : > { %4758 = vadd.xlane.f32.xlu1 %v4757_v21 }
 0x621   : > { %v15138_v18 = vpop.xlane.xlu1 %4080  ;;  %v15152_v48 = vpop.eup %10541  ;;  %v4470_v2 = vmul.f32 1.442695, %v4260_v25 }
 0x622   : > { %18234 = vst [vmem:[#allocation116_spill] sm:$0xff] %v15138_v18  ;;  %18238 = vst [vmem:[#allocation46_spill] sm:$0xff] %v15152_v48  ;;  %v4751_v42 = vsel %vm3793_vm2, %v15152_v48, 0.0  ;;  %v15162_v41 = vpop.eup %10543 }
 0x623   : > { %v4660_v29 = vpop.xlane.xlu0 %4659  ;;  %18241 = vst [vmem:[#allocation51_spill] sm:$0xff] %v15162_v41  ;;  %v4775_v6 = vsel %vm3793_vm2, %v15162_v41, 0.0 }
 0x624   : > { %4743 = vadd.xlane.f32.xlu1 %v4742_v9 }
 0x625   : > { %v15146_v44 = vpop.xlane.xlu1 %4074 }
 0x627   : > { %v15148_v21 = vpop.xlane.xlu0 %4137 }
 0x628   : > { %18237 = vst [vmem:[#allocation52_spill] sm:$0xff] %v15148_v21  ;;  %4770 = vadd.xlane.f32.xlu1 %v4769_v51  ;;  %v4454_v21 = vmul.f32 1.442695, %v4252_v3 }
 0x629   : > { %v15156_v9 = vpop.xlane.xlu1 %4092 }
 0x62a   : > { %10549 = vpow2.f32 %v4454_v21 }
 0x62b   : > { %v15158_v56 = vpop.xlane.xlu0 %4134  ;;  %10551 = vpow2.f32 %v4470_v2 }
 0x62c   : > { %18240 = vst [vmem:[#allocation146_spill] sm:$0xff] %v15158_v56  ;;  %4752 = vadd.xlane.f32.xlu1 %v4751_v42  ;;  %v15174_v56 = vpop.eup %10545 }
 0x62d   : > { %v15166_v51 = vpop.xlane.xlu1 %4086  ;;  %18244 = vst [vmem:[#allocation152_spill] sm:$0xff] %v15174_v56  ;;  %v4781_v50 = vsel %vm3793_vm2, %v15174_v56, 0.0  ;;  %v15182_v62 = vpop.eup %10547 }
 0x62e   : > { %18246 = vst [vmem:[#allocation14_spill] sm:$0xff] %v15182_v62  ;;  %v4802_v25 = vsel %vm3793_vm2, %v15182_v62, 0.0 }
 0x62f   : > { %v15168_v45 = vpop.xlane.xlu0 %4677 }
 0x630   : > { %4776 = vadd.xlane.f32.xlu1 %v4775_v6 }
 0x631   : > { %v15172_v31 = vpop.xlane.xlu1 %4101 }
 0x632   : > { %18243 = vst [vmem:[#allocation33_spill] sm:$0xff] %v15172_v31  ;;  %v18272_v31 = vld [vmem:[#allocation40_spill] sm:$0xff] }
 0x633   : > { %v15176_v42 = vpop.xlane.xlu0 %4671 }
 0x634   : > { %v15190_v21 = vpop.eup %10549 }
 0x635   : > { %v15178_v3 = vpop.xlane.xlu1 %4095  ;;  %18249 = vst [vmem:[#allocation23_spill] sm:$0xff] %v15190_v21  ;;  %v4784_v57 = vsel %vm3793_vm2, %v15190_v21, 0.0  ;;  %v15198_v18 = vpop.eup %10551  ;;  %v18256_v21 = vld [vmem:[#allocation113_spill] sm:$0xff] }
 0x636   : > { %18245 = vst [vmem:[#allocation26_spill] sm:$0xff] %v15178_v3  ;;  %18252 = vst [vmem:[#allocation27_spill] sm:$0xff] %v15198_v18 }
 0x637   : > { %4782 = vadd.xlane.f32.xlu0 %v4781_v50  ;;  %v15184_v52 = vpop.xlane.xlu0 %4149 }
 0x638   : > { %18247 = vst [vmem:[#allocation55_spill] sm:$0xff] %v15184_v52 }
 0x639   : > { %v15186_v6 = vpop.xlane.xlu1 %4104 }
 0x63a   : > { %18248 = vst [vmem:[#allocation154_spill] sm:$0xff] %v15186_v6  ;;  %v18254_v6 = vld [vmem:[#allocation6_spill] sm:$0xff] }
 0x63b   : > { %4803 = vadd.xlane.f32.xlu0 %v4802_v25  ;;  %v15192_v41 = vpop.xlane.xlu0 %4146  ;;  %v4808_v25 = vsel %vm3793_vm2, %v15198_v18, 0.0 }
 0x63c   : > { %18250 = vst [vmem:[#allocation151_spill] sm:$0xff] %v15192_v41 }
 0x63d   : > { %v15194_v2 = vpop.xlane.xlu1 %4098 }
 0x63e   : > { %18251 = vst [vmem:[#allocation9_spill] sm:$0xff] %v15194_v2 }
 0x63f   : > { %4785 = vadd.xlane.f32.xlu0 %v4784_v57  ;;  %v15200_v50 = vpop.xlane.xlu0 %4689 }
 0x641   : > { %v15202_v52 = vpop.xlane.xlu1 %4113  ;;  %5806 = vrot.lane.b32.xlu1 %v18254_v6, %s11061_s28 }
 0x642   : > { %18253 = vst [vmem:[#allocation160_spill] sm:$0xff] %v15202_v52 }
 0x643   : > { %4809 = vadd.xlane.f32.xlu0 %v4808_v25  ;;  %v15208_v41 = vpop.xlane.xlu0 %4683  ;;  %v18261_v25 = vld [vmem:[#allocation69_spill] sm:$0xff] }
 0x644   : > { %v4250_v18 = vsub.f32 %v18261_v25, %v14817_v35  ;;  %v18266_v35 = vld [vmem:[#allocation110_spill] sm:$0xff] }
 0x645   : > { %v15210_v62 = vpop.xlane.xlu1 %4107  ;;  %5889 = vrot.lane.b32.xlu1 %v18256_v21, %s11061_s28 }
 0x646   : > { %18255 = vst [vmem:[#allocation91_spill] sm:$0xff] %v15210_v62 }
 0x647   : > { %v15214_v2 = vpop.xlane.xlu0 %4161 }
 0x648   : > { %18257 = vst [vmem:[#allocation2_spill] sm:$0xff] %v15214_v2  ;;  %v4450_v2 = vmul.f32 1.442695, %v4250_v18  ;;  %v18269_v18 = vld [vmem:[#allocation64_spill] sm:$0xff] }
 0x649   : > { %v15216_v57 = vpop.xlane.xlu1 %4119 }
 0x64a   : > { %18258 = vst [vmem:[#allocation54_spill] sm:$0xff] %v15216_v57  ;;  %v18262_v57 = vld [vmem:[#allocation148_spill] sm:$0xff] }
 0x64b   : > { %v15218_v56 = vpop.xlane.xlu0 %4158 }
 0x64c   : > { %18259 = vst [vmem:[#allocation67_spill] sm:$0xff] %v15218_v56  ;;  %v4259_v56 = vsub.f32 %v18262_v57, %v15032_v27 }
 0x64d   : > { %v15220_v52 = vpop.xlane.xlu1 %4128 }
 0x64e   : > { %18260 = vst [vmem:[#allocation159_spill] sm:$0xff] %v15220_v52 }
 0x64f   : > { %v15222_v6 = vpop.xlane.xlu0 %4701 }
 0x651   : > { %v4669_v63 = vpop.xlane.xlu1 %4668 }
 0x652   : > { %10553 = vrcp.f32 %v4669_v63  ;;  %v4253_v63 = vsub.f32 %v18266_v35, %v14879_v12  ;;  %v18271_v35 = vld [vmem:[#allocation41_spill] sm:$0xff] }
 0x653   : > { %v15226_v48 = vpop.xlane.xlu0 %4695  ;;  %10555 = vrcp.f32 %v4660_v29  ;;  %v4468_v29 = vmul.f32 1.442695, %v4259_v56 }
 0x654   : > { %10557 = vrcp.f32 %v15130_v11  ;;  %v4456_v57 = vmul.f32 1.442695, %v4253_v63 }
 0x655   : > { %v4663_v21 = vpop.xlane.xlu1 %4662 }
 0x656   : > { %10559 = vrcp.f32 %v4663_v21 }
 0x657   : > { %v15231_v62 = vpop.xlane.xlu0 %4173  ;;  %10561 = vpow2.f32 %v4450_v2 }
 0x658   : > { %18263 = vst [vmem:[#allocation20_spill] sm:$0xff] %v15231_v62  ;;  %10563 = vpow2.f32 %v4468_v29 }
 0x659   : > { %v15233_v52 = vpop.xlane.xlu1 %4131  ;;  %5891 = vrot.lane.b32.xlu0 %v18265_v5, %s11061_s28  ;;  %10565 = vpow2.f32 %v4456_v57  ;;  %v18277_v57 = vld [vmem:[#allocation118_spill] sm:$0xff] }
 0x65a   : > { %18264 = vst [vmem:[#allocation81_spill] sm:$0xff] %v15233_v52  ;;  %v18270_v52 = vld [vmem:[#allocation25_spill] sm:$0xff] }
 0x65b   : > { %v15239_v25 = vpop.xlane.xlu0 %4170  ;;  %v4261_v38 = vsub.f32 %v18270_v52, %v15014_v32 }
 0x65c   : > { %18267 = vst [vmem:[#allocation98_spill] sm:$0xff] %v15239_v25  ;;  %v10554_v11 = vpop.eup %10553 }
 0x65d   : > { %v15241_v21 = vpop.xlane.xlu1 %4140  ;;  %5982 = vrot.lane.b32.xlu0 %v18269_v18, %s11061_s28  ;;  %v10556_v27 = vpop.eup %10555  ;;  %v5109_v56 = vmul.f32 %v10554_v11, %v14737_v30  ;;  %v4472_v34 = vmul.f32 1.442695, %v4261_v38  ;;  %v18276_v11 = vld [vmem:[#allocation137_spill] sm:$0xff] }
 0x65e   : > { %18268 = vst [vmem:[#allocation168_spill] sm:$0xff] %v15241_v21  ;;  %v10558_v62 = vpop.eup %10557  ;;  %v5106_v25 = vmul.f32 %v10556_v27, %v18271_v35 }
 0x65f   : > { %v15247_v5 = vpop.xlane.xlu0 %4713  ;;  %v5108_v18 = vmul.f32 %v10558_v62, %v18272_v31  ;;  %v18274_v31 = vld [vmem:[#allocation136_spill] sm:$0xff] }
 0x660   : > { %v10560_v12 = vpop.eup %10559 }
 0x661   : > { %v4681_v2 = vpop.xlane.xlu1 %4680  ;;  %v5107_v21 = vmul.f32 %v10560_v12, %v14772_v4  ;;  %v5219_v32 = vpack.c.bf16 %v5109_v56, %v5108_v18  ;;  %v15256_v52 = vpop.eup %10561  ;;  %v18273_v4 = vld [vmem:[#allocation131_spill] sm:$0xff]  ;;  %v4256_v12 = vsub.f32 %v18277_v57, %v14871_v33 }
 0x662   : > { %10567 = vrcp.f32 %v4681_v2  ;;  %v4255_v29 = vsub.f32 %v18273_v4, %v14968_v36  ;;  %v18275_v36 = vld [vmem:[#allocation145_spill] sm:$0xff] }
 0x663   : > { %v15253_v63 = vpop.xlane.xlu0 %4707  ;;  %v5218_v3 = vpack.c.bf16 %v5107_v21, %v5106_v25  ;;  %10569 = vrcp.f32 %v15176_v42  ;;  %v4778_v42 = vsel %vm3793_vm2, %v15256_v52, 0.0  ;;  %v4262_v25 = vsub.f32 %v18275_v36, %v15026_v13 }
 0x664   : > { %10571 = vrcp.f32 %v15168_v45  ;;  %v15269_v45 = vpop.eup %10563  ;;  %v4462_v33 = vmul.f32 1.442695, %v4256_v12 }
 0x665   : > { %v4675_v30 = vpop.xlane.xlu1 %4674  ;;  %9635 = vmatprep.mubr.msk.bf16.mxu1 %vm3793_vm2, %v5218_v3  ;;  %v4460_v3 = vmul.f32 1.442695, %v4255_v29  ;;  %v4805_v21 = vsel %vm3793_vm2, %v15269_v45, 0.0  ;;  %v4474_v13 = vmul.f32 1.442695, %v4262_v25  ;;  %v18279_v25 = vld [vmem:[#allocation35_spill] sm:$0xff] }
 0x666   : > { %10573 = vrcp.f32 %v4675_v30  ;;  %9636 = vmatmul.mubr.msk.bf16.vlgmr.msra.gmra.mrb[72].mxu1 %vm3793_vm2, %v5219_v32 }
 0x667   : > { %10575 = vpow2.f32 %v4472_v34  ;;  %9660 = vmatpush3.bf16.msra.mxu1 %v18190_v15  ;;  %v15264_v38 = vpop.xlane.xlu0 %4725  ;;  %v15278_v15 = vpop.eup %10565 }
 0x668   : > { %9661 = vmatprep.subr.bf16.mxu1 %v18274_v31  ;;  %10577 = vpow2.f32 %v4460_v3  ;;  %v4787_v30 = vsel %vm3793_vm2, %v15278_v15, 0.0 }
 0x669   : > { %v15271_v62 = vpop.xlane.xlu1 %4143  ;;  %4779 = vadd.xlane.f32.xlu1 %v4778_v42  ;;  %10579 = vpow2.f32 %v4474_v13 }
 0x66a   : > { %10581 = vrcp.f32 %v15208_v41 }
 0x66b   : > { %9662 = vmatpush3.bf16.msra.mxu1 %v18274_v31  ;;  %v15276_v34 = vpop.xlane.xlu0 %4719  ;;  %10583 = vpow2.f32 %v4462_v33 }
 0x66c   : > { %9663 = vmatprep.subr.bf16.mxu1 %v18276_v11  ;;  %v10568_v27 = vpop.eup %10567 }
 0x66d   : > { %v15285_v56 = vpop.xlane.xlu1 %4152  ;;  %4806 = vadd.xlane.f32.xlu1 %v4805_v21  ;;  %v10570_v2 = vpop.eup %10569  ;;  %v5113_v4 = vmul.f32 %v10568_v27, %v14810_v49 }
 0x66e   : > { %v10572_v35 = vpop.eup %10571  ;;  %v5110_v3 = vmul.f32 %v10570_v2, %v14614_v39 }
 0x66f   : > { %9664 = vmatpush3.bf16.msra.mxu1 %v18276_v11  ;;  %v15288_v18 = vpop.xlane.xlu0 %4737  ;;  %v4264_v11 = vsub.f32 %v18279_v25, %v15008_v10  ;;  %v5112_v57 = vmul.f32 %v10572_v35, %v14590_v16 }
 0x670   : > { %v10574_v32 = vpop.eup %10573 }
 0x671   : > { %v15293_v29 = vpop.eup %10575  ;;  %v4693_v31 = vpop.xlane.xlu1 %4692  ;;  %4788 = vadd.xlane.f32.xlu1 %v4787_v30  ;;  %v5111_v36 = vmul.f32 %v10574_v32, %v14853_v40  ;;  %v5221_v40 = vpack.c.bf16 %v5113_v4, %v5112_v57  ;;  %v4478_v2 = vmul.f32 1.442695, %v4264_v11 }
 0x672   : > { %v15295_v42 = vpop.f32.mrb[96].mxu0  ;;  %v4811_v39 = vsel %vm3793_vm2, %v15293_v29, 0.0  ;;  %v15317_v13 = vpop.eup %10577 }
 0x673   : > { %18278 = vst [vmem:[#allocation155_spill] sm:$0xff] %v15295_v42  ;;  %v15301_v21 = vpop.f32.mrb[97].mxu0  ;;  %v15306_v27 = vpop.xlane.xlu0 %4731  ;;  %v5220_v12 = vpack.c.bf16 %v5111_v36, %v5110_v3  ;;  %v4793_v32 = vsel %vm3793_vm2, %v15317_v13, 0.0 }
 0x674   : > { %18280 = vst [vmem:[#allocation122_spill] sm:$0xff] %v15301_v21  ;;  %v15304_v49 = vpop.f32.mrb[98].mxu0  ;;  %v15325_v4 = vpop.eup %10579 }
 0x675   : > { %18281 = vst [vmem:[#allocation42_spill] sm:$0xff] %v15304_v49  ;;  %v15309_v30 = vpop.f32.mrb[99].mxu0  ;;  %v4687_v10 = vpop.xlane.xlu1 %4686  ;;  %4812 = vadd.xlane.f32.xlu1 %v4811_v39  ;;  %9639 = vmatprep.mubr.msk.bf16.mxu1 %vm3793_vm2, %v5220_v12  ;;  %v4814_v11 = vsel %vm3793_vm2, %v15325_v4, 0.0 }
 0x676   : > { %18282 = vst [vmem:[#allocation8_spill] sm:$0xff] %v15309_v30  ;;  %10585 = vrcp.f32 %v4687_v10  ;;  %9640 = vmatmul.mubr.msk.bf16.gmra.mrb[76].mxu1 %vm3793_vm2, %v5221_v40  ;;  %v10582_v3 = vpop.eup %10581 }
 0x677   : > { %v15315_v16 = vpop.xlane.xlu0 %4761  ;;  %10587 = vpow2.f32 %v4478_v2  ;;  %v15329_v36 = vpop.eup %10583  ;;  %v5114_v40 = vmul.f32 %v10582_v3, %v14696_v0 }
 0x678   : > { %10589 = vrcp.f32 %v4693_v31  ;;  %v4796_v30 = vsel %vm3793_vm2, %v15329_v36, 0.0 }
 0x679   : > { %v15319_v41 = vpop.xlane.xlu1 %4155  ;;  %10591 = vrcp.f32 %v15200_v50 }
 0x67a   : > { %10593 = vrcp.f32 %v15226_v48  ;;  %v18289_v48 = vld [vmem:[#allocation112_spill] sm:$0xff] }
 0x67b   : > { %v15321_v35 = vpop.xlane.xlu0 %4755 }
 0x67c   : > { %4794 = vadd.xlane.f32.xlu0 %v4793_v32 }
 0x67d   : > { %v15327_v33 = vpop.xlane.xlu1 %4164 }
 0x67f   : > { %v15331_v25 = vpop.xlane.xlu0 %4746 }
 0x680   : > { %v10586_v57 = vpop.eup %10585  ;;  %4815 = vadd.xlane.f32.xlu0 %v4814_v11 }
 0x681   : > { %v4705_v12 = vpop.xlane.xlu1 %4704  ;;  %v15335_v39 = vpop.f32.mrb[100].mxu0  ;;  %v5115_v10 = vmul.f32 %v10586_v57, %v14922_v46  ;;  %v18287_v46 = vld [vmem:[#allocation56_spill] sm:$0xff] }
 0x682   : > { %18283 = vst [vmem:[#allocation164_spill] sm:$0xff] %v15335_v39  ;;  %v15339_v2 = vpop.f32.mrb[101].mxu0  ;;  %v15348_v31 = vpop.eup %10587 }
 0x683   : > { %18284 = vst [vmem:[#allocation11_spill] sm:$0xff] %v15339_v2  ;;  %v15342_v32 = vpop.f32.mrb[102].mxu0  ;;  %v15344_v21 = vpop.xlane.xlu0 %4767  ;;  %v5222_v11 = vpack.c.bf16 %v5115_v10, %v5114_v40  ;;  %v4820_v3 = vsel %vm3793_vm2, %v15348_v31, 0.0 }
 0x684   : > { %18285 = vst [vmem:[#allocation171_spill] sm:$0xff] %v15342_v32  ;;  %v15351_v39 = vpop.f32.mrb[103].mxu0  ;;  %4797 = vadd.xlane.f32.xlu0 %v4796_v30  ;;  %v10590_v30 = vpop.eup %10589 }
 0x685   : > { %18286 = vst [vmem:[#allocation169_spill] sm:$0xff] %v15351_v39  ;;  %v4699_v0 = vpop.xlane.xlu1 %4698  ;;  %9651 = vmatprep.mubr.msk.bf16.mxu0 %vm3793_vm2, %v5222_v11  ;;  %v10592_v10 = vpop.eup %10591 }
 0x686   : > { %10595 = vrcp.f32 %v4699_v0  ;;  %5980 = vrot.lane.b32.xlu1 %v18287_v46, %s11061_s28  ;;  %v10594_v0 = vpop.eup %10593  ;;  %v5117_v46 = vmul.f32 %v10590_v30, %v14887_v1 }
 0x687   : > { %v15356_v50 = vpop.xlane.xlu0 %4749  ;;  %10597 = vrcp.f32 %v4705_v12  ;;  %v5116_v12 = vmul.f32 %v10592_v10, %v14680_v60 }
 0x688   : > { %4821 = vadd.xlane.f32.xlu0 %v4820_v3  ;;  %10599 = vrcp.f32 %v15222_v6 }
 0x689   : > { %v15360_v57 = vpop.xlane.xlu1 %4167  ;;  %v5223_v32 = vpack.c.bf16 %v5117_v46, %v5116_v12  ;;  %10601 = vrcp.f32 %v15253_v63 }
 0x68a   : > { %18288 = vst [vmem:[#allocation10_spill] sm:$0xff] %v15360_v57  ;;  %5893 = vrot.lane.b32.xlu1 %v18289_v48, %s11061_s28  ;;  %v5118_v48 = vmul.f32 %v10594_v0, %v14763_v43 }
 0x68b   : > { %v15365_v40 = vpop.xlane.xlu0 %4773 }
 0x68d   : > { %v15367_v11 = vpop.xlane.xlu1 %4176 }
 0x68e   : > { %18290 = vst [vmem:[#allocation124_spill] sm:$0xff] %v15367_v11 }
 0x68f   : > { %v5718_v2 = vpop.permute.xlu0 %5717 }
 0x690   : > { %v10596_v39 = vpop.eup %10595  ;;  %9649 = vmatprep.subr.bf16.mxu0 %v5718_v2 }
 0x691   : > { %v15371_v3 = vpop.xlane.xlu1 %4716  ;;  %9650 = vmatpush3.bf16.msra.mxu0 %v5718_v2  ;;  %v5119_v6 = vmul.f32 %v10596_v39, %v14991_v54  ;;  %v10598_v42 = vpop.eup %10597  ;;  %v18291_v2 = vld [vmem:[#allocation63_spill] sm:$0xff] }
 0x692   : > { %v10600_v1 = vpop.eup %10599  ;;  %v5121_v60 = vmul.f32 %v10598_v42, %v14954_v53  ;;  %v4254_v10 = vsub.f32 %v18291_v2, %v14892_v59 }
 0x693   : > { %v5224_v49 = vpack.c.bf16 %v5119_v6, %v5118_v48  ;;  %v5120_v43 = vmul.f32 %v10600_v1, %v14746_v7  ;;  %v10602_v53 = vpop.eup %10601  ;;  %v18297_v7 = vld [vmem:[#allocation103_spill] sm:$0xff]  ;;  %v18298_v1 = vld [vmem:[#allocation129_spill] sm:$0xff] }
 0x694   : > { %9652 = vmatmul.mubr.msk.bf16.vlgmr.msra.gmra.mrb[120].mxu0 %vm3793_vm2, %v5223_v32  ;;  %v18294_v32 = vld [vmem:[#allocation165_spill] sm:$0xff] }
 0x695   : > { %v4711_v30 = vpop.xlane.xlu1 %4710  ;;  %9655 = vmatprep.mubr.msk.bf16.mxu0 %vm3793_vm2, %v5224_v49  ;;  %v5225_v63 = vpack.c.bf16 %v5121_v60, %v5120_v43  ;;  %v4263_v46 = vsub.f32 %v18294_v32, %v15079_v23  ;;  %v4458_v49 = vmul.f32 1.442695, %v4254_v10  ;;  %v5122_v23 = vmul.f32 %v10602_v53, %v14841_v37  ;;  %v18299_v10 = vld [vmem:[#allocation99_spill] sm:$0xff]  ;;  %v18300_v32 = vld [vmem:[#allocation161_spill] sm:$0xff] }
 0x696   : > { %10603 = vrcp.f32 %v4711_v30  ;;  %v4257_v30 = vsub.f32 %v18298_v1, %v14946_v61 }
 0x697   : > { %v4476_v42 = vmul.f32 1.442695, %v4263_v46  ;;  %10605 = vpow2.f32 %v4458_v49  ;;  %v4265_v46 = vsub.f32 %v18300_v32, %v15065_v55 }
 0x699   : > { %v15382_v54 = vpop.xlane.xlu1 %4728  ;;  %v15384_v39 = vpop.f32.mrb[104].mxu0  ;;  %10607 = vpow2.f32 %v4476_v42  ;;  %v4480_v61 = vmul.f32 1.442695, %v4265_v46 }
 0x69a   : > { %18292 = vst [vmem:[#allocation84_spill] sm:$0xff] %v15384_v39  ;;  %v15386_v0 = vpop.f32.mrb[105].mxu0  ;;  %10609 = vrcp.f32 %v15306_v27 }
 0x69b   : > { %18293 = vst [vmem:[#allocation140_spill] sm:$0xff] %v15386_v0  ;;  %v15390_v12 = vpop.f32.mrb[106].mxu0 }
 0x69c   : > { %18295 = vst [vmem:[#allocation5_spill] sm:$0xff] %v15390_v12  ;;  %v15392_v48 = vpop.f32.mrb[107].mxu0  ;;  %9656 = vmatmul.mubr.msk.bf16.gmra.mrb[124].mxu0 %vm3793_vm2, %v5225_v63  ;;  %v4464_v63 = vmul.f32 1.442695, %v4257_v30 }
 0x69d   : > { %18296 = vst [vmem:[#allocation167_spill] sm:$0xff] %v15392_v48  ;;  %v4723_v59 = vpop.xlane.xlu1 %4722 }
 0x69e   : > { %5895 = vrot.lane.b32.xlu0 %v18297_v7, %s11061_s28  ;;  %v18302_v7 = vld [vmem:[#allocation173_spill] sm:$0xff] }
 0x69f   : > { %v4267_v42 = vsub.f32 %v18302_v7, %v15104_v17 }
 0x6a0   : > { %v10604_v6 = vpop.eup %10603 }
 0x6a1   : > { %v15399_v60 = vpop.xlane.xlu1 %4740  ;;  %v5123_v2 = vmul.f32 %v10604_v6, %v15050_v20  ;;  %v15413_v53 = vpop.eup %10605 }
 0x6a2   : > { %6156 = vrot.lane.b32.xlu0 %v18299_v10, %s11061_s28  ;;  %v4484_v10 = vmul.f32 1.442695, %v4267_v42 }
 0x6a3   : > { %v5226_v43 = vpack.c.bf16 %v5123_v2, %v5122_v23  ;;  %v15423_v1 = vpop.eup %10607  ;;  %v4790_v23 = vsel %vm3793_vm2, %v15413_v53, 0.0 }
 0x6a4   : > { %v10610_v2 = vpop.eup %10609  ;;  %v4817_v46 = vsel %vm3793_vm2, %v15423_v1, 0.0 }
 0x6a5   : > { %v4735_v49 = vpop.xlane.xlu1 %4734  ;;  %9667 = vmatprep.mubr.msk.bf16.mxu1 %vm3793_vm2, %v5226_v43  ;;  %v18306_v43 = vld [vmem:[#allocation163_spill] sm:$0xff] }
 0x6a6   : > { %10611 = vrcp.f32 %v4735_v49  ;;  %v5130_v49 = vmul.f32 %v10610_v2, %v14913_v19 }
 0x6a7   : > { %10613 = vpow2.f32 %v4464_v63  ;;  %v4274_v63 = vsub.f32 %v18306_v43, %v15072_v22 }
 0x6a8   : > { %10615 = vpow2.f32 %v4480_v61 }
 0x6a9   : > { %v15409_v37 = vpop.xlane.xlu1 %4764  ;;  %v15411_v20 = vpop.f32.mrb[108].mxu0  ;;  %10617 = vpow2.f32 %v4484_v10  ;;  %v4498_v42 = vmul.f32 1.442695, %v4274_v63 }
 0x6aa   : > { %18301 = vst [vmem:[#allocation87_spill] sm:$0xff] %v15411_v20  ;;  %v15417_v6 = vpop.f32.mrb[109].mxu0  ;;  %10619 = vrcp.f32 %v15371_v3 }
 0x6ab   : > { %18303 = vst [vmem:[#allocation30_spill] sm:$0xff] %v15417_v6  ;;  %v15419_v55 = vpop.f32.mrb[110].mxu0  ;;  %v18307_v6 = vld [vmem:[#allocation150_spill] sm:$0xff]  ;;  %10621 = vrcp.f32 %v4723_v59 }
 0x6ac   : > { %18304 = vst [vmem:[#allocation134_spill] sm:$0xff] %v15419_v55  ;;  %v15421_v27 = vpop.f32.mrb[111].mxu0  ;;  %10623 = vrcp.f32 %v15247_v5 }
 0x6ad   : > { %18305 = vst [vmem:[#allocation172_spill] sm:$0xff] %v15421_v27  ;;  %v4759_v30 = vpop.xlane.xlu1 %4758  ;;  %v4268_v27 = vsub.f32 %v18307_v6, %v15036_v28  ;;  %10625 = vrcp.f32 %v15276_v34  ;;  %v18308_v28 = vld [vmem:[#allocation158_spill] sm:$0xff] }
 0x6ae   : > { %4791 = vadd.xlane.f32.xlu1 %v4790_v23  ;;  %v4276_v3 = vsub.f32 %v18308_v28, %v15058_v8  ;;  %10627 = vpow2.f32 %v4498_v42  ;;  %v5979_v42 = vpop.permute.xlu0 %5978 }
 0x6af   : > { %v4486_v2 = vmul.f32 1.442695, %v4268_v27 }
 0x6b0   : > { %v10612_v17 = vpop.eup %10611  ;;  %v4502_v43 = vmul.f32 1.442695, %v4276_v3 }
 0x6b1   : > { %v15429_v32 = vpop.xlane.xlu1 %4743  ;;  %v5131_v61 = vmul.f32 %v10612_v17, %v15100_v24  ;;  %v15435_v7 = vpop.eup %10613  ;;  %10629 = vpow2.f32 %v4486_v2  ;;  %v18313_v2 = vld [vmem:[#allocation15_spill] sm:$0xff] }
 0x6b2   : > { %4818 = vadd.xlane.f32.xlu1 %v4817_v46  ;;  %v4799_v19 = vsel %vm3793_vm2, %v15435_v7, 0.0  ;;  %v15446_v24 = vpop.eup %10615  ;;  %10631 = vrcp.f32 %v15382_v54 }
 0x6b3   : > { %v5230_v22 = vpack.c.bf16 %v5131_v61, %v5130_v49  ;;  %v4823_v6 = vsel %vm3793_vm2, %v15446_v24, 0.0  ;;  %v15462_v27 = vpop.eup %10617  ;;  %10633 = vrcp.f32 %v4759_v30 }
 0x6b4   : > { %v10620_v63 = vpop.eup %10619  ;;  %10635 = vrcp.f32 %v15264_v38 }
 0x6b5   : > { %v15441_v23 = vpop.xlane.xlu1 %4770  ;;  %9683 = vmatprep.mubr.msk.bf16.mxu0 %vm3793_vm2, %v5230_v22  ;;  %v10622_v46 = vpop.eup %10621  ;;  %10637 = vrcp.f32 %v15321_v35  ;;  %v5125_v54 = vmul.f32 %v10620_v63, %v15030_v47  ;;  %v4829_v22 = vsel %vm3793_vm2, %v15462_v27, 0.0  ;;  %v18314_v35 = vld [vmem:[#allocation162_spill] sm:$0xff] }
 0x6b6   : > { %4800 = vadd.xlane.f32.xlu1 %v4799_v19  ;;  %v10624_v49 = vpop.eup %10623  ;;  %10639 = vpow2.f32 %v4502_v43  ;;  %v5127_v38 = vmul.f32 %v10622_v46, %v15069_v58 }
 0x6b7   : > { %v10626_v61 = vpop.eup %10625  ;;  %v5124_v28 = vmul.f32 %v10624_v49, %v18313_v2 }
 0x6b8   : > { %v15473_v30 = vpop.eup %10627  ;;  %v5126_v3 = vmul.f32 %v10626_v61, %v18314_v35 }
 0x6b9   : > { %v15451_v59 = vpop.xlane.xlu1 %4752  ;;  %v15453_v5 = vpop.f32.mrb[64].mxu1  ;;  %v5227_v43 = vpack.c.bf16 %v5125_v54, %v5124_v28  ;;  %v4850_v63 = vsel %vm3793_vm2, %v15473_v30, 0.0 }
 0x6ba   : > { %18309 = vst [vmem:[#allocation13_spill] sm:$0xff] %v15453_v5  ;;  %v15457_v10 = vpop.f32.mrb[65].mxu1  ;;  %4824 = vadd.xlane.f32.xlu1 %v4823_v6 }
 0x6bb   : > { %18310 = vst [vmem:[#allocation177_spill] sm:$0xff] %v15457_v10  ;;  %v15460_v34 = vpop.f32.mrb[66].mxu1  ;;  %v15478_v6 = vpop.eup %10629 }
 0x6bc   : > { %18311 = vst [vmem:[#allocation176_spill] sm:$0xff] %v15460_v34  ;;  %v15464_v8 = vpop.f32.mrb[67].mxu1  ;;  %v10632_v10 = vpop.eup %10631  ;;  %v4832_v54 = vsel %vm3793_vm2, %v15478_v6, 0.0 }
 0x6bd   : > { %18312 = vst [vmem:[#allocation107_spill] sm:$0xff] %v15464_v8  ;;  %v15467_v17 = vpop.xlane.xlu1 %4776  ;;  %v10634_v58 = vpop.eup %10633 }
 0x6be   : > { %v10636_v46 = vpop.eup %10635  ;;  %v5139_v35 = vmul.f32 %v10634_v58, %v15126_v26  ;;  %v18324_v58 = vld [vmem:[#allocation83_spill] sm:$0xff] }
 0x6bf   : > { %v10638_v49 = vpop.eup %10637 }
 0x6c0   : > { %v15491_v28 = vpop.eup %10639 }
 0x6c1   : > { %v5807_v19 = vpop.permute.xlu1 %5806  ;;  %4830 = vadd.xlane.f32.xlu0 %v4829_v22  ;;  %v5228_v22 = vpack.c.bf16 %v5127_v38, %v5126_v3  ;;  %18316 = vst [vmem:[#allocation37_spill] sm:$0xff] %v15491_v28 }
 0x6c2   : > { %9665 = vmatprep.subr.bf16.mxu1 %v5807_v19 }
 0x6c3   : > { %9666 = vmatpush3.bf16.msra.mxu1 %v5807_v19  ;;  %v18315_v19 = vld [vmem:[#allocation174_spill] sm:$0xff] }
 0x6c4   : > { %9691 = vmatprep.subr.bf16.mxu1 %v5979_v42  ;;  %v15480_v47 = vpop.xlane.xlu0 %4782  ;;  %v5129_v2 = vmul.f32 %v10632_v10, %v18315_v19 }
 0x6c5   : > { %v5890_v8 = vpop.permute.xlu1 %5889  ;;  %4851 = vadd.xlane.f32.xlu0 %v4850_v63 }
 0x6c6   : > { %9668 = vmatmul.mubr.msk.bf16.vlgmr.msra.gmra.mrb[80].mxu1 %vm3793_vm2, %v5227_v43  ;;  %9675 = vmatprep.subr.bf16.mxu0 %v5890_v8  ;;  %v18319_v43 = vld [vmem:[#allocation127_spill] sm:$0xff] }
 0x6c7   : > { %9671 = vmatprep.mubr.msk.bf16.mxu1 %vm3793_vm2, %v5228_v22  ;;  %9676 = vmatpush3.bf16.msra.mxu0 %v5890_v8  ;;  %v5128_v8 = vmul.f32 %v10636_v46, %v18319_v43  ;;  %v18322_v22 = vld [vmem:[#allocation34_spill] sm:$0xff] }
 0x6c8   : > { %9692 = vmatpush3.bf16.msra.mxu1 %v5979_v42  ;;  %v15486_v61 = vpop.xlane.xlu0 %4803  ;;  %v18321_v42 = vld [vmem:[#allocation58_spill] sm:$0xff]  ;;  %v5138_v5 = vmul.f32 %v10638_v49, %v18322_v22 }
 0x6c9   : > { %v15493_v38 = vpop.f32.mrb[68].mxu1  ;;  %4833 = vadd.xlane.f32.xlu0 %v4832_v54  ;;  %v4856_v54 = vsel %vm3793_vm2, %v15491_v28, 0.0  ;;  %v5229_v19 = vpack.c.bf16 %v5129_v2, %v5128_v8 }
 0x6ca   : > { %18317 = vst [vmem:[#allocation181_spill] sm:$0xff] %v15493_v38  ;;  %v15496_v3 = vpop.f32.mrb[69].mxu1  ;;  %v5234_v26 = vpack.c.bf16 %v5139_v35, %v5138_v5  ;;  %v18329_v5 = vld [vmem:[#allocation128_spill] sm:$0xff] }
 0x6cb   : > { %18318 = vst [vmem:[#allocation141_spill] sm:$0xff] %v15496_v3  ;;  %v15499_v63 = vpop.f32.mrb[70].mxu1  ;;  %5984 = vrot.lane.b32.xlu1 %v18321_v42, %s11061_s28  ;;  %v18330_v35 = vld [vmem:[#allocation156_spill] sm:$0xff] }
 0x6cc   : > { %18320 = vst [vmem:[#allocation138_spill] sm:$0xff] %v15499_v63  ;;  %v15504_v34 = vpop.f32.mrb[71].mxu1  ;;  %v15506_v10 = vpop.xlane.xlu0 %4785  ;;  %v4266_v8 = vsub.f32 %v18330_v35, %v18329_v5 }
 0x6cd   : > { %18323 = vst [vmem:[#allocation96_spill] sm:$0xff] %v15504_v34  ;;  %4857 = vadd.xlane.f32.xlu0 %v4856_v54 }
 0x6ce   : > { %9672 = vmatmul.mubr.msk.bf16.gmra.mrb[84].mxu1 %vm3793_vm2, %v5229_v19  ;;  %v4482_v54 = vmul.f32 1.442695, %v4266_v8  ;;  %v18331_v19 = vld [vmem:[#allocation188_spill] sm:$0xff] }
 0x6cf   : > { %6067 = vrot.lane.b32.xlu1 %v18324_v58, %s11061_s28  ;;  %9699 = vmatprep.mubr.msk.bf16.mxu1 %vm3793_vm2, %v5234_v26  ;;  %v4275_v26 = vsub.f32 %v18331_v19, %v15166_v51  ;;  %v18332_v58 = vld [vmem:[#allocation76_spill] sm:$0xff]  ;;  %v18340_v19 = vld [vmem:[#allocation183_spill] sm:$0xff] }
 0x6d0   : > { %v15514_v46 = vpop.xlane.xlu0 %4809  ;;  %10641 = vpow2.f32 %v4482_v54 }
 0x6d1   : > { %v4500_v3 = vmul.f32 1.442695, %v4275_v26  ;;  %v18342_v26 = vld [vmem:[#allocation39_spill] sm:$0xff] }
 0x6d3   : > { %10643 = vpow2.f32 %v4500_v3 }
 0x6d4   : > { %v5892_v49 = vpop.permute.xlu0 %5891 }
 0x6d5   : > { %9677 = vmatprep.subr.bf16.mxu0 %v5892_v49 }
 0x6d6   : > { %9678 = vmatpush3.bf16.msra.mxu0 %v5892_v49  ;;  %v18333_v49 = vld [vmem:[#allocation170_spill] sm:$0xff] }
 0x6d9   : > { %v15516_v43 = vpop.f32.mrb[112].mxu0 }
 0x6da   : > { %18325 = vst [vmem:[#allocation185_spill] sm:$0xff] %v15516_v43  ;;  %v15518_v42 = vpop.f32.mrb[113].mxu0  ;;  %v4269_v43 = vsub.f32 %v18333_v49, %v15089_v14  ;;  %v15544_v14 = vpop.eup %10641 }
 0x6db   : > { %18326 = vst [vmem:[#allocation17_spill] sm:$0xff] %v15518_v42  ;;  %v15520_v22 = vpop.f32.mrb[114].mxu0  ;;  %v18334_v42 = vld [vmem:[#allocation95_spill] sm:$0xff] }
 0x6dc   : > { %18327 = vst [vmem:[#allocation82_spill] sm:$0xff] %v15520_v22  ;;  %v15522_v2 = vpop.f32.mrb[115].mxu0  ;;  %v4488_v22 = vmul.f32 1.442695, %v4269_v43 }
 0x6dd   : > { %18328 = vst [vmem:[#allocation43_spill] sm:$0xff] %v15522_v2  ;;  %v18335_v2 = vld [vmem:[#allocation186_spill] sm:$0xff]  ;;  %v15550_v3 = vpop.eup %10643 }
 0x6de   : > { %v4277_v34 = vsub.f32 %v18335_v2, %v15156_v9  ;;  %10645 = vpow2.f32 %v4488_v22  ;;  %v4826_v9 = vsel %vm3793_vm2, %v15544_v14, 0.0  ;;  %v18341_v2 = vld [vmem:[#allocation26_spill] sm:$0xff] }
 0x6e0   : > { %v4504_v54 = vmul.f32 1.442695, %v4277_v34  ;;  %v4853_v34 = vsel %vm3793_vm2, %v15550_v3, 0.0 }
 0x6e2   : > { %10647 = vpow2.f32 %v4504_v54 }
 0x6e3   : > { %6069 = vrot.lane.b32.xlu0 %v18332_v58, %s11061_s28  ;;  %v4278_v58 = vsub.f32 %v18342_v26, %v18341_v2  ;;  %v18345_v26 = vld [vmem:[#allocation33_spill] sm:$0xff] }
 0x6e7   : > { %6160 = vrot.lane.b32.xlu0 %v18334_v42, %s11061_s28  ;;  %v4271_v42 = vsub.f32 %v18340_v19, %v15146_v44  ;;  %v18344_v44 = vld [vmem:[#allocation178_spill] sm:$0xff]  ;;  %v4506_v19 = vmul.f32 1.442695, %v4278_v58 }
 0x6e8   : > { %v15556_v22 = vpop.eup %10645 }
 0x6e9   : > { %v15536_v5 = vpop.f32.mrb[116].mxu0  ;;  %v4492_v43 = vmul.f32 1.442695, %v4271_v42  ;;  %v4835_v42 = vsel %vm3793_vm2, %v15556_v22, 0.0 }
 0x6ea   : > { %18336 = vst [vmem:[#allocation126_spill] sm:$0xff] %v15536_v5  ;;  %v15538_v35 = vpop.f32.mrb[117].mxu0  ;;  %v18346_v5 = vld [vmem:[#allocation53_spill] sm:$0xff] }
 0x6eb   : > { %18337 = vst [vmem:[#allocation93_spill] sm:$0xff] %v15538_v35  ;;  %v15540_v51 = vpop.f32.mrb[118].mxu0  ;;  %v18343_v35 = vld [vmem:[#allocation147_spill] sm:$0xff]  ;;  %10649 = vpow2.f32 %v4492_v43 }
 0x6ec   : > { %18338 = vst [vmem:[#allocation135_spill] sm:$0xff] %v15540_v51  ;;  %v15542_v8 = vpop.f32.mrb[119].mxu0  ;;  %v4272_v54 = vsub.f32 %v18344_v44, %v18343_v35  ;;  %v4280_v51 = vsub.f32 %v18346_v5, %v18345_v26  ;;  %10651 = vpow2.f32 %v4506_v19  ;;  %v5983_v44 = vpop.permute.xlu0 %5982 }
 0x6ed   : > { %18339 = vst [vmem:[#allocation16_spill] sm:$0xff] %v15542_v8 }
 0x6ee   : > { %v4494_v2 = vmul.f32 1.442695, %v4272_v54  ;;  %v4510_v43 = vmul.f32 1.442695, %v4280_v51 }
 0x6f0   : > { %10653 = vpow2.f32 %v4494_v2 }
 0x6f1   : > { %10655 = vpow2.f32 %v4510_v43 }
 0x6f2   : > { %10657 = vrcp.f32 %v15399_v60 }
 0x6f3   : > { %4827 = vadd.xlane.f32.xlu1 %v4826_v9  ;;  %v15564_v9 = vpop.eup %10647  ;;  %10659 = vrcp.f32 %v15429_v32 }
 0x6f4   : > { %v4859_v35 = vsel %vm3793_vm2, %v15564_v9, 0.0  ;;  %10661 = vrcp.f32 %v15288_v18  ;;  %v18350_v18 = vld [vmem:[#allocation85_spill] sm:$0xff] }
 0x6f5   : > { %v15572_v58 = vpop.eup %10649  ;;  %10663 = vrcp.f32 %v15331_v25 }
 0x6f6   : > { %v4780_v49 = vpop.xlane.xlu1 %4779  ;;  %v4841_v54 = vsel %vm3793_vm2, %v15572_v58, 0.0  ;;  %10665 = vrcp.f32 %v15451_v59  ;;  %v18353_v59 = vld [vmem:[#allocation125_spill] sm:$0xff] }
 0x6f7   : > { %4854 = vadd.xlane.f32.xlu1 %v4853_v34  ;;  %10667 = vrcp.f32 %v4780_v49 }
 0x6f8   : > { %10669 = vrcp.f32 %v15356_v50 }
 0x6f9   : > { %10671 = vrcp.f32 %v15480_v47 }
 0x6fa   : > { %v15560_v8 = vpop.xlane.xlu1 %4806 }
 0x6fb   : > { %4836 = vadd.xlane.f32.xlu1 %v4835_v42  ;;  %v15578_v42 = vpop.eup %10651 }
 0x6fc   : > { %18347 = vst [vmem:[#allocation153_spill] sm:$0xff] %v15578_v42  ;;  %v4862_v51 = vsel %vm3793_vm2, %v15578_v42, 0.0  ;;  %v15584_v2 = vpop.eup %10653 }
 0x6fd   : > { %v4844_v43 = vsel %vm3793_vm2, %v15584_v2, 0.0 }
 0x6fe   : > { %v15568_v38 = vpop.xlane.xlu1 %4788 }
 0x6ff   : > { %4860 = vadd.xlane.f32.xlu1 %v4859_v35 }
 0x702   : > { %v15574_v34 = vpop.xlane.xlu1 %4812 }
 0x706   : > { %v5981_v5 = vpop.permute.xlu1 %5980  ;;  %4842 = vadd.xlane.f32.xlu0 %v4841_v54  ;;  %v15593_v54 = vpop.eup %10655 }
 0x707   : > { %9693 = vmatprep.subr.bf16.mxu1 %v5981_v5  ;;  %18348 = vst [vmem:[#allocation143_spill] sm:$0xff] %v15593_v54  ;;  %v4868_v32 = vsel %vm3793_vm2, %v15593_v54, 0.0 }
 0x708   : > { %9694 = vmatpush3.bf16.msra.mxu1 %v5981_v5  ;;  %v18349_v5 = vld [vmem:[#allocation88_spill] sm:$0xff] }
 0x709   : > { %9695 = vmatprep.subr.bf16.mxu1 %v5983_v44  ;;  %v15580_v19 = vpop.xlane.xlu0 %4794 }
 0x70a   : > { %v5894_v26 = vpop.permute.xlu1 %5893  ;;  %4863 = vadd.xlane.f32.xlu0 %v4862_v51 }
 0x70b   : > { %9679 = vmatprep.subr.bf16.mxu0 %v5894_v26 }
 0x70c   : > { %9680 = vmatpush3.bf16.msra.mxu0 %v5894_v26  ;;  %9696 = vmatpush3.bf16.msra.mxu1 %v5983_v44  ;;  %v10658_v44 = vpop.eup %10657 }
 0x70d   : > { %v15589_v35 = vpop.xlane.xlu0 %4815  ;;  %v10660_v51 = vpop.eup %10659 }
 0x70e   : > { %4845 = vadd.xlane.f32.xlu0 %v4844_v43  ;;  %v10662_v26 = vpop.eup %10661 }
 0x70f   : > { %v10664_v43 = vpop.eup %10663  ;;  %v5132_v49 = vmul.f32 %v10662_v26, %v18353_v59  ;;  %v18357_v26 = vld [vmem:[#allocation180_spill] sm:$0xff] }
 0x710   : > { %6158 = vrot.lane.b32.xlu1 %v18349_v5, %s11061_s28  ;;  %v18351_v5 = vld [vmem:[#allocation114_spill] sm:$0xff]  ;;  %v10666_v50 = vpop.eup %10665 }
 0x711   : > { %v15598_v60 = vpop.xlane.xlu0 %4797  ;;  %v5133_v63 = vmul.f32 %v10658_v44, %v18351_v5  ;;  %v10668_v12 = vpop.eup %10667  ;;  %v18355_v44 = vld [vmem:[#allocation46_spill] sm:$0xff] }
 0x712   : > { %4869 = vadd.xlane.f32.xlu0 %v4868_v32  ;;  %v18352_v32 = vld [vmem:[#allocation36_spill] sm:$0xff]  ;;  %v10670_v47 = vpop.eup %10669  ;;  %v5137_v5 = vmul.f32 %v10666_v50, %v18355_v44  ;;  %v18366_v44 = vld [vmem:[#allocation154_spill] sm:$0xff] }
 0x713   : > { %v5134_v55 = vmul.f32 %v10660_v51, %v18352_v32  ;;  %v5231_v48 = vpack.c.bf16 %v5133_v63, %v5132_v49  ;;  %v10672_v57 = vpop.eup %10671  ;;  %v5146_v51 = vmul.f32 %v10668_v12, %v15256_v52  ;;  %v18356_v32 = vld [vmem:[#allocation121_spill] sm:$0xff]  ;;  %v18363_v52 = vld [vmem:[#allocation116_spill] sm:$0xff]  ;;  %v18364_v12 = vld [vmem:[#allocation182_spill] sm:$0xff] }
 0x714   : > { %6071 = vrot.lane.b32.xlu1 %v18350_v18, %s11061_s28  ;;  %v18354_v18 = vld [vmem:[#allocation47_spill] sm:$0xff]  ;;  %v4270_v59 = vsub.f32 %v18357_v26, %v18356_v32  ;;  %v4273_v50 = vsub.f32 %v18364_v12, %v18363_v52 }
 0x715   : > { %v15606_v25 = vpop.xlane.xlu0 %4821  ;;  %v5135_v0 = vmul.f32 %v10664_v43, %v18354_v18  ;;  %v18359_v43 = vld [vmem:[#allocation152_spill] sm:$0xff]  ;;  %v18360_v18 = vld [vmem:[#allocation9_spill] sm:$0xff] }
 0x716   : > { %v5147_v63 = vmul.f32 %v10672_v57, %v18359_v43  ;;  %v18365_v57 = vld [vmem:[#allocation70_spill] sm:$0xff] }
 0x717   : > { %v5232_v39 = vpack.c.bf16 %v5135_v0, %v5134_v55  ;;  %v4490_v55 = vmul.f32 1.442695, %v4270_v59  ;;  %v18368_v59 = vld [vmem:[#allocation144_spill] sm:$0xff] }
 0x718   : > { %v5238_v0 = vpack.c.bf16 %v5147_v63, %v5146_v51 }
 0x719   : > { %v5896_v20 = vpop.permute.xlu0 %5895  ;;  %10673 = vpow2.f32 %v4490_v55  ;;  %v18371_v55 = vld [vmem:[#allocation49_spill] sm:$0xff] }
 0x71a   : > { %9681 = vmatprep.subr.bf16.mxu0 %v5896_v20 }
 0x71b   : > { %9682 = vmatpush3.bf16.msra.mxu0 %v5896_v20  ;;  %v18358_v20 = vld [vmem:[#allocation89_spill] sm:$0xff] }
 0x71c   : > { %v5136_v11 = vmul.f32 %v10670_v47, %v18358_v20  ;;  %v18369_v20 = vld [vmem:[#allocation32_spill] sm:$0xff] }
 0x71d   : > { %v4283_v43 = vsub.f32 %v18369_v20, %v18368_v59 }
 0x71e   : > { %9684 = vmatmul.mubr.msk.bf16.vlgmr.msra.gmra.mrb[128].mxu0 %vm3793_vm2, %v5231_v48  ;;  %v5233_v49 = vpack.c.bf16 %v5137_v5, %v5136_v11  ;;  %v18361_v48 = vld [vmem:[#allocation44_spill] sm:$0xff]  ;;  %v4496_v11 = vmul.f32 1.442695, %v4273_v50  ;;  %v18367_v5 = vld [vmem:[#allocation38_spill] sm:$0xff] }
 0x71f   : > { %9687 = vmatprep.mubr.msk.bf16.mxu0 %vm3793_vm2, %v5232_v39  ;;  %v4279_v54 = vsub.f32 %v18361_v48, %v18360_v18  ;;  %v18362_v39 = vld [vmem:[#allocation77_spill] sm:$0xff]  ;;  %v4281_v51 = vsub.f32 %v18367_v5, %v18366_v44  ;;  %v18383_v5 = vld [vmem:[#allocation166_spill] sm:$0xff] }
 0x721   : > { %v4508_v47 = vmul.f32 1.442695, %v4279_v54  ;;  %v4512_v32 = vmul.f32 1.442695, %v4281_v51 }
 0x723   : > { %10675 = vpow2.f32 %v4508_v47  ;;  %v15633_v26 = vpop.eup %10673 }
 0x724   : > { %10677 = vpow2.f32 %v4496_v11  ;;  %v4838_v63 = vsel %vm3793_vm2, %v15633_v26, 0.0 }
 0x725   : > { %10679 = vpow2.f32 %v4512_v32 }
 0x726   : > { %9688 = vmatmul.mubr.msk.bf16.gmra.mrb[132].mxu0 %vm3793_vm2, %v5233_v49  ;;  %v4516_v49 = vmul.f32 1.442695, %v4283_v43 }
 0x727   : > { %9715 = vmatprep.mubr.msk.bf16.mxu0 %vm3793_vm2, %v5238_v0  ;;  %v18370_v0 = vld [vmem:[#allocation160_spill] sm:$0xff] }
 0x728   : > { %6073 = vrot.lane.b32.xlu0 %v18362_v39, %s11061_s28  ;;  %v4284_v18 = vsub.f32 %v18371_v55, %v18370_v0  ;;  %10681 = vpow2.f32 %v4516_v49  ;;  %v18378_v55 = vld [vmem:[#allocation105_spill] sm:$0xff] }
 0x729   : > { %10683 = vrcp.f32 %v15409_v37 }
 0x72a   : > { %v4518_v44 = vmul.f32 1.442695, %v4284_v18  ;;  %10685 = vrcp.f32 %v15441_v23 }
 0x72b   : > { %10687 = vrcp.f32 %v15315_v16 }
 0x72c   : > { %6334 = vrot.lane.b32.xlu0 %v18365_v57, %s11061_s28  ;;  %10689 = vrcp.f32 %v15344_v21 }
 0x72d   : > { %v15639_v54 = vpop.eup %10675  ;;  %10691 = vpow2.f32 %v4518_v44 }
 0x72e   : > { %v4865_v50 = vsel %vm3793_vm2, %v15639_v54, 0.0  ;;  %v15653_v47 = vpop.eup %10677  ;;  %10693 = vrcp.f32 %v15467_v17 }
 0x72f   : > { %v4847_v32 = vsel %vm3793_vm2, %v15653_v47, 0.0  ;;  %v15668_v59 = vpop.eup %10679  ;;  %10695 = vrcp.f32 %v15560_v8 }
 0x730   : > { %18376 = vst [vmem:[#allocation28_spill] sm:$0xff] %v15668_v59  ;;  %v4871_v37 = vsel %vm3793_vm2, %v15668_v59, 0.0  ;;  %10697 = vrcp.f32 %v15365_v40 }
 0x731   : > { %10699 = vrcp.f32 %v15486_v61 }
 0x732   : > { %v15676_v16 = vpop.eup %10681 }
 0x733   : > { %v10684_v23 = vpop.eup %10683  ;;  %v4877_v8 = vsel %vm3793_vm2, %v15676_v16, 0.0 }
 0x734   : > { %v10686_v21 = vpop.eup %10685  ;;  %v5141_v18 = vmul.f32 %v10684_v23, %v18378_v55  ;;  %v18387_v55 = vld [vmem:[#allocation7_spill] sm:$0xff] }
 0x738   : > { %4839 = vadd.xlane.f32.xlu1 %v4838_v63  ;;  %v10688_v63 = vpop.eup %10687 }
 0x739   : > { %v15643_v48 = vpop.f32.mrb[72].mxu1  ;;  %v10690_v0 = vpop.eup %10689  ;;  %v5140_v57 = vmul.f32 %v10688_v63, %v18383_v5 }
 0x73a   : > { %18372 = vst [vmem:[#allocation157_spill] sm:$0xff] %v15643_v48  ;;  %v15645_v39 = vpop.f32.mrb[73].mxu1  ;;  %v15690_v44 = vpop.eup %10691 }
 0x73b   : > { %18373 = vst [vmem:[#allocation29_spill] sm:$0xff] %v15645_v39  ;;  %v15647_v52 = vpop.xlane.xlu1 %4791  ;;  %v15649_v12 = vpop.f32.mrb[74].mxu1  ;;  %18380 = vst [vmem:[#allocation101_spill] sm:$0xff] %v15690_v44 }
 0x73c   : > { %18374 = vst [vmem:[#allocation133_spill] sm:$0xff] %v15649_v12  ;;  %4866 = vadd.xlane.f32.xlu1 %v4865_v50  ;;  %v15657_v11 = vpop.f32.mrb[75].mxu1  ;;  %v6157_v50 = vpop.permute.xlu0 %6156  ;;  %v5235_v12 = vpack.c.bf16 %v5141_v18, %v5140_v57 }
 0x73d   : > { %18375 = vst [vmem:[#allocation74_spill] sm:$0xff] %v15657_v11  ;;  %v18385_v11 = vld [vmem:[#allocation132_spill] sm:$0xff]  ;;  %v10694_v5 = vpop.eup %10693 }
 0x73e   : > { %v5142_v48 = vmul.f32 %v10690_v0, %v18385_v11  ;;  %v18386_v0 = vld [vmem:[#allocation51_spill] sm:$0xff] }
 0x73f   : > { %v15664_v51 = vpop.xlane.xlu1 %4818  ;;  %v5145_v18 = vmul.f32 %v10694_v5, %v18386_v0 }
 0x740   : > { %4848 = vadd.xlane.f32.xlu1 %v4847_v32 }
 0x743   : > { %v15671_v20 = vpop.xlane.xlu1 %4800 }
 0x744   : > { %4872 = vadd.xlane.f32.xlu1 %v4871_v37  ;;  %v18382_v37 = vld [vmem:[#allocation19_spill] sm:$0xff] }
 0x745   : > { %v5143_v61 = vmul.f32 %v10686_v21, %v18382_v37  ;;  %v4880_v21 = vsel %vm3793_vm2, %v15690_v44, 0.0  ;;  %v10696_v37 = vpop.eup %10695 }
 0x746   : > { %v10698_v39 = vpop.eup %10697 }
 0x747   : > { %v15680_v43 = vpop.xlane.xlu1 %4824  ;;  %v10700_v11 = vpop.eup %10699 }
 0x749   : > { %v15683_v49 = vpop.f32.mrb[76].mxu1 }
 0x74a   : > { %18377 = vst [vmem:[#allocation66_spill] sm:$0xff] %v15683_v49  ;;  %v15686_v17 = vpop.f32.mrb[77].mxu1  ;;  %v18405_v49 = vld [vmem:[#allocation179_spill] sm:$0xff] }
 0x74b   : > { %18379 = vst [vmem:[#allocation73_spill] sm:$0xff] %v15686_v17  ;;  %v5985_v40 = vpop.permute.xlu1 %5984  ;;  %v15692_v32 = vpop.f32.mrb[78].mxu1  ;;  %4878 = vadd.xlane.f32.xlu0 %v4877_v8  ;;  %v5236_v8 = vpack.c.bf16 %v5143_v61, %v5142_v48  ;;  %v5144_v17 = vmul.f32 %v10698_v39, %v18387_v55  ;;  %v18388_v48 = vld [vmem:[#allocation50_spill] sm:$0xff]  ;;  %v18391_v39 = vld [vmem:[#allocation108_spill] sm:$0xff]  ;;  %v18392_v55 = vld [vmem:[#allocation91_spill] sm:$0xff] }
 0x74c   : > { %18381 = vst [vmem:[#allocation130_spill] sm:$0xff] %v15692_v32  ;;  %v15698_v23 = vpop.f32.mrb[79].mxu1  ;;  %9697 = vmatprep.subr.bf16.mxu1 %v5985_v40  ;;  %v18389_v61 = vld [vmem:[#allocation14_spill] sm:$0xff] }
 0x74d   : > { %18384 = vst [vmem:[#allocation75_spill] sm:$0xff] %v15698_v23  ;;  %9698 = vmatpush3.bf16.msra.mxu1 %v5985_v40  ;;  %v5155_v40 = vmul.f32 %v10696_v37, %v15269_v45  ;;  %v5237_v23 = vpack.c.bf16 %v5145_v18, %v5144_v17 }
 0x74e   : > { %9723 = vmatprep.subr.bf16.mxu1 %v6157_v50  ;;  %v15703_v59 = vpop.xlane.xlu0 %4830 }
 0x74f   : > { %v6068_v63 = vpop.permute.xlu1 %6067  ;;  %4881 = vadd.xlane.f32.xlu0 %v4880_v21 }
 0x750   : > { %9700 = vmatmul.mubr.msk.bf16.vlgmr.msra.gmra.mrb[88].mxu1 %vm3793_vm2, %v5235_v12  ;;  %9707 = vmatprep.subr.bf16.mxu0 %v6068_v63  ;;  %v5154_v12 = vmul.f32 %v10700_v11, %v18389_v61  ;;  %v18400_v61 = vld [vmem:[#allocation31_spill] sm:$0xff] }
 0x751   : > { %9703 = vmatprep.mubr.msk.bf16.mxu1 %vm3793_vm2, %v5236_v8  ;;  %9708 = vmatpush3.bf16.msra.mxu0 %v6068_v63  ;;  %v18393_v63 = vld [vmem:[#allocation72_spill] sm:$0xff] }
 0x752   : > { %9724 = vmatpush3.bf16.msra.mxu1 %v6157_v50  ;;  %v15709_v57 = vpop.xlane.xlu0 %4851  ;;  %v5242_v8 = vpack.c.bf16 %v5155_v40, %v5154_v12  ;;  %v18390_v50 = vld [vmem:[#allocation117_spill] sm:$0xff]  ;;  %v4282_v37 = vsub.f32 %v18393_v63, %v18392_v55 }
 0x755   : > { %6162 = vrot.lane.b32.xlu1 %v18388_v48, %s11061_s28  ;;  %v18399_v48 = vld [vmem:[#allocation94_spill] sm:$0xff] }
 0x756   : > { %v15717_v21 = vpop.xlane.xlu0 %4833  ;;  %v4285_v12 = vsub.f32 %v18400_v61, %v18399_v48  ;;  %v18407_v48 = vld [vmem:[#allocation79_spill] sm:$0xff] }
 0x757   : > { %v18408_v61 = vld [vmem:[#allocation175_spill] sm:$0xff] }
 0x758   : > { %9704 = vmatmul.mubr.msk.bf16.gmra.mrb[92].mxu1 %vm3793_vm2, %v5237_v23  ;;  %v18396_v23 = vld [vmem:[#allocation68_spill] sm:$0xff] }
 0x759   : > { %6245 = vrot.lane.b32.xlu1 %v18390_v50, %s11061_s28  ;;  %9731 = vmatprep.mubr.msk.bf16.mxu1 %vm3793_vm2, %v5242_v8  ;;  %v4514_v8 = vmul.f32 1.442695, %v4282_v37 }
 0x75a   : > { %v15723_v5 = vpop.xlane.xlu0 %4857 }
 0x75b   : > { %10701 = vpow2.f32 %v4514_v8 }
 0x75e   : > { %v6070_v45 = vpop.permute.xlu0 %6069 }
 0x75f   : > { %9709 = vmatprep.subr.bf16.mxu0 %v6070_v45 }
 0x760   : > { %9710 = vmatpush3.bf16.msra.mxu0 %v6070_v45  ;;  %v4520_v45 = vmul.f32 1.442695, %v4285_v12  ;;  %v4288_v12 = vsub.f32 %v18408_v61, %v18407_v48 }
 0x762   : > { %10703 = vpow2.f32 %v4520_v45 }
 0x765   : > { %6247 = vrot.lane.b32.xlu0 %v18391_v39, %s11061_s28  ;;  %v15761_v50 = vpop.eup %10701 }
 0x767   : > { %v15729_v17 = vpop.f32.mrb[120].mxu0 }
 0x768   : > { %18394 = vst [vmem:[#allocation142_spill] sm:$0xff] %v15729_v17  ;;  %v15731_v11 = vpop.f32.mrb[121].mxu0 }
 0x769   : > { %18395 = vst [vmem:[#allocation6_spill] sm:$0xff] %v15731_v11  ;;  %6338 = vrot.lane.b32.xlu0 %v18396_v23, %s11061_s28  ;;  %v15735_v0 = vpop.f32.mrb[122].mxu0  ;;  %v18404_v23 = vld [vmem:[#allocation59_spill] sm:$0xff]  ;;  %v4526_v11 = vmul.f32 1.442695, %v4288_v12 }
 0x76a   : > { %18397 = vst [vmem:[#allocation113_spill] sm:$0xff] %v15735_v0  ;;  %v15739_v40 = vpop.f32.mrb[123].mxu0  ;;  %v4287_v18 = vsub.f32 %v18405_v49, %v18404_v23  ;;  %v4874_v49 = vsel %vm3793_vm2, %v15761_v50, 0.0 }
 0x76b   : > { %18398 = vst [vmem:[#allocation69_spill] sm:$0xff] %v15739_v40 }
 0x76c   : > { %v4524_v8 = vmul.f32 1.442695, %v4287_v18  ;;  %v15765_v23 = vpop.eup %10703 }
 0x76d   : > { %18409 = vst [vmem:[#allocation25_spill] sm:$0xff] %v15765_v23  ;;  %v4883_v45 = vsel %vm3793_vm2, %v15765_v23, 0.0 }
 0x76e   : > { %10705 = vpow2.f32 %v4524_v8 }
 0x76f   : > { %v15745_v39 = vpop.f32.mrb[124].mxu0  ;;  %10707 = vpow2.f32 %v4526_v11 }
 0x770   : > { %18401 = vst [vmem:[#allocation148_spill] sm:$0xff] %v15745_v39  ;;  %v15747_v55 = vpop.f32.mrb[125].mxu0  ;;  %10709 = vrcp.f32 %v15568_v38 }
 0x771   : > { %18402 = vst [vmem:[#allocation104_spill] sm:$0xff] %v15747_v55  ;;  %v15749_v63 = vpop.f32.mrb[126].mxu0  ;;  %v18412_v55 = vld [vmem:[#allocation60_spill] sm:$0xff]  ;;  %10711 = vrcp.f32 %v15647_v52 }
 0x772   : > { %18403 = vst [vmem:[#allocation110_spill] sm:$0xff] %v15749_v63  ;;  %v15755_v0 = vpop.f32.mrb[127].mxu0  ;;  %10713 = vrcp.f32 %v15506_v10 }
 0x773   : > { %18406 = vst [vmem:[#allocation64_spill] sm:$0xff] %v15755_v0  ;;  %10715 = vrcp.f32 %v15580_v19 }
 0x774   : > { %10717 = vrcp.f32 %v15671_v20  ;;  %v18419_v20 = vld [vmem:[#allocation106_spill] sm:$0xff] }
 0x778   : > { %v15769_v37 = vpop.eup %10705 }
 0x779   : > { %18410 = vst [vmem:[#allocation41_spill] sm:$0xff] %v15769_v37  ;;  %v4889_v18 = vsel %vm3793_vm2, %v15769_v37, 0.0  ;;  %v15775_v61 = vpop.eup %10707 }
 0x77a   : > { %18411 = vst [vmem:[#allocation40_spill] sm:$0xff] %v15775_v61  ;;  %v4892_v11 = vsel %vm3793_vm2, %v15775_v61, 0.0  ;;  %v10710_v19 = vpop.eup %10709 }
 0x77d   : > { %4875 = vadd.xlane.f32.xlu1 %v4874_v49  ;;  %v6161_v49 = vpop.permute.xlu0 %6160 }
 0x780   : > { %v4828_v17 = vpop.xlane.xlu1 %4827 }
 0x781   : > { %4884 = vadd.xlane.f32.xlu1 %v4883_v45  ;;  %10719 = vrcp.f32 %v4828_v17 }
 0x782   : > { %10721 = vrcp.f32 %v15598_v60 }
 0x783   : > { %10723 = vrcp.f32 %v15703_v59  ;;  %v18423_v59 = vld [vmem:[#allocation23_spill] sm:$0xff] }
 0x784   : > { %v15771_v48 = vpop.xlane.xlu1 %4854 }
 0x788   : > { %v15777_v12 = vpop.xlane.xlu1 %4836  ;;  %4890 = vadd.xlane.f32.xlu0 %v4889_v18  ;;  %v18413_v18 = vld [vmem:[#allocation115_spill] sm:$0xff] }
 0x78c   : > { %v15781_v8 = vpop.xlane.xlu1 %4860  ;;  %4893 = vadd.xlane.f32.xlu0 %v4892_v11 }
 0x790   : > { %v6159_v45 = vpop.permute.xlu1 %6158 }
 0x791   : > { %9725 = vmatprep.subr.bf16.mxu1 %v6159_v45 }
 0x792   : > { %6336 = vrot.lane.b32.xlu1 %v18412_v55, %s11061_s28  ;;  %9726 = vmatpush3.bf16.msra.mxu1 %v6159_v45 }
 0x793   : > { %9727 = vmatprep.subr.bf16.mxu1 %v6161_v49  ;;  %v15785_v0 = vpop.xlane.xlu0 %4842 }
 0x794   : > { %v6072_v39 = vpop.permute.xlu1 %6071 }
 0x795   : > { %9711 = vmatprep.subr.bf16.mxu0 %v6072_v39 }
 0x796   : > { %6249 = vrot.lane.b32.xlu1 %v18413_v18, %s11061_s28  ;;  %9712 = vmatpush3.bf16.msra.mxu0 %v6072_v39 }
 0x797   : > { %9728 = vmatpush3.bf16.msra.mxu1 %v6161_v49  ;;  %v15792_v11 = vpop.xlane.xlu0 %4863  ;;  %v10712_v49 = vpop.eup %10711 }
 0x798   : > { %v10714_v40 = vpop.eup %10713  ;;  %v5150_v60 = vmul.f32 %v10712_v49, %v15413_v53 }
 0x799   : > { %v15795_v55 = vpop.f32.mrb[80].mxu1  ;;  %v10716_v52 = vpop.eup %10715  ;;  %v5148_v37 = vmul.f32 %v10714_v40, %v18423_v59 }
 0x79a   : > { %18414 = vst [vmem:[#allocation131_spill] sm:$0xff] %v15795_v55  ;;  %v15797_v45 = vpop.f32.mrb[81].mxu1  ;;  %v5149_v55 = vmul.f32 %v10710_v19, %v15278_v15  ;;  %v5151_v19 = vmul.f32 %v10716_v52, %v15317_v13  ;;  %v10718_v42 = vpop.eup %10717  ;;  %v18426_v15 = vld [vmem:[#allocation81_spill] sm:$0xff] }
 0x79b   : > { %18415 = vst [vmem:[#allocation136_spill] sm:$0xff] %v15797_v45  ;;  %v15799_v63 = vpop.f32.mrb[82].mxu1  ;;  %v15801_v38 = vpop.xlane.xlu0 %4845  ;;  %v18421_v45 = vld [vmem:[#allocation54_spill] sm:$0xff] }
 0x79c   : > { %18416 = vst [vmem:[#allocation145_spill] sm:$0xff] %v15799_v63  ;;  %v15805_v18 = vpop.f32.mrb[83].mxu1  ;;  %v5240_v53 = vpack.c.bf16 %v5151_v19, %v5150_v60  ;;  %v10720_v49 = vpop.eup %10719  ;;  %v18428_v60 = vld [vmem:[#allocation52_spill] sm:$0xff] }
 0x79d   : > { %18417 = vst [vmem:[#allocation137_spill] sm:$0xff] %v15805_v18  ;;  %v18422_v18 = vld [vmem:[#allocation71_spill] sm:$0xff]  ;;  %v10722_v59 = vpop.eup %10721  ;;  %v5162_v13 = vmul.f32 %v10720_v49, %v15544_v14  ;;  %v18429_v19 = vld [vmem:[#allocation184_spill] sm:$0xff] }
 0x79e   : > { %v4286_v61 = vsub.f32 %v18422_v18, %v18421_v45  ;;  %v18424_v45 = vld [vmem:[#allocation159_spill] sm:$0xff]  ;;  %v18425_v18 = vld [vmem:[#allocation45_spill] sm:$0xff]  ;;  %v10724_v44 = vpop.eup %10723  ;;  %v18430_v14 = vld [vmem:[#allocation168_spill] sm:$0xff] }
 0x79f   : > { %v15811_v39 = vpop.xlane.xlu0 %4869  ;;  %v4289_v40 = vsub.f32 %v18425_v18, %v18424_v45 }
 0x7a0   : > { %v4522_v28 = vmul.f32 1.442695, %v4286_v61  ;;  %v5152_v61 = vmul.f32 %v10722_v59, %v15329_v36 }
 0x7a1   : > { %v15814_v32 = vpop.f32.mrb[84].mxu1 }
 0x7a2   : > { %18418 = vst [vmem:[#allocation118_spill] sm:$0xff] %v15814_v32  ;;  %6251 = vrot.lane.b32.xlu0 %v18419_v20, %s11061_s28  ;;  %v15819_v63 = vpop.f32.mrb[85].mxu1  ;;  %v5239_v20 = vpack.c.bf16 %v5149_v55, %v5148_v37  ;;  %v5153_v32 = vmul.f32 %v10718_v42, %v15435_v7  ;;  %10725 = vpow2.f32 %v4522_v28  ;;  %v4528_v37 = vmul.f32 1.442695, %v4289_v40  ;;  %v18431_v28 = vld [vmem:[#allocation109_spill] sm:$0xff] }
 0x7a3   : > { %18420 = vst [vmem:[#allocation35_spill] sm:$0xff] %v15819_v63  ;;  %v15821_v17 = vpop.f32.mrb[86].mxu1  ;;  %v6074_v10 = vpop.permute.xlu0 %6073  ;;  %v5163_v55 = vmul.f32 %v10724_v44, %v15462_v27  ;;  %v4293_v42 = vsub.f32 %v18431_v28, %v18430_v14 }
 0x7a4   : > { %v15829_v23 = vpop.f32.mrb[87].mxu1  ;;  %9713 = vmatprep.subr.bf16.mxu0 %v6074_v10  ;;  %v5241_v52 = vpack.c.bf16 %v5153_v32, %v5152_v61  ;;  %10727 = vpow2.f32 %v4528_v37 }
 0x7a5   : > { %9714 = vmatpush3.bf16.msra.mxu0 %v6074_v10  ;;  %v18427_v10 = vld [vmem:[#allocation24_spill] sm:$0xff]  ;;  %v4536_v36 = vmul.f32 1.442695, %v4293_v42 }
 0x7a6   : > { %v4290_v63 = vsub.f32 %v18427_v10, %v18426_v15 }
 0x7a8   : > { %9716 = vmatmul.mubr.msk.bf16.vlgmr.msra.gmra.mrb[136].mxu0 %vm3793_vm2, %v5239_v20  ;;  %v4292_v20 = vsub.f32 %v18429_v19, %v18428_v60  ;;  %v4530_v45 = vmul.f32 1.442695, %v4290_v63  ;;  %v6335_v19 = vpop.permute.xlu0 %6334 }
 0x7a9   : > { %9719 = vmatprep.mubr.msk.bf16.mxu0 %vm3793_vm2, %v5240_v53  ;;  %v5246_v53 = vpack.c.bf16 %v5163_v55, %v5162_v13  ;;  %v18432_v55 = vld [vmem:[#allocation61_spill] sm:$0xff] }
 0x7aa   : > { %v4534_v7 = vmul.f32 1.442695, %v4292_v20  ;;  %10729 = vpow2.f32 %v4530_v45 }
 0x7ac   : > { %v15850_v15 = vpop.eup %10725  ;;  %10731 = vpow2.f32 %v4534_v7 }
 0x7ad   : > { %v4886_v27 = vsel %vm3793_vm2, %v15850_v15, 0.0  ;;  %10733 = vpow2.f32 %v4536_v36 }
 0x7ae   : > { %v15854_v44 = vpop.eup %10727  ;;  %10735 = vrcp.f32 %v15574_v34 }
 0x7af   : > { %v4895_v63 = vsel %vm3793_vm2, %v15854_v44, 0.0  ;;  %10737 = vrcp.f32 %v15664_v51 }
 0x7b0   : > { %9720 = vmatmul.mubr.msk.bf16.gmra.mrb[140].mxu0 %vm3793_vm2, %v5241_v52  ;;  %10739 = vrcp.f32 %v15514_v46 }
 0x7b1   : > { %9747 = vmatprep.mubr.msk.bf16.mxu0 %vm3793_vm2, %v5246_v53  ;;  %10741 = vrcp.f32 %v15589_v35  ;;  %v18433_v35 = vld [vmem:[#allocation86_spill] sm:$0xff] }
 0x7b2   : > { %10743 = vrcp.f32 %v15680_v43 }
 0x7b3   : > { %10745 = vrcp.f32 %v15771_v48  ;;  %v18434_v48 = vld [vmem:[#allocation27_spill] sm:$0xff] }
 0x7b4   : > { %v15856_v32 = vpop.eup %10729  ;;  %10747 = vrcp.f32 %v15606_v25 }
 0x7b5   : > { %v4898_v49 = vsel %vm3793_vm2, %v15856_v32, 0.0  ;;  %10749 = vrcp.f32 %v15709_v57 }
 0x7b6   : > { %v15862_v18 = vpop.eup %10731 }
 0x7b7   : > { %v4904_v40 = vsel %vm3793_vm2, %v15862_v18, 0.0  ;;  %v15866_v59 = vpop.eup %10733 }
 0x7b8   : > { %v4907_v13 = vsel %vm3793_vm2, %v15866_v59, 0.0  ;;  %v10736_v34 = vpop.eup %10735 }
 0x7b9   : > { %v10738_v46 = vpop.eup %10737  ;;  %v5157_v43 = vmul.f32 %v10736_v34, %v15293_v29 }
 0x7ba   : > { %4887 = vadd.xlane.f32.xlu1 %v4886_v27  ;;  %v10740_v52 = vpop.eup %10739  ;;  %v5159_v45 = vmul.f32 %v10738_v46, %v15423_v1  ;;  %v18436_v46 = vld [vmem:[#allocation146_spill] sm:$0xff] }
 0x7bb   : > { %v10742_v60 = vpop.eup %10741  ;;  %v5156_v53 = vmul.f32 %v10740_v52, %v18434_v48  ;;  %v18437_v52 = vld [vmem:[#allocation187_spill] sm:$0xff] }
 0x7bc   : > { %v5158_v25 = vmul.f32 %v10742_v60, %v15325_v4  ;;  %v10744_v14 = vpop.eup %10743 }
 0x7bd   : > { %v5243_v7 = vpack.c.bf16 %v5157_v43, %v5156_v53  ;;  %v10746_v36 = vpop.eup %10745  ;;  %v5161_v4 = vmul.f32 %v10744_v14, %v15446_v24 }
 0x7be   : > { %4896 = vadd.xlane.f32.xlu1 %v4895_v63  ;;  %v5244_v42 = vpack.c.bf16 %v5159_v45, %v5158_v25  ;;  %v10748_v29 = vpop.eup %10747  ;;  %v5171_v63 = vmul.f32 %v10746_v36, %v15550_v3  ;;  %v18438_v3 = vld [vmem:[#allocation151_spill] sm:$0xff] }
 0x7bf   : > { %v10750_v1 = vpop.eup %10749 }
 0x7c1   : > { %4899 = vadd.xlane.f32.xlu0 %v4898_v49  ;;  %v5160_v49 = vmul.f32 %v10748_v29, %v15348_v31  ;;  %v18439_v31 = vld [vmem:[#allocation48_spill] sm:$0xff] }
 0x7c2   : > { %v4295_v43 = vsub.f32 %v18439_v31, %v18438_v3  ;;  %v18449_v31 = vld [vmem:[#allocation4_spill] sm:$0xff] }
 0x7c3   : > { %v5245_v34 = vpack.c.bf16 %v5161_v4, %v5160_v49 }
 0x7c5   : > { %v15868_v10 = vpop.xlane.xlu1 %4839  ;;  %4905 = vadd.xlane.f32.xlu0 %v4904_v40  ;;  %v18435_v40 = vld [vmem:[#allocation3_spill] sm:$0xff] }
 0x7c9   : > { %v15875_v37 = vpop.xlane.xlu1 %4866  ;;  %4908 = vadd.xlane.f32.xlu0 %v4907_v13  ;;  %v5170_v13 = vmul.f32 %v10750_v1, %v15473_v30  ;;  %v18440_v30 = vld [vmem:[#allocation65_spill] sm:$0xff] }
 0x7cb   : > { %v5250_v60 = vpack.c.bf16 %v5171_v63, %v5170_v13 }
 0x7cd   : > { %v15878_v61 = vpop.xlane.xlu1 %4848 }
 0x7cf   : > { %6340 = vrot.lane.b32.xlu1 %v18432_v55, %s11061_s28 }
 0x7d1   : > { %v15885_v51 = vpop.xlane.xlu1 %4872 }
 0x7d3   : > { %6423 = vrot.lane.b32.xlu1 %v18433_v35, %s11061_s28  ;;  %v4291_v35 = vsub.f32 %v18437_v52, %v18436_v46  ;;  %v18448_v46 = vld [vmem:[#allocation78_spill] sm:$0xff] }
 0x7d5   : > { %v6163_v20 = vpop.permute.xlu1 %6162  ;;  %v4532_v24 = vmul.f32 1.442695, %v4291_v35 }
 0x7d6   : > { %9729 = vmatprep.subr.bf16.mxu1 %v6163_v20 }
 0x7d7   : > { %9730 = vmatpush3.bf16.msra.mxu1 %v6163_v20  ;;  %10751 = vpow2.f32 %v4532_v24  ;;  %v4297_v20 = vsub.f32 %v18440_v30, %v15285_v56  ;;  %v18451_v30 = vld [vmem:[#allocation55_spill] sm:$0xff] }
 0x7d8   : > { %9755 = vmatprep.subr.bf16.mxu1 %v6335_v19  ;;  %v15894_v57 = vpop.xlane.xlu0 %4878 }
 0x7d9   : > { %v6246_v28 = vpop.permute.xlu1 %6245  ;;  %v4544_v45 = vmul.f32 1.442695, %v4297_v20  ;;  %v18452_v20 = vld [vmem:[#allocation12_spill] sm:$0xff] }
 0x7da   : > { %9732 = vmatmul.mubr.msk.bf16.vlgmr.msra.gmra.mrb[96].mxu1 %vm3793_vm2, %v5243_v7  ;;  %9739 = vmatprep.subr.bf16.mxu0 %v6246_v28 }
 0x7db   : > { %9735 = vmatprep.mubr.msk.bf16.mxu1 %vm3793_vm2, %v5244_v42  ;;  %9740 = vmatpush3.bf16.msra.mxu0 %v6246_v28  ;;  %v18471_v42 = vld [vmem:[#allocation62_spill] sm:$0xff] }
 0x7dc   : > { %9756 = vmatpush3.bf16.msra.mxu1 %v6335_v19  ;;  %v15898_v27 = vpop.xlane.xlu0 %4881  ;;  %v4540_v19 = vmul.f32 1.442695, %v4295_v43  ;;  %v4294_v43 = vsub.f32 %v18449_v31, %v15271_v62 }
 0x7de   : > { %10753 = vpow2.f32 %v4540_v19  ;;  %v4538_v62 = vmul.f32 1.442695, %v4294_v43  ;;  %v18453_v43 = vld [vmem:[#allocation67_spill] sm:$0xff] }
 0x7df   : > { %6427 = vrot.lane.b32.xlu0 %v18435_v40, %s11061_s28  ;;  %10755 = vpow2.f32 %v4544_v45  ;;  %v4296_v45 = vsub.f32 %v18452_v20, %v18451_v30  ;;  %v18455_v20 = vld [vmem:[#allocation57_spill] sm:$0xff]  ;;  %v18462_v40 = vld [vmem:[#allocation100_spill] sm:$0xff] }
 0x7e0   : > { %v6248_v55 = vpop.permute.xlu0 %6247  ;;  %10757 = vrcp.f32 %v15777_v12  ;;  %v18450_v12 = vld [vmem:[#allocation102_spill] sm:$0xff] }
 0x7e1   : > { %9741 = vmatprep.subr.bf16.mxu0 %v6248_v55  ;;  %v15918_v25 = vpop.eup %10751  ;;  %10759 = vrcp.f32 %v15868_v10 }
 0x7e2   : > { %9736 = vmatmul.mubr.msk.bf16.gmra.mrb[100].mxu1 %vm3793_vm2, %v5245_v34  ;;  %9742 = vmatpush3.bf16.msra.mxu0 %v6248_v55  ;;  %v4901_v56 = vsel %vm3793_vm2, %v15918_v25, 0.0  ;;  %10761 = vrcp.f32 %v15717_v21 }
 0x7e3   : > { %9763 = vmatprep.mubr.msk.bf16.mxu1 %vm3793_vm2, %v5250_v60  ;;  %10763 = vrcp.f32 %v15785_v0 }
 0x7e4   : > { %v6339_v60 = vpop.permute.xlu0 %6338  ;;  %10765 = vrcp.f32 %v15878_v61 }
 0x7e8   : > { %v15932_v29 = vpop.eup %10753 }
 0x7e9   : > { %v4913_v13 = vsel %vm3793_vm2, %v15932_v29, 0.0  ;;  %v15946_v55 = vpop.eup %10755 }
 0x7ea   : > { %v4919_v34 = vsel %vm3793_vm2, %v15946_v55, 0.0  ;;  %v10758_v21 = vpop.eup %10757 }
 0x7eb   : > { %v10760_v10 = vpop.eup %10759 }
 0x7ec   : > { %v10762_v61 = vpop.eup %10761 }
 0x7f1   : > { %v15914_v48 = vpop.f32.mrb[128].mxu0 }
 0x7f2   : > { %18441 = vst [vmem:[#allocation56_spill] sm:$0xff] %v15914_v48  ;;  %v15916_v53 = vpop.f32.mrb[129].mxu0 }
 0x7f3   : > { %18442 = vst [vmem:[#allocation112_spill] sm:$0xff] %v15916_v53  ;;  %v15920_v7 = vpop.f32.mrb[130].mxu0  ;;  %v18489_v53 = vld [vmem:[#allocation41_spill] sm:$0xff] }
 0x7f4   : > { %v15924_v28 = vpop.f32.mrb[131].mxu0 }
 0x7f5   : > { %18443 = vst [vmem:[#allocation63_spill] sm:$0xff] %v15924_v28 }
 0x7f7   : > { %4902 = vadd.xlane.f32.xlu1 %v4901_v56  ;;  %v10764_v56 = vpop.eup %10763 }
 0x7f8   : > { %v10766_v31 = vpop.eup %10765 }
 0x7f9   : > { %v15930_v36 = vpop.f32.mrb[132].mxu0 }
 0x7fa   : > { %18444 = vst [vmem:[#allocation165_spill] sm:$0xff] %v15930_v36  ;;  %v15934_v1 = vpop.f32.mrb[133].mxu0 }
 0x7fb   : > { %18445 = vst [vmem:[#allocation103_spill] sm:$0xff] %v15934_v1  ;;  %v15936_v4 = vpop.f32.mrb[134].mxu0  ;;  %v18476_v1 = vld [vmem:[#allocation133_spill] sm:$0xff] }
 0x7fc   : > { %18446 = vst [vmem:[#allocation129_spill] sm:$0xff] %v15936_v4  ;;  %v15940_v49 = vpop.f32.mrb[135].mxu0  ;;  %v18487_v4 = vld [vmem:[#allocation101_spill] sm:$0xff] }
 0x7fd   : > { %18447 = vst [vmem:[#allocation99_spill] sm:$0xff] %v15940_v49  ;;  %v18477_v49 = vld [vmem:[#allocation157_spill] sm:$0xff] }
 0x7fe   : > { %4914 = vadd.xlane.f32.xlu0 %v4913_v13  ;;  %v5165_v13 = vmul.f32 %v10758_v21, %v15556_v22 }
 0x802   : > { %4920 = vadd.xlane.f32.xlu0 %v4919_v34 }
 0x808   : > { %6425 = vrot.lane.b32.xlu1 %v18448_v46, %s11061_s28  ;;  %v5166_v46 = vmul.f32 %v10760_v10, %v15633_v26 }
 0x80a   : > { %v4876_v52 = vpop.xlane.xlu1 %4875 }
 0x80b   : > { %10767 = vrcp.f32 %v4876_v52  ;;  %v4542_v52 = vmul.f32 1.442695, %v4296_v45  ;;  %v4301_v45 = vsub.f32 %v18455_v20, %v15327_v33 }
 0x80c   : > { %10769 = vrcp.f32 %v15801_v38  ;;  %v5164_v38 = vmul.f32 %v10762_v61, %v15478_v6 }
 0x80d   : > { %10771 = vrcp.f32 %v15894_v57  ;;  %v4552_v33 = vmul.f32 1.442695, %v4301_v45 }
 0x80e   : > { %v15952_v35 = vpop.xlane.xlu1 %4884  ;;  %10773 = vpow2.f32 %v4538_v62 }
 0x80f   : > { %10775 = vpow2.f32 %v4542_v52 }
 0x812   : > { %v6337_v24 = vpop.permute.xlu1 %6336 }
 0x813   : > { %9757 = vmatprep.subr.bf16.mxu1 %v6337_v24 }
 0x814   : > { %9758 = vmatpush3.bf16.msra.mxu1 %v6337_v24  ;;  %v5247_v24 = vpack.c.bf16 %v5165_v13, %v5164_v38 }
 0x815   : > { %9759 = vmatprep.subr.bf16.mxu1 %v6339_v60  ;;  %v15958_v3 = vpop.xlane.xlu0 %4890  ;;  %v10768_v30 = vpop.eup %10767 }
 0x816   : > { %v6250_v19 = vpop.permute.xlu1 %6249  ;;  %v10770_v22 = vpop.eup %10769  ;;  %v5178_v61 = vmul.f32 %v10768_v30, %v15761_v50 }
 0x817   : > { %9743 = vmatprep.subr.bf16.mxu0 %v6250_v19  ;;  %v10772_v6 = vpop.eup %10771 }
 0x818   : > { %6512 = vrot.lane.b32.xlu0 %v18450_v12, %s11061_s28  ;;  %9744 = vmatpush3.bf16.msra.mxu0 %v6250_v19  ;;  %v18454_v19 = vld [vmem:[#allocation139_spill] sm:$0xff]  ;;  %v15997_v52 = vpop.eup %10773 }
 0x819   : > { %9760 = vmatpush3.bf16.msra.mxu1 %v6339_v60  ;;  %v15966_v0 = vpop.xlane.xlu0 %4893  ;;  %v5167_v60 = vmul.f32 %v10764_v56, %v15572_v58  ;;  %v4299_v57 = vsub.f32 %v18454_v19, %v18453_v43  ;;  %v5169_v58 = vmul.f32 %v10766_v31, %v15653_v47  ;;  %v5179_v47 = vmul.f32 %v10772_v6, %v15676_v16  ;;  %v18475_v56 = vld [vmem:[#allocation123_spill] sm:$0xff] }
 0x81b   : > { %v5248_v12 = vpack.c.bf16 %v5167_v60, %v5166_v46  ;;  %v4548_v10 = vmul.f32 1.442695, %v4299_v57  ;;  %v5254_v60 = vpack.c.bf16 %v5179_v47, %v5178_v61 }
 0x81d   : > { %v6252_v34 = vpop.permute.xlu0 %6251  ;;  %10777 = vpow2.f32 %v4548_v10  ;;  %v18456_v10 = vld [vmem:[#allocation80_spill] sm:$0xff] }
 0x81e   : > { %9745 = vmatprep.subr.bf16.mxu0 %v6252_v34  ;;  %10779 = vpow2.f32 %v4552_v33 }
 0x81f   : > { %9746 = vmatpush3.bf16.msra.mxu0 %v6252_v34  ;;  %v5168_v34 = vmul.f32 %v10770_v22, %v15584_v2  ;;  %v4910_v2 = vsel %vm3793_vm2, %v15997_v52, 0.0  ;;  %10781 = vrcp.f32 %v15781_v8 }
 0x820   : > { %10783 = vrcp.f32 %v15875_v37  ;;  %v18457_v37 = vld [vmem:[#allocation18_spill] sm:$0xff] }
 0x821   : > { %v5249_v38 = vpack.c.bf16 %v5169_v58, %v5168_v34  ;;  %10785 = vrcp.f32 %v15723_v5  ;;  %v4298_v33 = vsub.f32 %v18457_v37, %v15319_v41 }
 0x822   : > { %9748 = vmatmul.mubr.msk.bf16.vlgmr.msra.gmra.mrb[144].mxu0 %vm3793_vm2, %v5247_v24  ;;  %v16005_v24 = vpop.eup %10775  ;;  %10787 = vrcp.f32 %v15792_v11 }
 0x823   : > { %v15978_v26 = vpop.f32.mrb[88].mxu1  ;;  %9751 = vmatprep.mubr.msk.bf16.mxu0 %vm3793_vm2, %v5248_v12  ;;  %v4916_v12 = vsel %vm3793_vm2, %v16005_v24, 0.0  ;;  %10789 = vrcp.f32 %v15885_v51  ;;  %v18459_v51 = vld [vmem:[#allocation97_spill] sm:$0xff] }
 0x824   : > { %v15981_v21 = vpop.f32.mrb[89].mxu1  ;;  %10791 = vrcp.f32 %v15811_v39  ;;  %v18460_v39 = vld [vmem:[#allocation153_spill] sm:$0xff] }
 0x825   : > { %v15986_v62 = vpop.f32.mrb[90].mxu1 }
 0x826   : > { %v15991_v13 = vpop.f32.mrb[91].mxu1 }
 0x827   : > { %v16019_v30 = vpop.eup %10777 }
 0x828   : > { %v4925_v22 = vsel %vm3793_vm2, %v16019_v30, 0.0  ;;  %v16023_v6 = vpop.eup %10779 }
 0x829   : > { %v4931_v58 = vsel %vm3793_vm2, %v16023_v6, 0.0  ;;  %v10782_v45 = vpop.eup %10781 }
 0x82a   : > { %9752 = vmatmul.mubr.msk.bf16.gmra.mrb[148].mxu0 %vm3793_vm2, %v5249_v38  ;;  %v10784_v34 = vpop.eup %10783  ;;  %v5173_v38 = vmul.f32 %v10782_v45, %v15564_v9  ;;  %v4546_v45 = vmul.f32 1.442695, %v4298_v33 }
 0x82b   : > { %v16000_v50 = vpop.f32.mrb[92].mxu1  ;;  %9779 = vmatprep.mubr.msk.bf16.mxu0 %vm3793_vm2, %v5254_v60  ;;  %v10786_v8 = vpop.eup %10785  ;;  %v5175_v11 = vmul.f32 %v10784_v34, %v15639_v54  ;;  %v18458_v60 = vld [vmem:[#allocation37_spill] sm:$0xff]  ;;  %v18463_v34 = vld [vmem:[#allocation28_spill] sm:$0xff] }
 0x82c   : > { %4911 = vadd.xlane.f32.xlu1 %v4910_v2  ;;  %v16007_v31 = vpop.f32.mrb[93].mxu1  ;;  %v10788_v47 = vpop.eup %10787  ;;  %v5172_v2 = vmul.f32 %v10786_v8, %v18458_v60  ;;  %10793 = vpow2.f32 %v4546_v45  ;;  %v18466_v60 = vld [vmem:[#allocation149_spill] sm:$0xff] }
 0x82d   : > { %v16009_v16 = vpop.f32.mrb[94].mxu1 }
 0x82e   : > { %v16013_v19 = vpop.f32.mrb[95].mxu1 }
 0x830   : > { %4917 = vadd.xlane.f32.xlu1 %v4916_v12  ;;  %v5174_v12 = vmul.f32 %v10788_v47, %v18460_v39  ;;  %v18464_v47 = vld [vmem:[#allocation143_spill] sm:$0xff] }
 0x832   : > { %v5252_v41 = vpack.c.bf16 %v5175_v11, %v5174_v12  ;;  %v18467_v11 = vld [vmem:[#allocation124_spill] sm:$0xff] }
 0x837   : > { %4926 = vadd.xlane.f32.xlu0 %v4925_v22  ;;  %v5251_v22 = vpack.c.bf16 %v5173_v38, %v5172_v2 }
 0x83b   : > { %4932 = vadd.xlane.f32.xlu0 %v4931_v58  ;;  %v10790_v58 = vpop.eup %10789 }
 0x83c   : > { %v10792_v54 = vpop.eup %10791  ;;  %v5177_v8 = vmul.f32 %v10790_v58, %v18463_v34 }
 0x83d   : > { %v5176_v38 = vmul.f32 %v10792_v54, %v18464_v47  ;;  %v16058_v12 = vpop.eup %10793 }
 0x841   : > { %6429 = vrot.lane.b32.xlu1 %v18456_v10, %s11061_s28  ;;  %v18461_v10 = vld [vmem:[#allocation2_spill] sm:$0xff] }
 0x842   : > { %v4300_v9 = vsub.f32 %v18462_v40, %v18461_v10  ;;  %v5253_v40 = vpack.c.bf16 %v5177_v8, %v5176_v38  ;;  %v18469_v8 = vld [vmem:[#allocation92_spill] sm:$0xff] }
 0x844   : > { %v4550_v37 = vmul.f32 1.442695, %v4300_v9 }
 0x846   : > { %10795 = vpow2.f32 %v4550_v37 }
 0x847   : > { %v16033_v20 = vpop.xlane.xlu1 %4887 }
 0x84b   : > { %v16037_v61 = vpop.xlane.xlu1 %4896 }
 0x84e   : > { %v4900_v34 = vpop.xlane.xlu0 %4899 }
 0x84f   : > { %v6341_v5 = vpop.permute.xlu1 %6340 }
 0x850   : > { %9761 = vmatprep.subr.bf16.mxu1 %v6341_v5  ;;  %v16062_v58 = vpop.eup %10795 }
 0x851   : > { %6516 = vrot.lane.b32.xlu0 %v18459_v51, %s11061_s28  ;;  %9762 = vmatpush3.bf16.msra.mxu1 %v6341_v5  ;;  %v18465_v5 = vld [vmem:[#allocation98_spill] sm:$0xff]  ;;  %v18468_v51 = vld [vmem:[#allocation21_spill] sm:$0xff]  ;;  %v4928_v10 = vsel %vm3793_vm2, %v16062_v58, 0.0 }
 0x852   : > { %v4303_v2 = vsub.f32 %v18466_v60, %v18465_v5  ;;  %v4305_v39 = vsub.f32 %v18468_v51, %v18467_v11  ;;  %v16076_v37 = vpop.xlane.xlu0 %4905  ;;  %v18473_v60 = vld [vmem:[#allocation20_spill] sm:$0xff] }
 0x853   : > { %v6424_v63 = vpop.permute.xlu1 %6423 }
 0x854   : > { %9764 = vmatmul.mubr.msk.bf16.vlgmr.msra.gmra.mrb[104].mxu1 %vm3793_vm2, %v5251_v22  ;;  %9771 = vmatprep.subr.bf16.mxu0 %v6424_v63  ;;  %v4556_v33 = vmul.f32 1.442695, %v4303_v2  ;;  %v4922_v22 = vsel %vm3793_vm2, %v16058_v12, 0.0 }
 0x855   : > { %9767 = vmatprep.mubr.msk.bf16.mxu1 %vm3793_vm2, %v5252_v41  ;;  %9772 = vmatpush3.bf16.msra.mxu0 %v6424_v63  ;;  %v4560_v63 = vmul.f32 1.442695, %v4305_v39 }
 0x856   : > { %10797 = vpow2.f32 %v4556_v33  ;;  %v16090_v33 = vpop.xlane.xlu0 %4908 }
 0x857   : > { %10799 = vpow2.f32 %v4560_v63 }
 0x858   : > { %10801 = vrcp.f32 %v4900_v34 }
 0x85c   : > { %9768 = vmatmul.mubr.msk.bf16.gmra.mrb[108].mxu1 %vm3793_vm2, %v5253_v40  ;;  %v18472_v40 = vld [vmem:[#allocation120_spill] sm:$0xff] }
 0x860   : > { %v16066_v9 = vpop.eup %10797 }
 0x861   : > { %v4937_v45 = vsel %vm3793_vm2, %v16066_v9, 0.0  ;;  %v16070_v41 = vpop.eup %10799 }
 0x862   : > { %v4943_v54 = vsel %vm3793_vm2, %v16070_v41, 0.0  ;;  %v10802_v46 = vpop.eup %10801 }
 0x865   : > { %4923 = vadd.xlane.f32.xlu1 %v4922_v22  ;;  %v18474_v22 = vld [vmem:[#allocation22_spill] sm:$0xff] }
 0x866   : > { %v4304_v57 = vsub.f32 %v18474_v22, %v18473_v60  ;;  %v18478_v60 = vpack.i.bf16 %v18476_v1, %v18477_v49 }
 0x869   : > { %4929 = vadd.xlane.f32.xlu1 %v4928_v10 }
 0x870   : > { %4938 = vadd.xlane.f32.xlu0 %v4937_v45  ;;  %v6428_v45 = vpop.permute.xlu0 %6427 }
 0x874   : > { %4944 = vadd.xlane.f32.xlu0 %v4943_v54 }
 0x87a   : > { %6514 = vrot.lane.b32.xlu1 %v18469_v8, %s11061_s28  ;;  %v18470_v8 = vld [vmem:[#allocation10_spill] sm:$0xff] }
 0x87b   : > { %v16078_v47 = vpop.f32.mrb[136].mxu0  ;;  %v4302_v34 = vsub.f32 %v18471_v42, %v18470_v8  ;;  %v4558_v8 = vmul.f32 1.442695, %v4304_v57 }
 0x87c   : > { %v16080_v38 = vpop.f32.mrb[137].mxu0 }
 0x87d   : > { %v16082_v5 = vpop.f32.mrb[138].mxu0  ;;  %v4554_v43 = vmul.f32 1.442695, %v4302_v34 }
 0x87e   : > { %v16086_v2 = vpop.f32.mrb[139].mxu0 }
 0x883   : > { %v16092_v11 = vpop.f32.mrb[140].mxu0 }
 0x884   : > { %v4903_v51 = vpop.xlane.xlu1 %4902  ;;  %v16094_v39 = vpop.f32.mrb[141].mxu0 }
 0x885   : > { %10803 = vrcp.f32 %v4903_v51  ;;  %v16096_v63 = vpop.f32.mrb[142].mxu0 }
 0x886   : > { %v16100_v10 = vpop.f32.mrb[143].mxu0  ;;  %10805 = vpow2.f32 %v4554_v43 }
 0x887   : > { %10807 = vpow2.f32 %v4558_v8 }
 0x888   : > { %v6426_v14 = vpop.permute.xlu1 %6425  ;;  %10809 = vrcp.f32 %v15952_v35 }
 0x889   : > { %9773 = vmatprep.subr.bf16.mxu0 %v6426_v14  ;;  %10811 = vrcp.f32 %v16033_v20 }
 0x88a   : > { %6601 = vrot.lane.b32.xlu0 %v18472_v40, %s11061_s28  ;;  %9774 = vmatpush3.bf16.msra.mxu0 %v6426_v14  ;;  %v5186_v40 = vmul.f32 %v10802_v46, %v15856_v32  ;;  %v18479_v32 = vpack.i.bf16 %v15986_v62, %v15978_v26  ;;  %10813 = vrcp.f32 %v15898_v27 }
 0x88b   : > { %9775 = vmatprep.subr.bf16.mxu0 %v6428_v45  ;;  %v16108_v51 = vpop.xlane.xlu0 %4914  ;;  %10815 = vrcp.f32 %v15958_v3  ;;  %v18482_v3 = vld [vmem:[#allocation119_spill] sm:$0xff] }
 0x88c   : > { %10817 = vrcp.f32 %v16037_v61 }
 0x88d   : > { %10819 = vrcp.f32 %v15966_v0  ;;  %v18488_v0 = vpack.i.bf16 %v15991_v13, %v15981_v21 }
 0x88e   : > { %6607 = vrot.lane.b32.xlu0 %v18475_v56, %s11061_s28  ;;  %9776 = vmatpush3.bf16.msra.mxu0 %v6428_v45  ;;  %v18486_v45 = vld [vmem:[#allocation25_spill] sm:$0xff] }
 0x88f   : > { %v10804_v54 = vpop.eup %10803  ;;  %v16114_v42 = vpop.xlane.xlu0 %4920 }
 0x890   : > { %v5187_v14 = vmul.f32 %v10804_v54, %v15918_v25  ;;  %v16127_v25 = vpop.eup %10805  ;;  %v18480_v54 = vld [vmem:[#allocation90_spill] sm:$0xff] }
 0x891   : > { %v4934_v56 = vsel %vm3793_vm2, %v16127_v25, 0.0  ;;  %v16131_v1 = vpop.eup %10807 }
 0x892   : > { %10025 = vrot.lane.b32.xlu0 %v18478_v60, %s11062_s26  ;;  %v5258_v22 = vpack.c.bf16 %v5187_v14, %v5186_v40  ;;  %v4940_v49 = vsel %vm3793_vm2, %v16131_v1, 0.0  ;;  %v18481_v14 = vld [vmem:[#allocation111_spill] sm:$0xff] }
 0x893   : > { %v6513_v34 = vpop.permute.xlu0 %6512 }
 0x894   : > { %9787 = vmatprep.subr.bf16.mxu1 %v6513_v34  ;;  %9795 = vmatprep.mubr.msk.bf16.mxu1 %vm3793_vm2, %v5258_v22 }
 0x895   : > { %9788 = vmatpush3.bf16.msra.mxu1 %v6513_v34  ;;  %v10810_v34 = vpop.eup %10809 }
 0x896   : > { %10035 = vrot.lane.b32.xlu0 %v18479_v32, %s11063_s27  ;;  %v5181_v26 = vmul.f32 %v10810_v34, %v18486_v45 }
 0x89e   : > { %4935 = vadd.xlane.f32.xlu1 %v4934_v56  ;;  %v10812_v56 = vpop.eup %10811 }
 0x89f   : > { %v5182_v61 = vmul.f32 %v10812_v56, %v15850_v15 }
 0x8a2   : > { %4941 = vadd.xlane.f32.xlu1 %v4940_v49  ;;  %v10814_v49 = vpop.eup %10813 }
 0x8a3   : > { %v10816_v20 = vpop.eup %10815 }
 0x8a4   : > { %v5183_v28 = vmul.f32 %v10816_v20, %v18489_v53 }
 0x8ad   : > { %v16135_v46 = vpop.f32.mrb[96].mxu1 }
 0x8ae   : > { %v16137_v43 = vpop.f32.mrb[97].mxu1 }
 0x8af   : > { %v16139_v57 = vpop.f32.mrb[98].mxu1 }
 0x8b0   : > { %v16143_v62 = vpop.f32.mrb[99].mxu1 }
 0x8b3   : > { %6518 = vrot.lane.b32.xlu1 %v18480_v54, %s11061_s28  ;;  %v18483_v54 = vld [vmem:[#allocation74_spill] sm:$0xff] }
 0x8b5   : > { %v16152_v8 = vpop.f32.mrb[100].mxu1 }
 0x8b6   : > { %v16155_v40 = vpop.f32.mrb[101].mxu1 }
 0x8b7   : > { %6603 = vrot.lane.b32.xlu1 %v18481_v14, %s11061_s28  ;;  %v16159_v60 = vpop.f32.mrb[102].mxu1  ;;  %v18484_v14 = vld [vmem:[#allocation29_spill] sm:$0xff] }
 0x8b8   : > { %v16163_v22 = vpop.f32.mrb[103].mxu1  ;;  %v18485_v35 = vpack.i.bf16 %v18483_v54, %v18484_v14  ;;  %v10818_v54 = vpop.eup %10817 }
 0x8b9   : > { %v16167_v27 = vpop.xlane.xlu1 %4911  ;;  %v10820_v45 = vpop.eup %10819  ;;  %v5185_v15 = vmul.f32 %v10818_v54, %v15854_v44 }
 0x8bb   : > { %6605 = vrot.lane.b32.xlu1 %v18482_v3, %s11061_s28  ;;  %v5180_v3 = vmul.f32 %v10814_v49, %v18487_v4  ;;  %v18490_v4 = vld [vmem:[#allocation40_spill] sm:$0xff]  ;;  %s11064_s28 = smov 24  }
 0x8bc   : > { %v5184_v34 = vmul.f32 %v10820_v45, %v18490_v4 }
 0x8bd   : > { %v16173_v32 = vpop.xlane.xlu1 %4917  ;;  %v5255_v48 = vpack.c.bf16 %v5181_v26, %v5180_v3 }
 0x8be   : > { %v5257_v56 = vpack.c.bf16 %v5185_v15, %v5184_v34 }
 0x8bf   : > { %10020 = vrot.lane.b32.xlu1 %v18485_v35, %s11062_s26  ;;  %v5256_v35 = vpack.c.bf16 %v5183_v28, %v5182_v61 }
 0x8c1   : > { %v6430_v36 = vpop.permute.xlu1 %6429 }
 0x8c2   : > { %9777 = vmatprep.subr.bf16.mxu0 %v6430_v36 }
 0x8c3   : > { %10030 = vrot.lane.b32.xlu1 %v18488_v0, %s11063_s27  ;;  %9778 = vmatpush3.bf16.msra.mxu0 %v6430_v36 }
 0x8c4   : > { %v4927_v21 = vpop.xlane.xlu0 %4926 }
 0x8c5   : > { %10821 = vrcp.f32 %v4927_v21 }
 0x8c6   : > { %9780 = vmatmul.mubr.msk.bf16.vlgmr.msra.gmra.mrb[152].mxu0 %vm3793_vm2, %v5255_v48 }
 0x8c7   : > { %9783 = vmatprep.mubr.msk.bf16.mxu0 %vm3793_vm2, %v5256_v35 }
 0x8c8   : > { %v16192_v13 = vpop.xlane.xlu0 %4932 }
 0x8cc   : > { %v6517_v49 = vpop.permute.xlu0 %6516 }
 0x8ce   : > { %9784 = vmatmul.mubr.msk.bf16.gmra.mrb[156].mxu0 %vm3793_vm2, %v5257_v56 }
 0x8cf   : > { %v10822_v3 = vpop.eup %10821 }
 0x8d0   : > { %v5195_v4 = vmul.f32 %v10822_v3, %v16019_v30 }
 0x8f2   : > { %v4924_v36 = vpop.xlane.xlu1 %4923 }
 0x8f3   : > { %10823 = vrcp.f32 %v4924_v36 }
 0x8f4   : > { %10825 = vrcp.f32 %v16090_v33 }
 0x8f5   : > { %v16194_v53 = vpop.f32.mrb[144].mxu0  ;;  %10827 = vrcp.f32 %v16076_v37 }
 0x8f6   : > { %v4930_v28 = vpop.xlane.xlu1 %4929  ;;  %v16196_v48 = vpop.f32.mrb[145].mxu0  ;;  %10829 = vrcp.f32 %v16167_v27 }
 0x8f7   : > { %v16198_v26 = vpop.f32.mrb[146].mxu0  ;;  %10831 = vrcp.f32 %v16108_v51  ;;  %v18493_v51 = vld [vmem:[#allocation130_spill] sm:$0xff] }
 0x8f8   : > { %v16202_v20 = vpop.f32.mrb[147].mxu0  ;;  %10833 = vrcp.f32 %v16173_v32 }
 0x8f9   : > { %10835 = vrcp.f32 %v16114_v42 }
 0x8fa   : > { %v6515_v61 = vpop.permute.xlu1 %6514  ;;  %10837 = vrcp.f32 %v4930_v28  ;;  %v18500_v28 = vpack.i.bf16 %v16013_v19, %v16007_v31 }
 0x8fb   : > { %9789 = vmatprep.subr.bf16.mxu1 %v6515_v61 }
 0x8fc   : > { %9790 = vmatpush3.bf16.msra.mxu1 %v6515_v61 }
 0x8fd   : > { %v10824_v0 = vpop.eup %10823  ;;  %v16206_v54 = vpop.f32.mrb[148].mxu0  ;;  %9791 = vmatprep.subr.bf16.mxu1 %v6517_v49 }
 0x8fe   : > { %v4939_v35 = vpop.xlane.xlu0 %4938  ;;  %v16208_v45 = vpop.f32.mrb[149].mxu0  ;;  %v5194_v15 = vmul.f32 %v10824_v0, %v16058_v12 }
 0x8ff   : > { %18491 = vst [vmem:[#allocation161_spill] sm:$0xff] %v16208_v45  ;;  %v16212_v34 = vpop.f32.mrb[150].mxu0  ;;  %v10826_v33 = vpop.eup %10825  ;;  %v10261_v45 = vld [vmem:[%s17263_s7] sm:$0xff]  }
 0x900   : > { %v16216_v21 = vpop.f32.mrb[151].mxu0  ;;  %9792 = vmatpush3.bf16.msra.mxu1 %v6517_v49  ;;  %v5262_v36 = vpack.c.bf16 %v5195_v4, %v5194_v15 }
 0x901   : > { %18492 = vst [vmem:[#allocation173_spill] sm:$0xff] %v16216_v21 }
 0x902   : > { %v16220_v14 = vpop.xlane.xlu0 %4944  ;;  %9811 = vmatprep.mubr.msk.bf16.mxu0 %vm3793_vm2, %v5262_v36  ;;  %v18494_v36 = vld [vmem:[#allocation66_spill] sm:$0xff] }
 0x906   : > { %v6602_v44 = vpop.permute.xlu0 %6601 }
 0x907   : > { %9803 = vmatprep.subr.bf16.mxu0 %v6602_v44 }
 0x908   : > { %9804 = vmatpush3.bf16.msra.mxu0 %v6602_v44  ;;  %v10828_v44 = vpop.eup %10827 }
 0x927   : > { %v9765_v30 = vpop.f32.mrb[104].mxu1 }
 0x928   : > { %v6392_v12 = vpop.f32.mrb[105].mxu1 }
 0x929   : > { %v9766_v49 = vpop.f32.mrb[106].mxu1 }
 0x92a   : > { %v10044_v3 = vpack.i.bf16 %v9766_v49, %v9765_v30  ;;  %v6395_v0 = vpop.f32.mrb[107].mxu1  ;;  %v18495_v30 = vpack.i.bf16 %v18493_v51, %v18494_v36  ;;  %v10830_v49 = vpop.eup %10829 }
 0x92b   : > { %v10039_v15 = vpack.i.bf16 %v6395_v0, %v6392_v12  ;;  %v4936_v4 = vpop.xlane.xlu1 %4935  ;;  %v18496_v0 = vld [vmem:[#allocation75_spill] sm:$0xff]  ;;  %v10832_v21 = vpop.eup %10831 }
 0x92c   : > { %10045 = vrot.lane.b32.xlu0 %v10044_v3, %s11064_s28  ;;  %v18497_v3 = vld [vmem:[#allocation73_spill] sm:$0xff]  ;;  %10839 = vrcp.f32 %v4936_v4 }
 0x92d   : > { %10040 = vrot.lane.b32.xlu1 %v10039_v15, %s11064_s28  ;;  %v18498_v61 = vpack.i.bf16 %v18496_v0, %v18497_v3  ;;  %v5189_v15 = vmul.f32 %v10826_v33, %v15866_v59  ;;  %10841 = vrcp.f32 %v16192_v13  ;;  %v5190_v59 = vmul.f32 %v10830_v49, %v15997_v52  ;;  %v10834_v13 = vpop.eup %10833  ;;  %v10262_v52 = vld [vmem:[%s17263_s7 + $0x8] sm:$0xff]  }
 0x92e   : > { %10843 = vrcp.f32 %v4939_v35  ;;  %v18501_v35 = vld [vmem:[#allocation113_spill] sm:$0xff] }
 0x92f   : > { %v4942_v37 = vpop.xlane.xlu1 %4941  ;;  %v9769_v27 = vpop.f32.mrb[108].mxu1 }
 0x930   : > { %10055 = vrot.lane.b32.xlu0 %v18495_v30, %s11062_s26  ;;  %v6408_v12 = vpop.f32.mrb[109].mxu1  ;;  %v5188_v30 = vmul.f32 %v10828_v44, %v15862_v18  ;;  %v5191_v18 = vmul.f32 %v10832_v21, %v15932_v29  ;;  %10845 = vrcp.f32 %v4942_v37  ;;  %v5192_v29 = vmul.f32 %v10834_v13, %v16005_v24  ;;  %v18502_v21 = vld [vmem:[#allocation142_spill] sm:$0xff]  ;;  %v18504_v37 = vld [vmem:[#allocation69_spill] sm:$0xff] }
 0x931   : > { %10050 = vrot.lane.b32.xlu1 %v18498_v61, %s11062_s26  ;;  %v9770_v32 = vpop.f32.mrb[110].mxu1  ;;  %v18499_v61 = vpack.i.bf16 %v16009_v16, %v16000_v50  ;;  %v10836_v16 = vpop.eup %10835  ;;  %10847 = vrcp.f32 %v16220_v14  ;;  %v18503_v33 = vpack.i.bf16 %v18501_v35, %v18502_v21  ;;  %v18509_v35 = vld [vmem:[#allocation42_spill] sm:$0xff] }
 0x932   : > { %v10074_v42 = vpack.i.bf16 %v9770_v32, %v9769_v27  ;;  %v6411_v56 = vpop.f32.mrb[111].mxu1  ;;  %v5260_v50 = vpack.c.bf16 %v5191_v18, %v5190_v59  ;;  %v10838_v19 = vpop.eup %10837  ;;  %v5193_v27 = vmul.f32 %v10836_v16, %v15946_v55  ;;  %v18507_v55 = vpack.i.bf16 %v16082_v5, %v16078_v47 }
 0x933   : > { %v10069_v51 = vpack.i.bf16 %v6411_v56, %v6408_v12  ;;  %v6519_v36 = vpop.permute.xlu1 %6518  ;;  %v5259_v56 = vpack.c.bf16 %v5189_v15, %v5188_v30  ;;  %v18505_v12 = vld [vmem:[#allocation6_spill] sm:$0xff]  ;;  %v5196_v3 = vmul.f32 %v10838_v19, %v16062_v58 }
 0x934   : > { %10065 = vrot.lane.b32.xlu0 %v18499_v61, %s11063_s27  ;;  %9793 = vmatprep.subr.bf16.mxu1 %v6519_v36  ;;  %v18506_v49 = vpack.i.bf16 %v18504_v37, %v18505_v12  ;;  %v5261_v0 = vpack.c.bf16 %v5193_v27, %v5192_v29 }
 0x935   : > { %10060 = vrot.lane.b32.xlu1 %v18500_v28, %s11063_s27  ;;  %9794 = vmatpush3.bf16.msra.mxu1 %v6519_v36 }
 0x936   : > { %9819 = vmatprep.subr.bf16.mxu1 %v10261_v45  ;;  %v10840_v44 = vpop.eup %10839 }
 0x937   : > { %v6604_v4 = vpop.permute.xlu1 %6603  ;;  %v10842_v24 = vpop.eup %10841  ;;  %v5198_v32 = vmul.f32 %v10840_v44, %v16127_v25 }
 0x938   : > { %10075 = vrot.lane.b32.xlu0 %v10074_v42, %s11064_s28  ;;  %9796 = vmatmul.mubr.msk.bf16.vlgmr.msra.gmra.mrb[112].mxu1 %vm3793_vm2, %v5259_v56  ;;  %v10844_v14 = vpop.eup %10843  ;;  %v5197_v15 = vmul.f32 %v10842_v24, %v16023_v6  ;;  %v18508_v42 = vpack.i.bf16 %v16086_v2, %v16080_v38 }
 0x939   : > { %9805 = vmatprep.subr.bf16.mxu0 %v6604_v4  ;;  %10070 = vrot.lane.b32.xlu1 %v10069_v51, %s11064_s28  ;;  %v5199_v58 = vmul.f32 %v10844_v14, %v16066_v9 }
 0x93a   : > { %9799 = vmatprep.mubr.msk.bf16.mxu1 %vm3793_vm2, %v5260_v50  ;;  %9806 = vmatpush3.bf16.msra.mxu0 %v6604_v4  ;;  %v5263_v51 = vpack.c.bf16 %v5197_v15, %v5196_v3  ;;  %v10846_v36 = vpop.eup %10845  ;;  %v18512_v3 = vld [vmem:[#allocation122_spill] sm:$0xff] }
 0x93b   : > { %v6606_v31 = vpop.permute.xlu1 %6605  ;;  %9820 = vmatpush3.bf16.msra.mxu1 %v10261_v45  ;;  %v6608_v45 = vpop.permute.xlu0 %6607  ;;  %v5264_v30 = vpack.c.bf16 %v5199_v58, %v5198_v32  ;;  %v5200_v5 = vmul.f32 %v10846_v36, %v16131_v1 }
 0x93c   : > { %10085 = vrot.lane.b32.xlu0 %v18503_v33, %s11062_s26  ;;  %9807 = vmatprep.subr.bf16.mxu0 %v6606_v31  ;;  %v10848_v47 = vpop.eup %10847  ;;  %v18510_v33 = vld [vmem:[#allocation155_spill] sm:$0xff] }
 0x93d   : > { %10080 = vrot.lane.b32.xlu1 %v18506_v49, %s11062_s26  ;;  %9821 = vmatprep.subr.bf16.mxu1 %v10262_v52  ;;  %v5201_v6 = vmul.f32 %v10848_v47, %v16070_v41 }
 0x93e   : > { %9808 = vmatpush3.bf16.msra.mxu0 %v6606_v31 }
 0x93f   : > { %9809 = vmatprep.subr.bf16.mxu0 %v6608_v45  ;;  %9822 = vmatpush3.bf16.msra.mxu1 %v10262_v52  ;;  %v5265_v25 = vpack.c.bf16 %v5201_v6, %v5200_v5  ;;  %v10026_v38 = vpop.permute.xlu0 %10025  ;;  %v10021_v2 = vpop.permute.xlu1 %10020 }
 0x940   : > { %10095 = vrot.lane.b32.xlu0 %v18507_v55, %s11063_s27  ;;  %9800 = vmatmul.mubr.msk.bf16.gmra.mrb[116].mxu1 %vm3793_vm2, %v5261_v0  ;;  %v10028_v9 = vunpack.i.h.bf16 %v10026_v38  ;;  %v10027_v28 = vunpack.i.l.bf16 %v10026_v38  ;;  %v10023_v16 = vunpack.i.h.bf16 %v10021_v2  ;;  %v10022_v52 = vunpack.i.l.bf16 %v10021_v2  ;;  %v18511_v0 = vld [vmem:[#allocation8_spill] sm:$0xff] }
 0x941   : > { %10090 = vrot.lane.b32.xlu1 %v18508_v42, %s11063_s27  ;;  %v18514_v38 = vld [vmem:[#allocation148_spill] sm:$0xff] }
 0x942   : > { %9810 = vmatpush3.bf16.msra.mxu0 %v6608_v45  ;;  %v7077_v21 = vsel %vm1868_vm1, %v18509_v35, %v10028_v9  ;;  %v7076_v27 = vsel %vm1868_vm1, %v18510_v33, %v10027_v28  ;;  %v7075_v14 = vsel %vm1868_vm1, %v18511_v0, %v10023_v16  ;;  %v7074_v55 = vsel %vm1868_vm1, %v18512_v3, %v10022_v52  ;;  %v18516_v28 = vld [vmem:[#allocation64_spill] sm:$0xff]  ;;  %v18523_v0 = vld [vmem:[#allocation169_spill] sm:$0xff]  ;;  %v18524_v3 = vld [vmem:[#allocation11_spill] sm:$0xff] }
 0x943   : > { %v10036_v61 = vpop.permute.xlu0 %10035  ;;  %v10031_v56 = vpop.permute.xlu1 %10030  ;;  %v18520_v33 = vpack.i.bf16 %v16100_v10, %v16094_v39 }
 0x944   : > { %v10038_v13 = vunpack.i.h.bf16 %v10036_v61  ;;  %v10037_v4 = vunpack.i.l.bf16 %v10036_v61  ;;  %v10033_v41 = vunpack.i.h.bf16 %v10031_v56  ;;  %v10032_v31 = vunpack.i.l.bf16 %v10031_v56  ;;  %v18517_v56 = vld [vmem:[#allocation104_spill] sm:$0xff] }
 0x945   : > { %9812 = vmatmul.mubr.msk.bf16.vlgmr.msra.gmra.mrb[160].mxu0 %vm3793_vm2, %v5263_v51 }
 0x946   : > { %9815 = vmatprep.mubr.msk.bf16.mxu0 %vm3793_vm2, %v5264_v30  ;;  %v7109_v37 = vsel %vm7106_vm3, %v7076_v27, %v10037_v4  ;;  %v7110_v12 = vsel %vm7106_vm3, %v7077_v21, %v10038_v13  ;;  %v7108_v42 = vsel %vm7106_vm3, %v7075_v14, %v10033_v41  ;;  %v7107_v58 = vsel %vm7106_vm3, %v7074_v55, %v10032_v31 }
 0x947   : > { %v18519_v41 = vpack.i.bf16 %v16096_v63, %v16092_v11  ;;  %v18522_v11 = vld [vmem:[#allocation164_spill] sm:$0xff] }
 0x94d   : > { %9816 = vmatmul.mubr.msk.bf16.gmra.mrb[164].mxu0 %vm3793_vm2, %v5265_v25  ;;  %v18513_v25 = vld [vmem:[#allocation110_spill] sm:$0xff] }
 0x94e   : > { %v18515_v2 = vpack.i.bf16 %v18513_v25, %v18514_v38  ;;  %v18525_v38 = vld [vmem:[#allocation145_spill] sm:$0xff] }
 0x999   : > { %v9781_v59 = vpop.f32.mrb[152].mxu0 }
 0x99a   : > { %v6481_v18 = vpop.f32.mrb[153].mxu0 }
 0x99b   : > { %v9782_v50 = vpop.f32.mrb[154].mxu0 }
 0x99c   : > { %v10104_v1 = vpack.i.bf16 %v9782_v50, %v9781_v59  ;;  %v6484_v29 = vpop.f32.mrb[155].mxu0 }
 0x99d   : > { %v10099_v19 = vpack.i.bf16 %v6484_v29, %v6481_v18  ;;  %v18518_v18 = vpack.i.bf16 %v18516_v28, %v18517_v56  ;;  %v18529_v28 = vld [vmem:[#allocation136_spill] sm:$0xff] }
 0x99e   : > { %10105 = vrot.lane.b32.xlu0 %v10104_v1, %s11064_s28  ;;  %v10046_v44 = vpop.permute.xlu0 %10045 }
 0x99f   : > { %v10048_v49 = vunpack.i.h.bf16 %v10046_v44  ;;  %v10047_v24 = vunpack.i.l.bf16 %v10046_v44  ;;  %v10041_v45 = vpop.permute.xlu1 %10040  ;;  %10100 = vrot.lane.b32.xlu1 %v10099_v19, %s11064_s28 }
 0x9a0   : > { %v10043_v32 = vunpack.i.h.bf16 %v10041_v45  ;;  %v10042_v15 = vunpack.i.l.bf16 %v10041_v45 }
 0x9a1   : > { %v7142_v51 = vsel %vm7139_vm4, %v7109_v37, %v10047_v24  ;;  %v7143_v36 = vsel %vm7139_vm4, %v7110_v12, %v10048_v49  ;;  %v9785_v30 = vpop.f32.mrb[156].mxu0  ;;  %v18521_v49 = vld [vmem:[#allocation171_spill] sm:$0xff] }
 0x9a2   : > { %v7173_v47 = vpack.c.bf16 %v7143_v36, %v7142_v51  ;;  %v7141_v5 = vsel %vm7139_vm4, %v7108_v42, %v10043_v32  ;;  %v7140_v6 = vsel %vm7139_vm4, %v7107_v58, %v10042_v15  ;;  %10115 = vrot.lane.b32.xlu0 %v18515_v2, %s11062_s26  ;;  %v6497_v61 = vpop.f32.mrb[157].mxu0  ;;  %v10056_v59 = vpop.permute.xlu0 %10055  ;;  %v18526_v2 = vld [vmem:[#allocation131_spill] sm:$0xff] }
 0x9a3   : > { %v10051_v9 = vpop.permute.xlu1 %10050  ;;  %10110 = vrot.lane.b32.xlu1 %v18518_v18, %s11062_s26  ;;  %v9786_v13 = vpop.f32.mrb[158].mxu0  ;;  %v7172_v4 = vpack.c.bf16 %v7141_v5, %v7140_v6  ;;  %v10058_v1 = vunpack.i.h.bf16 %v10056_v59  ;;  %v10057_v29 = vunpack.i.l.bf16 %v10056_v59 }
 0x9a4   : > { %v10134_v50 = vpack.i.bf16 %v9786_v13, %v9785_v30  ;;  %v6500_v16 = vpop.f32.mrb[159].mxu0  ;;  %v10053_v19 = vunpack.i.h.bf16 %v10051_v9  ;;  %v10052_v35 = vunpack.i.l.bf16 %v10051_v9  ;;  %v18528_v9 = vld [vmem:[#allocation137_spill] sm:$0xff]  ;;  %v18531_v13 = vpack.i.bf16 %v16139_v57, %v16135_v46 }
 0x9a5   : > { %v10129_v52 = vpack.i.bf16 %v6500_v16, %v6497_v61  ;;  %9823 = vmatprep.mubr.msk.bf16.mxu1 %vm538_vm0, %v7172_v4  ;;  %v7081_v24 = vsel %vm1868_vm1, %v18521_v49, %v10058_v1  ;;  %v7080_v63 = vsel %vm1868_vm1, %v18522_v11, %v10057_v29  ;;  %v18527_v61 = vpack.i.bf16 %v18525_v38, %v18526_v2  ;;  %v18537_v2 = vld [vmem:[#allocation118_spill] sm:$0xff] }
 0x9a6   : > { %10125 = vrot.lane.b32.xlu0 %v18519_v41, %s11063_s27  ;;  %v10066_v31 = vpop.permute.xlu0 %10065  ;;  %9824 = vmatmul.mubr.msk.bf16.vlgmr.msra.gmra.mrb[120].mxu1 %vm538_vm0, %v7173_v47  ;;  %v7079_v14 = vsel %vm1868_vm1, %v18523_v0, %v10053_v19  ;;  %v7078_v39 = vsel %vm1868_vm1, %v18524_v3, %v10052_v35  ;;  %v18530_v56 = vpack.i.bf16 %v18528_v9, %v18529_v28 }
 0x9a7   : > { %v10061_v21 = vpop.permute.xlu1 %10060  ;;  %10120 = vrot.lane.b32.xlu1 %v18520_v33, %s11063_s27  ;;  %v10068_v27 = vunpack.i.h.bf16 %v10066_v31  ;;  %v10067_v44 = vunpack.i.l.bf16 %v10066_v31  ;;  %v18532_v4 = vpack.i.bf16 %v16143_v62, %v16137_v43  ;;  %v18533_v43 = vld [vmem:[#allocation5_spill] sm:$0xff] }
 0x9a8   : > { %v10063_v37 = vunpack.i.h.bf16 %v10061_v21  ;;  %v10062_v12 = vunpack.i.l.bf16 %v10061_v21 }
 0x9a9   : > { %v7113_v15 = vsel %vm7106_vm3, %v7080_v63, %v10067_v44  ;;  %v7114_v42 = vsel %vm7106_vm3, %v7081_v24, %v10068_v27  ;;  %v18534_v24 = vld [vmem:[#allocation84_spill] sm:$0xff] }
 0x9aa   : > { %10135 = vrot.lane.b32.xlu0 %v10134_v50, %s11064_s28  ;;  %v10076_v45 = vpop.permute.xlu0 %10075  ;;  %v7111_v36 = vsel %vm7106_vm3, %v7078_v39, %v10062_v12  ;;  %v7112_v30 = vsel %vm7106_vm3, %v7079_v14, %v10063_v37  ;;  %v18536_v14 = vld [vmem:[#allocation140_spill] sm:$0xff] }
 0x9ab   : > { %v10078_v10 = vunpack.i.h.bf16 %v10076_v45  ;;  %v10077_v55 = vunpack.i.l.bf16 %v10076_v45  ;;  %v10071_v32 = vpop.permute.xlu1 %10070  ;;  %10130 = vrot.lane.b32.xlu1 %v10129_v52, %s11064_s28  ;;  %v18535_v45 = vld [vmem:[#allocation167_spill] sm:$0xff] }
 0x9ac   : > { %v10073_v58 = vunpack.i.h.bf16 %v10071_v32  ;;  %v10072_v51 = vunpack.i.l.bf16 %v10071_v32 }
 0x9ad   : > { %v7146_v47 = vsel %vm7139_vm4, %v7113_v15, %v10077_v55  ;;  %v7147_v5 = vsel %vm7139_vm4, %v7114_v42, %v10078_v10 }
 0x9ae   : > { %v7145_v6 = vsel %vm7139_vm4, %v7112_v30, %v10073_v58  ;;  %v7144_v25 = vsel %vm7139_vm4, %v7111_v36, %v10072_v51  ;;  %10145 = vrot.lane.b32.xlu0 %v18527_v61, %s11062_s26  ;;  %v7175_v59 = vpack.c.bf16 %v7147_v5, %v7146_v47  ;;  %v10086_v50 = vpop.permute.xlu0 %10085  ;;  %v18538_v61 = vpack.i.bf16 %v15821_v17, %v18537_v2 }
 0x9af   : > { %10140 = vrot.lane.b32.xlu1 %v18530_v56, %s11062_s26  ;;  %v7174_v18 = vpack.c.bf16 %v7145_v6, %v7144_v25  ;;  %v10081_v16 = vpop.permute.xlu1 %10080  ;;  %v10088_v29 = vunpack.i.h.bf16 %v10086_v50  ;;  %v10087_v41 = vunpack.i.l.bf16 %v10086_v50  ;;  %v18541_v17 = vpack.i.bf16 %v16159_v60, %v16152_v8  ;;  %v18543_v60 = vld [vmem:[#allocation134_spill] sm:$0xff] }
 0x9b0   : > { %v10083_v35 = vunpack.i.h.bf16 %v10081_v16  ;;  %v10082_v21 = vunpack.i.l.bf16 %v10081_v16 }
 0x9b1   : > { %9827 = vmatprep.mubr.msk.bf16.mxu1 %vm538_vm0, %v7174_v18  ;;  %v7085_v62 = vsel %vm1868_vm1, %v18533_v43, %v10088_v29  ;;  %v7084_v11 = vsel %vm1868_vm1, %v18534_v24, %v10087_v41  ;;  %v18539_v18 = vld [vmem:[#allocation35_spill] sm:$0xff] }
 0x9b2   : > { %10155 = vrot.lane.b32.xlu0 %v18531_v13, %s11063_s27  ;;  %9828 = vmatmul.mubr.msk.bf16.gmra.mrb[124].mxu1 %vm538_vm0, %v7175_v59  ;;  %v10096_v52 = vpop.permute.xlu0 %10095  ;;  %v7083_v0 = vsel %vm1868_vm1, %v18535_v45, %v10083_v35  ;;  %v7082_v3 = vsel %vm1868_vm1, %v18536_v14, %v10082_v21  ;;  %v18540_v13 = vpack.i.bf16 %v15829_v23, %v18539_v18  ;;  %v18544_v43 = vld [vmem:[#allocation87_spill] sm:$0xff] }
 0x9b3   : > { %10150 = vrot.lane.b32.xlu1 %v18532_v4, %s11063_s27  ;;  %v10091_v31 = vpop.permute.xlu1 %10090  ;;  %v10098_v46 = vunpack.i.h.bf16 %v10096_v52  ;;  %v10097_v57 = vunpack.i.l.bf16 %v10096_v52 }
 0x9b4   : > { %v10093_v37 = vunpack.i.h.bf16 %v10091_v31  ;;  %v10092_v12 = vunpack.i.l.bf16 %v10091_v31 }
 0x9b5   : > { %v7117_v32 = vsel %vm7106_vm3, %v7084_v11, %v10097_v57  ;;  %v7118_v15 = vsel %vm7106_vm3, %v7085_v62, %v10098_v46 }
 0x9b6   : > { %v7115_v51 = vsel %vm7106_vm3, %v7082_v3, %v10092_v12  ;;  %v7116_v36 = vsel %vm7106_vm3, %v7083_v0, %v10093_v37 }
 0xa0b   : > { %v9797_v1 = vpop.f32.mrb[112].mxu1 }
 0xa0c   : > { %v6570_v19 = vpop.f32.mrb[113].mxu1 }
 0xa0d   : > { %v9798_v33 = vpop.f32.mrb[114].mxu1 }
 0xa0e   : > { %v10164_v27 = vpack.i.bf16 %v9798_v33, %v9797_v1  ;;  %v6573_v44 = vpop.f32.mrb[115].mxu1  ;;  %v18542_v33 = vpack.i.bf16 %v16163_v22, %v16155_v40  ;;  %v18546_v22 = vld [vmem:[#allocation30_spill] sm:$0xff] }
 0xa0f   : > { %v10159_v49 = vpack.i.bf16 %v6573_v44, %v6570_v19 }
 0xa10   : > { %10165 = vrot.lane.b32.xlu0 %v10164_v27, %s11064_s28  ;;  %v10106_v63 = vpop.permute.xlu0 %10105 }
 0xa11   : > { %v10108_v39 = vunpack.i.h.bf16 %v10106_v63  ;;  %v10107_v10 = vunpack.i.l.bf16 %v10106_v63  ;;  %v10101_v55 = vpop.permute.xlu1 %10100  ;;  %10160 = vrot.lane.b32.xlu1 %v10159_v49, %s11064_s28  ;;  %v18545_v63 = vld [vmem:[#allocation172_spill] sm:$0xff] }
 0xa12   : > { %v10103_v42 = vunpack.i.h.bf16 %v10101_v55  ;;  %v10102_v58 = vunpack.i.l.bf16 %v10101_v55 }
 0xa13   : > { %v7150_v30 = vsel %vm7139_vm4, %v7117_v32, %v10107_v10  ;;  %v7151_v47 = vsel %vm7139_vm4, %v7118_v15, %v10108_v39  ;;  %v9801_v5 = vpop.f32.mrb[116].mxu1 }
 0xa14   : > { %v7177_v6 = vpack.c.bf16 %v7151_v47, %v7150_v30  ;;  %v7149_v25 = vsel %vm7139_vm4, %v7116_v36, %v10103_v42  ;;  %v7148_v38 = vsel %vm7139_vm4, %v7115_v51, %v10102_v58  ;;  %10175 = vrot.lane.b32.xlu0 %v18538_v61, %s11062_s26  ;;  %v6586_v59 = vpop.f32.mrb[117].mxu1  ;;  %v10116_v9 = vpop.permute.xlu0 %10115  ;;  %v18549_v61 = vld [vmem:[#allocation63_spill] sm:$0xff] }
 0xa15   : > { %v7176_v28 = vpack.c.bf16 %v7149_v25, %v7148_v38  ;;  %v10111_v56 = vpop.permute.xlu1 %10110  ;;  %10170 = vrot.lane.b32.xlu1 %v18540_v13, %s11062_s26  ;;  %v9802_v4 = vpop.f32.mrb[118].mxu1  ;;  %v10118_v1 = vunpack.i.h.bf16 %v10116_v9  ;;  %v10117_v29 = vunpack.i.l.bf16 %v10116_v9 }
 0xa16   : > { %v10194_v50 = vpack.i.bf16 %v9802_v4, %v9801_v5  ;;  %v6589_v16 = vpop.f32.mrb[119].mxu1  ;;  %v10113_v19 = vunpack.i.h.bf16 %v10111_v56  ;;  %v10112_v23 = vunpack.i.l.bf16 %v10111_v56  ;;  %v18552_v4 = vpack.i.bf16 %v16198_v26, %v16194_v53  ;;  %v18558_v53 = vld [vmem:[#allocation103_spill] sm:$0xff] }
 0xa17   : > { %v10189_v52 = vpack.i.bf16 %v6589_v16, %v6586_v59  ;;  %9831 = vmatprep.mubr.msk.bf16.mxu1 %vm538_vm0, %v7176_v28  ;;  %v7089_v49 = vsel %vm1868_vm1, %v18543_v60, %v10118_v1  ;;  %v7088_v62 = vsel %vm1868_vm1, %v18544_v43, %v10117_v29  ;;  %v18550_v59 = vld [vmem:[#allocation112_spill] sm:$0xff]  ;;  %v18555_v16 = vld [vmem:[#allocation165_spill] sm:$0xff]  ;;  %v18557_v1 = vld [vmem:[#allocation99_spill] sm:$0xff]  ;;  %v18560_v29 = vpack.i.bf16 %v16212_v34, %v16206_v54 }
 0xa18   : > { %v9813_v41 = vpop.f32.mrb[160].mxu0  ;;  %10185 = vrot.lane.b32.xlu0 %v18541_v17, %s11063_s27  ;;  %v10126_v31 = vpop.permute.xlu0 %10125  ;;  %9832 = vmatmul.mubr.msk.bf16.gmra.mrb[128].mxu1 %vm538_vm0, %v7177_v6  ;;  %v7087_v40 = vsel %vm1868_vm1, %v18545_v63, %v10113_v19  ;;  %v7086_v45 = vsel %vm1868_vm1, %v18546_v22, %v10112_v23  ;;  %v18547_v6 = vld [vmem:[#allocation56_spill] sm:$0xff]  ;;  %v18551_v9 = vpack.i.bf16 %v18549_v61, %v18550_v59  ;;  %v16458_v19 = vld [vmem:[%s17264_s8] ss:$0 sm:$0xff]  ;;  %v11019_v63 = vld [vmem:[%s11161_s24 + $0x8] sm:$0xff] }
 0xa19   : > { %v6659_v35 = vpop.f32.mrb[161].mxu0  ;;  %v10121_v21 = vpop.permute.xlu1 %10120  ;;  %10180 = vrot.lane.b32.xlu1 %v18542_v33, %s11063_s27  ;;  %v10128_v46 = vunpack.i.h.bf16 %v10126_v31  ;;  %v10127_v57 = vunpack.i.l.bf16 %v10126_v31  ;;  %v18548_v25 = vpack.i.bf16 %v15920_v7, %v18547_v6  ;;  %v18553_v7 = vpack.i.bf16 %v16202_v20, %v16196_v48  ;;  %v18561_v48 = vld [vmem:[#allocation173_spill] sm:$0xff] }
 0xa1a   : > { %v9814_v27 = vpop.f32.mrb[162].mxu0  ;;  %v10123_v44 = vunpack.i.h.bf16 %v10121_v21  ;;  %v10122_v37 = vunpack.i.l.bf16 %v10121_v21  ;;  %v18559_v26 = vpack.i.bf16 %v18557_v1, %v18558_v53  ;;  %v18562_v20 = vld [vmem:[#allocation161_spill] sm:$0xff] }
 0xa1b   : > { %v10224_v12 = vpack.i.bf16 %v9814_v27, %v9813_v41  ;;  %v6662_v8 = vpop.f32.mrb[163].mxu0  ;;  %v7121_v39 = vsel %vm7106_vm3, %v7088_v62, %v10127_v57  ;;  %v7122_v10 = vsel %vm7106_vm3, %v7089_v49, %v10128_v46  ;;  %v18563_v41 = vpack.i.bf16 %v18561_v48, %v18562_v20 }
 0xa1c   : > { %v10219_v24 = vpack.i.bf16 %v6662_v8, %v6659_v35  ;;  %10195 = vrot.lane.b32.xlu0 %v10194_v50, %s11064_s28  ;;  %v10136_v11 = vpop.permute.xlu0 %10135  ;;  %v7119_v15 = vsel %vm7106_vm3, %v7086_v45, %v10122_v37  ;;  %v7120_v42 = vsel %vm7106_vm3, %v7087_v40, %v10123_v44  ;;  %v18554_v50 = vld [vmem:[#allocation129_spill] sm:$0xff]  ;;  %v11017_v44 = vld [vmem:[%s11161_s24] sm:$0xff] }
 0xa1d   : > { %v10138_v0 = vunpack.i.h.bf16 %v10136_v11  ;;  %v10137_v14 = vunpack.i.l.bf16 %v10136_v11  ;;  %v10131_v3 = vpop.permute.xlu1 %10130  ;;  %10190 = vrot.lane.b32.xlu1 %v10189_v52, %s11064_s28  ;;  %v18556_v52 = vpack.i.bf16 %v18554_v50, %v18555_v16 }
 0xa1e   : > { %v10133_v55 = vunpack.i.h.bf16 %v10131_v3  ;;  %v10132_v32 = vunpack.i.l.bf16 %v10131_v3  ;;  %v11020_v3 = vld [vmem:[%s11161_s24 + $0x10] sm:$0xff] }
 0xa1f   : > { %v7154_v58 = vsel %vm7139_vm4, %v7121_v39, %v10137_v14  ;;  %v7155_v51 = vsel %vm7139_vm4, %v7122_v10, %v10138_v0 }
 0xa20   : > { %v7179_v36 = vpack.c.bf16 %v7155_v51, %v7154_v58  ;;  %v7153_v30 = vsel %vm7139_vm4, %v7120_v42, %v10133_v55  ;;  %v7152_v47 = vsel %vm7139_vm4, %v7119_v15, %v10132_v32  ;;  %v9817_v5 = vpop.f32.mrb[164].mxu0  ;;  %10205 = vrot.lane.b32.xlu0 %v18548_v25, %s11062_s26  ;;  %v10146_v17 = vpop.permute.xlu0 %10145  ;;  %v18564_v55 = vld [vmem:[#allocation176_spill] sm:$0xff]  ;;  %v18565_v15 = vld [vmem:[#allocation13_spill] sm:$0xff]  ;;  %v18566_v58 = vld [vmem:[#allocation107_spill] sm:$0xff] }
 0xa21   : > { %v7178_v38 = vpack.c.bf16 %v7153_v30, %v7152_v47  ;;  %v6675_v2 = vpop.f32.mrb[165].mxu0  ;;  %10200 = vrot.lane.b32.xlu1 %v18551_v9, %s11062_s26  ;;  %v10141_v31 = vpop.permute.xlu1 %10140  ;;  %v10148_v8 = vunpack.i.h.bf16 %v10146_v17  ;;  %v10147_v60 = vunpack.i.l.bf16 %v10146_v17 }
 0xa22   : > { %v9818_v28 = vpop.f32.mrb[166].mxu0  ;;  %v10143_v49 = vunpack.i.h.bf16 %v10141_v31  ;;  %v10142_v43 = vunpack.i.l.bf16 %v10141_v31 }
 0xa23   : > { %v10254_v56 = vpack.i.bf16 %v9818_v28, %v9817_v5  ;;  %v6678_v18 = vpop.f32.mrb[167].mxu0  ;;  %9835 = vmatprep.mubr.msk.bf16.mxu1 %vm538_vm0, %v7178_v38  ;;  %v7093_v32 = vsel %vm1868_vm1, %v18564_v55, %v10148_v8  ;;  %v7092_v42 = vsel %vm1868_vm1, %v18565_v15, %v10147_v60  ;;  %v11024_v60 = vld [vmem:[%s11161_s24 + $0x28] sm:$0xff] }
 0xa24   : > { %v10249_v13 = vpack.i.bf16 %v6678_v18, %v6675_v2  ;;  %10215 = vrot.lane.b32.xlu0 %v18552_v4, %s11063_s27  ;;  %9836 = vmatmul.mubr.msk.bf16.gmra.mrb[132].mxu1 %vm538_vm0, %v7179_v36  ;;  %v10156_v21 = vpop.permute.xlu0 %10155  ;;  %v7091_v51 = vsel %vm1868_vm1, %v18566_v58, %v10143_v49  ;;  %v18567_v36 = vld [vmem:[#allocation177_spill] sm:$0xff] }
 0xa25   : > { %10210 = vrot.lane.b32.xlu1 %v18553_v7, %s11063_s27  ;;  %v10151_v57 = vpop.permute.xlu1 %10150  ;;  %v10157_v62 = vunpack.i.l.bf16 %v10156_v21  ;;  %v10158_v45 = vunpack.i.h.bf16 %v10156_v21  ;;  %v7090_v30 = vsel %vm1868_vm1, %v18567_v36, %v10142_v43 }
 0xa26   : > { %v10152_v0 = vunpack.i.l.bf16 %v10151_v57  ;;  %v10153_v14 = vunpack.i.h.bf16 %v10151_v57 }
 0xa27   : > { %v7125_v5 = vsel %vm7106_vm3, %v7092_v42, %v10157_v62  ;;  %v7126_v61 = vsel %vm7106_vm3, %v7093_v32, %v10158_v45  ;;  %v18570_v32 = vld [vmem:[#allocation96_spill] sm:$0xff]  ;;  %v18571_v42 = vld [vmem:[#allocation141_spill] sm:$0xff] }
 0xa28   : > { %10225 = vrot.lane.b32.xlu0 %v10224_v12, %s11064_s28  ;;  %v7123_v59 = vsel %vm7106_vm3, %v7090_v30, %v10152_v0 }
 0xa29   : > { %10220 = vrot.lane.b32.xlu1 %v10219_v24, %s11064_s28  ;;  %v11018_v24 = vld [vmem:[%s11161_s24 + $0x18] sm:$0xff] }
 0xa2c   : > { %10235 = vrot.lane.b32.xlu0 %v18556_v52, %s11062_s26 }
 0xa2d   : > { %10230 = vrot.lane.b32.xlu1 %v18559_v26, %s11062_s26 }
 0xa30   : > { %10245 = vrot.lane.b32.xlu0 %v18560_v29, %s11063_s27 }
 0xa31   : > { %10240 = vrot.lane.b32.xlu1 %v18563_v41, %s11063_s27 }
 0xa34   : > { %10255 = vrot.lane.b32.xlu0 %v10254_v56, %s11064_s28  ;;  %v7124_v56 = vsel %vm7106_vm3, %v7091_v51, %v10153_v14  ;;  %v18568_v14 = vld [vmem:[#allocation138_spill] sm:$0xff] }
 0xa35   : > { %10250 = vrot.lane.b32.xlu1 %v10249_v13, %s11064_s28 }
 0xa79   : > { %v9825_v23 = vpop.f32.mrb[120].mxu1 }
 0xa7a   : > { %v7293_v54 = vpop.f32.mrb[121].mxu1  ;;  %v7302_v27 = vadd.f32 %v9825_v23, %v16458_v19  ;;  %v11021_v23 = vld [vmem:[%s11161_s24 + $0x20] sm:$0xff] }
 0xa7b   : > { %v7294_v34 = vadd.f32 %v16458_v19, %v7293_v54  ;;  %v9826_v35 = vpop.f32.mrb[122].mxu1 }
 0xa7c   : > { %v7305_v33 = vadd.f32 %v9826_v35, %v16458_v19  ;;  %v7296_v46 = vpop.f32.mrb[123].mxu1  ;;  %v16476_v39 = vadd.f32 %v11020_v3, %v7302_v27  ;;  %v11022_v27 = vld [vmem:[%s11161_s24 + $0x30] sm:$0xff] }
 0xa7d   : > { %v16464_v37 = vadd.f32 %v11017_v44, %v7294_v34  ;;  %v7297_v12 = vadd.f32 %v16458_v19, %v7296_v46 }
 0xa7e   : > { %v16468_v11 = vadd.f32 %v11018_v24, %v7305_v33  ;;  %v7460_v7 = vsel %vm538_vm0, %v16476_v39, 0.0 }
 0xa7f   : > { %v16471_v40 = vadd.f32 %v11019_v63, %v7297_v12  ;;  %v7454_v22 = vsel %vm538_vm0, %v16464_v37, 0.0  ;;  %v11023_v12 = vld [vmem:[%s11161_s24 + $0x38] sm:$0xff] }
 0xa80   : > { %7455 = vadd.xlane.f32.xlu1 %v7454_v22  ;;  %v7463_v2 = vsel %vm538_vm0, %v16468_v11, 0.0 }
 0xa81   : > { %v7457_v10 = vsel %vm538_vm0, %v16471_v40, 0.0 }
 0xa82   : > { %v10166_v47 = vpop.permute.xlu0 %10165  ;;  %7458 = vadd.xlane.f32.xlu0 %v7457_v10  ;;  %v18569_v10 = vld [vmem:[#allocation181_spill] sm:$0xff] }
 0xa83   : > { %v10168_v6 = vunpack.i.h.bf16 %v10166_v47  ;;  %v10167_v25 = vunpack.i.l.bf16 %v10166_v47  ;;  %v10161_v38 = vpop.permute.xlu1 %10160 }
 0xa84   : > { %v10163_v9 = vunpack.i.h.bf16 %v10161_v38  ;;  %v10162_v28 = vunpack.i.l.bf16 %v10161_v38  ;;  %7464 = vadd.xlane.f32.xlu1 %v7463_v2 }
 0xa85   : > { %v7158_v18 = vsel %vm7139_vm4, %v7125_v5, %v10167_v25  ;;  %v7159_v13 = vsel %vm7139_vm4, %v7126_v61, %v10168_v6  ;;  %v9829_v4 = vpop.f32.mrb[124].mxu1 }
 0xa86   : > { %v7181_v50 = vpack.c.bf16 %v7159_v13, %v7158_v18  ;;  %v7157_v16 = vsel %vm7139_vm4, %v7124_v56, %v10163_v9  ;;  %v7156_v52 = vsel %vm7139_vm4, %v7123_v59, %v10162_v28  ;;  %v10176_v1 = vpop.permute.xlu0 %10175  ;;  %v7309_v53 = vpop.f32.mrb[125].mxu1  ;;  %7461 = vadd.xlane.f32.xlu0 %v7460_v7  ;;  %v7318_v29 = vadd.f32 %v9829_v4, %v16458_v19 }
 0xa87   : > { %v7180_v26 = vpack.c.bf16 %v7157_v16, %v7156_v52  ;;  %v7310_v48 = vadd.f32 %v16458_v19, %v7309_v53  ;;  %v10171_v20 = vpop.permute.xlu1 %10170  ;;  %v9830_v41 = vpop.f32.mrb[126].mxu1  ;;  %v10178_v35 = vunpack.i.h.bf16 %v10176_v1  ;;  %v10177_v21 = vunpack.i.l.bf16 %v10176_v1 }
 0xa88   : > { %v7321_v17 = vadd.f32 %v9830_v41, %v16458_v19  ;;  %v7312_v31 = vpop.f32.mrb[127].mxu1  ;;  %v10173_v33 = vunpack.i.h.bf16 %v10171_v20  ;;  %v10172_v46 = vunpack.i.l.bf16 %v10171_v20  ;;  %v16510_v44 = vadd.f32 %v11022_v27, %v7318_v29  ;;  %v18575_v27 = vld [vmem:[#allocation17_spill] sm:$0xff] }
 0xa89   : > { %v16504_v54 = vadd.f32 %v11021_v23, %v7310_v48  ;;  %v7313_v34 = vadd.f32 %v16458_v19, %v7312_v31  ;;  %9839 = vmatprep.mubr.msk.bf16.mxu1 %vm538_vm0, %v7180_v26  ;;  %v7097_v3 = vsel %vm1868_vm1, %v18568_v14, %v10178_v35  ;;  %v7096_v55 = vsel %vm1868_vm1, %v18569_v10, %v10177_v21  ;;  %v18572_v23 = vld [vmem:[#allocation82_spill] sm:$0xff]  ;;  %v18573_v35 = vld [vmem:[#allocation185_spill] sm:$0xff] }
 0xa8a   : > { %v10186_v57 = vpop.permute.xlu0 %10185  ;;  %9840 = vmatmul.mubr.msk.bf16.gmra.mrb[136].mxu1 %vm538_vm0, %v7181_v50  ;;  %v16513_v8 = vadd.f32 %v11023_v12, %v7321_v17  ;;  %v7095_v15 = vsel %vm1868_vm1, %v18570_v32, %v10173_v33  ;;  %v7094_v58 = vsel %vm1868_vm1, %v18571_v42, %v10172_v46  ;;  %v7472_v5 = vsel %vm538_vm0, %v16510_v44, 0.0  ;;  %v18574_v46 = vld [vmem:[#allocation43_spill] sm:$0xff] }
 0xa8b   : > { %v16516_v49 = vadd.f32 %v11024_v60, %v7313_v34  ;;  %v10181_v43 = vpop.permute.xlu1 %10180  ;;  %v7466_v62 = vsel %vm538_vm0, %v16504_v54, 0.0  ;;  %v10188_v24 = vunpack.i.h.bf16 %v10186_v57  ;;  %v10187_v63 = vunpack.i.l.bf16 %v10186_v57 }
 0xa8c   : > { %7467 = vadd.xlane.f32.xlu0 %v7466_v62  ;;  %v10183_v22 = vunpack.i.h.bf16 %v10181_v43  ;;  %v10182_v45 = vunpack.i.l.bf16 %v10181_v43  ;;  %v7475_v6 = vsel %vm538_vm0, %v16513_v8, 0.0 }
 0xa8d   : > { %v7469_v0 = vsel %vm538_vm0, %v16516_v49, 0.0  ;;  %v7129_v25 = vsel %vm7106_vm3, %v7096_v55, %v10187_v63  ;;  %v7130_v38 = vsel %vm7106_vm3, %v7097_v3, %v10188_v24 }
 0xa8e   : > { %v10196_v51 = vpop.permute.xlu0 %10195  ;;  %7470 = vadd.xlane.f32.xlu1 %v7469_v0  ;;  %v7127_v59 = vsel %vm7106_vm3, %v7094_v58, %v10182_v45  ;;  %v7128_v9 = vsel %vm7106_vm3, %v7095_v15, %v10183_v22 }
 0xa8f   : > { %v10198_v36 = vunpack.i.h.bf16 %v10196_v51  ;;  %v10197_v30 = vunpack.i.l.bf16 %v10196_v51  ;;  %v10191_v47 = vpop.permute.xlu1 %10190 }
 0xa90   : > { %v10193_v2 = vunpack.i.h.bf16 %v10191_v47  ;;  %v10192_v61 = vunpack.i.l.bf16 %v10191_v47  ;;  %7473 = vadd.xlane.f32.xlu0 %v7472_v5 }
 0xa91   : > { %v7162_v28 = vsel %vm7139_vm4, %v7129_v25, %v10197_v30  ;;  %v7163_v56 = vsel %vm7139_vm4, %v7130_v38, %v10198_v36 }
 0xa92   : > { %v7183_v18 = vpack.c.bf16 %v7163_v56, %v7162_v28  ;;  %v7161_v13 = vsel %vm7139_vm4, %v7128_v9, %v10193_v2  ;;  %v7160_v4 = vsel %vm7139_vm4, %v7127_v59, %v10192_v61  ;;  %v10206_v7 = vpop.permute.xlu0 %10205  ;;  %7476 = vadd.xlane.f32.xlu1 %v7475_v6  ;;  %v18576_v9 = vld [vmem:[#allocation135_spill] sm:$0xff]  ;;  %v18577_v56 = vld [vmem:[#allocation126_spill] sm:$0xff] }
 0xa93   : > { %v7182_v50 = vpack.c.bf16 %v7161_v13, %v7160_v4  ;;  %v10201_v16 = vpop.permute.xlu1 %10200  ;;  %v10208_v52 = vunpack.i.h.bf16 %v10206_v7  ;;  %v10207_v1 = vunpack.i.l.bf16 %v10206_v7  ;;  %v18578_v4 = vld [vmem:[#allocation16_spill] sm:$0xff] }
 0xa94   : > { %v10203_v26 = vunpack.i.h.bf16 %v10201_v16  ;;  %v10202_v29 = vunpack.i.l.bf16 %v10201_v16 }
 0xa95   : > { %9843 = vmatprep.mubr.msk.bf16.mxu1 %vm538_vm0, %v7182_v50  ;;  %v7101_v34 = vsel %vm1868_vm1, %v18572_v23, %v10208_v52  ;;  %v7100_v21 = vsel %vm1868_vm1, %v18573_v35, %v10207_v1  ;;  %v18579_v50 = vld [vmem:[#allocation93_spill] sm:$0xff] }
 0xa96   : > { %v10216_v53 = vpop.permute.xlu0 %10215  ;;  %9844 = vmatmul.mubr.msk.bf16.gmra.mrb[140].mxu1 %vm538_vm0, %v7183_v18  ;;  %v7099_v57 = vsel %vm1868_vm1, %v18574_v46, %v10203_v26  ;;  %v7098_v12 = vsel %vm1868_vm1, %v18575_v27, %v10202_v29 }
 0xa97   : > { %v10211_v48 = vpop.permute.xlu1 %10210  ;;  %v10218_v20 = vunpack.i.h.bf16 %v10216_v53  ;;  %v10217_v41 = vunpack.i.l.bf16 %v10216_v53 }
 0xa98   : > { %v10213_v17 = vunpack.i.h.bf16 %v10211_v48  ;;  %v10212_v31 = vunpack.i.l.bf16 %v10211_v48 }
 0xa99   : > { %v7133_v24 = vsel %vm7106_vm3, %v7100_v21, %v10217_v41  ;;  %v7134_v63 = vsel %vm7106_vm3, %v7101_v34, %v10218_v20 }
 0xa9a   : > { %v10226_v33 = vpop.permute.xlu0 %10225  ;;  %v7131_v0 = vsel %vm7106_vm3, %v7098_v12, %v10212_v31  ;;  %v7132_v14 = vsel %vm7106_vm3, %v7099_v57, %v10213_v17 }
 0xa9b   : > { %v10228_v60 = vunpack.i.h.bf16 %v10226_v33  ;;  %v10227_v43 = vunpack.i.l.bf16 %v10226_v33  ;;  %v10221_v62 = vpop.permute.xlu1 %10220 }
 0xa9c   : > { %v10223_v22 = vunpack.i.h.bf16 %v10221_v62  ;;  %v10222_v45 = vunpack.i.l.bf16 %v10221_v62  ;;  %v11025_v62 = vld [vmem:[%s11161_s24 + $0x40] sm:$0xff] }
 0xa9d   : > { %v7166_v3 = vsel %vm7139_vm4, %v7133_v24, %v10227_v43  ;;  %v7167_v10 = vsel %vm7139_vm4, %v7134_v63, %v10228_v60 }
 0xa9e   : > { %v7185_v55 = vpack.c.bf16 %v7167_v10, %v7166_v3  ;;  %v7165_v32 = vsel %vm7139_vm4, %v7132_v14, %v10223_v22  ;;  %v7164_v15 = vsel %vm7139_vm4, %v7131_v0, %v10222_v45  ;;  %v10236_v42 = vpop.permute.xlu0 %10235  ;;  %v11026_v45 = vld [vmem:[%s11161_s24 + $0x50] sm:$0xff]  ;;  %v11027_v14 = vld [vmem:[%s11161_s24 + $0x48] sm:$0xff] }
 0xa9f   : > { %v7184_v58 = vpack.c.bf16 %v7165_v32, %v7164_v15  ;;  %v10231_v51 = vpop.permute.xlu1 %10230  ;;  %v10238_v36 = vunpack.i.h.bf16 %v10236_v42  ;;  %v10237_v30 = vunpack.i.l.bf16 %v10236_v42 }
 0xaa0   : > { %v10233_v5 = vunpack.i.h.bf16 %v10231_v51  ;;  %v10232_v6 = vunpack.i.l.bf16 %v10231_v51 }
 0xaa1   : > { %9847 = vmatprep.mubr.msk.bf16.mxu1 %vm538_vm0, %v7184_v58  ;;  %v7105_v28 = vsel %vm1868_vm1, %v18576_v9, %v10238_v36  ;;  %v7104_v18 = vsel %vm1868_vm1, %v18577_v56, %v10237_v30 }
 0xaa2   : > { %v10246_v47 = vpop.permute.xlu0 %10245  ;;  %9848 = vmatmul.mubr.msk.bf16.gmra.mrb[144].mxu1 %vm538_vm0, %v7185_v55  ;;  %v7103_v7 = vsel %vm1868_vm1, %v18578_v4, %v10233_v5  ;;  %v7102_v16 = vsel %vm1868_vm1, %v18579_v50, %v10232_v6  ;;  %v11028_v55 = vld [vmem:[%s11161_s24 + $0x58] sm:$0xff] }
 0xaa3   : > { %v10241_v25 = vpop.permute.xlu1 %10240  ;;  %v10248_v38 = vunpack.i.h.bf16 %v10246_v47  ;;  %v10247_v2 = vunpack.i.l.bf16 %v10246_v47 }
 0xaa4   : > { %v10243_v61 = vunpack.i.h.bf16 %v10241_v25  ;;  %v10242_v59 = vunpack.i.l.bf16 %v10241_v25  ;;  %v11029_v25 = vld [vmem:[%s11161_s24 + $0x60] sm:$0xff] }
 0xaa5   : > { %v7137_v26 = vsel %vm7106_vm3, %v7104_v18, %v10247_v2  ;;  %v7138_v29 = vsel %vm7106_vm3, %v7105_v28, %v10248_v38  ;;  %v11031_v28 = vld [vmem:[%s11161_s24 + $0x68] sm:$0xff] }
 0xaa6   : > { %v10256_v13 = vpop.permute.xlu0 %10255  ;;  %v7135_v41 = vsel %vm7106_vm3, %v7102_v16, %v10242_v59  ;;  %v7136_v17 = vsel %vm7106_vm3, %v7103_v7, %v10243_v61  ;;  %v11030_v59 = vld [vmem:[%s11161_s24 + $0x70] sm:$0xff] }
 0xaa7   : > { %v10258_v52 = vunpack.i.h.bf16 %v10256_v13  ;;  %v10257_v1 = vunpack.i.l.bf16 %v10256_v13  ;;  %v10251_v53 = vpop.permute.xlu1 %10250  ;;  %v11032_v13 = vld [vmem:[%s11161_s24 + $0x78] sm:$0xff] }
 0xaa8   : > { %v10253_v48 = vunpack.i.h.bf16 %v10251_v53  ;;  %v10252_v20 = vunpack.i.l.bf16 %v10251_v53 }
 0xaa9   : > { %v7170_v31 = vsel %vm7139_vm4, %v7137_v26, %v10257_v1  ;;  %v7171_v23 = vsel %vm7139_vm4, %v7138_v29, %v10258_v52 }
 0xaaa   : > { %v7187_v34 = vpack.c.bf16 %v7171_v23, %v7170_v31  ;;  %v7169_v35 = vsel %vm7139_vm4, %v7136_v17, %v10253_v48  ;;  %v7168_v21 = vsel %vm7139_vm4, %v7135_v41, %v10252_v20  ;;  %v11033_v20 = vld [vmem:[%s11161_s24 + $0x80] sm:$0xff]  ;;  %v11034_v23 = vld [vmem:[%s11161_s24 + $0x90] sm:$0xff] }
 0xaab   : > { %v7186_v33 = vpack.c.bf16 %v7169_v35, %v7168_v21  ;;  %v11035_v35 = vld [vmem:[%s11161_s24 + $0x88] sm:$0xff] }
 0xaad   : > { %9851 = vmatprep.mubr.msk.bf16.mxu1 %vm538_vm0, %v7186_v33 }
 0xaae   : > { %9852 = vmatmul.mubr.msk.bf16.gmra.mrb[148].mxu1 %vm538_vm0, %v7187_v34 }
 0xaeb   : > { %v9833_v46 = vpop.f32.mrb[128].mxu1 }
 0xaec   : > { %v7325_v57 = vpop.f32.mrb[129].mxu1  ;;  %v7334_v27 = vadd.f32 %v9833_v46, %v16458_v19  ;;  %v11036_v46 = vld [vmem:[%s11161_s24 + $0x98] sm:$0xff] }
 0xaed   : > { %v7326_v12 = vadd.f32 %v16458_v19, %v7325_v57  ;;  %v9834_v60 = vpop.f32.mrb[130].mxu1 }
 0xaee   : > { %v7328_v43 = vpop.f32.mrb[131].mxu1  ;;  %v7337_v63 = vadd.f32 %v9834_v60, %v16458_v19  ;;  %v16588_v0 = vadd.f32 %v11026_v45, %v7334_v27 }
 0xaef   : > { %v16583_v24 = vadd.f32 %v11025_v62, %v7326_v12  ;;  %v7329_v22 = vadd.f32 %v16458_v19, %v7328_v43 }
 0xaf0   : > { %v16596_v32 = vadd.f32 %v11028_v55, %v7337_v63  ;;  %v7484_v42 = vsel %vm538_vm0, %v16588_v0, 0.0 }
 0xaf1   : > { %v16591_v3 = vadd.f32 %v11027_v14, %v7329_v22  ;;  %v7478_v10 = vsel %vm538_vm0, %v16583_v24, 0.0 }
 0xaf2   : > { %7479 = vadd.xlane.f32.xlu0 %v7478_v10  ;;  %v7487_v51 = vsel %vm538_vm0, %v16596_v32, 0.0  ;;  %v11037_v10 = vld [vmem:[%s11161_s24 + $0xa0] sm:$0xff] }
 0xaf3   : > { %v7481_v15 = vsel %vm538_vm0, %v16591_v3, 0.0 }
 0xaf4   : > { %7482 = vadd.xlane.f32.xlu1 %v7481_v15 }
 0xaf6   : > { %7485 = vadd.xlane.f32.xlu0 %v7484_v42 }
 0xaf7   : > { %v9837_v58 = vpop.f32.mrb[132].mxu1 }
 0xaf8   : > { %v7341_v36 = vpop.f32.mrb[133].mxu1  ;;  %7488 = vadd.xlane.f32.xlu1 %v7487_v51  ;;  %v7350_v30 = vadd.f32 %v9837_v58, %v16458_v19  ;;  %v11038_v58 = vld [vmem:[%s11161_s24 + $0xb0] sm:$0xff] }
 0xaf9   : > { %v7342_v47 = vadd.f32 %v16458_v19, %v7341_v36  ;;  %v9838_v5 = vpop.f32.mrb[134].mxu1  ;;  %v11039_v36 = vld [vmem:[%s11161_s24 + $0xa8] sm:$0xff] }
 0xafa   : > { %v7344_v6 = vpop.f32.mrb[135].mxu1  ;;  %v7353_v2 = vadd.f32 %v9838_v5, %v16458_v19  ;;  %v16612_v9 = vadd.f32 %v11030_v59, %v7350_v30  ;;  %v11040_v5 = vld [vmem:[%s11161_s24 + $0xb8] sm:$0xff] }
 0xafb   : > { %v16607_v38 = vadd.f32 %v11029_v25, %v7342_v47  ;;  %v7345_v61 = vadd.f32 %v16458_v19, %v7344_v6 }
 0xafc   : > { %v16620_v4 = vadd.f32 %v11032_v13, %v7353_v2  ;;  %v7496_v50 = vsel %vm538_vm0, %v16612_v9, 0.0 }
 0xafd   : > { %18580 = vst [vmem:[#allocation163_spill] sm:$0xff] %v16607_v38  ;;  %v16615_v56 = vadd.f32 %v11031_v28, %v7345_v61  ;;  %v7490_v18 = vsel %vm538_vm0, %v16607_v38, 0.0 }
 0xafe   : > { %7491 = vadd.xlane.f32.xlu0 %v7490_v18  ;;  %18582 = vst [vmem:[#allocation158_spill] sm:$0xff] %v16620_v4  ;;  %v7499_v16 = vsel %vm538_vm0, %v16620_v4, 0.0 }
 0xaff   : > { %18581 = vst [vmem:[#allocation150_spill] sm:$0xff] %v16615_v56  ;;  %v7493_v7 = vsel %vm538_vm0, %v16615_v56, 0.0 }
 0xb00   : > { %7494 = vadd.xlane.f32.xlu1 %v7493_v7 }
 0xb02   : > { %7497 = vadd.xlane.f32.xlu0 %v7496_v50 }
 0xb04   : > { %7500 = vadd.xlane.f32.xlu1 %v7499_v16 }
 0xb0f   : > { %v7459_v50 = vpop.xlane.xlu0 %7458 }
 0xb5d   : > { %v9841_v52 = vpop.f32.mrb[136].mxu1 }
 0xb5e   : > { %v7357_v1 = vpop.f32.mrb[137].mxu1  ;;  %v7366_v53 = vadd.f32 %v9841_v52, %v16458_v19  ;;  %v11041_v52 = vld [vmem:[%s11161_s24 + $0xc0] sm:$0xff] }
 0xb5f   : > { %v7358_v26 = vadd.f32 %v16458_v19, %v7357_v1  ;;  %v9842_v29 = vpop.f32.mrb[138].mxu1 }
 0xb60   : > { %v7360_v48 = vpop.f32.mrb[139].mxu1  ;;  %v7369_v17 = vadd.f32 %v9842_v29, %v16458_v19  ;;  %v16636_v34 = vadd.f32 %v11034_v23, %v7366_v53  ;;  %v7456_v29 = vpop.xlane.xlu1 %7455 }
 0xb61   : > { %v16631_v41 = vadd.f32 %v11033_v20, %v7358_v26  ;;  %v7361_v31 = vadd.f32 %v16458_v19, %v7360_v48  ;;  %v11042_v48 = vld [vmem:[%s11161_s24 + $0xd0] sm:$0xff] }
 0xb62   : > { %18584 = vst [vmem:[#allocation162_spill] sm:$0xff] %v16636_v34  ;;  %v16644_v57 = vadd.f32 %v11036_v46, %v7369_v17  ;;  %v7508_v12 = vsel %vm538_vm0, %v16636_v34, 0.0  ;;  %v11043_v17 = vld [vmem:[%s11161_s24 + $0xc8] sm:$0xff] }
 0xb63   : > { %18583 = vst [vmem:[#allocation15_spill] sm:$0xff] %v16631_v41  ;;  %v16639_v21 = vadd.f32 %v11035_v35, %v7361_v31  ;;  %v7502_v33 = vsel %vm538_vm0, %v16631_v41, 0.0  ;;  %v11044_v35 = vld [vmem:[%s11161_s24 + $0xd8] sm:$0xff] }
 0xb64   : > { %7503 = vadd.xlane.f32.xlu0 %v7502_v33  ;;  %18586 = vst [vmem:[#allocation127_spill] sm:$0xff] %v16644_v57  ;;  %v7511_v43 = vsel %vm538_vm0, %v16644_v57, 0.0 }
 0xb65   : > { %18585 = vst [vmem:[#allocation174_spill] sm:$0xff] %v16639_v21  ;;  %v7505_v27 = vsel %vm538_vm0, %v16639_v21, 0.0 }
 0xb66   : > { %7506 = vadd.xlane.f32.xlu1 %v7505_v27  ;;  %v7462_v27 = vpop.xlane.xlu0 %7461 }
 0xb68   : > { %7509 = vadd.xlane.f32.xlu0 %v7508_v12 }
 0xb69   : > { %v9845_v60 = vpop.f32.mrb[140].mxu1 }
 0xb6a   : > { %v7373_v62 = vpop.f32.mrb[141].mxu1  ;;  %7512 = vadd.xlane.f32.xlu1 %v7511_v43  ;;  %v7382_v63 = vadd.f32 %v9845_v60, %v16458_v19  ;;  %v7465_v60 = vpop.xlane.xlu1 %7464 }
 0xb6b   : > { %v7374_v22 = vadd.f32 %v16458_v19, %v7373_v62  ;;  %v9846_v45 = vpop.f32.mrb[142].mxu1 }
 0xb6c   : > { %v7376_v14 = vpop.f32.mrb[143].mxu1  ;;  %v7385_v15 = vadd.f32 %v9846_v45, %v16458_v19  ;;  %v16660_v51 = vadd.f32 %v11038_v58, %v7382_v63  ;;  %v7550_v63 = vmul.f32 0.03125, %v7456_v29 }
 0xb6d   : > { %v16655_v55 = vadd.f32 %v11037_v10, %v7374_v22  ;;  %v7377_v42 = vadd.f32 %v16458_v19, %v7376_v14  ;;  %v7468_v22 = vpop.xlane.xlu0 %7467 }
 0xb6e   : > { %18588 = vst [vmem:[#allocation34_spill] sm:$0xff] %v16660_v51  ;;  %v16668_v6 = vadd.f32 %v11040_v5, %v7385_v15  ;;  %v7520_v2 = vsel %vm538_vm0, %v16660_v51, 0.0 }
 0xb6f   : > { %18587 = vst [vmem:[#allocation58_spill] sm:$0xff] %v16655_v55  ;;  %v16663_v30 = vadd.f32 %v11039_v36, %v7377_v42  ;;  %v7514_v47 = vsel %vm538_vm0, %v16655_v55, 0.0  ;;  %v7471_v42 = vpop.xlane.xlu1 %7470  ;;  %v7551_v36 = vmul.f32 0.03125, %v7459_v50 }
 0xb70   : > { %7515 = vadd.xlane.f32.xlu0 %v7514_v47  ;;  %18590 = vst [vmem:[#allocation128_spill] sm:$0xff] %v16668_v6  ;;  %v7523_v59 = vsel %vm538_vm0, %v16668_v6, 0.0  ;;  %v11045_v47 = vld [vmem:[%s11161_s24 + $0xe0] sm:$0xff] }
 0xb71   : > { %18589 = vst [vmem:[#allocation83_spill] sm:$0xff] %v16663_v30  ;;  %v7517_v25 = vsel %vm538_vm0, %v16663_v30, 0.0 }
 0xb72   : > { %7518 = vadd.xlane.f32.xlu1 %v7517_v25 }
 0xb74   : > { %7521 = vadd.xlane.f32.xlu0 %v7520_v2 }
 0xb75   : > { %v9849_v61 = vpop.f32.mrb[144].mxu1 }
 0xb76   : > { %v7389_v28 = vpop.f32.mrb[145].mxu1  ;;  %7524 = vadd.xlane.f32.xlu1 %v7523_v59  ;;  %v7398_v18 = vadd.f32 %v9849_v61, %v16458_v19  ;;  %v16708_v61 = vsub.f32 %v16464_v37, %v7550_v63  ;;  %v7552_v59 = vmul.f32 0.03125, %v7462_v27 }
 0xb77   : > { %v7390_v13 = vadd.f32 %v16458_v19, %v7389_v28  ;;  %v9850_v7 = vpop.f32.mrb[146].mxu1  ;;  %v11046_v28 = vld [vmem:[%s11161_s24 + $0xf0] sm:$0xff] }
 0xb78   : > { %v7392_v16 = vpop.f32.mrb[147].mxu1  ;;  %v7401_v53 = vadd.f32 %v9850_v7, %v16458_v19  ;;  %v16684_v20 = vadd.f32 %v11042_v48, %v7398_v18  ;;  %v7477_v48 = vpop.xlane.xlu1 %7476 }
 0xb79   : > { %v16679_v1 = vadd.f32 %v11041_v52, %v7390_v13  ;;  %v7393_v26 = vadd.f32 %v16458_v19, %v7392_v16  ;;  %v11047_v13 = vld [vmem:[%s11161_s24 + $0xe8] sm:$0xff]  ;;  %v7474_v16 = vpop.xlane.xlu0 %7473  ;;  %v16719_v52 = vsub.f32 %v16471_v40, %v7551_v36 }
 0xb7a   : > { %18592 = vst [vmem:[#allocation188_spill] sm:$0xff] %v16684_v20  ;;  %v16692_v33 = vadd.f32 %v11044_v35, %v7401_v53  ;;  %v7532_v12 = vsel %vm538_vm0, %v16684_v20, 0.0  ;;  %v7553_v53 = vmul.f32 0.03125, %v7465_v60  ;;  %v7555_v60 = vmul.f32 0.03125, %v7471_v42 }
 0xb7b   : > { %18591 = vst [vmem:[#allocation156_spill] sm:$0xff] %v16679_v1  ;;  %v16687_v31 = vadd.f32 %v11043_v17, %v7393_v26  ;;  %v7526_v23 = vsel %vm538_vm0, %v16679_v1, 0.0  ;;  %v16727_v17 = vsub.f32 %v16476_v39, %v7552_v59  ;;  %v7557_v42 = vmul.f32 0.03125, %v7477_v48 }
 0xb7c   : > { %7527 = vadd.xlane.f32.xlu0 %v7526_v23  ;;  %18594 = vst [vmem:[#allocation170_spill] sm:$0xff] %v16692_v33  ;;  %v7535_v62 = vsel %vm538_vm0, %v16692_v33, 0.0  ;;  %v7554_v23 = vmul.f32 0.03125, %v7468_v22 }
 0xb7d   : > { %18593 = vst [vmem:[#allocation76_spill] sm:$0xff] %v16687_v31  ;;  %v7529_v46 = vsel %vm538_vm0, %v16687_v31, 0.0 }
 0xb7e   : > { %7530 = vadd.xlane.f32.xlu1 %v7529_v46  ;;  %v7614_v46 = vmul.f32 %v16708_v61, %v16708_v61  ;;  %v16741_v22 = vsub.f32 %v16504_v54, %v7554_v23 }
 0xb7f   : > { %v7480_v27 = vpop.xlane.xlu0 %7479 }
 0xb80   : > { %7533 = vadd.xlane.f32.xlu0 %v7532_v12  ;;  %v16734_v12 = vsub.f32 %v16468_v11, %v7553_v53 }
 0xb81   : > { %v9853_v43 = vpop.f32.mrb[148].mxu1  ;;  %v7483_v63 = vpop.xlane.xlu1 %7482 }
 0xb82   : > { %v7405_v45 = vpop.f32.mrb[149].mxu1  ;;  %7536 = vadd.xlane.f32.xlu1 %v7535_v62  ;;  %v7414_v14 = vadd.f32 %v9853_v43, %v16458_v19  ;;  %v7615_v62 = vmul.f32 %v16719_v52, %v16719_v52  ;;  %v7617_v36 = vmul.f32 %v16734_v12, %v16734_v12 }
 0xb83   : > { %v7406_v10 = vadd.f32 %v16458_v19, %v7405_v45  ;;  %v9854_v15 = vpop.f32.mrb[150].mxu1  ;;  %v7556_v45 = vmul.f32 0.03125, %v7474_v16  ;;  %v7559_v16 = vmul.f32 0.03125, %v7483_v63 }
 0xb84   : > { %v7408_v58 = vpop.f32.mrb[151].mxu1  ;;  %v7417_v25 = vadd.f32 %v9854_v15, %v16458_v19  ;;  %v16711_v18 = vadd.f32 %v11046_v28, %v7414_v14  ;;  %v7646_v14 = vsel %vm538_vm0, %v7614_v46, 0.0  ;;  %v16747_v15 = vsub.f32 %v16516_v49, %v7555_v60 }
 0xb85   : > { %v16703_v5 = vadd.f32 %v11045_v47, %v7406_v10  ;;  %v7409_v2 = vadd.f32 %v16458_v19, %v7408_v58  ;;  %v11048_v19 = vld [vmem:[%s11161_s24 + $0xf8] sm:$0xff]  ;;  %v7616_v10 = vmul.f32 %v16727_v17, %v16727_v17  ;;  %v7649_v58 = vsel %vm538_vm0, %v7615_v62, 0.0  ;;  %v7486_v47 = vpop.xlane.xlu0 %7485 }
 0xb86   : > { %18596 = vst [vmem:[#allocation186_spill] sm:$0xff] %v16711_v18  ;;  %v16722_v26 = vadd.f32 %v11048_v19, %v7417_v25  ;;  %v7544_v35 = vsel %vm538_vm0, %v16711_v18, 0.0  ;;  %v16753_v25 = vsub.f32 %v16510_v44, %v7556_v45  ;;  %v7618_v28 = vmul.f32 %v16741_v22, %v16741_v22 }
 0xb87   : > { %18595 = vst [vmem:[#allocation95_spill] sm:$0xff] %v16703_v5  ;;  %v16714_v7 = vadd.f32 %v11047_v13, %v7409_v2  ;;  %v7538_v50 = vsel %vm538_vm0, %v16703_v5, 0.0  ;;  %v7558_v2 = vmul.f32 0.03125, %v7480_v27  ;;  %v7652_v59 = vsel %vm538_vm0, %v7616_v10, 0.0  ;;  %v7489_v13 = vpop.xlane.xlu1 %7488 }
 0xb88   : > { %7539 = vadd.xlane.f32.xlu0 %v7538_v50  ;;  %18598 = vst [vmem:[#allocation26_spill] sm:$0xff] %v16722_v26  ;;  %v7547_v43 = vsel %vm538_vm0, %v16722_v26, 0.0  ;;  %v16759_v50 = vsub.f32 %v16513_v8, %v7557_v42  ;;  %v7655_v53 = vsel %vm538_vm0, %v7617_v36, 0.0  ;;  %v7619_v19 = vmul.f32 %v16747_v15, %v16747_v15 }
 0xb89   : > { %18597 = vst [vmem:[#allocation183_spill] sm:$0xff] %v16714_v7  ;;  %v7541_v29 = vsel %vm538_vm0, %v16714_v7, 0.0  ;;  %v16765_v48 = vsub.f32 %v16583_v24, %v7558_v2  ;;  %v7560_v23 = vmul.f32 0.03125, %v7486_v47  ;;  %v7620_v46 = vmul.f32 %v16753_v25, %v16753_v25 }
 0xb8a   : > { %7542 = vadd.xlane.f32.xlu1 %v7541_v29  ;;  %v16771_v60 = vsub.f32 %v16591_v3, %v7559_v16  ;;  %v7661_v62 = vsel %vm538_vm0, %v7619_v19, 0.0  ;;  %v7621_v63 = vmul.f32 %v16759_v50, %v16759_v50 }
 0xb8b   : > { %v7492_v29 = vpop.xlane.xlu0 %7491  ;;  %v16777_v45 = vsub.f32 %v16588_v0, %v7560_v23  ;;  %v7664_v10 = vsel %vm538_vm0, %v7620_v46, 0.0  ;;  %v7622_v42 = vmul.f32 %v16765_v48, %v16765_v48 }
 0xb8c   : > { %7545 = vadd.xlane.f32.xlu0 %v7544_v35  ;;  %v7658_v35 = vsel %vm538_vm0, %v7618_v28, 0.0  ;;  %v7667_v2 = vsel %vm538_vm0, %v7621_v63, 0.0 }
 0xb8d   : > { %v7495_v27 = vpop.xlane.xlu1 %7494  ;;  %v7624_v19 = vmul.f32 %v16777_v45, %v16777_v45 }
 0xb8e   : > { %7548 = vadd.xlane.f32.xlu1 %v7547_v43  ;;  %v7561_v43 = vmul.f32 0.03125, %v7489_v13  ;;  %v7563_v47 = vmul.f32 0.03125, %v7495_v27 }
 0xb90   : > { %7647 = vadd.xlane.f32.xlu0 %v7646_v14  ;;  %v7562_v14 = vmul.f32 0.03125, %v7492_v29  ;;  %v16783_v36 = vsub.f32 %v16596_v32, %v7561_v43  ;;  %v16795_v29 = vsub.f32 %v16615_v56, %v7563_v47  ;;  %v7676_v43 = vsel %vm538_vm0, %v7624_v19, 0.0 }
 0xb91   : > { %v7501_v28 = vpop.xlane.xlu1 %7500 }
 0xb92   : > { %7650 = vadd.xlane.f32.xlu1 %v7649_v58  ;;  %v7498_v58 = vpop.xlane.xlu0 %7497  ;;  %v16789_v13 = vsub.f32 %v16607_v38, %v7562_v14  ;;  %v7565_v23 = vmul.f32 0.03125, %v7501_v28  ;;  %v7625_v46 = vmul.f32 %v16783_v36, %v16783_v36 }
 0xb93   : > { %v7564_v16 = vmul.f32 0.03125, %v7498_v58 }
 0xb94   : > { %7653 = vadd.xlane.f32.xlu0 %v7652_v59  ;;  %v7623_v59 = vmul.f32 %v16771_v60, %v16771_v60  ;;  %v16807_v63 = vsub.f32 %v16620_v4, %v7565_v23  ;;  %v7679_v14 = vsel %vm538_vm0, %v7625_v46, 0.0 }
 0xb95   : > { %v16801_v27 = vsub.f32 %v16612_v9, %v7564_v16  ;;  %v10263_v16 = vld [vmem:[%s17267_s11] sm:$0xff]  }
 0xb96   : > { %7656 = vadd.xlane.f32.xlu1 %v7655_v53  ;;  %v7670_v53 = vsel %vm538_vm0, %v7622_v42, 0.0  ;;  %9855 = vmatprep.subr.bf16.mxu0 %v10263_v16 }
 0xb97   : > { %v7628_v58 = vmul.f32 %v16801_v27, %v16801_v27  ;;  %9856 = vmatpush3.bf16.msra.mxu0 %v10263_v16 }
 0xb98   : > { %7659 = vadd.xlane.f32.xlu0 %v7658_v35  ;;  %v7673_v35 = vsel %vm538_vm0, %v7623_v59, 0.0 }
 0xb99   : > { %v7688_v59 = vsel %vm538_vm0, %v7628_v58, 0.0 }
 0xb9a   : > { %7662 = vadd.xlane.f32.xlu1 %v7661_v62  ;;  %v7626_v62 = vmul.f32 %v16789_v13, %v16789_v13 }
 0xb9c   : > { %7665 = vadd.xlane.f32.xlu0 %v7664_v10  ;;  %v7627_v10 = vmul.f32 %v16795_v29, %v16795_v29  ;;  %v7682_v42 = vsel %vm538_vm0, %v7626_v62, 0.0 }
 0xb9e   : > { %7668 = vadd.xlane.f32.xlu1 %v7667_v2  ;;  %v7685_v47 = vsel %vm538_vm0, %v7627_v10, 0.0  ;;  %v7629_v2 = vmul.f32 %v16807_v63, %v16807_v63 }
 0xba0   : > { %7671 = vadd.xlane.f32.xlu0 %v7670_v53  ;;  %v7691_v28 = vsel %vm538_vm0, %v7629_v2, 0.0  ;;  %v10264_v53 = vld [vmem:[%s17267_s11 + $0x8] sm:$0xff]  }
 0xba1   : > { %9857 = vmatprep.subr.bf16.mxu0 %v10264_v53 }
 0xba2   : > { %7674 = vadd.xlane.f32.xlu1 %v7673_v35  ;;  %9858 = vmatpush3.bf16.msra.mxu0 %v10264_v53 }
 0xba4   : > { %7677 = vadd.xlane.f32.xlu0 %v7676_v43 }
 0xba6   : > { %7680 = vadd.xlane.f32.xlu1 %v7679_v14 }
 0xba8   : > { %7683 = vadd.xlane.f32.xlu0 %v7682_v42 }
 0xbaa   : > { %7686 = vadd.xlane.f32.xlu1 %v7685_v47 }
 0xbac   : > { %7689 = vadd.xlane.f32.xlu0 %v7688_v59 }
 0xbae   : > { %7692 = vadd.xlane.f32.xlu1 %v7691_v28 }
 0xbf1   : > { %v7504_v19 = vpop.xlane.xlu0 %7503 }
 0xbf2   : > { %v7566_v23 = vmul.f32 0.03125, %v7504_v19 }
 0xbf3   : > { %v7507_v35 = vpop.xlane.xlu1 %7506 }
 0xbf4   : > { %v16827_v46 = vsub.f32 %v16631_v41, %v7566_v23  ;;  %v7567_v43 = vmul.f32 0.03125, %v7507_v35 }
 0xbf5   : > { %v7510_v62 = vpop.xlane.xlu0 %7509 }
 0xbf6   : > { %v16830_v14 = vsub.f32 %v16639_v21, %v7567_v43  ;;  %v7568_v10 = vmul.f32 0.03125, %v7510_v62  ;;  %v7630_v42 = vmul.f32 %v16827_v46, %v16827_v46 }
 0xbf7   : > { %v7513_v58 = vpop.xlane.xlu1 %7512 }
 0xbf8   : > { %v16835_v47 = vsub.f32 %v16636_v34, %v7568_v10  ;;  %v7569_v2 = vmul.f32 0.03125, %v7513_v58  ;;  %v7694_v59 = vsel %vm538_vm0, %v7630_v42, 0.0  ;;  %v7631_v28 = vmul.f32 %v16830_v14, %v16830_v14 }
 0xbf9   : > { %7695 = vadd.xlane.f32.xlu0 %v7694_v59 }
 0xbfa   : > { %v16841_v16 = vsub.f32 %v16644_v57, %v7569_v2  ;;  %v7697_v53 = vsel %vm538_vm0, %v7631_v28, 0.0  ;;  %v7632_v19 = vmul.f32 %v16835_v47, %v16835_v47 }
 0xbfb   : > { %7698 = vadd.xlane.f32.xlu1 %v7697_v53 }
 0xbfc   : > { %v7700_v23 = vsel %vm538_vm0, %v7632_v19, 0.0  ;;  %v7633_v35 = vmul.f32 %v16841_v16, %v16841_v16 }
 0xbfd   : > { %v7516_v43 = vpop.xlane.xlu0 %7515  ;;  %7701 = vadd.xlane.f32.xlu0 %v7700_v23 }
 0xbfe   : > { %v7570_v62 = vmul.f32 0.03125, %v7516_v43  ;;  %v7703_v10 = vsel %vm538_vm0, %v7633_v35, 0.0 }
 0xbff   : > { %7704 = vadd.xlane.f32.xlu1 %v7703_v10  ;;  %v7519_v42 = vpop.xlane.xlu1 %7518 }
 0xc00   : > { %v16851_v58 = vsub.f32 %v16655_v55, %v7570_v62  ;;  %v7571_v2 = vmul.f32 0.03125, %v7519_v42 }
 0xc01   : > { %v7522_v59 = vpop.xlane.xlu0 %7521 }
 0xc02   : > { %v16854_v28 = vsub.f32 %v16663_v30, %v7571_v2  ;;  %v7572_v53 = vmul.f32 0.03125, %v7522_v59  ;;  %v7634_v19 = vmul.f32 %v16851_v58, %v16851_v58 }
 0xc03   : > { %v7525_v21 = vpop.xlane.xlu1 %7524 }
 0xc04   : > { %v16859_v23 = vsub.f32 %v16660_v51, %v7572_v53  ;;  %v7573_v43 = vmul.f32 0.03125, %v7525_v21  ;;  %v7706_v35 = vsel %vm538_vm0, %v7634_v19, 0.0  ;;  %v7635_v62 = vmul.f32 %v16854_v28, %v16854_v28 }
 0xc05   : > { %7707 = vadd.xlane.f32.xlu0 %v7706_v35 }
 0xc06   : > { %v16865_v10 = vsub.f32 %v16668_v6, %v7573_v43  ;;  %v7709_v42 = vsel %vm538_vm0, %v7635_v62, 0.0  ;;  %v7636_v2 = vmul.f32 %v16859_v23, %v16859_v23 }
 0xc07   : > { %7710 = vadd.xlane.f32.xlu1 %v7709_v42 }
 0xc08   : > { %v7712_v59 = vsel %vm538_vm0, %v7636_v2, 0.0  ;;  %v7637_v21 = vmul.f32 %v16865_v10, %v16865_v10 }
 0xc09   : > { %v7528_v53 = vpop.xlane.xlu0 %7527  ;;  %7713 = vadd.xlane.f32.xlu0 %v7712_v59 }
 0xc0a   : > { %v7574_v19 = vmul.f32 0.03125, %v7528_v53  ;;  %v7715_v30 = vsel %vm538_vm0, %v7637_v21, 0.0 }
 0xc0b   : > { %7716 = vadd.xlane.f32.xlu1 %v7715_v30  ;;  %v7531_v35 = vpop.xlane.xlu1 %7530 }
 0xc0c   : > { %v16875_v43 = vsub.f32 %v16679_v1, %v7574_v19  ;;  %v7575_v62 = vmul.f32 0.03125, %v7531_v35 }
 0xc0d   : > { %v7534_v6 = vpop.xlane.xlu0 %7533 }
 0xc0e   : > { %v16878_v55 = vsub.f32 %v16687_v31, %v7575_v62  ;;  %v7576_v42 = vmul.f32 0.03125, %v7534_v6  ;;  %v7638_v2 = vmul.f32 %v16875_v43, %v16875_v43 }
 0xc0f   : > { %v7537_v51 = vpop.xlane.xlu1 %7536 }
 0xc10   : > { %v16883_v59 = vsub.f32 %v16684_v20, %v7576_v42  ;;  %v7577_v53 = vmul.f32 0.03125, %v7537_v51  ;;  %v7718_v30 = vsel %vm538_vm0, %v7638_v2, 0.0  ;;  %v7639_v21 = vmul.f32 %v16878_v55, %v16878_v55 }
 0xc11   : > { %7719 = vadd.xlane.f32.xlu0 %v7718_v30 }
 0xc12   : > { %v16889_v19 = vsub.f32 %v16692_v33, %v7577_v53  ;;  %v7721_v35 = vsel %vm538_vm0, %v7639_v21, 0.0  ;;  %v7640_v6 = vmul.f32 %v16883_v59, %v16883_v59 }
 0xc13   : > { %7722 = vadd.xlane.f32.xlu1 %v7721_v35 }
 0xc14   : > { %v7724_v62 = vsel %vm538_vm0, %v7640_v6, 0.0  ;;  %v7641_v51 = vmul.f32 %v16889_v19, %v16889_v19 }
 0xc15   : > { %v7540_v42 = vpop.xlane.xlu0 %7539  ;;  %7725 = vadd.xlane.f32.xlu0 %v7724_v62 }
 0xc16   : > { %v7578_v2 = vmul.f32 0.03125, %v7540_v42  ;;  %v7727_v31 = vsel %vm538_vm0, %v7641_v51, 0.0 }
 0xc17   : > { %7728 = vadd.xlane.f32.xlu1 %v7727_v31  ;;  %v7543_v30 = vpop.xlane.xlu1 %7542 }
 0xc18   : > { %v16899_v53 = vsub.f32 %v16703_v5, %v7578_v2  ;;  %v7579_v21 = vmul.f32 0.03125, %v7543_v30 }
 0xc19   : > { %v7546_v33 = vpop.xlane.xlu0 %7545 }
 0xc1a   : > { %v16902_v1 = vsub.f32 %v16714_v7, %v7579_v21  ;;  %v7580_v35 = vmul.f32 0.03125, %v7546_v33  ;;  %v7642_v6 = vmul.f32 %v16899_v53, %v16899_v53 }
 0xc1b   : > { %v7549_v20 = vpop.xlane.xlu1 %7548 }
 0xc1c   : > { %v16907_v62 = vsub.f32 %v16711_v18, %v7580_v35  ;;  %v7581_v42 = vmul.f32 0.03125, %v7549_v20  ;;  %v7730_v31 = vsel %vm538_vm0, %v7642_v6, 0.0  ;;  %v7643_v51 = vmul.f32 %v16902_v1, %v16902_v1 }
 0xc1d   : > { %7731 = vadd.xlane.f32.xlu0 %v7730_v31  ;;  %v7648_v2 = vpop.xlane.xlu0 %7647 }
 0xc1e   : > { %v16913_v30 = vsub.f32 %v16722_v26, %v7581_v42  ;;  %v7742_v21 = vmul.f32 0.03125, %v7648_v2  ;;  %v7733_v33 = vsel %vm538_vm0, %v7643_v51, 0.0  ;;  %v7644_v7 = vmul.f32 %v16907_v62, %v16907_v62 }
 0xc1f   : > { %7734 = vadd.xlane.f32.xlu1 %v7733_v33  ;;  %v7651_v35 = vpop.xlane.xlu1 %7650 }
 0xc20   : > { %v7774_v5 = vadd.f32 1e-06, %v7742_v21  ;;  %v7743_v20 = vmul.f32 0.03125, %v7651_v35  ;;  %v7736_v6 = vsel %vm538_vm0, %v7644_v7, 0.0  ;;  %v7645_v18 = vmul.f32 %v16913_v30, %v16913_v30 }
 0xc21   : > { %7737 = vadd.xlane.f32.xlu0 %v7736_v6  ;;  %v7654_v31 = vpop.xlane.xlu0 %7653 }
 0xc22   : > { %10849 = vrsqrt.f32 %v7774_v5  ;;  %v7775_v42 = vadd.f32 1e-06, %v7743_v20  ;;  %v7744_v26 = vmul.f32 0.03125, %v7654_v31  ;;  %v7739_v2 = vsel %vm538_vm0, %v7645_v18, 0.0  ;;  %v16925_v18 = vld [vmem:[%s17265_s9] ss:$0 sm:$0xff] }
 0xc23   : > { %7740 = vadd.xlane.f32.xlu1 %v7739_v2  ;;  %v7657_v51 = vpop.xlane.xlu1 %7656 }
 0xc24   : > { %10851 = vrsqrt.f32 %v7775_v42  ;;  %v7776_v57 = vadd.f32 1e-06, %v7744_v26  ;;  %v7745_v33 = vmul.f32 0.03125, %v7657_v51 }
 0xc25   : > { %v7660_v41 = vpop.xlane.xlu0 %7659 }
 0xc26   : > { %10853 = vrsqrt.f32 %v7776_v57  ;;  %v7777_v21 = vadd.f32 1e-06, %v7745_v33  ;;  %v7746_v35 = vmul.f32 0.03125, %v7660_v41 }
 0xc27   : > { %v7663_v7 = vpop.xlane.xlu1 %7662 }
 0xc28   : > { %10855 = vrsqrt.f32 %v7777_v21  ;;  %v7778_v34 = vadd.f32 1e-06, %v7746_v35  ;;  %v7747_v56 = vmul.f32 0.03125, %v7663_v7  ;;  %v16933_v7 = vld [vmem:[%s17266_s10] ss:$0 sm:$0xff] }
 0xc29   : > { %v7666_v6 = vpop.xlane.xlu0 %7665 }
 0xc2a   : > { %10857 = vrsqrt.f32 %v7778_v34  ;;  %v7779_v5 = vadd.f32 1e-06, %v7747_v56  ;;  %v7748_v20 = vmul.f32 0.03125, %v7666_v6 }
 0xc2b   : > { %v7669_v31 = vpop.xlane.xlu1 %7668 }
 0xc2c   : > { %v10850_v4 = vpop.eup %10849  ;;  %10859 = vrsqrt.f32 %v7779_v5  ;;  %v7780_v26 = vadd.f32 1e-06, %v7748_v20  ;;  %v7749_v57 = vmul.f32 0.03125, %v7669_v31 }
 0xc2d   : > { %v7838_v41 = vmul.f32 %v10850_v4, %v16708_v61  ;;  %v7672_v42 = vpop.xlane.xlu0 %7671 }
 0xc2e   : > { %v10852_v2 = vpop.eup %10851  ;;  %10861 = vrsqrt.f32 %v7780_v26  ;;  %v7781_v51 = vadd.f32 1e-06, %v7749_v57  ;;  %v7750_v33 = vmul.f32 0.03125, %v7672_v42 }
 0xc2f   : > { %v7839_v56 = vmul.f32 %v10852_v2, %v16719_v52  ;;  %v7675_v34 = vpop.xlane.xlu1 %7674  ;;  %v7876_v21 = vmul.f32 %v16925_v18, %v7838_v41 }
 0xc30   : > { %v10854_v35 = vpop.eup %10853  ;;  %10863 = vrsqrt.f32 %v7781_v51  ;;  %v7782_v6 = vadd.f32 1e-06, %v7750_v33  ;;  %v7751_v5 = vmul.f32 0.03125, %v7675_v34 }
 0xc31   : > { %v7840_v4 = vmul.f32 %v10854_v35, %v16727_v17  ;;  %v7678_v61 = vpop.xlane.xlu0 %7677  ;;  %v7877_v20 = vmul.f32 %v16925_v18, %v7839_v56  ;;  %v7914_v2 = vadd.f32 %v16933_v7, %v7876_v21 }
 0xc32   : > { %v10856_v31 = vpop.eup %10855  ;;  %10865 = vrsqrt.f32 %v7782_v6  ;;  %v7783_v52 = vadd.f32 1e-06, %v7751_v5  ;;  %v7752_v26 = vmul.f32 0.03125, %v7678_v61 }
 0xc33   : > { %v7878_v57 = vmul.f32 %v16925_v18, %v7840_v4  ;;  %v7841_v41 = vmul.f32 %v10856_v31, %v16734_v12  ;;  %v7681_v42 = vpop.xlane.xlu1 %7680  ;;  %v7915_v51 = vadd.f32 %v16933_v7, %v7877_v20 }
 0xc34   : > { %v10858_v33 = vpop.eup %10857  ;;  %10867 = vrsqrt.f32 %v7783_v52  ;;  %v7784_v34 = vadd.f32 1e-06, %v7752_v26  ;;  %v7753_v17 = vmul.f32 0.03125, %v7681_v42 }
 0xc35   : > { %v7879_v35 = vmul.f32 %v16925_v18, %v7841_v41  ;;  %v7842_v56 = vmul.f32 %v10858_v33, %v16741_v22  ;;  %v7684_v6 = vpop.xlane.xlu0 %7683  ;;  %v7946_v5 = vpack.c.bf16 %v7915_v51, %v7914_v2  ;;  %v7916_v12 = vadd.f32 %v16933_v7, %v7878_v57 }
 0xc36   : > { %v10860_v61 = vpop.eup %10859  ;;  %10869 = vrsqrt.f32 %v7784_v34  ;;  %v7785_v4 = vadd.f32 1e-06, %v7753_v17  ;;  %v7754_v38 = vmul.f32 0.03125, %v7684_v6 }
 0xc37   : > { %v7917_v21 = vadd.f32 %v16933_v7, %v7879_v35  ;;  %v7843_v20 = vmul.f32 %v10860_v61, %v16747_v15  ;;  %9859 = vmatprep.mubr.msk.bf16.mxu0 %vm538_vm0, %v7946_v5  ;;  %v7687_v31 = vpop.xlane.xlu1 %7686  ;;  %v7880_v52 = vmul.f32 %v16925_v18, %v7842_v56 }
 0xc38   : > { %v10862_v26 = vpop.eup %10861  ;;  %10871 = vrsqrt.f32 %v7785_v4  ;;  %v7786_v22 = vadd.f32 1e-06, %v7754_v38  ;;  %v7755_v41 = vmul.f32 0.03125, %v7687_v31 }
 0xc39   : > { %v7844_v42 = vmul.f32 %v10862_v26, %v16753_v25  ;;  %v7690_v2 = vpop.xlane.xlu0 %7689  ;;  %v7947_v51 = vpack.c.bf16 %v7917_v21, %v7916_v12  ;;  %v7881_v33 = vmul.f32 %v16925_v18, %v7843_v20  ;;  %v7918_v56 = vadd.f32 %v16933_v7, %v7880_v52 }
 0xc3a   : > { %v10864_v57 = vpop.eup %10863  ;;  %10873 = vrsqrt.f32 %v7786_v22  ;;  %v7787_v34 = vadd.f32 1e-06, %v7755_v41  ;;  %v7756_v17 = vmul.f32 0.03125, %v7690_v2 }
 0xc3b   : > { %v7845_v15 = vmul.f32 %v10864_v57, %v16759_v50  ;;  %9860 = vmatmul.mubr.msk.bf16.vlgmr.msra.gmra.mrb[168].mxu0 %vm538_vm0, %v7947_v51  ;;  %v7693_v35 = vpop.xlane.xlu1 %7692  ;;  %v7919_v38 = vadd.f32 %v16933_v7, %v7881_v33  ;;  %v7882_v6 = vmul.f32 %v16925_v18, %v7844_v42 }
 0xc3c   : > { %v10866_v25 = vpop.eup %10865  ;;  %10875 = vrsqrt.f32 %v7787_v34  ;;  %v7788_v5 = vadd.f32 1e-06, %v7756_v17  ;;  %v7757_v61 = vmul.f32 0.03125, %v7693_v35 }
 0xc3d   : > { %v7846_v4 = vmul.f32 %v10866_v25, %v16765_v48  ;;  %v7948_v12 = vpack.c.bf16 %v7919_v38, %v7918_v56  ;;  %v7883_v21 = vmul.f32 %v16925_v18, %v7845_v15  ;;  %v7920_v52 = vadd.f32 %v16933_v7, %v7882_v6 }
 0xc3e   : > { %v10868_v20 = vpop.eup %10867  ;;  %10877 = vrsqrt.f32 %v7788_v5  ;;  %v7789_v50 = vadd.f32 1e-06, %v7757_v61  ;;  %v10265_v61 = vld [vmem:[%s17269_s13] sm:$0xff]  }
 0xc3f   : > { %v7847_v31 = vmul.f32 %v10868_v20, %v16771_v60  ;;  %9863 = vmatprep.mubr.msk.bf16.mxu0 %vm538_vm0, %v7948_v12  ;;  %v7921_v26 = vadd.f32 %v16933_v7, %v7883_v21  ;;  %v7884_v22 = vmul.f32 %v16925_v18, %v7846_v4  ;;  %9891 = vmatprep.subr.bf16.mxu1 %v10265_v61 }
 0xc40   : > { %v10870_v41 = vpop.eup %10869  ;;  %10879 = vrsqrt.f32 %v7789_v50  ;;  %9892 = vmatpush3.bf16.msra.mxu1 %v10265_v61 }
 0xc41   : > { %v7848_v48 = vmul.f32 %v10870_v41, %v16777_v45  ;;  %v7949_v42 = vpack.c.bf16 %v7921_v26, %v7920_v52  ;;  %v7885_v2 = vmul.f32 %v16925_v18, %v7847_v31  ;;  %v7922_v60 = vadd.f32 %v16933_v7, %v7884_v22 }
 0xc42   : > { %v10872_v51 = vpop.eup %10871 }
 0xc43   : > { %v7849_v33 = vmul.f32 %v10872_v51, %v16783_v36  ;;  %9864 = vmatmul.mubr.msk.bf16.gmra.mrb[172].mxu0 %vm538_vm0, %v7949_v42  ;;  %v7923_v57 = vadd.f32 %v16933_v7, %v7885_v2  ;;  %v7886_v34 = vmul.f32 %v16925_v18, %v7848_v48 }
 0xc44   : > { %v10874_v17 = vpop.eup %10873 }
 0xc45   : > { %v7850_v15 = vmul.f32 %v10874_v17, %v16789_v13  ;;  %v7950_v35 = vpack.c.bf16 %v7923_v57, %v7922_v60  ;;  %v7887_v45 = vmul.f32 %v16925_v18, %v7849_v33  ;;  %v7924_v36 = vadd.f32 %v16933_v7, %v7886_v34  ;;  %v10266_v13 = vld [vmem:[%s17269_s13 + $0x8] sm:$0xff]  }
 0xc46   : > { %v10876_v56 = vpop.eup %10875  ;;  %9893 = vmatprep.subr.bf16.mxu1 %v10266_v13 }
 0xc47   : > { %v7851_v38 = vmul.f32 %v10876_v56, %v16795_v29  ;;  %9867 = vmatprep.mubr.msk.bf16.mxu0 %vm538_vm0, %v7950_v35  ;;  %v7925_v6 = vadd.f32 %v16933_v7, %v7887_v45  ;;  %v7888_v25 = vmul.f32 %v16925_v18, %v7850_v15  ;;  %9894 = vmatpush3.bf16.msra.mxu1 %v10266_v13 }
 0xc48   : > { %v10878_v5 = vpop.eup %10877 }
 0xc49   : > { %v7852_v4 = vmul.f32 %v10878_v5, %v16801_v27  ;;  %v7951_v29 = vpack.c.bf16 %v7925_v6, %v7924_v36  ;;  %v7889_v12 = vmul.f32 %v16925_v18, %v7851_v38  ;;  %v7926_v20 = vadd.f32 %v16933_v7, %v7888_v25  ;;  %v10267_v38 = vld [vmem:[%s17269_s13 + $0x10] sm:$0xff]  }
 0xc4a   : > { %v10880_v21 = vpop.eup %10879  ;;  %9895 = vmatprep.subr.bf16.mxu1 %v10267_v38 }
 0xc4b   : > { %v7853_v50 = vmul.f32 %v10880_v21, %v16807_v63  ;;  %9868 = vmatmul.mubr.msk.bf16.gmra.mrb[176].mxu0 %vm538_vm0, %v7951_v29  ;;  %v7927_v31 = vadd.f32 %v16933_v7, %v7889_v12  ;;  %v7890_v52 = vmul.f32 %v16925_v18, %v7852_v4  ;;  %9896 = vmatpush3.bf16.msra.mxu1 %v10267_v38  ;;  %v10268_v29 = vld [vmem:[%s17269_s13 + $0x18] sm:$0xff]  }
 0xc4c   : > { %9897 = vmatprep.subr.bf16.mxu1 %v10268_v29 }
 0xc4d   : > { %v7952_v26 = vpack.c.bf16 %v7927_v31, %v7926_v20  ;;  %v7891_v27 = vmul.f32 %v16925_v18, %v7853_v50  ;;  %v7928_v22 = vadd.f32 %v16933_v7, %v7890_v52 }
 0xc4f   : > { %9871 = vmatprep.mubr.msk.bf16.mxu0 %vm538_vm0, %v7952_v26  ;;  %v7929_v41 = vadd.f32 %v16933_v7, %v7891_v27  ;;  %9898 = vmatpush3.bf16.msra.mxu1 %v10268_v29 }
 0xc51   : > { %v7953_v48 = vpack.c.bf16 %v7929_v41, %v7928_v22 }
 0xc53   : > { %9872 = vmatmul.mubr.msk.bf16.gmra.mrb[180].mxu0 %vm538_vm0, %v7953_v48  ;;  %v10269_v48 = vld [vmem:[%s17269_s13 + $0x20] sm:$0xff]  }
 0xc54   : > { %9899 = vmatprep.subr.bf16.mxu1 %v10269_v48 }
 0xc55   : > { %9900 = vmatpush3.bf16.msra.mxu1 %v10269_v48 }
 0xc86   : > { %v7696_v63 = vpop.xlane.xlu0 %7695 }
 0xc87   : > { %v7758_v42 = vmul.f32 0.03125, %v7696_v63 }
 0xc88   : > { %v7699_v2 = vpop.xlane.xlu1 %7698 }
 0xc89   : > { %v7790_v51 = vadd.f32 1e-06, %v7758_v42  ;;  %v7759_v33 = vmul.f32 0.03125, %v7699_v2 }
 0xc8a   : > { %v7702_v60 = vpop.xlane.xlu0 %7701 }
 0xc8b   : > { %10881 = vrsqrt.f32 %v7790_v51  ;;  %v7791_v57 = vadd.f32 1e-06, %v7759_v33  ;;  %v7760_v34 = vmul.f32 0.03125, %v7702_v60 }
 0xc8c   : > { %v7705_v17 = vpop.xlane.xlu1 %7704 }
 0xc8d   : > { %10883 = vrsqrt.f32 %v7791_v57  ;;  %v7792_v15 = vadd.f32 1e-06, %v7760_v34  ;;  %v7761_v35 = vmul.f32 0.03125, %v7705_v17  ;;  %v10270_v34 = vld [vmem:[%s17269_s13 + $0x28] sm:$0xff]  }
 0xc8e   : > { %9901 = vmatprep.subr.bf16.mxu1 %v10270_v34 }
 0xc8f   : > { %10885 = vrsqrt.f32 %v7792_v15  ;;  %v7793_v45 = vadd.f32 1e-06, %v7761_v35  ;;  %9902 = vmatpush3.bf16.msra.mxu1 %v10270_v34 }
 0xc91   : > { %10887 = vrsqrt.f32 %v7793_v45 }
 0xc92   : > { %v7708_v56 = vpop.xlane.xlu0 %7707 }
 0xc93   : > { %v7762_v36 = vmul.f32 0.03125, %v7708_v56 }
 0xc94   : > { %v7711_v6 = vpop.xlane.xlu1 %7710 }
 0xc95   : > { %v10882_v25 = vpop.eup %10881  ;;  %v7794_v5 = vadd.f32 1e-06, %v7762_v36  ;;  %v7763_v61 = vmul.f32 0.03125, %v7711_v6 }
 0xc96   : > { %v7854_v13 = vmul.f32 %v10882_v25, %v16827_v46  ;;  %v7714_v4 = vpop.xlane.xlu0 %7713 }
 0xc97   : > { %v10884_v12 = vpop.eup %10883  ;;  %10889 = vrsqrt.f32 %v7794_v5  ;;  %v7795_v21 = vadd.f32 1e-06, %v7763_v61  ;;  %v7764_v20 = vmul.f32 0.03125, %v7714_v4  ;;  %v10271_v5 = vld [vmem:[%s17269_s13 + $0x30] sm:$0xff]  }
 0xc98   : > { %v7855_v50 = vmul.f32 %v10884_v12, %v16830_v14  ;;  %v7717_v31 = vpop.xlane.xlu1 %7716  ;;  %v7892_v52 = vmul.f32 %v16925_v18, %v7854_v13  ;;  %9903 = vmatprep.subr.bf16.mxu1 %v10271_v5 }
 0xc99   : > { %v10886_v26 = vpop.eup %10885  ;;  %10891 = vrsqrt.f32 %v7795_v21  ;;  %v7796_v27 = vadd.f32 1e-06, %v7764_v20  ;;  %v7765_v22 = vmul.f32 0.03125, %v7717_v31  ;;  %9904 = vmatpush3.bf16.msra.mxu1 %v10271_v5 }
 0xc9a   : > { %v7856_v46 = vmul.f32 %v10886_v26, %v16835_v47  ;;  %v7893_v41 = vmul.f32 %v16925_v18, %v7855_v50  ;;  %v7930_v2 = vadd.f32 %v16933_v7, %v7892_v52  ;;  %v10272_v26 = vld [vmem:[%s17269_s13 + $0x38] sm:$0xff]  }
 0xc9b   : > { %v10888_v63 = vpop.eup %10887  ;;  %10893 = vrsqrt.f32 %v7796_v27  ;;  %v7797_v14 = vadd.f32 1e-06, %v7765_v22  ;;  %9905 = vmatprep.subr.bf16.mxu1 %v10272_v26 }
 0xc9c   : > { %v7857_v42 = vmul.f32 %v10888_v63, %v16841_v16  ;;  %v7931_v51 = vadd.f32 %v16933_v7, %v7893_v41  ;;  %v7894_v33 = vmul.f32 %v16925_v18, %v7856_v46 }
 0xc9d   : > { %10895 = vrsqrt.f32 %v7797_v14  ;;  %9906 = vmatpush3.bf16.msra.mxu1 %v10272_v26 }
 0xc9e   : > { %v7720_v47 = vpop.xlane.xlu0 %7719  ;;  %v7954_v60 = vpack.c.bf16 %v7931_v51, %v7930_v2  ;;  %v7895_v57 = vmul.f32 %v16925_v18, %v7857_v42  ;;  %v7932_v15 = vadd.f32 %v16933_v7, %v7894_v33 }
 0xc9f   : > { %v7766_v17 = vmul.f32 0.03125, %v7720_v47 }
 0xca0   : > { %9875 = vmatprep.mubr.msk.bf16.mxu0 %vm538_vm0, %v7954_v60  ;;  %v7723_v16 = vpop.xlane.xlu1 %7722  ;;  %v7933_v35 = vadd.f32 %v16933_v7, %v7895_v57 }
 0xca1   : > { %v10890_v45 = vpop.eup %10889  ;;  %v7798_v56 = vadd.f32 1e-06, %v7766_v17  ;;  %v7767_v38 = vmul.f32 0.03125, %v7723_v16 }
 0xca2   : > { %v7858_v36 = vmul.f32 %v10890_v45, %v16851_v58  ;;  %v7726_v6 = vpop.xlane.xlu0 %7725  ;;  %v7955_v25 = vpack.c.bf16 %v7933_v35, %v7932_v15 }
 0xca3   : > { %v10892_v61 = vpop.eup %10891  ;;  %10897 = vrsqrt.f32 %v7798_v56  ;;  %v7799_v13 = vadd.f32 1e-06, %v7767_v38  ;;  %v7768_v4 = vmul.f32 0.03125, %v7726_v6 }
 0xca4   : > { %v7859_v29 = vmul.f32 %v10892_v61, %v16854_v28  ;;  %9876 = vmatmul.mubr.msk.bf16.gmra.mrb[184].mxu0 %vm538_vm0, %v7955_v25  ;;  %v7729_v12 = vpop.xlane.xlu1 %7728  ;;  %v7896_v21 = vmul.f32 %v16925_v18, %v7858_v36 }
 0xca5   : > { %v10894_v20 = vpop.eup %10893  ;;  %10899 = vrsqrt.f32 %v7799_v13  ;;  %v7800_v58 = vadd.f32 1e-06, %v7768_v4  ;;  %v7769_v50 = vmul.f32 0.03125, %v7729_v12 }
 0xca6   : > { %v7860_v31 = vmul.f32 %v10894_v20, %v16859_v23  ;;  %v7897_v52 = vmul.f32 %v16925_v18, %v7859_v29  ;;  %v7934_v46 = vadd.f32 %v16933_v7, %v7896_v21 }
 0xca7   : > { %v10896_v28 = vpop.eup %10895  ;;  %10901 = vrsqrt.f32 %v7800_v58  ;;  %v7801_v27 = vadd.f32 1e-06, %v7769_v50 }
 0xca8   : > { %v7861_v22 = vmul.f32 %v10896_v28, %v16865_v10  ;;  %v7935_v41 = vadd.f32 %v16933_v7, %v7897_v52  ;;  %v7898_v48 = vmul.f32 %v16925_v18, %v7860_v31 }
 0xca9   : > { %10903 = vrsqrt.f32 %v7801_v27 }
 0xcaa   : > { %v7732_v23 = vpop.xlane.xlu0 %7731  ;;  %v7956_v63 = vpack.c.bf16 %v7935_v41, %v7934_v46  ;;  %v7899_v14 = vmul.f32 %v16925_v18, %v7861_v22  ;;  %v7936_v51 = vadd.f32 %v16933_v7, %v7898_v48 }
 0xcab   : > { %v7770_v42 = vmul.f32 0.03125, %v7732_v23 }
 0xcac   : > { %9879 = vmatprep.mubr.msk.bf16.mxu0 %vm538_vm0, %v7956_v63  ;;  %v7735_v2 = vpop.xlane.xlu1 %7734  ;;  %v7937_v10 = vadd.f32 %v16933_v7, %v7899_v14 }
 0xcad   : > { %v10898_v33 = vpop.eup %10897  ;;  %v7802_v47 = vadd.f32 1e-06, %v7770_v42  ;;  %v7771_v60 = vmul.f32 0.03125, %v7735_v2 }
 0xcae   : > { %v7862_v57 = vmul.f32 %v10898_v33, %v16875_v43  ;;  %v7738_v34 = vpop.xlane.xlu0 %7737  ;;  %v7957_v17 = vpack.c.bf16 %v7937_v10, %v7936_v51 }
 0xcaf   : > { %v10900_v16 = vpop.eup %10899  ;;  %10905 = vrsqrt.f32 %v7802_v47  ;;  %v7803_v15 = vadd.f32 1e-06, %v7771_v60  ;;  %v7772_v35 = vmul.f32 0.03125, %v7738_v34 }
 0xcb0   : > { %v7863_v45 = vmul.f32 %v10900_v16, %v16878_v55  ;;  %9880 = vmatmul.mubr.msk.bf16.gmra.mrb[188].mxu0 %vm538_vm0, %v7957_v17  ;;  %v7741_v56 = vpop.xlane.xlu1 %7740  ;;  %v7900_v38 = vmul.f32 %v16925_v18, %v7862_v57 }
 0xcb1   : > { %v10902_v36 = vpop.eup %10901  ;;  %10907 = vrsqrt.f32 %v7803_v15  ;;  %v7804_v6 = vadd.f32 1e-06, %v7772_v35  ;;  %v7773_v25 = vmul.f32 0.03125, %v7741_v56 }
 0xcb2   : > { %v7864_v5 = vmul.f32 %v10902_v36, %v16883_v59  ;;  %v7901_v43 = vmul.f32 %v16925_v18, %v7863_v45  ;;  %v7938_v55 = vadd.f32 %v16933_v7, %v7900_v38 }
 0xcb3   : > { %v10904_v61 = vpop.eup %10903  ;;  %10909 = vrsqrt.f32 %v7804_v6  ;;  %v7805_v13 = vadd.f32 1e-06, %v7773_v25 }
 0xcb4   : > { %v7865_v4 = vmul.f32 %v10904_v61, %v16889_v19  ;;  %v7939_v29 = vadd.f32 %v16933_v7, %v7901_v43  ;;  %v7902_v12 = vmul.f32 %v16925_v18, %v7864_v5 }
 0xcb5   : > { %10911 = vrsqrt.f32 %v7805_v13 }
 0xcb6   : > { %v7958_v21 = vpack.c.bf16 %v7939_v29, %v7938_v55  ;;  %v7903_v20 = vmul.f32 %v16925_v18, %v7865_v4  ;;  %v7940_v59 = vadd.f32 %v16933_v7, %v7902_v12 }
 0xcb8   : > { %9883 = vmatprep.mubr.msk.bf16.mxu0 %vm538_vm0, %v7958_v21  ;;  %v7941_v58 = vadd.f32 %v16933_v7, %v7903_v20 }
 0xcb9   : > { %v10906_v50 = vpop.eup %10905 }
 0xcba   : > { %v7866_v31 = vmul.f32 %v10906_v50, %v16899_v53  ;;  %v7959_v19 = vpack.c.bf16 %v7941_v58, %v7940_v59 }
 0xcbb   : > { %v10908_v52 = vpop.eup %10907 }
 0xcbc   : > { %v7867_v26 = vmul.f32 %v10908_v52, %v16902_v1  ;;  %9884 = vmatmul.mubr.msk.bf16.gmra.mrb[192].mxu0 %vm538_vm0, %v7959_v19  ;;  %v7904_v28 = vmul.f32 %v16925_v18, %v7866_v31 }
 0xcbd   : > { %v10910_v27 = vpop.eup %10909 }
 0xcbe   : > { %v7868_v22 = vmul.f32 %v10910_v27, %v16907_v62  ;;  %v7905_v46 = vmul.f32 %v16925_v18, %v7867_v26  ;;  %v7942_v23 = vadd.f32 %v16933_v7, %v7904_v28 }
 0xcbf   : > { %v10912_v41 = vpop.eup %10911 }
 0xcc0   : > { %v7869_v48 = vmul.f32 %v10912_v41, %v16913_v30  ;;  %v7943_v53 = vadd.f32 %v16933_v7, %v7905_v46  ;;  %v7906_v63 = vmul.f32 %v16925_v18, %v7868_v22  ;;  %v17071_v30 = vld [vmem:[%s17268_s12] ss:$0 sm:$0xff] }
 0xcc2   : > { %v7960_v14 = vpack.c.bf16 %v7943_v53, %v7942_v23  ;;  %v7907_v1 = vmul.f32 %v16925_v18, %v7869_v48  ;;  %v7944_v42 = vadd.f32 %v16933_v7, %v7906_v63 }
 0xcc4   : > { %9887 = vmatprep.mubr.msk.bf16.mxu0 %vm538_vm0, %v7960_v14  ;;  %v7945_v62 = vadd.f32 %v16933_v7, %v7907_v1 }
 0xcc6   : > { %v7961_v2 = vpack.c.bf16 %v7945_v62, %v7944_v42 }
 0xcc8   : > { %9888 = vmatmul.mubr.msk.bf16.gmra.mrb[196].mxu0 %vm538_vm0, %v7961_v2 }
 0xd0e   : > { %v9861_v51 = vpop.f32.mrb[168].mxu0 }
 0xd0f   : > { %v8076_v10 = vadd.f32 %v9861_v51, %v17071_v30  ;;  %v8067_v33 = vpop.f32.mrb[169].mxu0 }
 0xd10   : > { %v8068_v18 = vadd.f32 %v17071_v30, %v8067_v33  ;;  %v9862_v47 = vpop.f32.mrb[170].mxu0 }
 0xd11   : > { %v8228_v60 = vmul.f32 0.70710677, %v8076_v10  ;;  %v8079_v57 = vadd.f32 %v9862_v47, %v17071_v30  ;;  %v8070_v34 = vpop.f32.mrb[171].mxu0  ;;  %v8196_v19 = vmul.f32 0.5, %v8076_v10 }
 0xd12   : > { %v8226_v7 = vmul.f32 0.70710677, %v8068_v18  ;;  %v8071_v17 = vadd.f32 %v17071_v30, %v8070_v34  ;;  %v8194_v22 = vmul.f32 0.5, %v8068_v18 }
 0xd13   : > { %10913 = verf.f32 %v8228_v60  ;;  %v8229_v16 = vmul.f32 0.70710677, %v8079_v57  ;;  %v8197_v52 = vmul.f32 0.5, %v8079_v57 }
 0xd14   : > { %10915 = verf.f32 %v8226_v7  ;;  %v8227_v15 = vmul.f32 0.70710677, %v8071_v17  ;;  %v8195_v46 = vmul.f32 0.5, %v8071_v17 }
 0xd15   : > { %10917 = verf.f32 %v8229_v16 }
 0xd16   : > { %10919 = verf.f32 %v8227_v15  ;;  %v9865_v35 = vpop.f32.mrb[172].mxu0 }
 0xd17   : > { %v8092_v45 = vadd.f32 %v9865_v35, %v17071_v30  ;;  %v8083_v56 = vpop.f32.mrb[173].mxu0 }
 0xd18   : > { %v8084_v38 = vadd.f32 %v17071_v30, %v8083_v56  ;;  %v9866_v36 = vpop.f32.mrb[174].mxu0 }
 0xd19   : > { %v8232_v6 = vmul.f32 0.70710677, %v8092_v45  ;;  %v8095_v25 = vadd.f32 %v9866_v36, %v17071_v30  ;;  %v8086_v5 = vpop.f32.mrb[175].mxu0  ;;  %v8200_v56 = vmul.f32 0.5, %v8092_v45 }
 0xd1a   : > { %v8230_v43 = vmul.f32 0.70710677, %v8084_v38  ;;  %v8087_v61 = vadd.f32 %v17071_v30, %v8086_v5 }
 0xd1b   : > { %10921 = verf.f32 %v8232_v6  ;;  %v8233_v13 = vmul.f32 0.70710677, %v8095_v25  ;;  %v8201_v36 = vmul.f32 0.5, %v8095_v25 }
 0xd1c   : > { %10923 = verf.f32 %v8230_v43  ;;  %v8231_v4 = vmul.f32 0.70710677, %v8087_v61 }
 0xd1d   : > { %v10914_v55 = vpop.eup %10913  ;;  %10925 = verf.f32 %v8233_v13  ;;  %v8198_v13 = vmul.f32 0.5, %v8084_v38 }
 0xd1e   : > { %v10916_v29 = vpop.eup %10915  ;;  %v8292_v12 = vadd.f32 1.0, %v10914_v55  ;;  %10927 = verf.f32 %v8231_v4  ;;  %v9869_v21 = vpop.f32.mrb[176].mxu0  ;;  %v8199_v4 = vmul.f32 0.5, %v8087_v61 }
 0xd1f   : > { %v10918_v20 = vpop.eup %10917  ;;  %v8290_v59 = vadd.f32 1.0, %v10916_v29  ;;  %v17082_v58 = vadd.f32 %v9869_v21, %v17071_v30  ;;  %v8099_v50 = vpop.f32.mrb[177].mxu0 }
 0xd20   : > { %v10920_v31 = vpop.eup %10919  ;;  %v8293_v26 = vadd.f32 1.0, %v10918_v20  ;;  %v17085_v28 = vadd.f32 %v17071_v30, %v8099_v50  ;;  %v9870_v27 = vpop.f32.mrb[178].mxu0  ;;  %v8324_v53 = vmul.f32 %v8292_v12, %v8196_v19 }
 0xd21   : > { %v8291_v41 = vadd.f32 1.0, %v10920_v31  ;;  %v8236_v48 = vmul.f32 0.70710677, %v17082_v58  ;;  %v8102_v23 = vpop.f32.mrb[179].mxu0  ;;  %v8111_v1 = vadd.f32 %v9870_v27, %v17071_v30  ;;  %v8322_v42 = vmul.f32 %v8290_v59, %v8194_v22 }
 0xd22   : > { %v8325_v63 = vmul.f32 %v8293_v26, %v8197_v52  ;;  %v8234_v14 = vmul.f32 0.70710677, %v17085_v28  ;;  %v8103_v2 = vadd.f32 %v17071_v30, %v8102_v23  ;;  %v8204_v23 = vmul.f32 0.5, %v17082_v58 }
 0xd23   : > { %v8323_v62 = vmul.f32 %v8291_v41, %v8195_v46  ;;  %10929 = verf.f32 %v8236_v48  ;;  %v8237_v10 = vmul.f32 0.70710677, %v8111_v1 }
 0xd24   : > { %v8355_v51 = vpack.c.bf16 %v8325_v63, %v8324_v53  ;;  %10931 = verf.f32 %v8234_v14  ;;  %v8235_v18 = vmul.f32 0.70710677, %v8103_v2  ;;  %v8205_v53 = vmul.f32 0.5, %v8111_v1 }
 0xd25   : > { %v10922_v33 = vpop.eup %10921  ;;  %v8354_v47 = vpack.c.bf16 %v8323_v62, %v8322_v42  ;;  %10933 = verf.f32 %v8237_v10  ;;  %v8202_v14 = vmul.f32 0.5, %v17085_v28  ;;  %v8203_v42 = vmul.f32 0.5, %v8103_v2 }
 0xd26   : > { %v10924_v60 = vpop.eup %10923  ;;  %v8296_v57 = vadd.f32 1.0, %v10922_v33  ;;  %v9873_v34 = vpop.f32.mrb[180].mxu0  ;;  %10935 = verf.f32 %v8235_v18 }
 0xd27   : > { %v10926_v7 = vpop.eup %10925  ;;  %v8294_v17 = vadd.f32 1.0, %v10924_v60  ;;  %v8124_v16 = vadd.f32 %v9873_v34, %v17071_v30  ;;  %v8115_v15 = vpop.f32.mrb[181].mxu0  ;;  %9907 = vmatprep.mubr.bf16.mxu1 %v8354_v47 }
 0xd28   : > { %v10928_v35 = vpop.eup %10927  ;;  %v8297_v6 = vadd.f32 1.0, %v10926_v7  ;;  %v8116_v5 = vadd.f32 %v17071_v30, %v8115_v15  ;;  %v9874_v43 = vpop.f32.mrb[182].mxu0  ;;  %9908 = vmatmul.mubr.bf16.vlgmr.msra.gmra.mrb[152].mxu1 %v8355_v51  ;;  %v8328_v21 = vmul.f32 %v8296_v57, %v8200_v56 }
 0xd29   : > { %v8295_v55 = vadd.f32 1.0, %v10928_v35  ;;  %v8240_v29 = vmul.f32 0.70710677, %v8124_v16  ;;  %v8118_v12 = vpop.f32.mrb[183].mxu0  ;;  %v8127_v50 = vadd.f32 %v9874_v43, %v17071_v30  ;;  %v8326_v31 = vmul.f32 %v8294_v17, %v8198_v13 }
 0xd2a   : > { %v8329_v20 = vmul.f32 %v8297_v6, %v8201_v36  ;;  %v8238_v59 = vmul.f32 0.70710677, %v8116_v5  ;;  %v8119_v45 = vadd.f32 %v17071_v30, %v8118_v12  ;;  %v8208_v58 = vmul.f32 0.5, %v8124_v16 }
 0xd2b   : > { %v8327_v19 = vmul.f32 %v8295_v55, %v8199_v4  ;;  %10937 = verf.f32 %v8240_v29  ;;  %v8241_v25 = vmul.f32 0.70710677, %v8127_v50  ;;  %v8209_v1 = vmul.f32 0.5, %v8127_v50 }
 0xd2c   : > { %10939 = verf.f32 %v8238_v59  ;;  %v8357_v52 = vpack.c.bf16 %v8329_v20, %v8328_v21  ;;  %v8239_v27 = vmul.f32 0.70710677, %v8119_v45  ;;  %v8206_v28 = vmul.f32 0.5, %v8116_v5 }
 0xd2d   : > { %v10930_v26 = vpop.eup %10929  ;;  %v8356_v38 = vpack.c.bf16 %v8327_v19, %v8326_v31  ;;  %10941 = verf.f32 %v8241_v25  ;;  %v8207_v2 = vmul.f32 0.5, %v8119_v45 }
 0xd2e   : > { %v10932_v61 = vpop.eup %10931  ;;  %v8300_v22 = vadd.f32 1.0, %v10930_v26  ;;  %10943 = verf.f32 %v8239_v27 }
 0xd2f   : > { %9911 = vmatprep.mubr.bf16.mxu1 %v8356_v38  ;;  %v10934_v46 = vpop.eup %10933  ;;  %v8298_v41 = vadd.f32 1.0, %v10932_v61 }
 0xd30   : > { %9912 = vmatmul.mubr.bf16.gmra.mrb[156].mxu1 %v8357_v52  ;;  %v10936_v48 = vpop.eup %10935  ;;  %v8301_v63 = vadd.f32 1.0, %v10934_v46  ;;  %v8332_v51 = vmul.f32 %v8300_v22, %v8204_v23 }
 0xd31   : > { %v8299_v62 = vadd.f32 1.0, %v10936_v48  ;;  %v8330_v33 = vmul.f32 %v8298_v41, %v8202_v14 }
 0xd32   : > { %v8333_v10 = vmul.f32 %v8301_v63, %v8205_v53 }
 0xd33   : > { %v8331_v18 = vmul.f32 %v8299_v62, %v8203_v42 }
 0xd34   : > { %v8359_v60 = vpack.c.bf16 %v8333_v10, %v8332_v51 }
 0xd35   : > { %v10938_v47 = vpop.eup %10937  ;;  %v8358_v34 = vpack.c.bf16 %v8331_v18, %v8330_v33 }
 0xd36   : > { %v10940_v57 = vpop.eup %10939  ;;  %v8304_v7 = vadd.f32 1.0, %v10938_v47 }
 0xd37   : > { %v10942_v17 = vpop.eup %10941  ;;  %v8302_v15 = vadd.f32 1.0, %v10940_v57  ;;  %9915 = vmatprep.mubr.bf16.mxu1 %v8358_v34 }
 0xd38   : > { %v10944_v35 = vpop.eup %10943  ;;  %v8305_v56 = vadd.f32 1.0, %v10942_v17  ;;  %9916 = vmatmul.mubr.bf16.gmra.mrb[160].mxu1 %v8359_v60  ;;  %v8336_v6 = vmul.f32 %v8304_v7, %v8208_v58 }
 0xd39   : > { %v8303_v36 = vadd.f32 1.0, %v10944_v35  ;;  %v8334_v13 = vmul.f32 %v8302_v15, %v8206_v28 }
 0xd3a   : > { %v8337_v43 = vmul.f32 %v8305_v56, %v8209_v1 }
 0xd3b   : > { %v8335_v4 = vmul.f32 %v8303_v36, %v8207_v2 }
 0xd3c   : > { %v8361_v55 = vpack.c.bf16 %v8337_v43, %v8336_v6 }
 0xd3d   : > { %v8360_v29 = vpack.c.bf16 %v8335_v4, %v8334_v13 }
 0xd3f   : > { %9919 = vmatprep.mubr.bf16.mxu1 %v8360_v29 }
 0xd40   : > { %9920 = vmatmul.mubr.bf16.gmra.mrb[164].mxu1 %v8361_v55 }
 0xd77   : > { %v9877_v12 = vpop.f32.mrb[184].mxu0 }
 0xd78   : > { %v8140_v21 = vadd.f32 %v9877_v12, %v17071_v30  ;;  %v8131_v20 = vpop.f32.mrb[185].mxu0 }
 0xd79   : > { %v8132_v16 = vadd.f32 %v17071_v30, %v8131_v20  ;;  %v9878_v59 = vpop.f32.mrb[186].mxu0 }
 0xd7a   : > { %v8244_v50 = vmul.f32 0.70710677, %v8140_v21  ;;  %v8143_v5 = vadd.f32 %v9878_v59, %v17071_v30  ;;  %v8134_v31 = vpop.f32.mrb[187].mxu0  ;;  %v8212_v51 = vmul.f32 0.5, %v8140_v21 }
 0xd7b   : > { %v8242_v19 = vmul.f32 0.70710677, %v8132_v16  ;;  %v8135_v45 = vadd.f32 %v17071_v30, %v8134_v31  ;;  %v8210_v47 = vmul.f32 0.5, %v8132_v16 }
 0xd7c   : > { %10945 = verf.f32 %v8244_v50  ;;  %v8245_v25 = vmul.f32 0.70710677, %v8143_v5  ;;  %v8213_v60 = vmul.f32 0.5, %v8143_v5 }
 0xd7d   : > { %10947 = verf.f32 %v8242_v19  ;;  %v8243_v52 = vmul.f32 0.70710677, %v8135_v45  ;;  %v8211_v34 = vmul.f32 0.5, %v8135_v45 }
 0xd7e   : > { %10949 = verf.f32 %v8245_v25 }
 0xd7f   : > { %10951 = verf.f32 %v8243_v52 }
 0xd83   : > { %v9881_v26 = vpop.f32.mrb[188].mxu0 }
 0xd84   : > { %v8156_v27 = vadd.f32 %v9881_v26, %v17071_v30  ;;  %v8147_v38 = vpop.f32.mrb[189].mxu0 }
 0xd85   : > { %v8148_v61 = vadd.f32 %v17071_v30, %v8147_v38  ;;  %v9882_v22 = vpop.f32.mrb[190].mxu0 }
 0xd86   : > { %v10946_v46 = vpop.eup %10945  ;;  %v8248_v41 = vmul.f32 0.70710677, %v8156_v27  ;;  %v8159_v48 = vadd.f32 %v9882_v22, %v17071_v30  ;;  %v8150_v23 = vpop.f32.mrb[191].mxu0  ;;  %v8216_v5 = vmul.f32 0.5, %v8156_v27 }
 0xd87   : > { %v10948_v53 = vpop.eup %10947  ;;  %v8308_v63 = vadd.f32 1.0, %v10946_v46  ;;  %v8246_v14 = vmul.f32 0.70710677, %v8148_v61  ;;  %v8151_v42 = vadd.f32 %v17071_v30, %v8150_v23  ;;  %v8214_v26 = vmul.f32 0.5, %v8148_v61 }
 0xd88   : > { %v10950_v62 = vpop.eup %10949  ;;  %v8306_v10 = vadd.f32 1.0, %v10948_v53  ;;  %10953 = verf.f32 %v8248_v41  ;;  %v8249_v33 = vmul.f32 0.70710677, %v8159_v48  ;;  %v8217_v45 = vmul.f32 0.5, %v8159_v48 }
 0xd89   : > { %v10952_v18 = vpop.eup %10951  ;;  %v8309_v57 = vadd.f32 1.0, %v10950_v62  ;;  %10955 = verf.f32 %v8246_v14  ;;  %v8247_v17 = vmul.f32 0.70710677, %v8151_v42  ;;  %v8340_v15 = vmul.f32 %v8308_v63, %v8212_v51 }
 0xd8a   : > { %v8307_v7 = vadd.f32 1.0, %v10952_v18  ;;  %10957 = verf.f32 %v8249_v33  ;;  %v8338_v58 = vmul.f32 %v8306_v10, %v8210_v47  ;;  %v8215_v41 = vmul.f32 0.5, %v8151_v42 }
 0xd8b   : > { %v8341_v35 = vmul.f32 %v8309_v57, %v8213_v60  ;;  %10959 = verf.f32 %v8247_v17 }
 0xd8c   : > { %v8339_v1 = vmul.f32 %v8307_v7, %v8211_v34 }
 0xd8d   : > { %v8363_v56 = vpack.c.bf16 %v8341_v35, %v8340_v15 }
 0xd8e   : > { %v8362_v28 = vpack.c.bf16 %v8339_v1, %v8338_v58 }
 0xd8f   : > { %v9885_v2 = vpop.f32.mrb[192].mxu0 }
 0xd90   : > { %v8172_v36 = vadd.f32 %v9885_v2, %v17071_v30  ;;  %v8163_v6 = vpop.f32.mrb[193].mxu0  ;;  %9923 = vmatprep.mubr.bf16.mxu1 %v8362_v28 }
 0xd91   : > { %v8164_v43 = vadd.f32 %v17071_v30, %v8163_v6  ;;  %v9886_v13 = vpop.f32.mrb[194].mxu0  ;;  %9924 = vmatmul.mubr.bf16.gmra.mrb[168].mxu1 %v8363_v56 }
 0xd92   : > { %v10954_v4 = vpop.eup %10953  ;;  %v8252_v55 = vmul.f32 0.70710677, %v8172_v36  ;;  %v8175_v29 = vadd.f32 %v9886_v13, %v17071_v30  ;;  %v8166_v12 = vpop.f32.mrb[195].mxu0  ;;  %v8220_v15 = vmul.f32 0.5, %v8172_v36 }
 0xd93   : > { %v10956_v21 = vpop.eup %10955  ;;  %v8312_v20 = vadd.f32 1.0, %v10954_v4  ;;  %v8250_v16 = vmul.f32 0.70710677, %v8164_v43  ;;  %v8167_v59 = vadd.f32 %v17071_v30, %v8166_v12  ;;  %v8218_v2 = vmul.f32 0.5, %v8164_v43 }
 0xd94   : > { %v10958_v50 = vpop.eup %10957  ;;  %10961 = verf.f32 %v8252_v55  ;;  %v8253_v31 = vmul.f32 0.70710677, %v8175_v29  ;;  %v8310_v19 = vadd.f32 1.0, %v10956_v21  ;;  %v8221_v1 = vmul.f32 0.5, %v8175_v29 }
 0xd95   : > { %v8313_v25 = vadd.f32 1.0, %v10958_v50  ;;  %10963 = verf.f32 %v8250_v16  ;;  %v10960_v52 = vpop.eup %10959  ;;  %v8251_v38 = vmul.f32 0.70710677, %v8167_v59  ;;  %v8344_v22 = vmul.f32 %v8312_v20, %v8216_v5 }
 0xd96   : > { %10965 = verf.f32 %v8253_v31  ;;  %v8311_v23 = vadd.f32 1.0, %v10960_v52  ;;  %v8342_v53 = vmul.f32 %v8310_v19, %v8214_v26  ;;  %v8219_v55 = vmul.f32 0.5, %v8167_v59 }
 0xd97   : > { %v8345_v46 = vmul.f32 %v8313_v25, %v8217_v45  ;;  %10967 = verf.f32 %v8251_v38 }
 0xd98   : > { %v8343_v63 = vmul.f32 %v8311_v23, %v8215_v41 }
 0xd99   : > { %v8365_v14 = vpack.c.bf16 %v8345_v46, %v8344_v22 }
 0xd9a   : > { %v8364_v27 = vpack.c.bf16 %v8343_v63, %v8342_v53  ;;  %v17116_v63 = vld [vmem:[%s17270_s14] ss:$0 sm:$0xff] }
 0xd9b   : > { %v9889_v62 = vpop.f32.mrb[196].mxu0 }
 0xd9c   : > { %v8188_v51 = vadd.f32 %v9889_v62, %v17071_v30  ;;  %v8179_v10 = vpop.f32.mrb[197].mxu0  ;;  %9927 = vmatprep.mubr.bf16.mxu1 %v8364_v27 }
 0xd9d   : > { %v8180_v48 = vadd.f32 %v17071_v30, %v8179_v10  ;;  %v9890_v33 = vpop.f32.mrb[198].mxu0  ;;  %9928 = vmatmul.mubr.bf16.gmra.mrb[172].mxu1 %v8365_v14 }
 0xd9e   : > { %v10962_v61 = vpop.eup %10961  ;;  %v8256_v18 = vmul.f32 0.70710677, %v8188_v51  ;;  %v8191_v47 = vadd.f32 %v9890_v33, %v17071_v30  ;;  %v8182_v42 = vpop.f32.mrb[199].mxu0  ;;  %v8224_v31 = vmul.f32 0.5, %v8188_v51 }
 0xd9f   : > { %v10964_v60 = vpop.eup %10963  ;;  %v8316_v57 = vadd.f32 1.0, %v10962_v61  ;;  %v8254_v34 = vmul.f32 0.70710677, %v8180_v48  ;;  %v8183_v7 = vadd.f32 %v17071_v30, %v8182_v42  ;;  %v8222_v52 = vmul.f32 0.5, %v8180_v48 }
 0xda0   : > { %v10966_v17 = vpop.eup %10965  ;;  %10969 = verf.f32 %v8256_v18  ;;  %v8257_v35 = vmul.f32 0.70710677, %v8191_v47  ;;  %v8314_v58 = vadd.f32 1.0, %v10964_v60  ;;  %v8225_v43 = vmul.f32 0.5, %v8191_v47 }
 0xda1   : > { %v8317_v56 = vadd.f32 1.0, %v10966_v17  ;;  %10971 = verf.f32 %v8254_v34  ;;  %v10968_v28 = vpop.eup %10967  ;;  %v8255_v6 = vmul.f32 0.70710677, %v8183_v7  ;;  %v8348_v13 = vmul.f32 %v8316_v57, %v8220_v15 }
 0xda2   : > { %10973 = verf.f32 %v8257_v35  ;;  %v8315_v12 = vadd.f32 1.0, %v10968_v28  ;;  %v8346_v21 = vmul.f32 %v8314_v58, %v8218_v2  ;;  %v8223_v38 = vmul.f32 0.5, %v8183_v7 }
 0xda3   : > { %v8349_v4 = vmul.f32 %v8317_v56, %v8221_v1  ;;  %10975 = verf.f32 %v8255_v6 }
 0xda4   : > { %v8347_v20 = vmul.f32 %v8315_v12, %v8219_v55 }
 0xda5   : > { %v8367_v30 = vpack.c.bf16 %v8349_v4, %v8348_v13 }
 0xda6   : > { %v8366_v16 = vpack.c.bf16 %v8347_v20, %v8346_v21 }
 0xda8   : > { %9931 = vmatprep.mubr.bf16.mxu1 %v8366_v16 }
 0xda9   : > { %9932 = vmatmul.mubr.bf16.gmra.mrb[176].mxu1 %v8367_v30 }
 0xdaa   : > { %v10970_v36 = vpop.eup %10969 }
 0xdab   : > { %v10972_v50 = vpop.eup %10971  ;;  %v8320_v29 = vadd.f32 1.0, %v10970_v36 }
 0xdac   : > { %v10974_v5 = vpop.eup %10973  ;;  %v8318_v19 = vadd.f32 1.0, %v10972_v50  ;;  %v18599_v50 = vld [vmem:[#allocation163_spill] sm:$0xff] }
 0xdad   : > { %v8321_v45 = vadd.f32 1.0, %v10974_v5  ;;  %v10976_v25 = vpop.eup %10975  ;;  %v8352_v59 = vmul.f32 %v8320_v29, %v8224_v31  ;;  %v18600_v5 = vld [vmem:[#allocation158_spill] sm:$0xff] }
 0xdae   : > { %v8319_v22 = vadd.f32 1.0, %v10976_v25  ;;  %v8350_v46 = vmul.f32 %v8318_v19, %v8222_v52  ;;  %v18601_v19 = vld [vmem:[#allocation150_spill] sm:$0xff] }
 0xdaf   : > { %v8353_v26 = vmul.f32 %v8321_v45, %v8225_v43 }
 0xdb0   : > { %v8351_v41 = vmul.f32 %v8319_v22, %v8223_v38 }
 0xdb1   : > { %v8369_v23 = vpack.c.bf16 %v8353_v26, %v8352_v59  ;;  %v18602_v26 = vld [vmem:[#allocation162_spill] sm:$0xff] }
 0xdb2   : > { %v8368_v53 = vpack.c.bf16 %v8351_v41, %v8350_v46  ;;  %v18603_v41 = vld [vmem:[#allocation15_spill] sm:$0xff] }
 0xdb4   : > { %9935 = vmatprep.mubr.bf16.mxu1 %v8368_v53 }
 0xdb5   : > { %9936 = vmatmul.mubr.bf16.gmra.mrb[180].mxu1 %v8369_v23 }
 0xdfb   : > { %v9909_v14 = vpop.f32.mrb[152].mxu1 }
 0xdfc   : > { %v8484_v62 = vadd.f32 %v9909_v14, %v17116_v63  ;;  %v8475_v27 = vpop.f32.mrb[153].mxu1  ;;  %v18604_v14 = vld [vmem:[#allocation127_spill] sm:$0xff] }
 0xdfd   : > { %v8476_v51 = vadd.f32 %v17116_v63, %v8475_v27  ;;  %v9910_v10 = vpop.f32.mrb[154].mxu1  ;;  %v18605_v27 = vld [vmem:[#allocation174_spill] sm:$0xff] }
 0xdfe   : > { %v8604_v48 = vadd.f32 %v8484_v62, %v16476_v39  ;;  %v8487_v33 = vadd.f32 %v9910_v10, %v17116_v63  ;;  %v8478_v61 = vpop.f32.mrb[155].mxu1 }
 0xdff   : > { %v8602_v18 = vadd.f32 %v8476_v51, %v16464_v37  ;;  %v8479_v47 = vadd.f32 %v17116_v63, %v8478_v61 }
 0xe00   : > { %8636 = vst.msk [vmem:[%s17124_s29 + $0x10] sm:$0xff] %vm538_vm0, %v8604_v48  ;;  %v8605_v42 = vadd.f32 %v8487_v33, %v16468_v11 }
 0xe01   : > { %8634 = vst.msk [vmem:[%s17124_s29] sm:$0xff] %vm538_vm0, %v8602_v18  ;;  %v8603_v60 = vadd.f32 %v8479_v47, %v16471_v40  ;;  %v18606_v47 = vld [vmem:[#allocation34_spill] sm:$0xff] }
 0xe02   : > { %8637 = vst.msk [vmem:[%s17124_s29 + $0x18] sm:$0xff] %vm538_vm0, %v8605_v42 }
 0xe03   : > { %8635 = vst.msk [vmem:[%s17124_s29 + $0x8] sm:$0xff] %vm538_vm0, %v8603_v60  ;;  %v9913_v39 = vpop.f32.mrb[156].mxu1 }
 0xe04   : > { %v8500_v37 = vadd.f32 %v9913_v39, %v17116_v63  ;;  %v8491_v57 = vpop.f32.mrb[157].mxu1 }
 0xe05   : > { %v8492_v34 = vadd.f32 %v17116_v63, %v8491_v57  ;;  %v9914_v7 = vpop.f32.mrb[158].mxu1 }
 0xe06   : > { %v8608_v11 = vadd.f32 %v8500_v37, %v16510_v44  ;;  %v8503_v17 = vadd.f32 %v9914_v7, %v17116_v63  ;;  %v8494_v15 = vpop.f32.mrb[159].mxu1  ;;  %v18607_v37 = vld [vmem:[#allocation58_spill] sm:$0xff]  ;;  %v18608_v7 = vld [vmem:[#allocation128_spill] sm:$0xff] }
 0xe07   : > { %v8606_v40 = vadd.f32 %v8492_v34, %v16504_v54  ;;  %v8495_v35 = vadd.f32 %v17116_v63, %v8494_v15 }
 0xe08   : > { %8640 = vst.msk [vmem:[%s17124_s29 + $0x30] sm:$0xff] %vm538_vm0, %v8608_v11  ;;  %v8609_v58 = vadd.f32 %v8503_v17, %v16513_v8  ;;  %v18609_v17 = vld [vmem:[#allocation83_spill] sm:$0xff] }
 0xe09   : > { %8638 = vst.msk [vmem:[%s17124_s29 + $0x20] sm:$0xff] %vm538_vm0, %v8606_v40  ;;  %v8607_v1 = vadd.f32 %v8495_v35, %v16516_v49 }
 0xe0a   : > { %8641 = vst.msk [vmem:[%s17124_s29 + $0x38] sm:$0xff] %vm538_vm0, %v8609_v58 }
 0xe0b   : > { %8639 = vst.msk [vmem:[%s17124_s29 + $0x28] sm:$0xff] %vm538_vm0, %v8607_v1  ;;  %v9917_v44 = vpop.f32.mrb[160].mxu1 }
 0xe0c   : > { %v8516_v54 = vadd.f32 %v9917_v44, %v17116_v63  ;;  %v8507_v56 = vpop.f32.mrb[161].mxu1 }
 0xe0d   : > { %v8508_v28 = vadd.f32 %v17116_v63, %v8507_v56  ;;  %v9918_v2 = vpop.f32.mrb[162].mxu1 }
 0xe0e   : > { %v8612_v8 = vadd.f32 %v8516_v54, %v16588_v0  ;;  %v8519_v6 = vadd.f32 %v9918_v2, %v17116_v63  ;;  %v8510_v13 = vpop.f32.mrb[163].mxu1  ;;  %v18610_v54 = vld [vmem:[#allocation188_spill] sm:$0xff] }
 0xe0f   : > { %v8610_v49 = vadd.f32 %v8508_v28, %v16583_v24  ;;  %v8511_v4 = vadd.f32 %v17116_v63, %v8510_v13 }
 0xe10   : > { %8644 = vst.msk [vmem:[%s17124_s29 + $0x50] sm:$0xff] %vm538_vm0, %v8612_v8  ;;  %v8613_v55 = vadd.f32 %v8519_v6, %v16596_v32  ;;  %v18611_v8 = vld [vmem:[#allocation156_spill] sm:$0xff] }
 0xe11   : > { %8642 = vst.msk [vmem:[%s17124_s29 + $0x40] sm:$0xff] %vm538_vm0, %v8610_v49  ;;  %v8611_v12 = vadd.f32 %v8511_v4, %v16591_v3  ;;  %v18612_v49 = vld [vmem:[#allocation170_spill] sm:$0xff] }
 0xe12   : > { %8645 = vst.msk [vmem:[%s17124_s29 + $0x58] sm:$0xff] %vm538_vm0, %v8613_v55  ;;  %v18613_v55 = vld [vmem:[#allocation76_spill] sm:$0xff] }
 0xe13   : > { %8643 = vst.msk [vmem:[%s17124_s29 + $0x48] sm:$0xff] %vm538_vm0, %v8611_v12  ;;  %v9921_v0 = vpop.f32.mrb[164].mxu1 }
 0xe14   : > { %v8532_v24 = vadd.f32 %v9921_v0, %v17116_v63  ;;  %v8523_v21 = vpop.f32.mrb[165].mxu1 }
 0xe15   : > { %v8524_v20 = vadd.f32 %v17116_v63, %v8523_v21  ;;  %v9922_v30 = vpop.f32.mrb[166].mxu1 }
 0xe16   : > { %v8616_v32 = vadd.f32 %v8532_v24, %v16612_v9  ;;  %v8535_v16 = vadd.f32 %v9922_v30, %v17116_v63  ;;  %v8526_v36 = vpop.f32.mrb[167].mxu1 }
 0xe17   : > { %v8614_v3 = vadd.f32 %v8524_v20, %v18599_v50  ;;  %v8527_v29 = vadd.f32 %v17116_v63, %v8526_v36 }
 0xe18   : > { %8648 = vst.msk [vmem:[%s17124_s29 + $0x70] sm:$0xff] %vm538_vm0, %v8616_v32  ;;  %v8617_v31 = vadd.f32 %v8535_v16, %v18600_v5  ;;  %v18614_v32 = vld [vmem:[#allocation186_spill] sm:$0xff] }
 0xe19   : > { %8646 = vst.msk [vmem:[%s17124_s29 + $0x60] sm:$0xff] %vm538_vm0, %v8614_v3  ;;  %v8615_v43 = vadd.f32 %v8527_v29, %v18601_v19  ;;  %v18615_v3 = vld [vmem:[#allocation95_spill] sm:$0xff] }
 0xe1a   : > { %8649 = vst.msk [vmem:[%s17124_s29 + $0x78] sm:$0xff] %vm538_vm0, %v8617_v31  ;;  %v18616_v31 = vld [vmem:[#allocation26_spill] sm:$0xff] }
 0xe1b   : > { %8647 = vst.msk [vmem:[%s17124_s29 + $0x68] sm:$0xff] %vm538_vm0, %v8615_v43  ;;  %v18617_v43 = vld [vmem:[#allocation183_spill] sm:$0xff] }
 0xe64   : > { %v9925_v9 = vpop.f32.mrb[168].mxu1 }
 0xe65   : > { %v8548_v45 = vadd.f32 %v9925_v9, %v17116_v63  ;;  %v8539_v25 = vpop.f32.mrb[169].mxu1 }
 0xe66   : > { %v8540_v52 = vadd.f32 %v17116_v63, %v8539_v25  ;;  %v9926_v59 = vpop.f32.mrb[170].mxu1 }
 0xe67   : > { %v8620_v38 = vadd.f32 %v8548_v45, %v18602_v26  ;;  %v8551_v22 = vadd.f32 %v9926_v59, %v17116_v63  ;;  %v8542_v46 = vpop.f32.mrb[171].mxu1 }
 0xe68   : > { %v8618_v23 = vadd.f32 %v8540_v52, %v18603_v41  ;;  %v8543_v53 = vadd.f32 %v17116_v63, %v8542_v46 }
 0xe69   : > { %8652 = vst.msk [vmem:[%s17124_s29 + $0x90] sm:$0xff] %vm538_vm0, %v8620_v38  ;;  %v8621_v62 = vadd.f32 %v8551_v22, %v18604_v14 }
 0xe6a   : > { %8650 = vst.msk [vmem:[%s17124_s29 + $0x80] sm:$0xff] %vm538_vm0, %v8618_v23  ;;  %v8619_v51 = vadd.f32 %v8543_v53, %v18605_v27 }
 0xe6b   : > { %8653 = vst.msk [vmem:[%s17124_s29 + $0x98] sm:$0xff] %vm538_vm0, %v8621_v62 }
 0xe6c   : > { %8651 = vst.msk [vmem:[%s17124_s29 + $0x88] sm:$0xff] %vm538_vm0, %v8619_v51 }
 0xe70   : > { %v9929_v10 = vpop.f32.mrb[172].mxu1 }
 0xe71   : > { %v8564_v48 = vadd.f32 %v9929_v10, %v17116_v63  ;;  %v8555_v33 = vpop.f32.mrb[173].mxu1 }
 0xe72   : > { %v8556_v61 = vadd.f32 %v17116_v63, %v8555_v33  ;;  %v9930_v18 = vpop.f32.mrb[174].mxu1 }
 0xe73   : > { %v8624_v42 = vadd.f32 %v8564_v48, %v18606_v47  ;;  %v8567_v60 = vadd.f32 %v9930_v18, %v17116_v63  ;;  %v8558_v39 = vpop.f32.mrb[175].mxu1 }
 0xe74   : > { %v8622_v57 = vadd.f32 %v8556_v61, %v18607_v37  ;;  %v8559_v34 = vadd.f32 %v17116_v63, %v8558_v39 }
 0xe75   : > { %8656 = vst.msk [vmem:[%s17124_s29 + $0xb0] sm:$0xff] %vm538_vm0, %v8624_v42  ;;  %v8625_v11 = vadd.f32 %v8567_v60, %v18608_v7 }
 0xe76   : > { %8654 = vst.msk [vmem:[%s17124_s29 + $0xa0] sm:$0xff] %vm538_vm0, %v8622_v57  ;;  %v8623_v15 = vadd.f32 %v8559_v34, %v18609_v17 }
 0xe77   : > { %8657 = vst.msk [vmem:[%s17124_s29 + $0xb8] sm:$0xff] %vm538_vm0, %v8625_v11 }
 0xe78   : > { %8655 = vst.msk [vmem:[%s17124_s29 + $0xa8] sm:$0xff] %vm538_vm0, %v8623_v15 }
 0xe7c   : > { %v9933_v40 = vpop.f32.mrb[176].mxu1 }
 0xe7d   : > { %v8580_v35 = vadd.f32 %v9933_v40, %v17116_v63  ;;  %v8571_v58 = vpop.f32.mrb[177].mxu1 }
 0xe7e   : > { %v8572_v1 = vadd.f32 %v17116_v63, %v8571_v58  ;;  %v9934_v44 = vpop.f32.mrb[178].mxu1 }
 0xe7f   : > { %v8628_v56 = vadd.f32 %v8580_v35, %v18610_v54  ;;  %v8583_v28 = vadd.f32 %v9934_v44, %v17116_v63  ;;  %v8574_v2 = vpop.f32.mrb[179].mxu1 }
 0xe80   : > { %v8626_v6 = vadd.f32 %v8572_v1, %v18611_v8  ;;  %v8575_v13 = vadd.f32 %v17116_v63, %v8574_v2 }
 0xe81   : > { %8660 = vst.msk [vmem:[%s17124_s29 + $0xd0] sm:$0xff] %vm538_vm0, %v8628_v56  ;;  %v8629_v4 = vadd.f32 %v8583_v28, %v18612_v49 }
 0xe82   : > { %8658 = vst.msk [vmem:[%s17124_s29 + $0xc0] sm:$0xff] %vm538_vm0, %v8626_v6  ;;  %v8627_v12 = vadd.f32 %v8575_v13, %v18613_v55 }
 0xe83   : > { %8661 = vst.msk [vmem:[%s17124_s29 + $0xd8] sm:$0xff] %vm538_vm0, %v8629_v4 }
 0xe84   : > { %8659 = vst.msk [vmem:[%s17124_s29 + $0xc8] sm:$0xff] %vm538_vm0, %v8627_v12 }
 0xe88   : > { %v9937_v0 = vpop.f32.mrb[180].mxu1 }
 0xe89   : > { %v8596_v24 = vadd.f32 %v9937_v0, %v17116_v63  ;;  %v8587_v21 = vpop.f32.mrb[181].mxu1 }
 0xe8a   : > { %v8588_v20 = vadd.f32 %v17116_v63, %v8587_v21  ;;  %v9938_v30 = vpop.f32.mrb[182].mxu1 }
 0xe8b   : > { %v8632_v16 = vadd.f32 %v8596_v24, %v18614_v32  ;;  %v8599_v36 = vadd.f32 %v9938_v30, %v17116_v63  ;;  %v8590_v50 = vpop.f32.mrb[183].mxu1 }
 0xe8c   : > { %v8630_v29 = vadd.f32 %v8588_v20, %v18615_v3  ;;  %v8591_v5 = vadd.f32 %v17116_v63, %v8590_v50 }
 0xe8d   : > { %8664 = vst.msk [vmem:[%s17124_s29 + $0xf0] sm:$0xff] %vm538_vm0, %v8632_v16  ;;  %v8633_v19 = vadd.f32 %v8599_v36, %v18616_v31 }
 0xe8e   : > { %8662 = vst.msk [vmem:[%s17124_s29 + $0xe0] sm:$0xff] %vm538_vm0, %v8630_v29  ;;  %v8631_v9 = vadd.f32 %v8591_v5, %v18617_v43 }
 0xe8f   : > { %8665 = vst.msk [vmem:[%s17124_s29 + $0xf8] sm:$0xff] %vm538_vm0, %v8633_v19 }
 0xe90   : > { %8663 = vst.msk [vmem:[%s17124_s29 + $0xe8] sm:$0xff] %vm538_vm0, %v8631_v9 }
 0xe91 PF: > { %s25_s18 = sadd.s32 1, %s11055_s18  }
 0xe92   : > { %p22_p4 = scmp.ge.s32.totalorder %s25_s18, 4  }
 0xe94   :  { %24 = sbr.rel (!%p22_p4) target bundleno = 1 (0x1), region = 110 }

</bundles_post_ra>
